<compile_context>
chip_gen: v6e
topology: v6e:2x2x1
jax: 0.10.0
libtpu: 0.0.40
codegen_flags: <defaults>
</compile_context>

<pallas_src>
import jax
import jax.numpy as jnp
from jax import lax
from jax.experimental import pallas as pl
from jax.experimental.pallas import tpu as pltpu


# ----------------------------- Pallas kernel --------------------------------

def _head_kernel(xcol_ref, w1_ref, s1_ref, b1_ref,
                 w2_ref, s2_ref, b2_ref, w3_ref, b3_ref,
                 o_ref, h1pad_ref, im2_ref):
    """Fused HeatmapHead forward for one batch element.

    xcol_ref:  (1, H*W, K1)      bf16  im2col of the input, K1 = 128 (padded)
    w1_ref:    (K1, C1)          bf16  conv1 weights, rows padded to K1
    s1_ref:    (1, C1)           f32   folded BN1 scale
    b1_ref:    (1, C1)           f32   folded BN1 bias (absorbs conv1 bias)
    w2_ref:    (9*C1, C1)        bf16  conv2 weights, tap-major rows
    s2_ref:    (1, C1)           f32   folded BN2 scale
    b2_ref:    (1, C1)           f32   folded BN2 bias (absorbs conv2 bias)
    w3_ref:    (C1, Lp)          bf16  1x1 conv weights, Lp = 128 (zero padded)
    b3_ref:    (1, Lp)           f32   1x1 conv bias (zero padded)
    o_ref:     (1, H*W, Lp)      f32   lane-dense output slab
    h1pad_ref: (H+2, W+2, C1)    bf16  VMEM scratch: padded layer-1 output
    im2_ref:   (H*W, 9*C1)       bf16  VMEM scratch: layer-2 im2col
    """
    Hp2, Wp2, C1 = h1pad_ref.shape
    H, W = Hp2 - 2, Wp2 - 2
    HW = H * W

    # ---- layer 1: one im2col matmul (K padded to 128) + BN + ReLU ----------
    y1 = jnp.dot(xcol_ref[0], w1_ref[...], preferred_element_type=jnp.float32)
    y1 = jnp.maximum(y1 * s1_ref[0] + b1_ref[0], 0.0)

    # In-kernel zero padding of the intermediate (stays in VMEM).
    h1pad_ref[...] = jnp.zeros(h1pad_ref.shape, h1pad_ref.dtype)
    h1pad_ref[1:H + 1, 1:W + 1, :] = (
        y1.reshape(H, W, C1).astype(h1pad_ref.dtype))

    # ---- layer 2: in-kernel im2col -> single K = 9*C1 matmul + BN + ReLU ---
    # Column bands are multiples of 256 lanes -> lane-aligned, unmasked stores.
    k = 0
    for dy in range(3):
        for dx in range(3):
            im2_ref[:, k * C1:(k + 1) * C1] = (
                h1pad_ref[dy:dy + H, dx:dx + W, :].reshape(HW, C1))
            k += 1
    y2 = jnp.dot(im2_ref[...], w2_ref[...], preferred_element_type=jnp.float32)
    y2 = jnp.maximum(y2 * s2_ref[0] + b2_ref[0], 0.0).astype(jnp.bfloat16)

    # ---- layer 3: 1x1 conv, lane-dense 128-wide padded output --------------
    y3 = jnp.dot(y2, w3_ref[...], preferred_element_type=jnp.float32)
    o_ref[0] = (y3 + b3_ref[0]).astype(o_ref.dtype)


# ------------------------------- wrapper -------------------------------------

def _fold_bn(conv_bias, gamma, beta, mean, var, eps=1e-5):
    scale = gamma / jnp.sqrt(var + eps)
    bias = beta + scale * (conv_bias - mean)
    return scale, bias


def heatmap_head(x_nchw, params):
    """Full HeatmapHead forward. x_nchw: (N, Cin, H, W) -> (N, L, H, W)."""
    N, Cin, H, W = x_nchw.shape
    C1 = params["w1"].shape[-1]          # 256
    L = params["w3"].shape[-1]           # num_landmarks
    K1 = 128                              # lane-dense padded K for conv1
    Lp = 128                              # lane-dense padded output channels
    HW = H * W

    # NCHW -> NHWC
    x = jnp.transpose(x_nchw, (0, 2, 3, 1))

    # Tiny wrapper-side im2col of the raw (Cin=4) input; padded to K1 lanes.
    xp = jnp.pad(x, ((0, 0), (1, 1), (1, 1), (0, 0)))
    cols = [xp[:, dy:dy + H, dx:dx + W, :]
            for dy in range(3) for dx in range(3)]
    xcol = jnp.concatenate(cols, axis=-1).reshape(N, HW, 9 * Cin)
    xcol = jnp.pad(xcol, ((0, 0), (0, 0), (0, K1 - 9 * Cin)))
    xcol = xcol.astype(jnp.bfloat16)

    # Weights: bf16 for the MXU; BN folded into fp32 scale/bias.
    w1f = params["w1"].reshape(9 * Cin, C1)
    w1f = jnp.pad(w1f, ((0, K1 - 9 * Cin), (0, 0))).astype(jnp.bfloat16)
    s1, b1 = _fold_bn(params["b1"], params["g1"], params["beta1"],
                      params["m1"], params["v1"])
    w2f = params["w2"].reshape(9 * C1, C1).astype(jnp.bfloat16)
    s2, b2 = _fold_bn(params["b2"], params["g2"], params["beta2"],
                      params["m2"], params["v2"])
    w3p = jnp.pad(params["w3"], ((0, 0), (0, Lp - L))).astype(jnp.bfloat16)
    b3p = jnp.pad(params["b3"], (0, Lp - L)).reshape(1, Lp)

    s1 = s1.reshape(1, C1)
    b1 = b1.reshape(1, C1)
    s2 = s2.reshape(1, C1)
    b2 = b2.reshape(1, C1)

    out = pl.pallas_call(
        _head_kernel,
        out_shape=jax.ShapeDtypeStruct((N, HW, Lp), jnp.float32),
        grid=(N,),
        in_specs=[
            pl.BlockSpec((1, HW, K1), lambda n: (n, 0, 0)),
            pl.BlockSpec((K1, C1), lambda n: (0, 0)),
            pl.BlockSpec((1, C1), lambda n: (0, 0)),
            pl.BlockSpec((1, C1), lambda n: (0, 0)),
            pl.BlockSpec((9 * C1, C1), lambda n: (0, 0)),
            pl.BlockSpec((1, C1), lambda n: (0, 0)),
            pl.BlockSpec((1, C1), lambda n: (0, 0)),
            pl.BlockSpec((C1, Lp), lambda n: (0, 0)),
            pl.BlockSpec((1, Lp), lambda n: (0, 0)),
        ],
        out_specs=pl.BlockSpec((1, HW, Lp), lambda n: (n, 0, 0)),
        scratch_shapes=[
            pltpu.VMEM((H + 2, W + 2, C1), jnp.bfloat16),
            pltpu.VMEM((HW, 9 * C1), jnp.bfloat16),
        ],
        compiler_params=pltpu.CompilerParams(
            dimension_semantics=("parallel",)),
    )(xcol, w1f, s1, b1, w2f, s2, b2, w3p, b3p)

    out = out[:, :, :L].reshape(N, H, W, L)
    return jnp.transpose(out, (0, 3, 1, 2))     # NHWC -> NCHW


# --------------------------- pure-JAX reference -----------------------------

def ref_forward(x_nchw, params, eps=1e-5):
    x = jnp.transpose(x_nchw, (0, 2, 3, 1))
    dn = ("NHWC", "HWIO", "NHWC")

    y = lax.conv_general_dilated(x, params["w1"], (1, 1), "SAME",
                                 dimension_numbers=dn) + params["b1"]
    y = (y - params["m1"]) / jnp.sqrt(params["v1"] + eps) * params["g1"] \
        + params["beta1"]
    y = jnp.maximum(y, 0.0)

    y = lax.conv_general_dilated(y, params["w2"], (1, 1), "SAME",
                                 dimension_numbers=dn) + params["b2"]
    y = (y - params["m2"]) / jnp.sqrt(params["v2"] + eps) * params["g2"] \
        + params["beta2"]
    y = jnp.maximum(y, 0.0)

    y = lax.conv_general_dilated(y, params["w3"][None, None], (1, 1), "SAME",
                                 dimension_numbers=dn) + params["b3"]
    return jnp.transpose(y, (0, 3, 1, 2))


# --------------------------------- main -------------------------------------

if __name__ == "__main__":
    N, Cin, H, W = 2, 4, 16, 16
    HID = 256          # fixed by the module
    L = 8              # num_landmarks

    key = jax.random.PRNGKey(0)
    ks = jax.random.split(key, 16)

    # Deterministic synthetic parameters (shapes from nn.Conv2d / nn.BatchNorm2d),
    # stored directly in HWIO / (Cin, Cout) layouts used by the kernels.
    params = {
        "w1": 0.1 * jax.random.normal(ks[0], (3, 3, Cin, HID), jnp.float32),
        "b1": 0.05 * jax.random.normal(ks[1], (HID,), jnp.float32),
        "g1": 1.0 + 0.05 * jax.random.normal(ks[2], (HID,), jnp.float32),
        "beta1": 0.05 * jax.random.normal(ks[3], (HID,), jnp.float32),
        "m1": 0.05 * jax.random.normal(ks[4], (HID,), jnp.float32),
        "v1": 1.0 + 0.1 * jnp.abs(jax.random.normal(ks[5], (HID,), jnp.float32)),

        "w2": 0.02 * jax.random.normal(ks[6], (3, 3, HID, HID), jnp.float32),
        "b2": 0.05 * jax.random.normal(ks[7], (HID,), jnp.float32),
        "g2": 1.0 + 0.05 * jax.random.normal(ks[8], (HID,), jnp.float32),
        "beta2": 0.05 * jax.random.normal(ks[9], (HID,), jnp.float32),
        "m2": 0.05 * jax.random.normal(ks[10], (HID,), jnp.float32),
        "v2": 1.0 + 0.1 * jnp.abs(jax.random.normal(ks[11], (HID,), jnp.float32)),

        "w3": 0.05 * jax.random.normal(ks[12], (HID, L), jnp.float32),
        "b3": 0.05 * jax.random.normal(ks[13], (L,), jnp.float32),
    }

    x = jax.random.normal(ks[14], (N, Cin, H, W), jnp.float32)

    out = jax.jit(heatmap_head)(x, params)
    out = jax.block_until_ready(out)

    ref = jax.block_until_ready(ref_forward(x, params))

    assert out.shape == (N, L, H, W), out.shape
    # Tolerance sized for bf16 MXU inputs with fp32 accumulation (fp32 reference).
    assert jnp.allclose(out, ref, atol=5e-2, rtol=5e-2), (
        float(jnp.max(jnp.abs(out - ref))))

    print("KERNEL_OK")
</pallas_src>

<mosaic_0001>
module attributes {stable_mosaic.version = 11 : i64} {
  func.func @_head_kernel(%arg0: i32, %arg1: memref<1x256x128xbf16, #tpu.memory_space<vmem>>, %arg2: memref<128x256xbf16, #tpu.memory_space<vmem>>, %arg3: memref<1x256xf32, #tpu.memory_space<vmem>>, %arg4: memref<1x256xf32, #tpu.memory_space<vmem>>, %arg5: memref<2304x256xbf16, #tpu.memory_space<vmem>>, %arg6: memref<1x256xf32, #tpu.memory_space<vmem>>, %arg7: memref<1x256xf32, #tpu.memory_space<vmem>>, %arg8: memref<256x128xbf16, #tpu.memory_space<vmem>>, %arg9: memref<1x128xf32, #tpu.memory_space<vmem>>, %arg10: memref<1x256x128xf32, #tpu.memory_space<vmem>>, %arg11: memref<18x18x256xbf16, #tpu.memory_space<vmem>>, %arg12: memref<256x2304xbf16, #tpu.memory_space<vmem>>) attributes {dimension_semantics = [#tpu.dimension_semantics<parallel>], iteration_bounds = array<i64: 2>, scalar_prefetch = 0 : i64, scratch_operands = 2 : i64, tpu.core_type = #tpu.core_type<tc>, window_params = [{transform_indices = @transform_0, window_bounds = array<i64: 1, 256, 128>}, {pipeline_mode = #tpu.pipeline_mode<synchronous>, transform_indices = @transform_1, window_bounds = array<i64: 128, 256>}, {pipeline_mode = #tpu.pipeline_mode<synchronous>, transform_indices = @transform_2, window_bounds = array<i64: 1, 256>}, {pipeline_mode = #tpu.pipeline_mode<synchronous>, transform_indices = @transform_3, window_bounds = array<i64: 1, 256>}, {pipeline_mode = #tpu.pipeline_mode<synchronous>, transform_indices = @transform_4, window_bounds = array<i64: 2304, 256>}, {pipeline_mode = #tpu.pipeline_mode<synchronous>, transform_indices = @transform_5, window_bounds = array<i64: 1, 256>}, {pipeline_mode = #tpu.pipeline_mode<synchronous>, transform_indices = @transform_6, window_bounds = array<i64: 1, 256>}, {pipeline_mode = #tpu.pipeline_mode<synchronous>, transform_indices = @transform_7, window_bounds = array<i64: 256, 128>}, {pipeline_mode = #tpu.pipeline_mode<synchronous>, transform_indices = @transform_8, window_bounds = array<i64: 1, 128>}, {transform_indices = @transform_9, window_bounds = array<i64: 1, 256, 128>}]} {
    %c0 = arith.constant 0 : index
    %c0_0 = arith.constant 0 : index
    %c0_1 = arith.constant 0 : index
    %0 = vector.load %arg1[%c0, %c0_0, %c0_1] : memref<1x256x128xbf16, #tpu.memory_space<vmem>>, vector<1x256x128xbf16>
    %1 = vector.shape_cast %0 : vector<1x256x128xbf16> to vector<256x128xbf16>
    %c0_2 = arith.constant 0 : index
    %c0_3 = arith.constant 0 : index
    %2 = vector.load %arg2[%c0_2, %c0_3] : memref<128x256xbf16, #tpu.memory_space<vmem>>, vector<128x256xbf16>
    %cst = arith.constant dense<0.000000e+00> : vector<256x256xf32>
    %3 = tpu.matmul %1, %2, %cst {dimension_numbers = #tpu.dot_dimension_numbers<[1], [0], [0], [1], [0, 0, 1, 1], [], []>} : vector<256x128xbf16>, vector<128x256xbf16>, vector<256x256xf32> -> vector<256x256xf32>
    %c0_4 = arith.constant 0 : index
    %c0_5 = arith.constant 0 : index
    %4 = vector.load %arg3[%c0_4, %c0_5] : memref<1x256xf32, #tpu.memory_space<vmem>>, vector<1x256xf32>
    %5 = vector.shape_cast %4 : vector<1x256xf32> to vector<256xf32>
    %6 = vector.shape_cast %5 : vector<256xf32> to vector<1x256xf32>
    %7 = vector.broadcast %6 : vector<1x256xf32> to vector<256x256xf32>
    %8 = arith.mulf %3, %7 : vector<256x256xf32>
    %c0_6 = arith.constant 0 : index
    %c0_7 = arith.constant 0 : index
    %9 = vector.load %arg4[%c0_6, %c0_7] : memref<1x256xf32, #tpu.memory_space<vmem>>, vector<1x256xf32>
    %10 = vector.shape_cast %9 : vector<1x256xf32> to vector<256xf32>
    %11 = vector.shape_cast %10 : vector<256xf32> to vector<1x256xf32>
    %12 = vector.broadcast %11 : vector<1x256xf32> to vector<256x256xf32>
    %13 = arith.addf %8, %12 : vector<256x256xf32>
    %cst_8 = arith.constant 0.000000e+00 : f32
    %14 = vector.broadcast %cst_8 : f32 to vector<256x256xf32>
    %15 = arith.maximumf %13, %14 : vector<256x256xf32>
    %cst_9 = arith.constant 0.000000e+00 : bf16
    %16 = vector.broadcast %cst_9 : bf16 to vector<18x18x256xbf16>
    %c0_10 = arith.constant 0 : index
    %c0_11 = arith.constant 0 : index
    %c0_12 = arith.constant 0 : index
    %17 = vector.load %arg11[%c0_10, %c0_11, %c0_12] : memref<18x18x256xbf16, #tpu.memory_space<vmem>>, vector<18x18x256xbf16>
    tpu.vector_store %arg11[%c0_10, %c0_11, %c0_12], %16 {strides = array<i32>} : memref<18x18x256xbf16, #tpu.memory_space<vmem>>, vector<18x18x256xbf16>,
    %18 = vector.shape_cast %15 : vector<256x256xf32> to vector<16x16x256xf32>
    %19 = arith.truncf %18 : vector<16x16x256xf32> to vector<16x16x256xbf16>
    %c1 = arith.constant 1 : index
    %c1_13 = arith.constant 1 : index
    %c0_14 = arith.constant 0 : index
    %20 = vector.load %arg11[%c1, %c1_13, %c0_14] : memref<18x18x256xbf16, #tpu.memory_space<vmem>>, vector<16x16x256xbf16>
    tpu.vector_store %arg11[%c1, %c1_13, %c0_14], %19 {strides = array<i32>} : memref<18x18x256xbf16, #tpu.memory_space<vmem>>, vector<16x16x256xbf16>,
    %c0_15 = arith.constant 0 : index
    %c0_16 = arith.constant 0 : index
    %c0_17 = arith.constant 0 : index
    %21 = vector.load %arg11[%c0_15, %c0_16, %c0_17] : memref<18x18x256xbf16, #tpu.memory_space<vmem>>, vector<16x16x256xbf16>
    %22 = vector.shape_cast %21 : vector<16x16x256xbf16> to vector<256x256xbf16>
    %c0_18 = arith.constant 0 : index
    %c0_19 = arith.constant 0 : index
    %23 = vector.load %arg12[%c0_18, %c0_19] : memref<256x2304xbf16, #tpu.memory_space<vmem>>, vector<256x256xbf16>
    tpu.vector_store %arg12[%c0_18, %c0_19], %22 {strides = array<i32>} : memref<256x2304xbf16, #tpu.memory_space<vmem>>, vector<256x256xbf16>,
    %c0_20 = arith.constant 0 : index
    %c1_21 = arith.constant 1 : index
    %c0_22 = arith.constant 0 : index
    %24 = vector.load %arg11[%c0_20, %c1_21, %c0_22] : memref<18x18x256xbf16, #tpu.memory_space<vmem>>, vector<16x16x256xbf16>
    %25 = vector.shape_cast %24 : vector<16x16x256xbf16> to vector<256x256xbf16>
    %c0_23 = arith.constant 0 : index
    %c256 = arith.constant 256 : index
    %26 = vector.load %arg12[%c0_23, %c256] : memref<256x2304xbf16, #tpu.memory_space<vmem>>, vector<256x256xbf16>
    tpu.vector_store %arg12[%c0_23, %c256], %25 {strides = array<i32>} : memref<256x2304xbf16, #tpu.memory_space<vmem>>, vector<256x256xbf16>,
    %c0_24 = arith.constant 0 : index
    %c2 = arith.constant 2 : index
    %c0_25 = arith.constant 0 : index
    %27 = vector.load %arg11[%c0_24, %c2, %c0_25] : memref<18x18x256xbf16, #tpu.memory_space<vmem>>, vector<16x16x256xbf16>
    %28 = vector.shape_cast %27 : vector<16x16x256xbf16> to vector<256x256xbf16>
    %c0_26 = arith.constant 0 : index
    %c512 = arith.constant 512 : index
    %29 = vector.load %arg12[%c0_26, %c512] : memref<256x2304xbf16, #tpu.memory_space<vmem>>, vector<256x256xbf16>
    tpu.vector_store %arg12[%c0_26, %c512], %28 {strides = array<i32>} : memref<256x2304xbf16, #tpu.memory_space<vmem>>, vector<256x256xbf16>,
    %c1_27 = arith.constant 1 : index
    %c0_28 = arith.constant 0 : index
    %c0_29 = arith.constant 0 : index
    %30 = vector.load %arg11[%c1_27, %c0_28, %c0_29] : memref<18x18x256xbf16, #tpu.memory_space<vmem>>, vector<16x16x256xbf16>
    %31 = vector.shape_cast %30 : vector<16x16x256xbf16> to vector<256x256xbf16>
    %c0_30 = arith.constant 0 : index
    %c768 = arith.constant 768 : index
    %32 = vector.load %arg12[%c0_30, %c768] : memref<256x2304xbf16, #tpu.memory_space<vmem>>, vector<256x256xbf16>
    tpu.vector_store %arg12[%c0_30, %c768], %31 {strides = array<i32>} : memref<256x2304xbf16, #tpu.memory_space<vmem>>, vector<256x256xbf16>,
    %c1_31 = arith.constant 1 : index
    %c1_32 = arith.constant 1 : index
    %c0_33 = arith.constant 0 : index
    %33 = vector.load %arg11[%c1_31, %c1_32, %c0_33] : memref<18x18x256xbf16, #tpu.memory_space<vmem>>, vector<16x16x256xbf16>
    %34 = vector.shape_cast %33 : vector<16x16x256xbf16> to vector<256x256xbf16>
    %c0_34 = arith.constant 0 : index
    %c1024 = arith.constant 1024 : index
    %35 = vector.load %arg12[%c0_34, %c1024] : memref<256x2304xbf16, #tpu.memory_space<vmem>>, vector<256x256xbf16>
    tpu.vector_store %arg12[%c0_34, %c1024], %34 {strides = array<i32>} : memref<256x2304xbf16, #tpu.memory_space<vmem>>, vector<256x256xbf16>,
    %c1_35 = arith.constant 1 : index
    %c2_36 = arith.constant 2 : index
    %c0_37 = arith.constant 0 : index
    %36 = vector.load %arg11[%c1_35, %c2_36, %c0_37] : memref<18x18x256xbf16, #tpu.memory_space<vmem>>, vector<16x16x256xbf16>
    %37 = vector.shape_cast %36 : vector<16x16x256xbf16> to vector<256x256xbf16>
    %c0_38 = arith.constant 0 : index
    %c1280 = arith.constant 1280 : index
    %38 = vector.load %arg12[%c0_38, %c1280] : memref<256x2304xbf16, #tpu.memory_space<vmem>>, vector<256x256xbf16>
    tpu.vector_store %arg12[%c0_38, %c1280], %37 {strides = array<i32>} : memref<256x2304xbf16, #tpu.memory_space<vmem>>, vector<256x256xbf16>,
    %c2_39 = arith.constant 2 : index
    %c0_40 = arith.constant 0 : index
    %c0_41 = arith.constant 0 : index
    %39 = vector.load %arg11[%c2_39, %c0_40, %c0_41] : memref<18x18x256xbf16, #tpu.memory_space<vmem>>, vector<16x16x256xbf16>
    %40 = vector.shape_cast %39 : vector<16x16x256xbf16> to vector<256x256xbf16>
    %c0_42 = arith.constant 0 : index
    %c1536 = arith.constant 1536 : index
    %41 = vector.load %arg12[%c0_42, %c1536] : memref<256x2304xbf16, #tpu.memory_space<vmem>>, vector<256x256xbf16>
    tpu.vector_store %arg12[%c0_42, %c1536], %40 {strides = array<i32>} : memref<256x2304xbf16, #tpu.memory_space<vmem>>, vector<256x256xbf16>,
    %c2_43 = arith.constant 2 : index
    %c1_44 = arith.constant 1 : index
    %c0_45 = arith.constant 0 : index
    %42 = vector.load %arg11[%c2_43, %c1_44, %c0_45] : memref<18x18x256xbf16, #tpu.memory_space<vmem>>, vector<16x16x256xbf16>
    %43 = vector.shape_cast %42 : vector<16x16x256xbf16> to vector<256x256xbf16>
    %c0_46 = arith.constant 0 : index
    %c1792 = arith.constant 1792 : index
    %44 = vector.load %arg12[%c0_46, %c1792] : memref<256x2304xbf16, #tpu.memory_space<vmem>>, vector<256x256xbf16>
    tpu.vector_store %arg12[%c0_46, %c1792], %43 {strides = array<i32>} : memref<256x2304xbf16, #tpu.memory_space<vmem>>, vector<256x256xbf16>,
    %c2_47 = arith.constant 2 : index
    %c2_48 = arith.constant 2 : index
    %c0_49 = arith.constant 0 : index
    %45 = vector.load %arg11[%c2_47, %c2_48, %c0_49] : memref<18x18x256xbf16, #tpu.memory_space<vmem>>, vector<16x16x256xbf16>
    %46 = vector.shape_cast %45 : vector<16x16x256xbf16> to vector<256x256xbf16>
    %c0_50 = arith.constant 0 : index
    %c2048 = arith.constant 2048 : index
    %47 = vector.load %arg12[%c0_50, %c2048] : memref<256x2304xbf16, #tpu.memory_space<vmem>>, vector<256x256xbf16>
    tpu.vector_store %arg12[%c0_50, %c2048], %46 {strides = array<i32>} : memref<256x2304xbf16, #tpu.memory_space<vmem>>, vector<256x256xbf16>,
    %c0_51 = arith.constant 0 : index
    %c0_52 = arith.constant 0 : index
    %48 = vector.load %arg12[%c0_51, %c0_52] : memref<256x2304xbf16, #tpu.memory_space<vmem>>, vector<256x2304xbf16>
    %c0_53 = arith.constant 0 : index
    %c0_54 = arith.constant 0 : index
    %49 = vector.load %arg5[%c0_53, %c0_54] : memref<2304x256xbf16, #tpu.memory_space<vmem>>, vector<2304x256xbf16>
    %cst_55 = arith.constant dense<0.000000e+00> : vector<256x256xf32>
    %50 = tpu.matmul %48, %49, %cst_55 {dimension_numbers = #tpu.dot_dimension_numbers<[1], [0], [0], [1], [0, 0, 1, 1], [], []>} : vector<256x2304xbf16>, vector<2304x256xbf16>, vector<256x256xf32> -> vector<256x256xf32>
    %c0_56 = arith.constant 0 : index
    %c0_57 = arith.constant 0 : index
    %51 = vector.load %arg6[%c0_56, %c0_57] : memref<1x256xf32, #tpu.memory_space<vmem>>, vector<1x256xf32>
    %52 = vector.shape_cast %51 : vector<1x256xf32> to vector<256xf32>
    %53 = vector.shape_cast %52 : vector<256xf32> to vector<1x256xf32>
    %54 = vector.broadcast %53 : vector<1x256xf32> to vector<256x256xf32>
    %55 = arith.mulf %50, %54 : vector<256x256xf32>
    %c0_58 = arith.constant 0 : index
    %c0_59 = arith.constant 0 : index
    %56 = vector.load %arg7[%c0_58, %c0_59] : memref<1x256xf32, #tpu.memory_space<vmem>>, vector<1x256xf32>
    %57 = vector.shape_cast %56 : vector<1x256xf32> to vector<256xf32>
    %58 = vector.shape_cast %57 : vector<256xf32> to vector<1x256xf32>
    %59 = vector.broadcast %58 : vector<1x256xf32> to vector<256x256xf32>
    %60 = arith.addf %55, %59 : vector<256x256xf32>
    %cst_60 = arith.constant 0.000000e+00 : f32
    %61 = vector.broadcast %cst_60 : f32 to vector<256x256xf32>
    %62 = arith.maximumf %60, %61 : vector<256x256xf32>
    %63 = arith.truncf %62 : vector<256x256xf32> to vector<256x256xbf16>
    %c0_61 = arith.constant 0 : index
    %c0_62 = arith.constant 0 : index
    %64 = vector.load %arg8[%c0_61, %c0_62] : memref<256x128xbf16, #tpu.memory_space<vmem>>, vector<256x128xbf16>
    %cst_63 = arith.constant dense<0.000000e+00> : vector<256x128xf32>
    %65 = tpu.matmul %63, %64, %cst_63 {dimension_numbers = #tpu.dot_dimension_numbers<[1], [0], [0], [1], [0, 0, 1, 1], [], []>} : vector<256x256xbf16>, vector<256x128xbf16>, vector<256x128xf32> -> vector<256x128xf32>
    %c0_64 = arith.constant 0 : index
    %c0_65 = arith.constant 0 : index
    %66 = vector.load %arg9[%c0_64, %c0_65] : memref<1x128xf32, #tpu.memory_space<vmem>>, vector<1x128xf32>
    %67 = vector.shape_cast %66 : vector<1x128xf32> to vector<128xf32>
    %68 = vector.shape_cast %67 : vector<128xf32> to vector<1x128xf32>
    %69 = vector.broadcast %68 : vector<1x128xf32> to vector<256x128xf32>
    %70 = arith.addf %65, %69 : vector<256x128xf32>
    %c0_66 = arith.constant 0 : index
    %c0_67 = arith.constant 0 : index
    %c0_68 = arith.constant 0 : index
    %71 = vector.load %arg10[%c0_66, %c0_67, %c0_68] : memref<1x256x128xf32, #tpu.memory_space<vmem>>, vector<1x256x128xf32>
    %72 = vector.shape_cast %71 : vector<1x256x128xf32> to vector<256x128xf32>
    %73 = vector.shape_cast %70 : vector<256x128xf32> to vector<1x256x128xf32>
    tpu.vector_store %arg10[%c0_66, %c0_67, %c0_68], %73 {strides = array<i32>} : memref<1x256x128xf32, #tpu.memory_space<vmem>>, vector<1x256x128xf32>,
    return
  }
  func.func @transform_0(%arg0: i32) -> (i32, i32, i32) {
    %c0_i32 = arith.constant 0 : i32
    %c0_i32_0 = arith.constant 0 : i32
    %c0_i32_1 = arith.constant 0 : i32
    return %arg0, %c0_i32, %c0_i32_0 : i32, i32, i32
  }
  func.func @transform_1(%arg0: i32) -> (i32, i32) {
    %c0_i32 = arith.constant 0 : i32
    %c0_i32_0 = arith.constant 0 : i32
    %c0_i32_1 = arith.constant 0 : i32
    return %c0_i32, %c0_i32_0 : i32, i32
  }
  func.func @transform_2(%arg0: i32) -> (i32, i32) {
    %c0_i32 = arith.constant 0 : i32
    %c0_i32_0 = arith.constant 0 : i32
    %c0_i32_1 = arith.constant 0 : i32
    return %c0_i32, %c0_i32_0 : i32, i32
  }
  func.func @transform_3(%arg0: i32) -> (i32, i32) {
    %c0_i32 = arith.constant 0 : i32
    %c0_i32_0 = arith.constant 0 : i32
    %c0_i32_1 = arith.constant 0 : i32
    return %c0_i32, %c0_i32_0 : i32, i32
  }
  func.func @transform_4(%arg0: i32) -> (i32, i32) {
    %c0_i32 = arith.constant 0 : i32
    %c0_i32_0 = arith.constant 0 : i32
    %c0_i32_1 = arith.constant 0 : i32
    return %c0_i32, %c0_i32_0 : i32, i32
  }
  func.func @transform_5(%arg0: i32) -> (i32, i32) {
    %c0_i32 = arith.constant 0 : i32
    %c0_i32_0 = arith.constant 0 : i32
    %c0_i32_1 = arith.constant 0 : i32
    return %c0_i32, %c0_i32_0 : i32, i32
  }
  func.func @transform_6(%arg0: i32) -> (i32, i32) {
    %c0_i32 = arith.constant 0 : i32
    %c0_i32_0 = arith.constant 0 : i32
    %c0_i32_1 = arith.constant 0 : i32
    return %c0_i32, %c0_i32_0 : i32, i32
  }
  func.func @transform_7(%arg0: i32) -> (i32, i32) {
    %c0_i32 = arith.constant 0 : i32
    %c0_i32_0 = arith.constant 0 : i32
    %c0_i32_1 = arith.constant 0 : i32
    return %c0_i32, %c0_i32_0 : i32, i32
  }
  func.func @transform_8(%arg0: i32) -> (i32, i32) {
    %c0_i32 = arith.constant 0 : i32
    %c0_i32_0 = arith.constant 0 : i32
    %c0_i32_1 = arith.constant 0 : i32
    return %c0_i32, %c0_i32_0 : i32, i32
  }
  func.func @transform_9(%arg0: i32) -> (i32, i32, i32) {
    %c0_i32 = arith.constant 0 : i32
    %c0_i32_0 = arith.constant 0 : i32
    %c0_i32_1 = arith.constant 0 : i32
    return %arg0, %c0_i32, %c0_i32_0 : i32, i32, i32
  }
}

</mosaic_0001>

<bundles_post_ra>
// kernel: heatmap_head.1
= control target key start
LH: loop header
LB: loop body
LE: loop exit
PB: predicated region body
PF: predicated region fallthrough
CT: control target
= control target key end

     0   :  { %s11434_s30 = smov 0   ;;  %s16112_s0 = inlined_call_operand.vmem [shape: bf16[2,256,128], index: 0, kind: input, shape index: {}]   ;;  %s16113_s1 = inlined_call_operand.vmem [shape: bf16[128,256], index: 1, kind: input, shape index: {}]   ;;  %s16114_s2 = inlined_call_operand.vmem [shape: f32[1,256], index: 2, kind: input, shape index: {}]   ;;  %s16115_s3 = inlined_call_operand.vmem [shape: f32[1,256], index: 3, kind: input, shape index: {}]   ;;  %s16116_s4 = inlined_call_operand.vmem [shape: bf16[2304,256], index: 4, kind: input, shape index: {}]   ;;  %s16117_s5 = inlined_call_operand.vmem [shape: f32[1,256], index: 5, kind: input, shape index: {}]   ;;  %s16118_s6 = inlined_call_operand.vmem [shape: f32[1,256], index: 6, kind: input, shape index: {}]   ;;  %s16119_s7 = inlined_call_operand.vmem [shape: bf16[256,128], index: 7, kind: input, shape index: {}]   ;;  %s16120_s8 = inlined_call_operand.vmem [shape: f32[1,128], index: 8, kind: input, shape index: {}]   ;;  %s16121_s9 = inlined_call_operand.vmem [shape: f32[2,256,128], index: 9, kind: output, shape index: {}]  }
   0x1 LB: > { %s9957_s10 = sadd.s32 4294967295, %s11381_s30   ;;  %p9961_p0 = scmp.ge.s32.totalorder %s11381_s30, 1  ;;  %s11381_s30 = sphi %s11434_s30, %s19_s30  }
   0x2   : > { %p287_p1 = scmp.lt.s32.totalorder %s11381_s30, 3 }
   0x4   : > { %p288_p2 = pnand %p9961_p0, %p287_p1 }
   0x6   : > { %291 = sbr.rel (%p288_p2) target bundleno = 1351 (0x547), region = 56 }
   0xb   : > { %v10844_v0 = vld [vmem:[%s16113_s1 + $0x74] ss:$8 sps:$4 sm:$0xff]   ;;  %p11447_p3 = scmp.lt.s32.totalorder %s9957_s10, 1  ;;  %v10846_v1 = vld [vmem:[%s16113_s1 + $0x70] ss:$8 sps:$4 sm:$0xff]   ;;  %v11383_v2 = vmov 0  }
   0xc   : > { %590 = vmatprep.mubr.bf16.mxu0 %v11383_v2  ;;  %967 = vst [vmem:[#allocation2 + $0xb0] sm:$0xff] %v11383_v2  ;;  %969 = vst [vmem:[#allocation2 + $0x10] sm:$0x11] %v11383_v2  ;;  %670 = vmatprep.mubr.bf16.mxu1 %v11383_v2  ;;  %v10847_v3 = vld [vmem:[%s16113_s1 + $0x64] ss:$8 sps:$4 sm:$0xff]   ;;  %vm1505_vm3 = vcmask 1043456  }
   0xd   : > { %972 = vst [vmem:[#allocation2 + $0x128] sm:$0x11] %v11383_v2  ;;  %975 = vst [vmem:[#allocation2 + $0x108] sm:$0x11] %v11383_v2  ;;  %558 = vmatprep.subr.bf16.mxu0 %v10844_v0  ;;  %s16525_s10 = smov (!%p11447_p3, %s9957_s10), 1  ;;  %10819 = vmatprep.subr.bf16.mxu1 %v10844_v0  ;;  %vm1508_vm5 = vcmask 1047556  }
   0xe   : > { %978 = vst [vmem:[#allocation2 + $0x118] sm:$0x11] %v11383_v2  ;;  %981 = vst [vmem:[#allocation2 + $0x58] sm:$0x11] %v11383_v2  ;;  %559 = vmatpush1.bf16.msra.mxu0 %v10846_v1  ;;  %v10849_v4 = vld [vmem:[%s16113_s1 + $0x60] ss:$8 sps:$4 sm:$0xff]   ;;  %10827 = vmatpush1.bf16.msra.mxu1 %v10846_v1 }
   0xf   : > { %984 = vst [vmem:[#allocation2 + $0x130] sm:$0x11] %v11383_v2  ;;  %987 = vst [vmem:[#allocation2 + $0x1a0] sm:$0x11] %v11383_v2  ;;  %560 = vmatprep.subr.bf16.mxu0 %v10847_v3  ;;  %v10850_v5 = vld [vmem:[%s16113_s1 + $0x54] ss:$8 sps:$4 sm:$0xff]   ;;  %10820 = vmatprep.subr.bf16.mxu1 %v10847_v3 }
  0x10   : > { %990 = vst [vmem:[#allocation2 + $0xe8] sm:$0x11] %v11383_v2  ;;  %993 = vst [vmem:[#allocation2 + $0x28] sm:$0x11] %v11383_v2  ;;  %s10673_s22 = sshll.u32 %s16525_s10, 7  ;;  %vm1516_vm8 = vcmask 1040384  }
  0x11   : > { %996 = vst [vmem:[#allocation2 + $0xb8] sm:$0x11] %v11383_v2  ;;  %999 = vst [vmem:[#allocation2 + $0x50] sm:$0x11] %v11383_v2  ;;  %v10852_v6 = vld [vmem:[%s16113_s1 + $0x50] ss:$8 sps:$4 sm:$0xff]   ;;  %s11501_s29 = scalar_lea.vmem %s16112_s0, %s10673_s22 }
  0x12   : > { %1002 = vst [vmem:[#allocation2 + $0x198] sm:$0x11] %v11383_v2  ;;  %1005 = vst [vmem:[#allocation2 + $0xc8] sm:$0x11] %v11383_v2  ;;  %561 = vmatpush1.bf16.msra.mxu0 %v10849_v4  ;;  %10828 = vmatpush1.bf16.msra.mxu1 %v10849_v4  ;;  %v10853_v7 = vld [vmem:[%s16113_s1 + $0x44] ss:$8 sps:$4 sm:$0xff]  }
  0x13   : > { %1008 = vst [vmem:[#allocation2 + $0x30] sm:$0x11] %v11383_v2  ;;  %1011 = vst [vmem:[#allocation2 + $0x8] sm:$0x11] %v11383_v2  ;;  %562 = vmatprep.subr.bf16.mxu0 %v10850_v5  ;;  %10821 = vmatprep.subr.bf16.mxu1 %v10850_v5  ;;  %v10855_v8 = vld [vmem:[%s16113_s1 + $0x40] ss:$8 sps:$4 sm:$0xff]  }
  0x14   : > { %1014 = vst [vmem:[#allocation2 + $0x68] sm:$0x11] %v11383_v2  ;;  %1017 = vst [vmem:[#allocation2 + $0x88] sm:$0x11] %v11383_v2  ;;  %v10856_v9 = vld [vmem:[%s16113_s1 + $0x34] ss:$8 sps:$4 sm:$0xff]  }
  0x15   : > { %1018 = vst [vmem:[#allocation2 + $0xe0] sm:$0xff] %v11383_v2  ;;  %1020 = vst [vmem:[#allocation2 + $0x188] sm:$0x11] %v11383_v2  ;;  %v10858_v10 = vld [vmem:[%s16113_s1 + $0x30] ss:$8 sps:$4 sm:$0xff]   ;;  %v10868_v19 = vld [vmem:[%s11501_s29] sm:$0xff]  }
  0x16   : > { %563 = vmatpush1.bf16.msra.mxu0 %v10852_v6  ;;  %10829 = vmatpush1.bf16.msra.mxu1 %v10852_v6  ;;  %v10859_v11 = vld [vmem:[%s16113_s1 + $0x24] ss:$8 sps:$4 sm:$0xff]   ;;  %v10861_v12 = vld [vmem:[%s16113_s1 + $0x20] ss:$8 sps:$4 sm:$0xff]   ;;  %v10862_v13 = vld [vmem:[%s16113_s1 + $0x14] ss:$8 sps:$4 sm:$0xff]  }
  0x17   : > { %564 = vmatprep.subr.bf16.mxu0 %v10853_v7  ;;  %10822 = vmatprep.subr.bf16.mxu1 %v10853_v7  ;;  %v10864_v14 = vld [vmem:[%s16113_s1 + $0x10] ss:$8 sps:$4 sm:$0xff]   ;;  %v10865_v15 = vld [vmem:[%s16113_s1 + $0x4] ss:$8 sps:$4 sm:$0xff]   ;;  %v10867_v16 = vld [vmem:[%s16113_s1] ss:$8 sps:$4 sm:$0xff]  }
  0x18   : > { %v10885_v17 = vld [vmem:[%s16116_s4 + $0x74] ss:$8 sps:$4 sm:$0xff]   ;;  %v10875_v20 = vld [vmem:[%s11501_s29 + $0x40] sm:$0xff]   ;;  %v10883_v21 = vld [vmem:[%s16116_s4 + $0x70] ss:$8 sps:$4 sm:$0xff]   ;;  %vm1518_vm10 = vcmask 1044484  }
  0x19   : > { %v10888_v18 = vld [vmem:[%s16116_s4 + $0x174] ss:$8 sps:$4 sm:$0xff]   ;;  %v10886_v22 = vld [vmem:[%s16116_s4 + $0x170] ss:$8 sps:$4 sm:$0xff]   ;;  %v10891_v23 = vld [vmem:[%s16116_s4 + $0x64] ss:$8 sps:$4 sm:$0xff]  }
  0x1a   : > { %565 = vmatpush1.bf16.msra.mxu0 %v10855_v8  ;;  %10830 = vmatpush1.bf16.msra.mxu1 %v10855_v8  ;;  %v10894_v24 = vld [vmem:[%s16116_s4 + $0x164] ss:$8 sps:$4 sm:$0xff]   ;;  %v10889_v25 = vld [vmem:[%s16116_s4 + $0x60] ss:$8 sps:$4 sm:$0xff]   ;;  %v10897_v27 = vld [vmem:[%s16116_s4 + $0x54] ss:$8 sps:$4 sm:$0xff]  }
  0x1b   : > { %566 = vmatprep.subr.bf16.mxu0 %v10856_v9  ;;  %10823 = vmatprep.subr.bf16.mxu1 %v10856_v9  ;;  %v10892_v26 = vld [vmem:[%s16116_s4 + $0x160] ss:$8 sps:$4 sm:$0xff]   ;;  %v10900_v28 = vld [vmem:[%s16116_s4 + $0x154] ss:$8 sps:$4 sm:$0xff]   ;;  %v10895_v31 = vld [vmem:[%s16116_s4 + $0x50] ss:$8 sps:$4 sm:$0xff]  }
  0x1c   : > { %v10869_v29 = vld [vmem:[%s11501_s29 + $0x8] sm:$0xff]   ;;  %v10898_v32 = vld [vmem:[%s16116_s4 + $0x150] ss:$8 sps:$4 sm:$0xff]   ;;  %v10909_v37 = vld [vmem:[%s16116_s4 + $0x34] ss:$8 sps:$4 sm:$0xff]   ;;  %s10674_s24 = sshll.u32 %s16525_s10, 8 }
  0x1d   : > { %v10877_v30 = vld [vmem:[%s11501_s29 + $0x48] sm:$0xff]   ;;  %v10912_v38 = vld [vmem:[%s16116_s4 + $0x134] ss:$8 sps:$4 sm:$0xff]   ;;  %v10907_v41 = vld [vmem:[%s16116_s4 + $0x30] ss:$8 sps:$4 sm:$0xff]   ;;  %s16043_s11 = scalar_lea.vmem %s16121_s9, %s10674_s24 }
  0x1e   : > { %567 = vmatpush1.bf16.msra.mxu0 %v10858_v10  ;;  %10831 = vmatpush1.bf16.msra.mxu1 %v10858_v10  ;;  %v10903_v33 = vld [vmem:[%s16116_s4 + $0x44] ss:$8 sps:$4 sm:$0xff]   ;;  %v10901_v35 = vld [vmem:[%s16116_s4 + $0x40] ss:$8 sps:$4 sm:$0xff]   ;;  %v10870_v39 = vld [vmem:[%s11501_s29 + $0x10] sm:$0xff]  }
  0x1f   : > { %568 = vmatprep.subr.bf16.mxu0 %v10859_v11  ;;  %10824 = vmatprep.subr.bf16.mxu1 %v10859_v11  ;;  %v10906_v34 = vld [vmem:[%s16116_s4 + $0x144] ss:$8 sps:$4 sm:$0xff]   ;;  %v10904_v36 = vld [vmem:[%s16116_s4 + $0x140] ss:$8 sps:$4 sm:$0xff]   ;;  %v10878_v40 = vld [vmem:[%s11501_s29 + $0x50] sm:$0xff]  }
  0x20   : > { %v10910_v42 = vld [vmem:[%s16116_s4 + $0x130] ss:$8 sps:$4 sm:$0xff]   ;;  %v10915_v43 = vld [vmem:[%s16116_s4 + $0x24] ss:$8 sps:$4 sm:$0xff]   ;;  %v10913_v45 = vld [vmem:[%s16116_s4 + $0x20] ss:$8 sps:$4 sm:$0xff]  }
  0x21   : > { %v10918_v44 = vld [vmem:[%s16116_s4 + $0x124] ss:$8 sps:$4 sm:$0xff]   ;;  %v10916_v46 = vld [vmem:[%s16116_s4 + $0x120] ss:$8 sps:$4 sm:$0xff]   ;;  %v10921_v47 = vld [vmem:[%s16116_s4 + $0x14] ss:$8 sps:$4 sm:$0xff]  }
  0x22   : > { %569 = vmatpush1.bf16.msra.mxu0 %v10861_v12  ;;  %10832 = vmatpush1.bf16.msra.mxu1 %v10861_v12  ;;  %v10924_v48 = vld [vmem:[%s16116_s4 + $0x114] ss:$8 sps:$4 sm:$0xff]   ;;  %v10919_v51 = vld [vmem:[%s16116_s4 + $0x10] ss:$8 sps:$4 sm:$0xff]   ;;  %v10927_v53 = vld [vmem:[%s16116_s4 + $0x4] ss:$8 sps:$4 sm:$0xff]  }
  0x23   : > { %570 = vmatprep.subr.bf16.mxu0 %v10862_v13  ;;  %10825 = vmatprep.subr.bf16.mxu1 %v10862_v13  ;;  %v10871_v49 = vld [vmem:[%s11501_s29 + $0x18] sm:$0xff]   ;;  %v10930_v54 = vld [vmem:[%s16116_s4 + $0x104] ss:$8 sps:$4 sm:$0xff]   ;;  %v10925_v55 = vld [vmem:[%s16116_s4] ss:$8 sps:$4 sm:$0xff]  }
  0x24   : > { %v10879_v50 = vld [vmem:[%s11501_s29 + $0x58] sm:$0xff]   ;;  %v10928_v56 = vld [vmem:[%s16116_s4 + $0x100] ss:$8 sps:$4 sm:$0xff]   ;;  %v10939_v63 = vld [vmem:[%s16116_s4 + $0xe4] ss:$8 sps:$4 sm:$0xff]  }
  0x25   : > { %v10922_v52 = vld [vmem:[%s16116_s4 + $0x110] ss:$8 sps:$4 sm:$0xff]   ;;  %v10933_v57 = vld [vmem:[%s16116_s4 + $0xf4] ss:$8 sps:$4 sm:$0xff]   ;;  %v10872_v59 = vld [vmem:[%s11501_s29 + $0x20] sm:$0xff]  }
  0x26   : > { %571 = vmatpush1.bf16.msra.mxu0 %v10864_v14  ;;  %10833 = vmatpush1.bf16.msra.mxu1 %v10864_v14  ;;  %v10936_v58 = vld [vmem:[%s16116_s4 + $0x1f4] ss:$8 sps:$4 sm:$0xff]   ;;  %v10880_v60 = vld [vmem:[%s11501_s29 + $0x60] sm:$0xff]   ;;  %v10931_v61 = vld [vmem:[%s16116_s4 + $0xf0] ss:$8 sps:$4 sm:$0xff]  }
  0x27   : > { %572 = vmatprep.subr.bf16.mxu0 %v10865_v15  ;;  %10826 = vmatprep.subr.bf16.mxu1 %v10865_v15  ;;  %v10934_v62 = vld [vmem:[%s16116_s4 + $0x1f0] ss:$8 sps:$4 sm:$0xff]   ;;  %v10942_v0 = vld [vmem:[%s16116_s4 + $0x1e4] ss:$8 sps:$4 sm:$0xff]   ;;  %v10937_v1 = vld [vmem:[%s16116_s4 + $0xe0] ss:$8 sps:$4 sm:$0xff]  }
  0x28   : > { %v10940_v3 = vld [vmem:[%s16116_s4 + $0x1e0] ss:$8 sps:$4 sm:$0xff]   ;;  %v10945_v4 = vld [vmem:[%s16116_s4 + $0xd4] ss:$8 sps:$4 sm:$0xff]   ;;  %v10943_v8 = vld [vmem:[%s16116_s4 + $0xd0] ss:$8 sps:$4 sm:$0xff]  }
  0x29   : > { %v10948_v5 = vld [vmem:[%s16116_s4 + $0x1d4] ss:$8 sps:$4 sm:$0xff]   ;;  %v10873_v6 = vld [vmem:[%s11501_s29 + $0x28] sm:$0xff]   ;;  %v10946_v9 = vld [vmem:[%s16116_s4 + $0x1d0] ss:$8 sps:$4 sm:$0xff]  }
  0x2a   : > { %573 = vmatpush1.bf16.msra.mxu0 %v10867_v16  ;;  %10834 = vmatpush1.bf16.msra.mxu1 %v10867_v16  ;;  %v10881_v7 = vld [vmem:[%s11501_s29 + $0x68] sm:$0xff]   ;;  %v10874_v14 = vld [vmem:[%s11501_s29 + $0x30] sm:$0xff]   ;;  %v10876_v16 = vld [vmem:[%s11501_s29 + $0x38] sm:$0xff]   ;;  %vm1742_vm0 = vsmask.f32 3328 }
  0x2b   : > { %7589 = vmatprep.subr.bf16.mxu1 %v10885_v17  ;;  %7782 = vmatprep.subr.bf16.mxu0 %v10888_v18  ;;  %v10951_v10 = vld [vmem:[%s16116_s4 + $0xc4] ss:$8 sps:$4 sm:$0xff]   ;;  %v10949_v12 = vld [vmem:[%s16116_s4 + $0xc0] ss:$8 sps:$4 sm:$0xff]   ;;  %v10882_v15 = vld [vmem:[%s11501_s29 + $0x70] sm:$0xff]  }
  0x2c   : > { %v10954_v11 = vld [vmem:[%s16116_s4 + $0x1c4] ss:$8 sps:$4 sm:$0xff]   ;;  %v10952_v13 = vld [vmem:[%s16116_s4 + $0x1c0] ss:$8 sps:$4 sm:$0xff]   ;;  %v10957_v17 = vld [vmem:[%s16116_s4 + $0xb4] ss:$8 sps:$4 sm:$0xff]  }
  0x2d   : > { %591 = vmatmul.mubr.bf16.vlgmr.msra.gmra.mxu0 %v10868_v19  ;;  %671 = vmatmul.mubr.bf16.vlgmr.msra.gmra.mxu1 %v10875_v20  ;;  %v10960_v18 = vld [vmem:[%s16116_s4 + $0x1b4] ss:$8 sps:$4 sm:$0xff]   ;;  %v10955_v19 = vld [vmem:[%s16116_s4 + $0xb0] ss:$8 sps:$4 sm:$0xff]   ;;  %vm1743_vm1 = vsmask.f32 7440 }
  0x2e   : > { %600 = vmatprep.mubr.bf16.mxu0 %v11383_v2  ;;  %680 = vmatprep.mubr.bf16.mxu1 %v11383_v2  ;;  %v10958_v20 = vld [vmem:[%s16116_s4 + $0x1b0] ss:$8 sps:$4 sm:$0xff]   ;;  %vm11754_vm2 = vmor %vm1742_vm0, %vm1743_vm1  ;;  %vm1506_vm4 = vsmask.f32 7938  ;;  %vm1509_vm6 = vsmask.f32 7954 }
  0x2f   : > { %7590 = vmatpush1.bf16.msra.mxu1 %v10883_v21  ;;  %7783 = vmatpush1.bf16.msra.mxu0 %v10886_v22  ;;  %v10961_v21 = vld [vmem:[%s11501_s29 + $0x78] sm:$0xff]   ;;  %v10964_v22 = vld [vmem:[%s16116_s4 + $0xa4] ss:$8 sps:$4 sm:$0xff]   ;;  %vm1181_vm7 = vsmask.f32 256  ;;  %vm11858_vm12 = vmand %vm1505_vm3, %vm1506_vm4  ;;  %vm2289_vm4 = vcmask 1042432  }
  0x30   : > { %7591 = vmatprep.subr.bf16.mxu1 %v10891_v23  ;;  %7784 = vmatprep.subr.bf16.mxu0 %v10894_v24  ;;  %v10967_v23 = vld [vmem:[%s16116_s4 + $0x1a4] ss:$8 sps:$4 sm:$0xff]   ;;  %v10962_v24 = vld [vmem:[%s16116_s4 + $0xa0] ss:$8 sps:$4 sm:$0xff]   ;;  %vm1182_vm9 = vsmask.f32 4368  ;;  %vm11866_vm13 = vmand %vm1508_vm5, %vm1509_vm6 }
  0x31   : > { %vm1519_vm11 = vsmask.f32 4352  ;;  %vm11881_vm14 = vmor %vm11866_vm13, %vm11858_vm12  ;;  %vm2290_vm5 = vcmask 1046532  }
  0x32   : > { %vm11891_vm15 = vmand %vm1516_vm8, %vm1181_vm7 }
  0x33   : > { %7592 = vmatpush1.bf16.msra.mxu1 %v10889_v25  ;;  %7785 = vmatpush1.bf16.msra.mxu0 %v10892_v26  ;;  %v10965_v25 = vld [vmem:[%s16116_s4 + $0x1a0] ss:$8 sps:$4 sm:$0xff]   ;;  %v10970_v26 = vld [vmem:[%s16116_s4 + $0x94] ss:$8 sps:$4 sm:$0xff]   ;;  %vm11905_vm0 = vmand %vm1518_vm10, %vm1519_vm11 }
  0x34   : > { %7593 = vmatprep.subr.bf16.mxu1 %v10897_v27  ;;  %7786 = vmatprep.subr.bf16.mxu0 %v10900_v28  ;;  %v10973_v27 = vld [vmem:[%s16116_s4 + $0x194] ss:$8 sps:$4 sm:$0xff]   ;;  %v1748_v28 = vrot.slane %v11383_v2, 4  ;;  %vm11921_vm1 = vmor %vm1181_vm7, %vm1182_vm9 }
  0x35   : > { %601 = vmatmul.mubr.bf16.gmra.mxu0 %v10869_v29  ;;  %681 = vmatmul.mubr.bf16.gmra.mxu1 %v10877_v30  ;;  %v1751_v29 = vrot.slane %v11383_v2, 5  ;;  %v10968_v30 = vld [vmem:[%s16116_s4 + $0x90] ss:$8 sps:$4 sm:$0xff]   ;;  %vm11931_vm3 = vmor %vm11905_vm0, %vm11891_vm15 }
  0x36   : > { %610 = vmatprep.mubr.bf16.mxu0 %v11383_v2  ;;  %690 = vmatprep.mubr.bf16.mxu1 %v11383_v2  ;;  %vm12607_vm6 = vmor %vm2289_vm4, %vm2290_vm5 }
  0x37   : > { %7594 = vmatpush1.bf16.msra.mxu1 %v10895_v31  ;;  %7787 = vmatpush1.bf16.msra.mxu0 %v10898_v32  ;;  %v10971_v31 = vld [vmem:[%s16116_s4 + $0x190] ss:$8 sps:$4 sm:$0xff]  }
  0x38   : > { %7595 = vmatprep.subr.bf16.mxu1 %v10903_v33  ;;  %7788 = vmatprep.subr.bf16.mxu0 %v10906_v34  ;;  %v1696_v32 = vld [vmem:[#allocation2 + $0x10] sm:$0x11]  ;;  %v1752_v33 = vor.u32 %v1751_v29, %v1748_v28 }
  0x39   : > { %v1765_v34 = vshll.u32 %v1696_v32, 16 }
  0x3b   : > { %7596 = vmatpush1.bf16.msra.mxu1 %v10901_v35  ;;  %7789 = vmatpush1.bf16.msra.mxu0 %v10904_v36  ;;  %v10976_v35 = vld [vmem:[%s16116_s4 + $0x84] ss:$8 sps:$4 sm:$0xff]  }
  0x3c   : > { %7597 = vmatprep.subr.bf16.mxu1 %v10909_v37  ;;  %7790 = vmatprep.subr.bf16.mxu0 %v10912_v38  ;;  %v10979_v36 = vld [vmem:[%s16116_s4 + $0x184] ss:$8 sps:$4 sm:$0xff]   ;;  %v10974_v37 = vld [vmem:[%s16116_s4 + $0x80] ss:$8 sps:$4 sm:$0xff]  }
  0x3d   : > { %611 = vmatmul.mubr.bf16.gmra.mxu0 %v10870_v39  ;;  %691 = vmatmul.mubr.bf16.gmra.mxu1 %v10878_v40  ;;  %v10977_v38 = vld [vmem:[%s16116_s4 + $0x180] ss:$8 sps:$4 sm:$0xff]   ;;  %v1753_v40 = vrot.slane %v1752_v33, 4 }
  0x3e   : > { %620 = vmatprep.mubr.bf16.mxu0 %v11383_v2  ;;  %700 = vmatprep.mubr.bf16.mxu1 %v11383_v2 }
  0x3f   : > { %7598 = vmatpush1.bf16.msra.mxu1 %v10907_v41  ;;  %7791 = vmatpush1.bf16.msra.mxu0 %v10910_v42  ;;  %v1767_v41 = vrot.slane %v1765_v34, 5  ;;  %v10079_v42 = vcombine.high %v11383_v2, %v11383_v2 }
  0x40   : > { %7599 = vmatprep.subr.bf16.mxu1 %v10915_v43  ;;  %7792 = vmatprep.subr.bf16.mxu0 %v10918_v44  ;;  %v10078_v43 = vcombine.low %v11383_v2, %v11383_v2  ;;  %v1758_v44 = vsel %vm11754_vm2, %v1753_v40, %v1751_v29 }
  0x43   : > { %7600 = vmatpush1.bf16.msra.mxu1 %v10913_v45  ;;  %7793 = vmatpush1.bf16.msra.mxu0 %v10916_v46  ;;  %v1768_v45 = vsel %vm11754_vm2, %v1753_v40, %v1767_v41 }
  0x44   : > { %7601 = vmatprep.subr.bf16.mxu1 %v10921_v47  ;;  %7794 = vmatprep.subr.bf16.mxu0 %v10924_v48  ;;  %v10080_v46 = vcombine.low %v1758_v44, %v1768_v45  ;;  %v10081_v47 = vcombine.high %v1758_v44, %v1768_v45  ;;  %v10980_v48 = vld [vmem:[%s16116_s4 + $0x270] ss:$8 sps:$4 sm:$0xff]  }
  0x45   : > { %621 = vmatmul.mubr.bf16.gmra.mxu0 %v10871_v49  ;;  %701 = vmatmul.mubr.bf16.gmra.mxu1 %v10879_v50  ;;  %v10983_v49 = vld [vmem:[%s16116_s4 + $0x260] ss:$8 sps:$4 sm:$0xff]   ;;  %v10985_v50 = vld [vmem:[%s16116_s4 + $0x264] ss:$8 sps:$4 sm:$0xff]  }
  0x46   : > { %630 = vmatprep.mubr.bf16.mxu0 %v11383_v2  ;;  %710 = vmatprep.mubr.bf16.mxu1 %v11383_v2 }
  0x47   : > { %7602 = vmatpush1.bf16.msra.mxu1 %v10919_v51  ;;  %7795 = vmatpush1.bf16.msra.mxu0 %v10922_v52  ;;  %v10986_v51 = vld [vmem:[%s16116_s4 + $0x250] ss:$8 sps:$4 sm:$0xff]   ;;  %v10988_v52 = vld [vmem:[%s16116_s4 + $0x254] ss:$8 sps:$4 sm:$0xff]  }
  0x48   : > { %7603 = vmatprep.subr.bf16.mxu1 %v10927_v53  ;;  %7796 = vmatprep.subr.bf16.mxu0 %v10930_v54  ;;  %v10989_v53 = vld [vmem:[%s16116_s4 + $0x240] ss:$8 sps:$4 sm:$0xff]   ;;  %v10991_v54 = vld [vmem:[%s16116_s4 + $0x244] ss:$8 sps:$4 sm:$0xff]  }
  0x4b   : > { %7604 = vmatpush1.bf16.msra.mxu1 %v10925_v55  ;;  %7797 = vmatpush1.bf16.msra.mxu0 %v10928_v56  ;;  %v10992_v55 = vld [vmem:[%s16116_s4 + $0x230] ss:$8 sps:$4 sm:$0xff]   ;;  %v10994_v56 = vld [vmem:[%s16116_s4 + $0x234] ss:$8 sps:$4 sm:$0xff]  }
  0x4c   : > { %7605 = vmatprep.subr.bf16.mxu1 %v10933_v57  ;;  %7798 = vmatprep.subr.bf16.mxu0 %v10936_v58  ;;  %v10995_v57 = vld [vmem:[%s16116_s4 + $0x220] ss:$8 sps:$4 sm:$0xff]   ;;  %v10997_v58 = vld [vmem:[%s16116_s4 + $0x224] ss:$8 sps:$4 sm:$0xff]  }
  0x4d   : > { %631 = vmatmul.mubr.bf16.gmra.mxu0 %v10872_v59  ;;  %711 = vmatmul.mubr.bf16.gmra.mxu1 %v10880_v60  ;;  %v10998_v59 = vld [vmem:[%s16116_s4 + $0x210] ss:$8 sps:$4 sm:$0xff]   ;;  %v11000_v60 = vld [vmem:[%s16116_s4 + $0x214] ss:$8 sps:$4 sm:$0xff]  }
  0x4e   : > { %640 = vmatprep.mubr.bf16.mxu0 %v11383_v2  ;;  %720 = vmatprep.mubr.bf16.mxu1 %v11383_v2 }
  0x4f   : > { %7606 = vmatpush2.bf16.msra.mxu1 %v10931_v61  ;;  %7799 = vmatpush2.bf16.msra.mxu0 %v10934_v62  ;;  %v753_v61 = vlaneseq  ;;  %v11001_v62 = vld [vmem:[%s16116_s4 + $0x200] ss:$8 sps:$4 sm:$0xff]  }
  0x50   : > { %7607 = vmatprep.subr.bf16.mxu1 %v10939_v63  ;;  %7800 = vmatprep.subr.bf16.mxu0 %v10942_v0  ;;  %v11003_v63 = vld [vmem:[%s16116_s4 + $0x204] ss:$8 sps:$4 sm:$0xff]  }
  0x51   : > { %v754_v0 = vshrl.u32 %v753_v61, 7 }
  0x53   : > { %7608 = vmatpush2.bf16.msra.mxu1 %v10937_v1  ;;  %7801 = vmatpush2.bf16.msra.mxu0 %v10940_v3  ;;  %v11814_v1 = vsub.s32 0, %v754_v0  ;;  %v751_v3 = vld [vmem:[%s16114_s2] sm:$0x3] }
  0x54   : > { %7609 = vmatprep.subr.bf16.mxu1 %v10945_v4  ;;  %7802 = vmatprep.subr.bf16.mxu0 %v10948_v5  ;;  %v11819_v4 = vsub.s32 1, %v754_v0  ;;  %v827_v5 = vld [vmem:[%s16115_s3] sm:$0x3] }
  0x55   : > { %641 = vmatmul.mubr.bf16.gmra.mxu0 %v10873_v6  ;;  %721 = vmatmul.mubr.bf16.gmra.mxu1 %v10881_v7  ;;  %16134 = vst [vmem:[#allocation4_spill] sm:$0xff] %v11814_v1  ;;  %v11825_v6 = vrot.slane %v751_v3, %v11814_v1  ;;  %v11004_v7 = vld [vmem:[%s16116_s4 + $0x2f0] ss:$8 sps:$4 sm:$0xff]  }
  0x56   : > { %650 = vmatprep.mubr.bf16.mxu0 %v11383_v2  ;;  %730 = vmatprep.mubr.bf16.mxu1 %v11383_v2  ;;  %16135 = vst [vmem:[#allocation5_spill] sm:$0xff] %v11819_v4 }
  0x57   : > { %7610 = vmatpush2.bf16.msra.mxu1 %v10943_v8  ;;  %7803 = vmatpush2.bf16.msra.mxu0 %v10946_v9  ;;  %v11006_v8 = vld [vmem:[%s16116_s4 + $0x2f4] ss:$8 sps:$4 sm:$0xff]   ;;  %v11834_v9 = vrot.slane %v827_v5, %v11814_v1 }
  0x58   : > { %7611 = vmatprep.subr.bf16.mxu1 %v10951_v10  ;;  %7804 = vmatprep.subr.bf16.mxu0 %v10954_v11  ;;  %v11837_v10 = vrot.slane %v751_v3, %v11819_v4 }
  0x5b   : > { %7612 = vmatpush2.bf16.msra.mxu1 %v10949_v12  ;;  %7805 = vmatpush2.bf16.msra.mxu0 %v10952_v13 }
  0x5c   : > { %7613 = vmatprep.subr.bf16.mxu1 %v10957_v17  ;;  %7806 = vmatprep.subr.bf16.mxu0 %v10960_v18 }
  0x5d   : > { %651 = vmatmul.mubr.bf16.gmra.mxu0 %v10874_v14  ;;  %731 = vmatmul.mubr.bf16.gmra.mxu1 %v10882_v15  ;;  %v11841_v14 = vrot.slane %v827_v5, %v11819_v4  ;;  %v11009_v5 = vld [vmem:[%s16116_s4 + $0x2e4] ss:$8 sps:$4 sm:$0xff]  }
  0x5e   : > { %660 = vmatprep.mubr.bf16.mxu0 %v11383_v2  ;;  %740 = vmatprep.mubr.bf16.mxu1 %v11383_v2  ;;  %v10982_v2 = vld [vmem:[%s16116_s4 + $0x274] ss:$8 sps:$4 sm:$0xff]  }
  0x5f   : > { %7614 = vmatpush2.bf16.msra.mxu1 %v10955_v19  ;;  %7807 = vmatpush2.bf16.msra.mxu0 %v10958_v20 }
  0x60   : > { %7615 = vmatprep.subr.bf16.mxu1 %v10964_v22  ;;  %7808 = vmatprep.subr.bf16.mxu0 %v10967_v23 }
  0x63   : > { %7616 = vmatpush2.bf16.msra.mxu1 %v10962_v24  ;;  %7809 = vmatpush2.bf16.msra.mxu0 %v10965_v25 }
  0x64   : > { %7617 = vmatprep.subr.bf16.mxu1 %v10970_v26  ;;  %7810 = vmatprep.subr.bf16.mxu0 %v10973_v27 }
  0x65   : > { %661 = vmatmul.mubr.bf16.gmra.mxu0 %v10876_v16  ;;  %741 = vmatmul.mubr.bf16.gmra.mxu1 %v10961_v21 }
  0x66   : > { %7621 = vmatprep.mubr.bf16.mxu1 %v10079_v42  ;;  %7814 = vmatprep.mubr.bf16.mxu0 %v10081_v47 }
  0x67   : > { %7618 = vmatpush2.bf16.msra.mxu1 %v10968_v30  ;;  %7811 = vmatpush2.bf16.msra.mxu0 %v10971_v31 }
  0x68   : > { %7619 = vmatprep.subr.bf16.mxu1 %v10976_v35  ;;  %7812 = vmatprep.subr.bf16.mxu0 %v10979_v36 }
  0x6b   : > { %7620 = vmatpush2.bf16.msra.mxu1 %v10974_v37  ;;  %7813 = vmatpush2.bf16.msra.mxu0 %v10977_v38 }
  0x6c   : > { %7975 = vmatprep.subr.bf16.mxu1 %v10982_v2 }
  0x6e   : > { %7622 = vmatmul.mubr.bf16.vlgmr.msra.gmra.mxu1 %v10078_v43  ;;  %7815 = vmatmul.mubr.bf16.vlgmr.msra.gmra.mxu0 %v10080_v46 }
  0x6f   : > { %7976 = vmatpush1.bf16.msra.mxu1 %v10980_v48 }
  0x70   : > { %7977 = vmatprep.subr.bf16.mxu1 %v10985_v50 }
  0x73   : > { %7978 = vmatpush1.bf16.msra.mxu1 %v10983_v49 }
  0x74   : > { %7979 = vmatprep.subr.bf16.mxu1 %v10988_v52 }
  0x77   : > { %7980 = vmatpush1.bf16.msra.mxu1 %v10986_v51 }
  0x78   : > { %7981 = vmatprep.subr.bf16.mxu1 %v10991_v54 }
  0x7b   : > { %7982 = vmatpush1.bf16.msra.mxu1 %v10989_v53 }
  0x7c   : > { %7983 = vmatprep.subr.bf16.mxu1 %v10994_v56 }
  0x7f   : > { %7984 = vmatpush1.bf16.msra.mxu1 %v10992_v55 }
  0x80   : > { %7985 = vmatprep.subr.bf16.mxu1 %v10997_v58 }
  0x83   : > { %7986 = vmatpush1.bf16.msra.mxu1 %v10995_v57 }
  0x84   : > { %7987 = vmatprep.subr.bf16.mxu1 %v11000_v60  ;;  %v11007_v60 = vld [vmem:[%s16116_s4 + $0x2e0] ss:$8 sps:$4 sm:$0xff]  }
  0x87   : > { %7988 = vmatpush1.bf16.msra.mxu1 %v10998_v59 }
  0x88   : > { %7989 = vmatprep.subr.bf16.mxu1 %v11003_v63 }
  0x8b   : > { %7990 = vmatpush1.bf16.msra.mxu1 %v11001_v62  ;;  %v11123_v62 = vld [vmem:[%s16116_s4 + $0x560] ss:$8 sps:$4 sm:$0xff]  }
  0x8c   : > { %7991 = vmatprep.subr.bf16.mxu1 %v11006_v8 }
  0x8f   : > { %7992 = vmatpush2.bf16.msra.mxu1 %v11004_v7 }
  0x90   : > { %7993 = vmatprep.subr.bf16.mxu1 %v11009_v5 }
  0x93   : > { %7994 = vmatpush2.bf16.msra.mxu1 %v11007_v60 }
  0xed   : > { %v592_v11 = vpop.f32.mrf.mxu0  ;;  %v672_v12 = vpop.f32.mrf.mxu1 }
  0xee   : > { %v763_v13 = vmul.f32 %v11825_v6, %v592_v11  ;;  %v795_v15 = vmul.f32 %v11825_v6, %v672_v12 }
  0xef   : > { %v594_v16 = vpop.f32.mrf.mxu0  ;;  %v674_v17 = vpop.f32.mrf.mxu1 }
  0xf0   : > { %v839_v18 = vadd.f32 %v11834_v9, %v763_v13  ;;  %v764_v19 = vmul.f32 %v11837_v10, %v594_v16  ;;  %v871_v20 = vadd.f32 %v11834_v9, %v795_v15  ;;  %v796_v21 = vmul.f32 %v11837_v10, %v674_v17 }
  0xf1   : > { %v596_v22 = vpop.f32.mrf.mxu0  ;;  %v676_v23 = vpop.f32.mrf.mxu1 }
  0xf2   : > { %v840_v24 = vadd.f32 %v11841_v14, %v764_v19  ;;  %v765_v25 = vmul.f32 %v11825_v6, %v596_v22  ;;  %v903_v26 = vmax.f32 %v839_v18, 0.0  ;;  %v935_v28 = vmax.f32 %v871_v20, 0.0 }
  0xf3   : > { %v598_v27 = vpop.f32.mrf.mxu0  ;;  %v872_v29 = vadd.f32 %v11841_v14, %v796_v21  ;;  %v797_v30 = vmul.f32 %v11825_v6, %v676_v23  ;;  %v678_v31 = vpop.f32.mrf.mxu1 }
  0xf4   : > { %v904_v32 = vmax.f32 %v840_v24, 0.0  ;;  %v841_v33 = vadd.f32 %v11834_v9, %v765_v25  ;;  %v766_v34 = vmul.f32 %v11837_v10, %v598_v27  ;;  %v798_v35 = vmul.f32 %v11837_v10, %v678_v31 }
  0xf5   : > { %v602_v36 = vpop.f32.mrf.mxu0  ;;  %v936_v37 = vmax.f32 %v872_v29, 0.0  ;;  %v873_v38 = vadd.f32 %v11834_v9, %v797_v30  ;;  %v682_v45 = vpop.f32.mrf.mxu1 }
  0xf6   : > { %v10675_v40 = vpack.c.bf16 %v904_v32, %v903_v26  ;;  %v905_v42 = vmax.f32 %v841_v33, 0.0  ;;  %v842_v43 = vadd.f32 %v11841_v14, %v766_v34  ;;  %v767_v44 = vmul.f32 %v11825_v6, %v602_v36  ;;  %v11914_v26 = vld [vmem:[#allocation2 + $0xb0] sm:$0xff]  ;;  %v1522_v33 = vld [vmem:[#allocation2 + $0x128] sm:$0x11] }
  0xf7   : > { %v604_v47 = vpop.f32.mrf.mxu0  ;;  %v10691_v48 = vpack.c.bf16 %v936_v37, %v935_v28  ;;  %v937_v2 = vmax.f32 %v873_v38, 0.0  ;;  %v874_v49 = vadd.f32 %v11841_v14, %v798_v35  ;;  %v799_v50 = vmul.f32 %v11825_v6, %v682_v45  ;;  %v11010_v45 = vld [vmem:[%s16116_s4 + $0x370] ss:$8 sps:$4 sm:$0xff]   ;;  %v11131_v28 = vld [vmem:[%s16116_s4 + $0x554] ss:$8 sps:$4 sm:$0xff]  }
  0xf8   : > { %v1185_v51 = vshrl.u32 %v10675_v40, 16  ;;  %v1188_v52 = vshll.u32 %v10675_v40, 16  ;;  %v906_v53 = vmax.f32 %v842_v43, 0.0  ;;  %v843_v54 = vadd.f32 %v11834_v9, %v767_v44  ;;  %v11012_v40 = vld [vmem:[%s16116_s4 + $0x374] ss:$8 sps:$4 sm:$0xff]  }
  0xf9   : > { %v768_v55 = vmul.f32 %v11837_v10, %v604_v47  ;;  %v606_v56 = vpop.f32.mrf.mxu0  ;;  %v1321_v57 = vshrl.u32 %v10691_v48, 16  ;;  %v1324_v58 = vshll.u32 %v10691_v48, 16  ;;  %v938_v59 = vmax.f32 %v874_v49, 0.0  ;;  %8168 = vmatprep.subr.bf16.mxu0 %v11012_v40  ;;  %v11013_v40 = vld [vmem:[%s16116_s4 + $0x360] ss:$8 sps:$4 sm:$0xff]  }
  0xfa   : > { %v1187_v61 = vrot.slane %v1185_v51, 7  ;;  %v10676_v63 = vpack.c.bf16 %v906_v53, %v905_v42  ;;  %v907_v0 = vmax.f32 %v843_v54, 0.0  ;;  %v769_v3 = vmul.f32 %v11825_v6, %v606_v56  ;;  %8169 = vmatpush1.bf16.msra.mxu0 %v11010_v45 }
  0xfb   : > { %v844_v8 = vadd.f32 %v11841_v14, %v768_v55  ;;  %v608_v11 = vpop.f32.mrf.mxu0  ;;  %v11896_v12 = vrot.slane %v1321_v57, 7  ;;  %v11898_v13 = vpack.c.bf16 %v938_v59, %v937_v2  ;;  %v11901_v15 = vadd.f32 %v11834_v9, %v799_v50 }
  0xfc   : > { %v1190_v16 = vor.u32 %v1188_v52, %v1187_v61  ;;  %v1191_v17 = vrot.slane %v1187_v61, 4  ;;  %v1193_v18 = vshrl.u32 %v10676_v63, 16  ;;  %v1196_v19 = vshll.u32 %v10676_v63, 16 }
  0xfd   : > { %v908_v21 = vmax.f32 %v844_v8, 0.0  ;;  %v845_v22 = vadd.f32 %v11834_v9, %v769_v3  ;;  %v770_v23 = vmul.f32 %v11837_v10, %v608_v11  ;;  %v612_v24 = vpop.f32.mrf.mxu0  ;;  %v11912_v25 = vor.u32 %v1324_v58, %v11896_v12 }
  0xfe   : > { %v1513_v27 = vsel %vm11881_vm14, %v1190_v16, %v11914_v26  ;;  %v1195_v29 = vrot.slane %v1193_v18, 7  ;;  %v771_v30 = vmul.f32 %v11825_v6, %v612_v24  ;;  %v1327_v31 = vrot.slane %v11896_v12, 4  ;;  %v1529_v24 = vld [vmem:[#allocation2 + $0x108] sm:$0x11] }
  0xff   : > { %1514 = vst [vmem:[#allocation2 + $0x48] sm:$0xff] %v1513_v27  ;;  %v10677_v34 = vpack.c.bf16 %v908_v21, %v907_v0  ;;  %v909_v35 = vmax.f32 %v845_v22, 0.0  ;;  %v846_v36 = vadd.f32 %v11841_v14, %v770_v23  ;;  %v614_v37 = vpop.f32.mrf.mxu0  ;;  %v1770_v38 = vshrl.u32 %v1513_v27, 16 }
 0x100   : > { %v1198_v41 = vor.u32 %v1196_v19, %v1195_v29  ;;  %v1200_v42 = vrot.slane %v1195_v29, 4  ;;  %v847_v43 = vadd.f32 %v11834_v9, %v771_v30  ;;  %v772_v44 = vmul.f32 %v11837_v10, %v614_v37 }
 0x101   : > { %v1202_v46 = vshrl.u32 %v10677_v34, 16  ;;  %v1205_v47 = vshll.u32 %v10677_v34, 16  ;;  %v910_v48 = vmax.f32 %v846_v36, 0.0  ;;  %v616_v2 = vpop.f32.mrf.mxu0  ;;  %v11944_v49 = vrot.slane %v1770_v38, 4 }
 0x102   : > { %v11948_v50 = vsel %vm11921_vm1, %v1191_v17, %v1198_v41  ;;  %v1523_v51 = vsel %vm11931_vm3, %v1200_v42, %v1522_v33  ;;  %v911_v52 = vmax.f32 %v847_v43, 0.0  ;;  %v848_v53 = vadd.f32 %v11841_v14, %v772_v44  ;;  %v11015_v41 = vld [vmem:[%s16116_s4 + $0x364] ss:$8 sps:$4 sm:$0xff]  }
 0x103   : > { %1515 = vst [vmem:[#allocation2 + $0x160] sm:$0xff] %v11948_v50  ;;  %1524 = vst [vmem:[#allocation2 + $0x128] sm:$0x11] %v1523_v51  ;;  %v1204_v54 = vrot.slane %v1202_v46, 7  ;;  %v10678_v55 = vpack.c.bf16 %v910_v48, %v909_v35  ;;  %v773_v56 = vmul.f32 %v11825_v6, %v616_v2  ;;  %v618_v57 = vpop.f32.mrf.mxu0  ;;  %v10097_v58 = vcombine.high %v1513_v27, %v11948_v50  ;;  %v11016_v46 = vld [vmem:[%s16116_s4 + $0x2d0] ss:$8 sps:$4 sm:$0xff]  }
 0x104   : > { %v912_v59 = vmax.f32 %v848_v53, 0.0  ;;  %v774_v60 = vmul.f32 %v11837_v10, %v618_v57  ;;  %v10096_v61 = vcombine.low %v1513_v27, %v11948_v50  ;;  %v1773_v63 = vshll.u32 %v1513_v27, 16  ;;  %8170 = vmatprep.subr.bf16.mxu0 %v11015_v41  ;;  %v11019_v57 = vld [vmem:[%s16116_s4 + $0x350] ss:$8 sps:$4 sm:$0xff]  }
 0x105   : > { %v1207_v0 = vor.u32 %v1205_v47, %v1204_v54  ;;  %v1208_v3 = vrot.slane %v1204_v54, 4  ;;  %v1210_v5 = vshrl.u32 %v10678_v55, 16  ;;  %v1213_v7 = vshll.u32 %v10678_v55, 16  ;;  %v622_v8 = vpop.f32.mrf.mxu0  ;;  %7631 = vmatprep.mubr.bf16.mxu1 %v10097_v58  ;;  %8171 = vmatpush1.bf16.msra.mxu0 %v11013_v40 }
 0x106   : > { %v10679_v11 = vpack.c.bf16 %v912_v59, %v911_v52  ;;  %v849_v16 = vadd.f32 %v11834_v9, %v773_v56  ;;  %v850_v17 = vadd.f32 %v11841_v14, %v774_v60  ;;  %v775_v18 = vmul.f32 %v11825_v6, %v622_v8  ;;  %7632 = vmatmul.mubr.bf16.gmra.mxu1 %v10096_v61 }
 0x107   : > { %v11964_v19 = vsel %vm11881_vm14, %v1207_v0, %v11914_v26  ;;  %v1212_v20 = vrot.slane %v1210_v5, 7  ;;  %v624_v21 = vpop.f32.mrf.mxu0  ;;  %v1775_v22 = vrot.slane %v1773_v63, 5  ;;  %v1779_v23 = vshll.u32 %v11948_v50, 16  ;;  %v11021_v0 = vld [vmem:[%s16116_s4 + $0x354] ss:$8 sps:$4 sm:$0xff]  }
 0x108   : > { %1527 = vst [vmem:[#allocation2 + $0x40] sm:$0xff] %v11964_v19  ;;  %v1219_v27 = vshrl.u32 %v10679_v11, 16  ;;  %v1222_v29 = vshll.u32 %v10679_v11, 16  ;;  %v913_v30 = vmax.f32 %v849_v16, 0.0  ;;  %v914_v33 = vmax.f32 %v850_v17, 0.0  ;;  %8172 = vmatprep.subr.bf16.mxu0 %v11021_v0 }
 0x109   : > { %v1215_v34 = vor.u32 %v1213_v7, %v1212_v20  ;;  %v1217_v35 = vrot.slane %v1212_v20, 4  ;;  %v851_v36 = vadd.f32 %v11834_v9, %v775_v18  ;;  %v776_v37 = vmul.f32 %v11837_v10, %v624_v21  ;;  %v626_v38 = vpop.f32.mrf.mxu0  ;;  %v11024_v11 = vld [vmem:[%s16116_s4 + $0x344] ss:$8 sps:$4 sm:$0xff]   ;;  %v11025_v16 = vld [vmem:[%s16116_s4 + $0x2c0] ss:$8 sps:$4 sm:$0xff]   ;;  %8173 = vmatpush1.bf16.msra.mxu0 %v11019_v57 }
 0x10a   : > { %v1221_v42 = vrot.slane %v1219_v27, 7  ;;  %v10680_v43 = vpack.c.bf16 %v914_v33, %v913_v30  ;;  %v777_v44 = vmul.f32 %v11825_v6, %v626_v38  ;;  %v1776_v45 = vor.u32 %v1775_v22, %v11944_v49  ;;  %v11018_v49 = vld [vmem:[%s16116_s4 + $0x2d4] ss:$8 sps:$4 sm:$0xff]   ;;  %v11027_v27 = vld [vmem:[%s16116_s4 + $0x2c4] ss:$8 sps:$4 sm:$0xff]   ;;  %8174 = vmatprep.subr.bf16.mxu0 %v11024_v11 }
 0x10b   : > { %v11983_v47 = vsel %vm11921_vm1, %v1208_v3, %v1215_v34  ;;  %v1530_v48 = vsel %vm11931_vm3, %v1217_v35, %v1529_v24  ;;  %v915_v2 = vmax.f32 %v851_v36, 0.0  ;;  %v852_v51 = vadd.f32 %v11841_v14, %v776_v37  ;;  %v628_v52 = vpop.f32.mrf.mxu0  ;;  %7995 = vmatprep.subr.bf16.mxu1 %v11018_v49  ;;  %v1536_v17 = vld [vmem:[#allocation2 + $0x118] sm:$0x11]  ;;  %v1699_v35 = vld [vmem:[#allocation2 + $0x128] sm:$0x11] }
 0x10c   : > { %1528 = vst [vmem:[#allocation2 + $0x178] sm:$0xff] %v11983_v47  ;;  %1531 = vst [vmem:[#allocation2 + $0x108] sm:$0x11] %v1530_v48  ;;  %v1224_v53 = vor.u32 %v1222_v29, %v1221_v42  ;;  %v1225_v54 = vrot.slane %v1221_v42, 4  ;;  %v1227_v55 = vshrl.u32 %v10680_v43, 16  ;;  %v1230_v56 = vshll.u32 %v10680_v43, 16  ;;  %7996 = vmatpush2.bf16.msra.mxu1 %v11016_v46 }
 0x10d   : > { %v916_v58 = vmax.f32 %v852_v51, 0.0  ;;  %v853_v59 = vadd.f32 %v11834_v9, %v777_v44  ;;  %v778_v60 = vmul.f32 %v11837_v10, %v628_v52  ;;  %v632_v61 = vpop.f32.mrf.mxu0  ;;  %v10115_v63 = vcombine.high %v11964_v19, %v11983_v47  ;;  %v11022_v36 = vld [vmem:[%s16116_s4 + $0x340] ss:$8 sps:$4 sm:$0xff]   ;;  %7997 = vmatprep.subr.bf16.mxu1 %v11027_v27  ;;  %v11030_v43 = vld [vmem:[%s16116_s4 + $0x334] ss:$8 sps:$4 sm:$0xff]  }
 0x10e   : > { %v12005_v3 = vsel %vm11881_vm14, %v1224_v53, %v11914_v26  ;;  %v1229_v5 = vrot.slane %v1227_v55, 7  ;;  %v779_v7 = vmul.f32 %v11825_v6, %v632_v61  ;;  %v10114_v8 = vcombine.low %v11964_v19, %v11983_v47  ;;  %8175 = vmatpush1.bf16.msra.mxu0 %v11022_v36  ;;  %v11028_v57 = vld [vmem:[%s16116_s4 + $0x330] ss:$8 sps:$4 sm:$0xff]   ;;  %v11033_v11 = vld [vmem:[%s16116_s4 + $0x324] ss:$8 sps:$4 sm:$0xff]  }
 0x10f   : > { %1534 = vst [vmem:[#allocation2 + $0x110] sm:$0xff] %v12005_v3  ;;  %v10681_v18 = vpack.c.bf16 %v916_v58, %v915_v2  ;;  %v917_v20 = vmax.f32 %v853_v59, 0.0  ;;  %v854_v21 = vadd.f32 %v11841_v14, %v778_v60  ;;  %v634_v22 = vpop.f32.mrf.mxu0  ;;  %7641 = vmatprep.mubr.bf16.mxu1 %v10115_v63  ;;  %v1777_v24 = vrot.slane %v1776_v45, 4  ;;  %8176 = vmatprep.subr.bf16.mxu0 %v11030_v43  ;;  %v1543_v0 = vld [vmem:[#allocation2 + $0x58] sm:$0x11] }
 0x110   : > { %v1232_v29 = vor.u32 %v1230_v56, %v1229_v5  ;;  %v1234_v30 = vrot.slane %v1229_v5, 4  ;;  %v855_v33 = vadd.f32 %v11834_v9, %v779_v7  ;;  %v780_v34 = vmul.f32 %v11837_v10, %v634_v22  ;;  %7642 = vmatmul.mubr.bf16.gmra.mxu1 %v10114_v8 }
 0x111   : > { %v1236_v37 = vshrl.u32 %v10681_v18, 16  ;;  %v1239_v38 = vshll.u32 %v10681_v18, 16  ;;  %v918_v40 = vmax.f32 %v854_v21, 0.0  ;;  %v636_v41 = vpop.f32.mrf.mxu0  ;;  %v12028_v42 = vrot.slane %v1779_v23, 5  ;;  %7998 = vmatpush2.bf16.msra.mxu1 %v11025_v16  ;;  %v11034_v16 = vld [vmem:[%s16116_s4 + $0x2b0] ss:$8 sps:$4 sm:$0xff]  }
 0x112   : > { %v12035_v44 = vsel %vm11921_vm1, %v1225_v54, %v1232_v29  ;;  %v1537_v45 = vsel %vm11931_vm3, %v1234_v30, %v1536_v17  ;;  %v919_v46 = vmax.f32 %v855_v33, 0.0  ;;  %v856_v48 = vadd.f32 %v11841_v14, %v780_v34  ;;  %8177 = vmatpush1.bf16.msra.mxu0 %v11028_v57  ;;  %v11031_v34 = vld [vmem:[%s16116_s4 + $0x320] ss:$8 sps:$4 sm:$0xff]  }
 0x113   : > { %1535 = vst [vmem:[#allocation2 + $0x90] sm:$0xff] %v12035_v44  ;;  %1538 = vst [vmem:[#allocation2 + $0x118] sm:$0x11] %v1537_v45  ;;  %v1238_v23 = vrot.slane %v1236_v37, 7  ;;  %v10682_v2 = vpack.c.bf16 %v918_v40, %v917_v20  ;;  %v781_v51 = vmul.f32 %v11825_v6, %v636_v41  ;;  %v638_v52 = vpop.f32.mrf.mxu0  ;;  %v12045_v49 = vsel %vm11754_vm2, %v1777_v24, %v12028_v42  ;;  %v11036_v24 = vld [vmem:[%s16116_s4 + $0x2b4] ss:$8 sps:$4 sm:$0xff]  }
 0x114   : > { %v920_v53 = vmax.f32 %v856_v48, 0.0  ;;  %v782_v54 = vmul.f32 %v11837_v10, %v638_v52  ;;  %v1783_v55 = vshrl.u32 %v11948_v50, 16  ;;  %v1789_v56 = vshll.u32 %v1699_v35, 16  ;;  %8178 = vmatprep.subr.bf16.mxu0 %v11033_v11  ;;  %7999 = vmatprep.subr.bf16.mxu1 %v11036_v24  ;;  %v11039_v41 = vld [vmem:[%s16116_s4 + $0x314] ss:$8 sps:$4 sm:$0xff]  }
 0x115   : > { %v1241_v58 = vor.u32 %v1239_v38, %v1238_v23  ;;  %v1242_v59 = vrot.slane %v1238_v23, 4  ;;  %v1244_v60 = vshrl.u32 %v10682_v2, 16  ;;  %v1247_v61 = vshll.u32 %v10682_v2, 16  ;;  %v642_v63 = vpop.f32.mrf.mxu0  ;;  %8000 = vmatpush2.bf16.msra.mxu1 %v11034_v16 }
 0x116   : > { %v10683_v5 = vpack.c.bf16 %v920_v53, %v919_v46  ;;  %v857_v7 = vadd.f32 %v11834_v9, %v781_v51  ;;  %v858_v8 = vadd.f32 %v11841_v14, %v782_v54  ;;  %v783_v50 = vmul.f32 %v11825_v6, %v642_v63  ;;  %v11043_v53 = vld [vmem:[%s16116_s4 + $0x2a0] ss:$8 sps:$4 sm:$0xff]   ;;  %v11045_v54 = vld [vmem:[%s16116_s4 + $0x2a4] ss:$8 sps:$4 sm:$0xff]   ;;  %8179 = vmatpush1.bf16.msra.mxu0 %v11031_v34 }
 0x117   : > { %v12064_v17 = vsel %vm11881_vm14, %v1241_v58, %v11914_v26  ;;  %v1246_v18 = vrot.slane %v1244_v60, 7  ;;  %v1785_v20 = vrot.slane %v1783_v55, 4  ;;  %v1791_v21 = vrot.slane %v1789_v56, 5  ;;  %v644_v22 = vpop.f32.mrf.mxu0  ;;  %8180 = vmatprep.subr.bf16.mxu0 %v11039_v41  ;;  %8001 = vmatprep.subr.bf16.mxu1 %v11045_v54  ;;  %v11040_v34 = vld [vmem:[%s16116_s4 + $0x300] ss:$8 sps:$4 sm:$0xff]  }
 0x118   : > { %1541 = vst [vmem:[#allocation2 + $0x148] sm:$0xff] %v12064_v17  ;;  %v1253_v27 = vshrl.u32 %v10683_v5, 16  ;;  %v1256_v29 = vshll.u32 %v10683_v5, 16  ;;  %v921_v30 = vmax.f32 %v857_v7, 0.0  ;;  %v922_v33 = vmax.f32 %v858_v8, 0.0 }
 0x119   : > { %v1249_v35 = vor.u32 %v1247_v61, %v1246_v18  ;;  %v1251_v36 = vrot.slane %v1246_v18, 4  ;;  %v859_v37 = vadd.f32 %v11834_v9, %v783_v50  ;;  %v1786_v38 = vor.u32 %v1785_v20, %v12028_v42  ;;  %v646_v40 = vpop.f32.mrf.mxu0  ;;  %v11042_v7 = vld [vmem:[%s16116_s4 + $0x304] ss:$8 sps:$4 sm:$0xff]   ;;  %v1550_v18 = vld [vmem:[#allocation2 + $0x130] sm:$0x11]  ;;  %8002 = vmatpush2.bf16.msra.mxu1 %v11043_v53 }
 0x11a   : > { %v1255_v43 = vrot.slane %v1253_v27, 7  ;;  %v10684_v45 = vpack.c.bf16 %v922_v33, %v921_v30  ;;  %v784_v46 = vmul.f32 %v11837_v10, %v644_v22  ;;  %v785_v48 = vmul.f32 %v11825_v6, %v646_v40 }
 0x11b   : > { %v12082_v23 = vsel %vm11921_vm1, %v1242_v59, %v1249_v35  ;;  %v1544_v42 = vsel %vm11931_vm3, %v1251_v36, %v1543_v0  ;;  %v923_v2 = vmax.f32 %v859_v37, 0.0  ;;  %v1787_v51 = vrot.slane %v1786_v38, 4  ;;  %v648_v52 = vpop.f32.mrf.mxu0  ;;  %v11037_v59 = vld [vmem:[%s16116_s4 + $0x310] ss:$8 sps:$4 sm:$0xff]   ;;  %v11048_v35 = vld [vmem:[%s16116_s4 + $0x3f4] ss:$8 sps:$4 sm:$0xff]  }
 0x11c   : > { %1542 = vst [vmem:[#allocation2 + $0x100] sm:$0xff] %v12082_v23  ;;  %1545 = vst [vmem:[#allocation2 + $0x58] sm:$0x11] %v1544_v42  ;;  %v1258_v55 = vor.u32 %v1256_v29, %v1255_v43  ;;  %v1259_v56 = vrot.slane %v1255_v43, 4  ;;  %v1261_v57 = vshrl.u32 %v10684_v45, 16  ;;  %v1264_v58 = vshll.u32 %v10684_v45, 16  ;;  %8181 = vmatpush1.bf16.msra.mxu0 %v11037_v59  ;;  %v12128_v43 = vpop.f32.mrf.mxu1 }
 0x11d   : > { %v1792_v60 = vsel %vm11754_vm2, %v1787_v51, %v1791_v21  ;;  %v860_v61 = vadd.f32 %v11841_v14, %v784_v46  ;;  %v861_v63 = vadd.f32 %v11834_v9, %v785_v48  ;;  %v786_v0 = vmul.f32 %v11837_v10, %v648_v52  ;;  %v652_v5 = vpop.f32.mrf.mxu0  ;;  %8182 = vmatprep.subr.bf16.mxu0 %v11042_v7  ;;  %v11052_v45 = vld [vmem:[%s16116_s4 + $0x290] ss:$8 sps:$4 sm:$0xff]   ;;  %v11054_v46 = vld [vmem:[%s16116_s4 + $0x294] ss:$8 sps:$4 sm:$0xff]  }
 0x11e   : > { %v12107_v8 = vsel %vm11881_vm14, %v1258_v55, %v11914_v26  ;;  %v1263_v50 = vrot.slane %v1261_v57, 7  ;;  %v10099_v11 = vcombine.high %v12045_v49, %v1792_v60  ;;  %v10098_v16 = vcombine.low %v12045_v49, %v1792_v60  ;;  %8003 = vmatprep.subr.bf16.mxu1 %v11054_v46  ;;  %v11057_v46 = vld [vmem:[%s16116_s4 + $0x3d4] ss:$8 sps:$4 sm:$0xff]  }
 0x11f   : > { %1548 = vst [vmem:[#allocation2 + $0xd8] sm:$0xff] %v12107_v8  ;;  %v924_v20 = vmax.f32 %v860_v61, 0.0  ;;  %v925_v21 = vmax.f32 %v861_v63, 0.0  ;;  %v862_v22 = vadd.f32 %v11841_v14, %v786_v0  ;;  %v787_v24 = vmul.f32 %v11825_v6, %v652_v5  ;;  %v654_v27 = vpop.f32.mrf.mxu0  ;;  %8004 = vmatpush2.bf16.msra.mxu1 %v11052_v45 }
 0x120   : > { %v1266_v29 = vor.u32 %v1264_v58, %v1263_v50  ;;  %v1268_v30 = vrot.slane %v1263_v50, 4  ;;  %7824 = vmatprep.mubr.bf16.mxu0 %v10099_v11  ;;  %v10133_v33 = vcombine.high %v12005_v3, %v12035_v44  ;;  %v10132_v49 = vcombine.low %v12005_v3, %v12035_v44  ;;  %8183 = vmatpush1.bf16.msra.mxu0 %v11040_v34  ;;  %v12150_v50 = vpop.f32.mrf.mxu1  ;;  %v11051_v11 = vld [vmem:[%s16116_s4 + $0x3e4] ss:$8 sps:$4 sm:$0xff]  }
 0x121   : > { %v10685_v36 = vpack.c.bf16 %v924_v20, %v923_v2  ;;  %7825 = vmatmul.mubr.bf16.gmra.mxu0 %v10098_v16  ;;  %v926_v37 = vmax.f32 %v862_v22, 0.0  ;;  %v12125_v38 = vadd.f32 %v11834_v9, %v787_v24  ;;  %v1794_v40 = vshrl.u32 %v11964_v19, 16  ;;  %v656_v41 = vpop.f32.mrf.mxu0  ;;  %v1702_v2 = vld [vmem:[#allocation2 + $0x108] sm:$0x11]  ;;  %8184 = vmatprep.subr.bf16.mxu0 %v11048_v35 }
 0x122   : > { %v12138_v48 = vsel %vm11921_vm1, %v1259_v56, %v1266_v29  ;;  %v1551_v42 = vsel %vm11931_vm3, %v1268_v30, %v1550_v18  ;;  %7651 = vmatprep.mubr.bf16.mxu1 %v10133_v33  ;;  %v1797_v51 = vshll.u32 %v11964_v19, 16  ;;  %v1803_v52 = vshll.u32 %v11983_v47, 16  ;;  %v11046_v19 = vld [vmem:[%s16116_s4 + $0x3f0] ss:$8 sps:$4 sm:$0xff]   ;;  %v1557_v30 = vld [vmem:[#allocation2 + $0x1a0] sm:$0x11]  ;;  %v12168_v45 = vpop.f32.mrf.mxu1 }
 0x123   : > { %1549 = vst [vmem:[#allocation2 + $0x180] sm:$0xff] %v12138_v48  ;;  %1552 = vst [vmem:[#allocation2 + $0x130] sm:$0x11] %v1551_v42  ;;  %v1270_v53 = vshrl.u32 %v10685_v36, 16  ;;  %v1273_v54 = vshll.u32 %v10685_v36, 16  ;;  %v10686_v55 = vpack.c.bf16 %v926_v37, %v925_v21  ;;  %v927_v57 = vmax.f32 %v12125_v38, 0.0  ;;  %7652 = vmatmul.mubr.bf16.gmra.mxu1 %v10132_v49  ;;  %v658_v7 = vpop.f32.mrf.mxu0 }
 0x124   : > { %v1796_v56 = vrot.slane %v1794_v40, 4  ;;  %v1799_v58 = vrot.slane %v1797_v51, 5  ;;  %v1805_v59 = vrot.slane %v1803_v52, 5  ;;  %v1807_v60 = vshrl.u32 %v11983_v47, 16  ;;  %8185 = vmatpush2.bf16.msra.mxu0 %v11046_v19  ;;  %v11049_v36 = vld [vmem:[%s16116_s4 + $0x3e0] ss:$8 sps:$4 sm:$0xff]  }
 0x125   : > { %v1272_v61 = vrot.slane %v1270_v53, 7  ;;  %v1278_v63 = vshrl.u32 %v10686_v55, 16  ;;  %v1281_v0 = vshll.u32 %v10686_v55, 16  ;;  %v1813_v5 = vshll.u32 %v1702_v2, 16  ;;  %8186 = vmatprep.subr.bf16.mxu0 %v11051_v11  ;;  %v11061_v53 = vld [vmem:[%s16116_s4 + $0x280] ss:$8 sps:$4 sm:$0xff]  }
 0x126   : > { %v1800_v16 = vor.u32 %v1799_v58, %v1796_v56  ;;  %v1809_v47 = vrot.slane %v1807_v60, 4  ;;  %v788_v18 = vmul.f32 %v11837_v10, %v654_v27  ;;  %v789_v20 = vmul.f32 %v11825_v6, %v656_v41  ;;  %v662_v41 = vpop.f32.mrf.mxu0  ;;  %v1705_v11 = vld [vmem:[#allocation2 + $0x118] sm:$0x11] }
 0x127   : > { %v1275_v21 = vor.u32 %v1273_v54, %v1272_v61  ;;  %v1276_v22 = vrot.slane %v1272_v61, 4  ;;  %v1280_v24 = vrot.slane %v1278_v63, 7  ;;  %v1815_v29 = vrot.slane %v1813_v5, 5 }
 0x128   : > { %v1801_v33 = vrot.slane %v1800_v16, 4  ;;  %v1810_v49 = vor.u32 %v1809_v47, %v1805_v59  ;;  %v864_v34 = vadd.f32 %v11841_v14, %v788_v18  ;;  %v865_v35 = vadd.f32 %v11834_v9, %v789_v20  ;;  %8187 = vmatpush2.bf16.msra.mxu0 %v11049_v36  ;;  %v664_v16 = vpop.f32.mrf.mxu0  ;;  %v12204_v47 = vpop.f32.mrf.mxu1 }
 0x129   : > { %v12165_v27 = vsel %vm11881_vm14, %v1275_v21, %v11914_v26  ;;  %v1283_v37 = vor.u32 %v1281_v0, %v1280_v24  ;;  %v1285_v38 = vrot.slane %v1280_v24, 4  ;;  %v790_v40 = vmul.f32 %v11837_v10, %v658_v7  ;;  %8188 = vmatprep.subr.bf16.mxu0 %v11057_v46  ;;  %v11060_v24 = vld [vmem:[%s16116_s4 + $0x3c4] ss:$8 sps:$4 sm:$0xff]  }
 0x12a   : > { %1555 = vst [vmem:[#allocation2 + $0x138] sm:$0xff] %v12165_v27  ;;  %v1806_v42 = vsel %vm11754_vm2, %v1801_v33, %v1805_v59  ;;  %v1811_v2 = vrot.slane %v1810_v49, 4  ;;  %v928_v51 = vmax.f32 %v864_v34, 0.0  ;;  %v929_v52 = vmax.f32 %v865_v35, 0.0  ;;  %v11063_v59 = vld [vmem:[%s16116_s4 + $0x284] ss:$8 sps:$4 sm:$0xff]  }
 0x12b   : > { %v12181_v54 = vsel %vm11921_vm1, %v1276_v22, %v1283_v37  ;;  %v1558_v55 = vsel %vm11931_vm3, %v1285_v38, %v1557_v30  ;;  %v866_v56 = vadd.f32 %v11841_v14, %v790_v40  ;;  %v12190_v58 = vsel %vm11881_vm14, %v11912_v25, %v11914_v26  ;;  %8005 = vmatprep.subr.bf16.mxu1 %v11063_v59 }
 0x12c   : > { %1556 = vst [vmem:[#allocation2 + $0x78] sm:$0xff] %v12181_v54  ;;  %1559 = vst [vmem:[#allocation2 + $0x1a0] sm:$0x11] %v1558_v55  ;;  %v1816_v60 = vsel %vm11754_vm2, %v1811_v2, %v1815_v29  ;;  %v10687_v19 = vpack.c.bf16 %v928_v51, %v927_v57  ;;  %v791_v61 = vmul.f32 %v11825_v6, %v662_v41  ;;  %v11055_v57 = vld [vmem:[%s16116_s4 + $0x3d0] ss:$8 sps:$4 sm:$0xff]   ;;  %v1818_v22 = vshrl.u32 %v12005_v3, 16  ;;  %v12220_v2 = vpop.f32.mrf.mxu1 }
 0x12d   : > { %1576 = vst [vmem:[#allocation2] sm:$0xff] %v12190_v58  ;;  %v10151_v63 = vcombine.high %v12064_v17, %v12082_v23  ;;  %v10117_v25 = vcombine.high %v1806_v42, %v1816_v60  ;;  %v10116_v0 = vcombine.low %v1806_v42, %v1816_v60  ;;  %v930_v5 = vmax.f32 %v866_v56, 0.0  ;;  %8006 = vmatpush2.bf16.msra.mxu1 %v11061_v53  ;;  %v666_v42 = vpop.f32.mrf.mxu0  ;;  %v11066_v55 = vld [vmem:[%s16116_s4 + $0x3b4] ss:$8 sps:$4 sm:$0xff]  }
 0x12e   : > { %v10150_v7 = vcombine.low %v12064_v17, %v12082_v23  ;;  %v1287_v18 = vshrl.u32 %v10687_v19, 16  ;;  %v1290_v20 = vshll.u32 %v10687_v19, 16  ;;  %v12210_v21 = vadd.f32 %v11834_v9, %v791_v61  ;;  %8189 = vmatpush2.bf16.msra.mxu0 %v11055_v57 }
 0x12f   : > { %7661 = vmatprep.mubr.bf16.mxu1 %v10151_v63  ;;  %7834 = vmatprep.mubr.bf16.mxu0 %v10117_v25  ;;  %v10688_v29 = vpack.c.bf16 %v930_v5, %v929_v52  ;;  %v1821_v30 = vshll.u32 %v12005_v3, 16  ;;  %v1827_v33 = vshll.u32 %v12035_v44, 16  ;;  %v1831_v49 = vshrl.u32 %v12035_v44, 16  ;;  %v11058_v3 = vld [vmem:[%s16116_s4 + $0x3c0] ss:$8 sps:$4 sm:$0xff]  }
 0x130   : > { %7662 = vmatmul.mubr.bf16.gmra.mxu1 %v10150_v7  ;;  %v1289_v34 = vrot.slane %v1287_v18, 7  ;;  %7835 = vmatmul.mubr.bf16.gmra.mxu0 %v10116_v0  ;;  %v931_v35 = vmax.f32 %v12210_v21, 0.0  ;;  %v1820_v36 = vrot.slane %v1818_v22, 4  ;;  %v1837_v37 = vshll.u32 %v1705_v11, 16  ;;  %v1564_v63 = vld [vmem:[#allocation2 + $0xe8] sm:$0x11]  ;;  %v12239_v18 = vpop.f32.mrf.mxu1 }
 0x131   : > { %v1295_v38 = vshrl.u32 %v10688_v29, 16  ;;  %v1298_v40 = vshll.u32 %v10688_v29, 16  ;;  %v1823_v41 = vrot.slane %v1821_v30, 5  ;;  %v1829_v46 = vrot.slane %v1827_v33, 5  ;;  %8190 = vmatprep.subr.bf16.mxu0 %v11060_v24  ;;  %v668_v30 = vpop.f32.mrf.mxu0  ;;  %v11069_v33 = vld [vmem:[%s16116_s4 + $0x3a4] ss:$8 sps:$4 sm:$0xff]  }
 0x132   : > { %v1292_v51 = vor.u32 %v1290_v20, %v1289_v34  ;;  %v1293_v44 = vrot.slane %v1289_v34, 4  ;;  %v1833_v52 = vrot.slane %v1831_v49, 4  ;;  %v1839_v53 = vrot.slane %v1837_v37, 5  ;;  %8191 = vmatpush2.bf16.msra.mxu0 %v11058_v3  ;;  %v11064_v20 = vld [vmem:[%s16116_s4 + $0x3b0] ss:$8 sps:$4 sm:$0xff]  }
 0x133   : > { %v1297_v56 = vrot.slane %v1295_v38, 7  ;;  %v1824_v59 = vor.u32 %v1823_v41, %v1820_v36  ;;  %v792_v60 = vmul.f32 %v11837_v10, %v664_v16  ;;  %v1329_v19 = vshrl.u32 %v11898_v13, 16  ;;  %8192 = vmatprep.subr.bf16.mxu0 %v11066_v55  ;;  %v1578_v38 = vld [vmem:[#allocation2 + $0xb8] sm:$0x11]  ;;  %v12264_v55 = vpop.f32.mrf.mxu1 }
 0x134   : > { %v12233_v61 = vsel %vm11881_vm14, %v1292_v51, %v11914_v26  ;;  %v1834_v25 = vor.u32 %v1833_v52, %v1829_v46  ;;  %v1332_v0 = vshll.u32 %v11898_v13, 16  ;;  %v793_v5 = vmul.f32 %v11825_v6, %v666_v42  ;;  %v11072_v13 = vld [vmem:[%s16116_s4 + $0x474] ss:$8 sps:$4 sm:$0xff]  }
 0x135   : > { %1562 = vst [vmem:[#allocation2 + $0x158] sm:$0xff] %v12233_v61  ;;  %v1300_v7 = vor.u32 %v1298_v40, %v1297_v56  ;;  %v1302_v11 = vrot.slane %v1297_v56, 4  ;;  %v1825_v57 = vrot.slane %v1824_v59, 4  ;;  %v868_v16 = vadd.f32 %v11841_v14, %v792_v60  ;;  %8361 = vmatprep.subr.bf16.mxu1 %v11072_v13  ;;  %v11075_v60 = vld [vmem:[%s16116_s4 + $0x394] ss:$8 sps:$4 sm:$0xff]  }
 0x136   : > { %v1835_v21 = vrot.slane %v1834_v25, 4  ;;  %v1331_v22 = vrot.slane %v1329_v19, 7  ;;  %v869_v24 = vadd.f32 %v11834_v9, %v793_v5  ;;  %v939_v29 = vmax.f32 %v11901_v15, 0.0  ;;  %8193 = vmatpush2.bf16.msra.mxu0 %v11064_v20  ;;  %v12297_v20 = vpop.f32.mrf.mxu1  ;;  %v11073_v13 = vld [vmem:[%s16116_s4 + $0x390] ss:$8 sps:$4 sm:$0xff]  }
 0x137   : > { %v12254_v49 = vsel %vm11921_vm1, %v1293_v44, %v1300_v7  ;;  %v1565_v34 = vsel %vm11931_vm3, %v1302_v11, %v1564_v63  ;;  %v1830_v36 = vsel %vm11754_vm2, %v1825_v57, %v1829_v46  ;;  %v932_v37 = vmax.f32 %v868_v16, 0.0  ;;  %v11067_v46 = vld [vmem:[%s16116_s4 + $0x3a0] ss:$8 sps:$4 sm:$0xff]   ;;  %8194 = vmatprep.subr.bf16.mxu0 %v11069_v33 }
 0x138   : > { %1563 = vst [vmem:[#allocation2 + $0x98] sm:$0xff] %v12254_v49  ;;  %1566 = vst [vmem:[#allocation2 + $0xe8] sm:$0x11] %v1565_v34  ;;  %v1840_v15 = vsel %vm11754_vm2, %v1835_v21, %v1839_v53  ;;  %v1334_v40 = vor.u32 %v1332_v0, %v1331_v22  ;;  %v1336_v41 = vrot.slane %v1331_v22, 4  ;;  %v933_v42 = vmax.f32 %v869_v24, 0.0 }
 0x139   : > { %v10135_v3 = vcombine.high %v1830_v36, %v1840_v15  ;;  %v10689_v51 = vpack.c.bf16 %v932_v37, %v931_v35  ;;  %v10134_v44 = vcombine.low %v1830_v36, %v1840_v15  ;;  %v794_v52 = vmul.f32 %v11837_v10, %v668_v30  ;;  %v1708_v0 = vld [vmem:[#allocation2 + $0x58] sm:$0x11] }
 0x13a   : > { %v12273_v53 = vsel %vm11921_vm1, %v1327_v31, %v1334_v40  ;;  %v1579_v56 = vsel %vm11931_vm3, %v1336_v41, %v1578_v38  ;;  %v800_v35 = vmul.f32 %v11837_v10, %v12128_v43  ;;  %v801_v59 = vmul.f32 %v11825_v6, %v12150_v50  ;;  %8195 = vmatpush2.bf16.msra.mxu0 %v11067_v46 }
 0x13b   : > { %7844 = vmatprep.mubr.bf16.mxu0 %v10135_v3  ;;  %v1304_v12 = vshrl.u32 %v10689_v51, 16  ;;  %v1307_v19 = vshll.u32 %v10689_v51, 16  ;;  %1577 = vst [vmem:[#allocation2 + $0x168] sm:$0xff] %v12273_v53  ;;  %1580 = vst [vmem:[#allocation2 + $0xb8] sm:$0x11] %v1579_v56  ;;  %v870_v31 = vadd.f32 %v11841_v14, %v794_v52  ;;  %v10169_v63 = vcombine.high %v12107_v8, %v12138_v48  ;;  %v12312_v52 = vpop.f32.mrf.mxu1 }
 0x13c   : > { %7845 = vmatmul.mubr.bf16.gmra.mxu0 %v10134_v44  ;;  %v876_v43 = vadd.f32 %v11841_v14, %v800_v35  ;;  %v12290_v50 = vadd.f32 %v11834_v9, %v801_v59  ;;  %v10168_v25 = vcombine.low %v12107_v8, %v12138_v48  ;;  %v1842_v5 = vshrl.u32 %v12064_v17, 16  ;;  %8196 = vmatprep.subr.bf16.mxu0 %v11075_v60 }
 0x13d   : > { %v1306_v7 = vrot.slane %v1304_v12, 7  ;;  %v934_v11 = vmax.f32 %v870_v31, 0.0  ;;  %7671 = vmatprep.mubr.bf16.mxu1 %v10169_v63  ;;  %v1845_v57 = vshll.u32 %v12064_v17, 16  ;;  %v1851_v16 = vshll.u32 %v12082_v23, 16  ;;  %v11080_v17 = vld [vmem:[%s16116_s4 + $0x384] ss:$8 sps:$4 sm:$0xff]  }
 0x13e   : > { %v940_v21 = vmax.f32 %v876_v43, 0.0  ;;  %v941_v22 = vmax.f32 %v12290_v50, 0.0  ;;  %7672 = vmatmul.mubr.bf16.gmra.mxu1 %v10168_v25  ;;  %v1844_v24 = vrot.slane %v1842_v5, 4  ;;  %v1855_v30 = vshrl.u32 %v12082_v23, 16  ;;  %8197 = vmatpush2.bf16.msra.mxu0 %v11073_v13  ;;  %v1571_v31 = vld [vmem:[#allocation2 + $0x28] sm:$0x11] }
 0x13f   : > { %v1309_v33 = vor.u32 %v1307_v19, %v1306_v7  ;;  %v1310_v34 = vrot.slane %v1306_v7, 4  ;;  %v10690_v36 = vpack.c.bf16 %v934_v11, %v933_v42  ;;  %v1847_v37 = vrot.slane %v1845_v57, 5  ;;  %v11078_v42 = vld [vmem:[%s16116_s4 + $0x380] ss:$8 sps:$4 sm:$0xff]   ;;  %8198 = vmatprep.subr.bf16.mxu0 %v11080_v17  ;;  %v12331_v11 = vpop.f32.mrf.mxu1 }
 0x140   : > { %v10693_v38 = vpack.c.bf16 %v940_v21, %v939_v29  ;;  %v1853_v15 = vrot.slane %v1851_v16, 5  ;;  %v1857_v40 = vrot.slane %v1855_v30, 4  ;;  %v1861_v41 = vshll.u32 %v1708_v0, 16 }
 0x141   : > { %v12310_v3 = vsel %vm11881_vm14, %v1309_v33, %v11914_v26  ;;  %v1312_v51 = vshrl.u32 %v10690_v36, 16  ;;  %v1315_v23 = vshll.u32 %v10690_v36, 16  ;;  %v1848_v44 = vor.u32 %v1847_v37, %v1844_v24 }
 0x142   : > { %1569 = vst [vmem:[#allocation2 + $0x80] sm:$0xff] %v12310_v3  ;;  %v1338_v29 = vshrl.u32 %v10693_v38, 16  ;;  %v1341_v46 = vshll.u32 %v10693_v38, 16  ;;  %v1858_v56 = vor.u32 %v1857_v40, %v1853_v15  ;;  %v1863_v35 = vrot.slane %v1861_v41, 5  ;;  %8199 = vmatpush2.bf16.msra.mxu0 %v11078_v42  ;;  %v12357_v40 = vpop.f32.mrf.mxu1  ;;  %v1711_v41 = vld [vmem:[#allocation2 + $0x130] sm:$0x11] }
 0x143   : > { %v1314_v59 = vrot.slane %v1312_v51, 7  ;;  %v1849_v60 = vrot.slane %v1848_v44, 4  ;;  %v802_v12 = vmul.f32 %v11837_v10, %v12168_v45  ;;  %v803_v19 = vmul.f32 %v11825_v6, %v12204_v47 }
 0x144   : > { %v12322_v63 = vrot.slane %v1338_v29, 7  ;;  %v1859_v43 = vrot.slane %v1858_v56, 4  ;;  %v804_v50 = vmul.f32 %v11837_v10, %v12220_v2  ;;  %v805_v25 = vmul.f32 %v11825_v6, %v12239_v18 }
 0x145   : > { %v1317_v0 = vor.u32 %v1315_v23, %v1314_v59  ;;  %v1319_v5 = vrot.slane %v1314_v59, 4  ;;  %v1854_v7 = vsel %vm11754_vm2, %v1849_v60, %v1853_v15  ;;  %v878_v45 = vadd.f32 %v11841_v14, %v802_v12 }
 0x146   : > { %v1343_v47 = vor.u32 %v1341_v46, %v12322_v63  ;;  %v1344_v57 = vrot.slane %v12322_v63, 4  ;;  %v1864_v2 = vsel %vm11754_vm2, %v1859_v43, %v1863_v35  ;;  %v879_v16 = vadd.f32 %v11834_v9, %v803_v19  ;;  %v1585_v43 = vld [vmem:[#allocation2 + $0x50] sm:$0x11] }
 0x147   : > { %v12340_v18 = vsel %vm11921_vm1, %v1310_v34, %v1317_v0  ;;  %v1572_v13 = vsel %vm11931_vm3, %v1319_v5, %v1571_v31  ;;  %v10153_v21 = vcombine.high %v1854_v7, %v1864_v2  ;;  %v942_v24 = vmax.f32 %v878_v45, 0.0 }
 0x148   : > { %1570 = vst [vmem:[#allocation2 + $0xa8] sm:$0xff] %v12340_v18  ;;  %1573 = vst [vmem:[#allocation2 + $0x28] sm:$0x11] %v1572_v13  ;;  %v12348_v30 = vsel %vm11881_vm14, %v1343_v47, %v11914_v26  ;;  %v10152_v17 = vcombine.low %v1854_v7, %v1864_v2  ;;  %v943_v33 = vmax.f32 %v879_v16, 0.0  ;;  %v880_v36 = vadd.f32 %v11841_v14, %v804_v50 }
 0x149   : > { %1583 = vst [vmem:[#allocation2 + $0x1a8] sm:$0xff] %v12348_v30  ;;  %7854 = vmatprep.mubr.bf16.mxu0 %v10153_v21  ;;  %v10694_v34 = vpack.c.bf16 %v942_v24, %v941_v22  ;;  %v881_v37 = vadd.f32 %v11834_v9, %v805_v25  ;;  %v10187_v38 = vcombine.high %v12165_v27, %v12181_v54  ;;  %v1866_v51 = vshrl.u32 %v12107_v8, 16 }
 0x14a   : > { %v10186_v15 = vcombine.low %v12165_v27, %v12181_v54  ;;  %7855 = vmatmul.mubr.bf16.gmra.mxu0 %v10152_v17  ;;  %v944_v26 = vmax.f32 %v880_v36, 0.0  ;;  %v1869_v23 = vshll.u32 %v12107_v8, 16  ;;  %v1875_v44 = vshll.u32 %v12138_v48, 16  ;;  %v12365_v8 = vpop.f32.mrf.mxu1 }
 0x14b   : > { %v1346_v22 = vshrl.u32 %v10694_v34, 16  ;;  %v1349_v42 = vshll.u32 %v10694_v34, 16  ;;  %v945_v29 = vmax.f32 %v881_v37, 0.0  ;;  %7681 = vmatprep.mubr.bf16.mxu1 %v10187_v38  ;;  %v1879_v46 = vshrl.u32 %v12138_v48, 16 }
 0x14c   : > { %v10695_v56 = vpack.c.bf16 %v944_v26, %v943_v33  ;;  %7682 = vmatmul.mubr.bf16.gmra.mxu1 %v10186_v15  ;;  %v1868_v35 = vrot.slane %v1866_v51, 4  ;;  %v1871_v59 = vrot.slane %v1869_v23, 5  ;;  %v1877_v60 = vrot.slane %v1875_v44, 5  ;;  %v714_v33 = vpop.f32.mrf.mxu1 }
 0x14d   : > { %v1348_v12 = vrot.slane %v1346_v22, 7  ;;  %v1881_v19 = vrot.slane %v1879_v46, 4  ;;  %v1885_v31 = vshll.u32 %v1711_v41, 16  ;;  %v806_v63 = vmul.f32 %v11837_v10, %v12264_v55  ;;  %v12391_v41 = vld [vmem:[#allocation2 + $0xb0] sm:$0xff] }
 0x14e   : > { %v1355_v50 = vshrl.u32 %v10695_v56, 16  ;;  %v1358_v25 = vshll.u32 %v10695_v56, 16  ;;  %v1872_v0 = vor.u32 %v1871_v59, %v1868_v35  ;;  %v807_v48 = vmul.f32 %v11825_v6, %v12297_v20  ;;  %v1714_v35 = vld [vmem:[#allocation2 + $0x1a0] sm:$0x11]  ;;  %v716_v59 = vpop.f32.mrf.mxu1 }
 0x14f   : > { %v1351_v5 = vor.u32 %v1349_v42, %v1348_v12  ;;  %v1353_v7 = vrot.slane %v1348_v12, 4  ;;  %v1882_v45 = vor.u32 %v1881_v19, %v1877_v60  ;;  %v1887_v47 = vrot.slane %v1885_v31, 5 }
 0x150   : > { %v12369_v2 = vrot.slane %v1355_v50, 7  ;;  %v1873_v16 = vrot.slane %v1872_v0, 4  ;;  %v882_v13 = vadd.f32 %v11841_v14, %v806_v63  ;;  %v883_v55 = vadd.f32 %v11834_v9, %v807_v48 }
 0x151   : > { %v12375_v21 = vsel %vm11921_vm1, %v1344_v57, %v1351_v5  ;;  %v1586_v24 = vsel %vm11931_vm3, %v1353_v7, %v1585_v43  ;;  %v1883_v17 = vrot.slane %v1882_v45, 4  ;;  %v808_v20 = vmul.f32 %v11837_v10, %v12312_v52  ;;  %v1592_v7 = vld [vmem:[#allocation2 + $0x198] sm:$0x11] }
 0x152   : > { %1584 = vst [vmem:[#allocation2 + $0x140] sm:$0xff] %v12375_v21  ;;  %1587 = vst [vmem:[#allocation2 + $0x50] sm:$0x11] %v1586_v24  ;;  %v1360_v36 = vor.u32 %v1358_v25, %v12369_v2  ;;  %v1361_v34 = vrot.slane %v12369_v2, 4  ;;  %v1878_v37 = vsel %vm11754_vm2, %v1873_v16, %v1877_v60  ;;  %v946_v57 = vmax.f32 %v882_v13, 0.0  ;;  %v718_v13 = vpop.f32.mrf.mxu1 }
 0x153   : > { %v1888_v38 = vsel %vm11754_vm2, %v1883_v17, %v1887_v47  ;;  %v947_v15 = vmax.f32 %v883_v55, 0.0  ;;  %v884_v26 = vadd.f32 %v11841_v14, %v808_v20  ;;  %v809_v52 = vmul.f32 %v11825_v6, %v12331_v11 }
 0x154   : > { %v12396_v51 = vsel %vm11881_vm14, %v1360_v36, %v12391_v41  ;;  %v10171_v23 = vcombine.high %v1878_v37, %v1888_v38  ;;  %v10696_v44 = vpack.c.bf16 %v946_v57, %v945_v29  ;;  %v10170_v22 = vcombine.low %v1878_v37, %v1888_v38 }
 0x155   : > { %1590 = vst [vmem:[#allocation2 + $0xa0] sm:$0xff] %v12396_v51  ;;  %v948_v42 = vmax.f32 %v884_v26, 0.0  ;;  %v885_v46 = vadd.f32 %v11834_v9, %v809_v52  ;;  %v10205_v56 = vcombine.high %v12233_v61, %v12254_v49  ;;  %v10204_v11 = vcombine.low %v12233_v61, %v12254_v49 }
 0x156   : > { %7864 = vmatprep.mubr.bf16.mxu0 %v10171_v23  ;;  %v1363_v60 = vshrl.u32 %v10696_v44, 16  ;;  %v1366_v12 = vshll.u32 %v10696_v44, 16  ;;  %v1890_v19 = vshrl.u32 %v12165_v27, 16  ;;  %v1893_v29 = vshll.u32 %v12165_v27, 16  ;;  %v722_v44 = vpop.f32.mrf.mxu1 }
 0x157   : > { %7865 = vmatmul.mubr.bf16.gmra.mxu0 %v10170_v22  ;;  %v10697_v31 = vpack.c.bf16 %v948_v42, %v947_v15  ;;  %v949_v63 = vmax.f32 %v885_v46, 0.0  ;;  %7691 = vmatprep.mubr.bf16.mxu1 %v10205_v56  ;;  %v1899_v43 = vshll.u32 %v12181_v54, 16  ;;  %v1903_v50 = vshrl.u32 %v12181_v54, 16 }
 0x158   : > { %v1365_v25 = vrot.slane %v1363_v60, 7  ;;  %7692 = vmatmul.mubr.bf16.gmra.mxu1 %v10204_v11  ;;  %v1892_v0 = vrot.slane %v1890_v19, 4  ;;  %v1895_v48 = vrot.slane %v1893_v29, 5  ;;  %v1909_v5 = vshll.u32 %v1714_v35, 16 }
 0x159   : > { %v1372_v45 = vshrl.u32 %v10697_v31, 16  ;;  %v1375_v47 = vshll.u32 %v10697_v31, 16  ;;  %v1901_v2 = vrot.slane %v1899_v43, 5  ;;  %v1905_v16 = vrot.slane %v1903_v50, 4 }
 0x15a   : > { %v1368_v27 = vor.u32 %v1366_v12, %v1365_v25  ;;  %v1370_v55 = vrot.slane %v1365_v25, 4  ;;  %v1896_v24 = vor.u32 %v1895_v48, %v1892_v0  ;;  %v1911_v17 = vrot.slane %v1909_v5, 5  ;;  %v724_v25 = vpop.f32.mrf.mxu1  ;;  %v1717_v48 = vld [vmem:[#allocation2 + $0xe8] sm:$0x11] }
 0x15b   : > { %v12408_v20 = vrot.slane %v1372_v45, 7  ;;  %v1906_v36 = vor.u32 %v1905_v16, %v1901_v2  ;;  %v810_v54 = vmul.f32 %v11837_v10, %v12357_v40  ;;  %v811_v37 = vmul.f32 %v11825_v6, %v12365_v8 }
 0x15c   : > { %v12416_v57 = vsel %vm11921_vm1, %v1361_v34, %v1368_v27  ;;  %v1593_v38 = vsel %vm11931_vm3, %v1370_v55, %v1592_v7  ;;  %v1897_v15 = vrot.slane %v1896_v24, 4  ;;  %v812_v26 = vmul.f32 %v11837_v10, %v714_v33 }
 0x15d   : > { %1591 = vst [vmem:[#allocation2 + $0x170] sm:$0xff] %v12416_v57  ;;  %1594 = vst [vmem:[#allocation2 + $0x198] sm:$0x11] %v1593_v38  ;;  %v1377_v52 = vor.u32 %v1375_v47, %v12408_v20  ;;  %v1378_v40 = vrot.slane %v12408_v20, 4  ;;  %v1907_v23 = vrot.slane %v1906_v36, 4  ;;  %v886_v8 = vadd.f32 %v11841_v14, %v810_v54 }
 0x15e   : > { %v1902_v34 = vsel %vm11754_vm2, %v1897_v15, %v1901_v2  ;;  %v887_v22 = vadd.f32 %v11834_v9, %v811_v37  ;;  %v888_v42 = vadd.f32 %v11841_v14, %v812_v26  ;;  %v813_v33 = vmul.f32 %v11825_v6, %v716_v59  ;;  %v1599_v38 = vld [vmem:[#allocation2 + $0xc8] sm:$0x11] }
 0x15f   : > { %v12433_v46 = vsel %vm11881_vm14, %v1377_v52, %v12391_v41  ;;  %v1912_v56 = vsel %vm11754_vm2, %v1907_v23, %v1911_v17  ;;  %v950_v11 = vmax.f32 %v886_v8, 0.0  ;;  %v10223_v35 = vcombine.high %v12310_v3, %v12340_v18 }
 0x160   : > { %1597 = vst [vmem:[#allocation2 + $0xc0] sm:$0xff] %v12433_v46  ;;  %v10189_v60 = vcombine.high %v1902_v34, %v1912_v56  ;;  %v10188_v12 = vcombine.low %v1902_v34, %v1912_v56  ;;  %v951_v19 = vmax.f32 %v887_v22, 0.0  ;;  %v952_v29 = vmax.f32 %v888_v42, 0.0 }
 0x161   : > { %v10698_v31 = vpack.c.bf16 %v950_v11, %v949_v63  ;;  %v889_v59 = vadd.f32 %v11834_v9, %v813_v33  ;;  %7701 = vmatprep.mubr.bf16.mxu1 %v10223_v35  ;;  %v10222_v43 = vcombine.low %v12310_v3, %v12340_v18  ;;  %v1914_v50 = vshrl.u32 %v12233_v61, 16 }
 0x162   : > { %7874 = vmatprep.mubr.bf16.mxu0 %v10189_v60  ;;  %v10699_v0 = vpack.c.bf16 %v952_v29, %v951_v19  ;;  %v1917_v5 = vshll.u32 %v12233_v61, 16  ;;  %v1923_v7 = vshll.u32 %v12254_v49, 16  ;;  %v1927_v45 = vshrl.u32 %v12254_v49, 16  ;;  %v726_v61 = vpop.f32.mrf.mxu1 }
 0x163   : > { %v1380_v47 = vshrl.u32 %v10698_v31, 16  ;;  %v1383_v63 = vshll.u32 %v10698_v31, 16  ;;  %7875 = vmatmul.mubr.bf16.gmra.mxu0 %v10188_v12  ;;  %v953_v2 = vmax.f32 %v889_v59, 0.0  ;;  %7702 = vmatmul.mubr.bf16.gmra.mxu1 %v10222_v43  ;;  %v1916_v16 = vrot.slane %v1914_v50, 4 }
 0x164   : > { %v1389_v27 = vshrl.u32 %v10699_v0, 16  ;;  %v1392_v55 = vshll.u32 %v10699_v0, 16  ;;  %v1919_v24 = vrot.slane %v1917_v5, 5  ;;  %v1925_v17 = vrot.slane %v1923_v7, 5  ;;  %v728_v12 = vpop.f32.mrf.mxu1 }
 0x165   : > { %v1382_v20 = vrot.slane %v1380_v47, 7  ;;  %v1929_v36 = vrot.slane %v1927_v45, 4  ;;  %v1933_v54 = vshll.u32 %v1717_v48, 16  ;;  %v814_v37 = vmul.f32 %v11837_v10, %v718_v13 }
 0x166   : > { %v12448_v15 = vrot.slane %v1389_v27, 7  ;;  %v1920_v49 = vor.u32 %v1919_v24, %v1916_v16  ;;  %v10241_v26 = vcombine.high %v12190_v58, %v12273_v53  ;;  %v815_v52 = vmul.f32 %v11825_v6, %v722_v44 }
 0x167   : > { %v1385_v23 = vor.u32 %v1383_v63, %v1382_v20  ;;  %v1387_v8 = vrot.slane %v1382_v20, 4  ;;  %v1930_v34 = vor.u32 %v1929_v36, %v1925_v17  ;;  %v1935_v22 = vrot.slane %v1933_v54, 5 }
 0x168   : > { %v1394_v42 = vor.u32 %v1392_v55, %v12448_v15  ;;  %v1395_v33 = vrot.slane %v12448_v15, 4  ;;  %v1921_v56 = vrot.slane %v1920_v49, 4  ;;  %v890_v13 = vadd.f32 %v11841_v14, %v814_v37  ;;  %7711 = vmatprep.mubr.bf16.mxu1 %v10241_v26  ;;  %v732_v55 = vpop.f32.mrf.mxu1 }
 0x169   : > { %v12458_v11 = vsel %vm11921_vm1, %v1378_v40, %v1385_v23  ;;  %v1600_v35 = vsel %vm11931_vm3, %v1387_v8, %v1599_v38  ;;  %v1931_v44 = vrot.slane %v1930_v34, 4  ;;  %v891_v60 = vadd.f32 %v11834_v9, %v815_v52  ;;  %v1606_v52 = vld [vmem:[#allocation2 + $0x30] sm:$0x11] }
 0x16a   : > { %1598 = vst [vmem:[#allocation2 + $0x190] sm:$0xff] %v12458_v11  ;;  %1601 = vst [vmem:[#allocation2 + $0xc8] sm:$0x11] %v1600_v35  ;;  %v12467_v19 = vsel %vm11881_vm14, %v1394_v42, %v12391_v41  ;;  %v1926_v29 = vsel %vm11754_vm2, %v1921_v56, %v1925_v17  ;;  %v954_v40 = vmax.f32 %v890_v13, 0.0  ;;  %v816_v31 = vmul.f32 %v11837_v10, %v724_v25  ;;  %v1720_v25 = vld [vmem:[#allocation2 + $0x28] sm:$0x11] }
 0x16b   : > { %1604 = vst [vmem:[#allocation2 + $0xf0] sm:$0xff] %v12467_v19  ;;  %v1936_v59 = vsel %vm11754_vm2, %v1931_v44, %v1935_v22  ;;  %v955_v43 = vmax.f32 %v891_v60, 0.0  ;;  %v817_v50 = vmul.f32 %v11825_v6, %v726_v61  ;;  %v10240_v0 = vcombine.low %v12190_v58, %v12273_v53  ;;  %v734_v22 = vpop.f32.mrf.mxu1 }
 0x16c   : > { %v10207_v48 = vcombine.high %v1926_v29, %v1936_v59  ;;  %v10700_v5 = vpack.c.bf16 %v954_v40, %v953_v2  ;;  %v10206_v7 = vcombine.low %v1926_v29, %v1936_v59  ;;  %v892_v45 = vadd.f32 %v11841_v14, %v816_v31  ;;  %v1723_v59 = vld [vmem:[#allocation2 + $0xb8] sm:$0x11] }
 0x16d   : > { %v893_v47 = vadd.f32 %v11834_v9, %v817_v50  ;;  %7712 = vmatmul.mubr.bf16.gmra.mxu1 %v10240_v0  ;;  %v1938_v63 = vshrl.u32 %v12310_v3, 16  ;;  %v1941_v16 = vshll.u32 %v12310_v3, 16  ;;  %v1947_v27 = vshll.u32 %v12340_v18, 16 }
 0x16e   : > { %7884 = vmatprep.mubr.bf16.mxu0 %v10207_v48  ;;  %v1397_v24 = vshrl.u32 %v10700_v5, 16  ;;  %v1400_v17 = vshll.u32 %v10700_v5, 16  ;;  %v956_v20 = vmax.f32 %v892_v45, 0.0  ;;  %v1951_v2 = vshrl.u32 %v12340_v18, 16 }
 0x16f   : > { %7885 = vmatmul.mubr.bf16.gmra.mxu0 %v10206_v7  ;;  %v957_v36 = vmax.f32 %v893_v47, 0.0  ;;  %v1940_v54 = vrot.slane %v1938_v63, 4  ;;  %v1943_v37 = vrot.slane %v1941_v16, 5  ;;  %v1949_v61 = vrot.slane %v1947_v27, 5  ;;  %v736_v7 = vpop.f32.mrf.mxu1 }
 0x170   : > { %v1399_v38 = vrot.slane %v1397_v24, 7  ;;  %v10701_v15 = vpack.c.bf16 %v956_v20, %v955_v43  ;;  %v1953_v49 = vrot.slane %v1951_v2, 4  ;;  %v1957_v26 = vshll.u32 %v1720_v25, 16 }
 0x171   : > { %v1944_v3 = vor.u32 %v1943_v37, %v1940_v54  ;;  %v818_v23 = vmul.f32 %v11837_v10, %v728_v12  ;;  %v10259_v8 = vcombine.high %v12348_v30, %v12375_v21  ;;  %v1962_v34 = vshrl.u32 %v12190_v58, 16 }
 0x172   : > { %v1402_v18 = vor.u32 %v1400_v17, %v1399_v38  ;;  %v1404_v42 = vrot.slane %v1399_v38, 4  ;;  %v1406_v56 = vshrl.u32 %v10701_v15, 16  ;;  %v1409_v13 = vshll.u32 %v10701_v15, 16  ;;  %v738_v38 = vpop.f32.mrf.mxu1 }
 0x173   : > { %v1945_v35 = vrot.slane %v1944_v3, 4  ;;  %v1954_v44 = vor.u32 %v1953_v49, %v1949_v61  ;;  %v1959_v60 = vrot.slane %v1957_v26, 5  ;;  %v894_v29 = vadd.f32 %v11841_v14, %v818_v23  ;;  %7721 = vmatprep.mubr.bf16.mxu1 %v10259_v8 }
 0x174   : > { %v12491_v40 = vsel %vm11921_vm1, %v1395_v33, %v1402_v18  ;;  %v1607_v12 = vsel %vm11931_vm3, %v1404_v42, %v1606_v52  ;;  %v1408_v31 = vrot.slane %v1406_v56, 7  ;;  %v1964_v43 = vrot.slane %v1962_v34, 4  ;;  %v1613_v34 = vld [vmem:[#allocation2 + $0x8] sm:$0x11] }
 0x175   : > { %1605 = vst [vmem:[#allocation2 + $0x150] sm:$0xff] %v12491_v40  ;;  %1608 = vst [vmem:[#allocation2 + $0x30] sm:$0x11] %v1607_v12  ;;  %v1950_v50 = vsel %vm11754_vm2, %v1945_v35, %v1949_v61  ;;  %v1955_v0 = vrot.slane %v1954_v44, 4  ;;  %v958_v48 = vmax.f32 %v894_v29, 0.0  ;;  %v1965_v5 = vshll.u32 %v12190_v58, 16 }
 0x176   : > { %v1411_v45 = vor.u32 %v1409_v13, %v1408_v31  ;;  %v1412_v33 = vrot.slane %v1408_v31, 4  ;;  %v1971_v47 = vshll.u32 %v12273_v53, 16  ;;  %v1975_v25 = vshrl.u32 %v12273_v53, 16 }
 0x177   : > { %v1960_v63 = vsel %vm11754_vm2, %v1955_v0, %v1959_v60  ;;  %v10702_v16 = vpack.c.bf16 %v958_v48, %v957_v36  ;;  %v1967_v27 = vrot.slane %v1965_v5, 5  ;;  %v1981_v24 = vshll.u32 %v1723_v59, 16  ;;  %v1726_v48 = vld [vmem:[#allocation2 + $0x50] sm:$0x11] }
 0x178   : > { %v12506_v17 = vsel %vm11881_vm14, %v1411_v45, %v12391_v41  ;;  %v10225_v20 = vcombine.high %v1950_v50, %v1960_v63  ;;  %v10224_v58 = vcombine.low %v1950_v50, %v1960_v63  ;;  %v1973_v2 = vrot.slane %v1971_v47, 5  ;;  %v11120_v5 = vld [vmem:[%s16116_s4 + $0x574] ss:$8 sps:$4 sm:$0xff]  }
 0x179   : > { %1611 = vst [vmem:[#allocation2 + $0xf8] sm:$0xff] %v12506_v17  ;;  %v1414_v54 = vshrl.u32 %v10702_v16, 16  ;;  %v1417_v37 = vshll.u32 %v10702_v16, 16  ;;  %v1968_v61 = vor.u32 %v1967_v27, %v1964_v43  ;;  %v1977_v53 = vrot.slane %v1975_v25, 4  ;;  %8554 = vmatprep.subr.bf16.mxu0 %v11120_v5 }
 0x17a   : > { %7894 = vmatprep.mubr.bf16.mxu0 %v10225_v20  ;;  %v1983_v15 = vrot.slane %v1981_v24, 5  ;;  %v819_v36 = vmul.f32 %v11825_v6, %v732_v55  ;;  %v820_v49 = vmul.f32 %v11837_v10, %v734_v22  ;;  %v821_v26 = vmul.f32 %v11825_v6, %v736_v7 }
 0x17b   : > { %v1416_v52 = vrot.slane %v1414_v54, 7  ;;  %7895 = vmatmul.mubr.bf16.gmra.mxu0 %v10224_v58  ;;  %v1969_v3 = vrot.slane %v1968_v61, 4  ;;  %v1978_v23 = vor.u32 %v1977_v53, %v1973_v2  ;;  %v10258_v8 = vcombine.low %v12348_v30, %v12375_v21 }
 0x17c   : > { %v895_v18 = vadd.f32 %v11834_v9, %v819_v36  ;;  %v896_v42 = vadd.f32 %v11841_v14, %v820_v49  ;;  %v897_v56 = vadd.f32 %v11834_v9, %v821_v26  ;;  %v822_v55 = vmul.f32 %v11837_v10, %v738_v38 }
 0x17d   : > { %v1419_v13 = vor.u32 %v1417_v37, %v1416_v52  ;;  %v1421_v22 = vrot.slane %v1416_v52, 4  ;;  %v1974_v35 = vsel %vm11754_vm2, %v1969_v3, %v1973_v2  ;;  %v1979_v44 = vrot.slane %v1978_v23, 4  ;;  %7722 = vmatmul.mubr.bf16.gmra.mxu1 %v10258_v8 }
 0x17e   : > { %v959_v60 = vmax.f32 %v895_v18, 0.0  ;;  %v960_v29 = vmax.f32 %v896_v42, 0.0  ;;  %v961_v12 = vmax.f32 %v897_v56, 0.0  ;;  %v898_v31 = vadd.f32 %v11841_v14, %v822_v55  ;;  %v1620_v18 = vld [vmem:[#allocation2 + $0x68] sm:$0x11] }
 0x17f   : > { %v12523_v59 = vsel %vm11921_vm1, %v1412_v33, %v1419_v13  ;;  %v1614_v43 = vsel %vm11931_vm3, %v1421_v22, %v1613_v34  ;;  %v1984_v50 = vsel %vm11754_vm2, %v1979_v44, %v1983_v15  ;;  %v10277_v0 = vcombine.high %v12396_v51, %v12416_v57 }
 0x180   : > { %1612 = vst [vmem:[#allocation2 + $0x18] sm:$0xff] %v12523_v59  ;;  %1615 = vst [vmem:[#allocation2 + $0x8] sm:$0x11] %v1614_v43  ;;  %v10243_v7 = vcombine.high %v1974_v35, %v1984_v50  ;;  %v10703_v45 = vpack.c.bf16 %v960_v29, %v959_v60  ;;  %v962_v33 = vmax.f32 %v898_v31, 0.0  ;;  %v10242_v47 = vcombine.low %v1974_v35, %v1984_v50  ;;  %v1729_v60 = vld [vmem:[#allocation2 + $0x198] sm:$0x11] }
 0x181   : > { %7731 = vmatprep.mubr.bf16.mxu1 %v10277_v0  ;;  %v1986_v25 = vshrl.u32 %v12348_v30, 16  ;;  %v1989_v63 = vshll.u32 %v12348_v30, 16  ;;  %v1995_v16 = vshll.u32 %v12375_v21, 16  ;;  %v1999_v27 = vshrl.u32 %v12375_v21, 16 }
 0x182   : > { %7904 = vmatprep.mubr.bf16.mxu0 %v10243_v7  ;;  %v1423_v24 = vshrl.u32 %v10703_v45, 16  ;;  %v1426_v20 = vshll.u32 %v10703_v45, 16  ;;  %v10704_v58 = vpack.c.bf16 %v962_v33, %v961_v12  ;;  %v2005_v2 = vshll.u32 %v1726_v48, 16 }
 0x183   : > { %7905 = vmatmul.mubr.bf16.gmra.mxu0 %v10242_v47  ;;  %v1988_v54 = vrot.slane %v1986_v25, 4  ;;  %v1991_v37 = vrot.slane %v1989_v63, 5  ;;  %v1997_v61 = vrot.slane %v1995_v16, 5  ;;  %v2001_v53 = vrot.slane %v1999_v27, 4  ;;  %v1732_v47 = vld [vmem:[#allocation2 + $0xc8] sm:$0x11] }
 0x184   : > { %v1425_v38 = vrot.slane %v1423_v24, 7  ;;  %v1431_v15 = vshrl.u32 %v10704_v58, 16  ;;  %v1434_v36 = vshll.u32 %v10704_v58, 16  ;;  %v2007_v49 = vrot.slane %v2005_v2, 5 }
 0x185   : > { %v1992_v30 = vor.u32 %v1991_v37, %v1988_v54  ;;  %v2002_v26 = vor.u32 %v2001_v53, %v1997_v61  ;;  %v10276_v21 = vcombine.low %v12396_v51, %v12416_v57  ;;  %v10295_v52 = vcombine.high %v12433_v46, %v12458_v11 }
 0x186   : > { %v1428_v3 = vor.u32 %v1426_v20, %v1425_v38  ;;  %v1429_v23 = vrot.slane %v1425_v38, 4  ;;  %v1433_v8 = vrot.slane %v1431_v15, 7  ;;  %v2010_v34 = vshrl.u32 %v12396_v51, 16 }
 0x187   : > { %v1993_v42 = vrot.slane %v1992_v30, 4  ;;  %v2003_v56 = vrot.slane %v2002_v26, 4  ;;  %7732 = vmatmul.mubr.bf16.gmra.mxu1 %v10276_v21  ;;  %v2013_v55 = vshll.u32 %v12396_v51, 16  ;;  %v2019_v13 = vshll.u32 %v12416_v57, 16 }
 0x188   : > { %v12549_v22 = vsel %vm11881_vm14, %v1428_v3, %v12391_v41  ;;  %v1436_v35 = vor.u32 %v1434_v36, %v1433_v8  ;;  %v1438_v44 = vrot.slane %v1433_v8, 4  ;;  %7741 = vmatprep.mubr.bf16.mxu1 %v10295_v52  ;;  %v2012_v29 = vrot.slane %v2010_v34, 4  ;;  %v1735_v36 = vld [vmem:[#allocation2 + $0x30] sm:$0x11] }
 0x189   : > { %1618 = vst [vmem:[#allocation2 + $0x60] sm:$0xff] %v12549_v22  ;;  %v1998_v12 = vsel %vm11754_vm2, %v1993_v42, %v1997_v61  ;;  %v2008_v51 = vsel %vm11754_vm2, %v2003_v56, %v2007_v49  ;;  %v2015_v31 = vrot.slane %v2013_v55, 5  ;;  %v2021_v48 = vrot.slane %v2019_v13, 5 }
 0x18a   : > { %v12558_v43 = vsel %vm11921_vm1, %v1429_v23, %v1436_v35  ;;  %v1621_v50 = vsel %vm11931_vm3, %v1438_v44, %v1620_v18  ;;  %v10261_v0 = vcombine.high %v1998_v12, %v2008_v51  ;;  %v10260_v5 = vcombine.low %v1998_v12, %v2008_v51 }
 0x18b   : > { %1619 = vst [vmem:[#allocation2 + $0x70] sm:$0xff] %v12558_v43  ;;  %1622 = vst [vmem:[#allocation2 + $0x68] sm:$0x11] %v1621_v50  ;;  %v2016_v7 = vor.u32 %v2015_v31, %v2012_v29  ;;  %v2023_v45 = vshrl.u32 %v12416_v57, 16  ;;  %v2029_v33 = vshll.u32 %v1729_v60, 16  ;;  %v10294_v25 = vcombine.low %v12433_v46, %v12458_v11 }
 0x18c   : > { %7914 = vmatprep.mubr.bf16.mxu0 %v10261_v0  ;;  %v2034_v63 = vshrl.u32 %v12433_v46, 16  ;;  %v2037_v16 = vshll.u32 %v12433_v46, 16  ;;  %v2043_v27 = vshll.u32 %v12458_v11, 16  ;;  %v10313_v58 = vcombine.high %v12467_v19, %v12491_v40 }
 0x18d   : > { %7915 = vmatmul.mubr.bf16.gmra.mxu0 %v10260_v5  ;;  %v2017_v24 = vrot.slane %v2016_v7, 4  ;;  %v2025_v20 = vrot.slane %v2023_v45, 4  ;;  %v2047_v57 = vshrl.u32 %v12458_v11, 16  ;;  %v2053_v61 = vshll.u32 %v1732_v47, 16  ;;  %v1738_v7 = vld [vmem:[#allocation2 + $0x8] sm:$0x11] }
 0x18e   : > { %v2036_v2 = vrot.slane %v2034_v63, 4  ;;  %v2039_v54 = vrot.slane %v2037_v16, 5  ;;  %v2045_v37 = vrot.slane %v2043_v27, 5  ;;  %v2031_v38 = vrot.slane %v2029_v33, 5 }
 0x18f   : > { %v2026_v53 = vor.u32 %v2025_v20, %v2021_v48  ;;  %7742 = vmatmul.mubr.bf16.gmra.mxu1 %v10294_v25  ;;  %v2049_v15 = vrot.slane %v2047_v57, 4  ;;  %v2022_v46 = vsel %vm11754_vm2, %v2017_v24, %v2021_v48  ;;  %v2055_v30 = vrot.slane %v2053_v61, 5 }
 0x190   : > { %7751 = vmatprep.mubr.bf16.mxu1 %v10313_v58  ;;  %v2040_v49 = vor.u32 %v2039_v54, %v2036_v2  ;;  %v2058_v26 = vshrl.u32 %v12467_v19, 16  ;;  %v2061_v11 = vshll.u32 %v12467_v19, 16  ;;  %v2067_v3 = vshll.u32 %v12491_v40, 16  ;;  %v2193_v54 = vld [vmem:[#allocation2 + $0xb0] sm:$0xee] }
 0x191   : > { %v2027_v21 = vrot.slane %v2026_v53, 4  ;;  %v2050_v52 = vor.u32 %v2049_v15, %v2045_v37  ;;  %v2071_v34 = vshrl.u32 %v12491_v40, 16  ;;  %v2077_v18 = vshll.u32 %v1735_v36, 16 }
 0x192   : > { %v2041_v23 = vrot.slane %v2040_v49, 4  ;;  %v2060_v8 = vrot.slane %v2058_v26, 4  ;;  %v2063_v55 = vrot.slane %v2061_v11, 5  ;;  %v2069_v13 = vrot.slane %v2067_v3, 5  ;;  %v2195_v49 = vld [vmem:[#allocation2 + $0x10] sm:$0x11] }
 0x193   : > { %v2032_v42 = vsel %vm11754_vm2, %v2027_v21, %v2031_v38  ;;  %v2051_v56 = vrot.slane %v2050_v52, 4  ;;  %v2073_v60 = vrot.slane %v2071_v34, 4  ;;  %v10312_v51 = vcombine.low %v12467_v19, %v12491_v40 }
 0x194   : > { %v10279_v35 = vcombine.high %v2022_v46, %v2032_v42  ;;  %v2046_v44 = vsel %vm11754_vm2, %v2041_v23, %v2045_v37  ;;  %v10278_v29 = vcombine.low %v2022_v46, %v2032_v42  ;;  %v2064_v31 = vor.u32 %v2063_v55, %v2060_v8  ;;  %v1741_v8 = vld [vmem:[#allocation2 + $0x68] sm:$0x11] }
 0x195   : > { %v2056_v12 = vsel %vm11754_vm2, %v2051_v56, %v2055_v30  ;;  %v10331_v0 = vcombine.high %v12506_v17, %v12523_v59  ;;  %v2074_v48 = vor.u32 %v2073_v60, %v2069_v13  ;;  %v2079_v5 = vrot.slane %v2077_v18, 5 }
 0x196   : > { %7924 = vmatprep.mubr.bf16.mxu0 %v10279_v35  ;;  %v10297_v50 = vcombine.high %v2046_v44, %v2056_v12  ;;  %v2065_v45 = vrot.slane %v2064_v31, 4  ;;  %v2082_v33 = vshrl.u32 %v12506_v17, 16  ;;  %v2085_v47 = vshll.u32 %v12506_v17, 16  ;;  %v12613_v35 = vld [vmem:[#allocation2 + $0x160] sm:$0xff] }
 0x197   : > { %7925 = vmatmul.mubr.bf16.gmra.mxu0 %v10278_v29  ;;  %7752 = vmatmul.mubr.bf16.gmra.mxu1 %v10312_v51  ;;  %v2091_v25 = vshll.u32 %v12523_v59, 16  ;;  %v2075_v19 = vrot.slane %v2074_v48, 4  ;;  %v2095_v40 = vshrl.u32 %v12523_v59, 16  ;;  %v2101_v24 = vshll.u32 %v1738_v7, 16  ;;  %v742_v48 = vpop.f32.mrf.mxu1 }
 0x198   : > { %7934 = vmatprep.mubr.bf16.mxu0 %v10297_v50  ;;  %7761 = vmatprep.mubr.bf16.mxu1 %v10331_v0  ;;  %v2084_v63 = vrot.slane %v2082_v33, 4  ;;  %v2087_v16 = vrot.slane %v2085_v47, 5  ;;  %v2070_v20 = vsel %vm11754_vm2, %v2065_v45, %v2069_v13  ;;  %v2106_v2 = vshrl.u32 %v12549_v22, 16 }
 0x199   : > { %v2093_v27 = vrot.slane %v2091_v25, 5  ;;  %v2080_v58 = vsel %vm11754_vm2, %v2075_v19, %v2079_v5  ;;  %v2097_v57 = vrot.slane %v2095_v40, 4  ;;  %v10330_v37 = vcombine.low %v12506_v17, %v12523_v59  ;;  %v2198_v19 = vld [vmem:[#allocation2 + $0x128] sm:$0x11] }
 0x19a   : > { %v2088_v61 = vor.u32 %v2087_v16, %v2084_v63  ;;  %v2109_v53 = vshll.u32 %v12549_v22, 16  ;;  %v10296_v38 = vcombine.low %v2046_v44, %v2056_v12  ;;  %v2115_v36 = vshll.u32 %v12558_v43, 16  ;;  %v12624_v63 = vld [vmem:[#allocation2 + $0x178] sm:$0xff]  ;;  %v744_v16 = vpop.f32.mrf.mxu1 }
 0x19b   : > { %v2098_v15 = vor.u32 %v2097_v57, %v2093_v27  ;;  %v2119_v46 = vshrl.u32 %v12558_v43, 16  ;;  %v10315_v30 = vcombine.high %v2070_v20, %v2080_v58  ;;  %v10349_v26 = vcombine.high %v12549_v22, %v12558_v43  ;;  %v11070_v57 = vld [vmem:[%s16116_s4 + $0x470] ss:$8 sps:$4 sm:$0xff]  }
 0x19c   : > { %v2103_v21 = vrot.slane %v2101_v24, 5  ;;  %v10030_v52 = vrot.slane %v2193_v54, 9  ;;  %v2089_v11 = vrot.slane %v2088_v61, 4  ;;  %v2108_v3 = vrot.slane %v2106_v2, 4 }
 0x19d   : > { %v2111_v17 = vrot.slane %v2109_v53, 5  ;;  %v2294_v59 = vrot.slane %v12391_v41, 5  ;;  %v2099_v23 = vrot.slane %v2098_v15, 4  ;;  %v2117_v34 = vrot.slane %v2115_v36, 5  ;;  %v11083_v53 = vld [vmem:[%s16116_s4 + $0x464] ss:$8 sps:$4 sm:$0xff]  }
 0x19e   : > { %v2121_v18 = vrot.slane %v2119_v46, 4  ;;  %v2297_v42 = vrot.slane %v2195_v49, 5  ;;  %v16150_v56 = vmov 0  ;;  %v2125_v44 = vshll.u32 %v1741_v8, 16  ;;  %v2201_v36 = vld [vmem:[#allocation2 + $0x108] sm:$0x11] }
 0x19f   : > { %7935 = vmatmul.mubr.bf16.gmra.mxu0 %v10296_v38  ;;  %7762 = vmatmul.mubr.bf16.gmra.mxu1 %v10330_v37  ;;  %v16151_v56 = vsel %vm12607_vm6, 4294967295, %v16150_v56  ;;  %v2296_v55 = vrot.slane %v2294_v59, 4  ;;  %v2295_v13 = vsel %vm12607_vm6, %v10030_v52, %v2294_v59  ;;  %v2094_v29 = vsel %vm11754_vm2, %v2089_v11, %v2093_v27  ;;  %v2196_v27 = vld [vmem:[#allocation2 + $0x48] sm:$0xee]  ;;  %v746_v37 = vpop.f32.mrf.mxu1 }
 0x1a0   : > { %7944 = vmatprep.mubr.bf16.mxu0 %v10315_v30  ;;  %7771 = vmatprep.mubr.bf16.mxu1 %v10349_v26  ;;  %16152 = vst [vmem:[#allocation6_spill] sm:$0xff] %v16151_v56  ;;  %v2104_v12 = vsel %vm11754_vm2, %v2099_v23, %v2103_v21  ;;  %v2112_v51 = vor.u32 %v2111_v17, %v2108_v3  ;;  %v2301_v0 = vrot.slane %v12613_v35, 5  ;;  %v2127_v25 = vrot.slane %v2125_v44, 5  ;;  %v11081_v30 = vld [vmem:[%s16116_s4 + $0x460] ss:$8 sps:$4 sm:$0xff]   ;;  %v12644_v21 = vld [vmem:[#allocation2 + $0x90] sm:$0xff] }
 0x1a1   : > { %v2298_v60 = vsel %vm12607_vm6, %v2296_v55, %v2297_v42  ;;  %v2122_v31 = vor.u32 %v2121_v18, %v2117_v34  ;;  %v10314_v5 = vcombine.low %v2070_v20, %v2080_v58  ;;  %v10348_v7 = vcombine.low %v12549_v22, %v12558_v43  ;;  %v2199_v26 = vld [vmem:[#allocation2 + $0x40] sm:$0xee]  ;;  %v748_v52 = vpop.f32.mrf.mxu1  ;;  %v11087_v3 = vld [vmem:[%s16116_s4 + $0x454] ss:$8 sps:$4 sm:$0xff]  }
 0x1a2   : > { %v10083_v50 = vcombine.high %v2295_v13, %v2298_v60  ;;  %v10333_v45 = vcombine.high %v2094_v29, %v2104_v12  ;;  %v2113_v33 = vrot.slane %v2112_v51, 4  ;;  %v2303_v40 = vrot.slane %v2301_v0, 4 }
 0x1a3   : > { %v2123_v47 = vrot.slane %v2122_v31, 4  ;;  %v2304_v24 = vrot.slane %v2198_v19, 5  ;;  %v10082_v43 = vcombine.low %v2295_v13, %v2298_v60  ;;  %v2308_v58 = vrot.slane %v12624_v63, 5  ;;  %v2468_v60 = vld [vmem:[#allocation2 + $0x48] sm:$0xff]  ;;  %v12674_v19 = vpop.f32.mrf.mxu1 }
 0x1a4   : > { %v2118_v20 = vsel %vm11754_vm2, %v2113_v33, %v2117_v34  ;;  %v10031_v2 = vrot.slane %v2196_v27, 9  ;;  %v10332_v61 = vcombine.low %v2094_v29, %v2104_v12  ;;  %v2311_v11 = vrot.slane %v2201_v36, 5  ;;  %v11085_v12 = vld [vmem:[%s16116_s4 + $0x450] ss:$8 sps:$4 sm:$0xff]   ;;  %v2470_v36 = vld [vmem:[#allocation2 + $0x40] sm:$0xff] }
 0x1a5   : > { %v2128_v22 = vsel %vm11754_vm2, %v2123_v47, %v2127_v25  ;;  %v2305_v54 = vsel %vm12607_vm6, %v2303_v40, %v2304_v24  ;;  %v2310_v49 = vrot.slane %v2308_v58, 4  ;;  %v823_v17 = vmul.f32 %v11825_v6, %v742_v48  ;;  %v11091_v48 = vld [vmem:[%s16116_s4 + $0x444] ss:$8 sps:$4 sm:$0xff]  }
 0x1a6   : > { %v10351_v38 = vcombine.high %v2118_v20, %v2128_v22  ;;  %v2302_v15 = vsel %vm12607_vm6, %v10031_v2, %v2301_v0  ;;  %v824_v59 = vmul.f32 %v11837_v10, %v744_v16  ;;  %v825_v23 = vmul.f32 %v11825_v6, %v746_v37  ;;  %v2204_v0 = vld [vmem:[#allocation2 + $0x118] sm:$0x11]  ;;  %v11089_v16 = vld [vmem:[%s16116_s4 + $0x440] ss:$8 sps:$4 sm:$0xff]  }
 0x1a7   : > { %7945 = vmatmul.mubr.bf16.gmra.mxu0 %v10314_v5  ;;  %7772 = vmatmul.mubr.bf16.gmra.mxu1 %v10348_v7  ;;  %v10101_v46 = vcombine.high %v2302_v15, %v2305_v54  ;;  %v10032_v8 = vrot.slane %v2199_v26, 9  ;;  %v12654_v34 = vsel %vm12607_vm6, %v2310_v49, %v2311_v11  ;;  %v2315_v18 = vrot.slane %v12644_v21, 5  ;;  %v2207_v37 = vld [vmem:[#allocation2 + $0x58] sm:$0x11] }
 0x1a8   : > { %7954 = vmatprep.mubr.bf16.mxu0 %v10333_v45  ;;  %8007 = vmatprep.mubr.bf16.mxu1 %v10083_v50  ;;  %v826_v42 = vmul.f32 %v11837_v10, %v748_v52  ;;  %v10350_v55 = vcombine.low %v2118_v20, %v2128_v22  ;;  %v899_v13 = vadd.f32 %v11834_v9, %v823_v17  ;;  %v2202_v45 = vld [vmem:[#allocation2 + $0x110] sm:$0xee]  ;;  %v2318_v40 = vrot.slane %v2204_v0, 5 }
 0x1a9   : > { %v900_v44 = vadd.f32 %v11841_v14, %v824_v59  ;;  %v10100_v29 = vcombine.low %v2302_v15, %v2305_v54  ;;  %v2309_v6 = vsel %vm12607_vm6, %v10032_v8, %v2308_v58  ;;  %v901_v51 = vadd.f32 %v11834_v9, %v825_v23  ;;  %v12672_v9 = vld [vmem:[#allocation2 + $0x100] sm:$0xff]  ;;  %v11095_v20 = vld [vmem:[%s16116_s4 + $0x434] ss:$8 sps:$4 sm:$0xff]   ;;  %v11118_v52 = vld [vmem:[%s16116_s4 + $0x570] ss:$8 sps:$4 sm:$0xff]  }
 0x1aa   : > { %v902_v10 = vadd.f32 %v11841_v14, %v826_v42  ;;  %v10085_v31 = vcombine.high %v2468_v60, %v12613_v35  ;;  %v10119_v50 = vcombine.high %v2309_v6, %v12654_v34  ;;  %v963_v5 = vmax.f32 %v899_v13, 0.0  ;;  %v1627_v59 = vld [vmem:[#allocation2 + $0x88] sm:$0x11]  ;;  %v2205_v42 = vld [vmem:[#allocation2 + $0x148] sm:$0xee]  ;;  %v2472_v0 = vld [vmem:[#allocation2 + $0x110] sm:$0xff] }
 0x1ab   : > { %v964_v7 = vmax.f32 %v900_v44, 0.0  ;;  %v2317_v33 = vrot.slane %v2315_v18, 4  ;;  %v965_v47 = vmax.f32 %v901_v51, 0.0  ;;  %v10033_v24 = vrot.slane %v2202_v45, 9  ;;  %v11125_v23 = vld [vmem:[%s16116_s4 + $0x564] ss:$8 sps:$4 sm:$0xff]  }
 0x1ac   : > { %v966_v25 = vmax.f32 %v902_v10, 0.0  ;;  %v10084_v15 = vcombine.low %v2468_v60, %v12613_v35  ;;  %v10103_v11 = vcombine.high %v2470_v36, %v12624_v63  ;;  %v2325_v60 = vrot.slane %v2207_v37, 5  ;;  %v11129_v45 = vld [vmem:[%s16116_s4 + $0x550] ss:$8 sps:$4 sm:$0xff]  }
 0x1ad   : > { %v10705_v14 = vpack.c.bf16 %v964_v7, %v963_v5  ;;  %v12684_v58 = vsel %vm12607_vm6, %v2317_v33, %v2318_v40  ;;  %v2316_v49 = vsel %vm12607_vm6, %v10033_v24, %v2315_v18  ;;  %v10034_v32 = vrot.slane %v2205_v42, 9  ;;  %v11102_v7 = vld [vmem:[%s16116_s4 + $0x410] ss:$8 sps:$4 sm:$0xff]   ;;  %v11136_v40 = vld [vmem:[%s16116_s4 + $0x544] ss:$8 sps:$4 sm:$0xff]  }
 0x1ae   : > { %v10706_v27 = vpack.c.bf16 %v966_v25, %v965_v47  ;;  %v10137_v35 = vcombine.high %v2316_v49, %v12684_v58  ;;  %v10121_v33 = vcombine.high %v2472_v0, %v12644_v21  ;;  %v11107_v25 = vld [vmem:[%s16116_s4 + $0x404] ss:$8 sps:$4 sm:$0xff]   ;;  %v12760_v24 = vld [vmem:[#allocation2 + $0x78] sm:$0xff]  ;;  %v11145_v42 = vld [vmem:[%s16116_s4 + $0x520] ss:$8 sps:$4 sm:$0xff]  }
 0x1af   : > { %7955 = vmatmul.mubr.bf16.gmra.mxu0 %v10332_v61  ;;  %8008 = vmatmul.mubr.bf16.vlgmr.msra.gmra.mxu1 %v10082_v43  ;;  %v1440_v22 = vshrl.u32 %v10705_v14, 16  ;;  %v1443_v43 = vshll.u32 %v10705_v14, 16  ;;  %v11093_v61 = vld [vmem:[%s16116_s4 + $0x430] ss:$8 sps:$4 sm:$0xff]  }
 0x1b0   : > { %7964 = vmatprep.mubr.bf16.mxu0 %v10351_v38  ;;  %8362 = vmatpush1.bf16.msra.mxu1 %v11070_v57  ;;  %v2322_v57 = vrot.slane %v12672_v9, 5  ;;  %v1448_v2 = vshrl.u32 %v10706_v27, 16  ;;  %v1451_v54 = vshll.u32 %v10706_v27, 16  ;;  %v12690_v38 = vpop.f32.mrf.mxu1  ;;  %v2208_v27 = vld [vmem:[#allocation2 + $0xd8] sm:$0xee] }
 0x1b1   : > { %8017 = vmatprep.mubr.bf16.mxu1 %v10101_v46  ;;  %8363 = vmatprep.subr.bf16.mxu1 %v11083_v53  ;;  %v1442_v53 = vrot.slane %v1440_v22, 7  ;;  %v10118_v46 = vcombine.low %v2309_v6, %v12654_v34 }
 0x1b2   : > { %v1450_v26 = vrot.slane %v1448_v2, 7  ;;  %v2324_v8 = vrot.slane %v2322_v57, 4  ;;  %v12714_v44 = vpop.f32.mrf.mxu1  ;;  %v2323_v5 = vsel %vm12607_vm6, %v10034_v32, %v2322_v57  ;;  %v11112_v57 = vld [vmem:[%s16116_s4 + $0x4f4] ss:$8 sps:$4 sm:$0xff]  }
 0x1b3   : > { %v1446_v17 = vrot.slane %v1442_v53, 4  ;;  %v11142_v2 = vld [vmem:[%s16116_s4 + $0x534] ss:$8 sps:$4 sm:$0xff]  }
 0x1b4   : > { %8364 = vmatpush1.bf16.msra.mxu1 %v11081_v30  ;;  %v11101_v30 = vld [vmem:[%s16116_s4 + $0x424] ss:$8 sps:$4 sm:$0xff]   ;;  %v1453_v34 = vor.u32 %v1451_v54, %v1450_v26  ;;  %v1455_v18 = vrot.slane %v1450_v26, 4  ;;  %v2326_v51 = vsel %vm12607_vm6, %v2324_v8, %v2325_v60  ;;  %v10035_v54 = vrot.slane %v2208_v27, 9  ;;  %v11140_v26 = vld [vmem:[%s16116_s4 + $0x530] ss:$8 sps:$4 sm:$0xff]  }
 0x1b5   : > { %8365 = vmatprep.subr.bf16.mxu1 %v11087_v3  ;;  %v1445_v3 = vor.u32 %v1443_v43, %v1442_v53  ;;  %v10155_v47 = vcombine.high %v2323_v5, %v2326_v51  ;;  %v11105_v43 = vld [vmem:[%s16116_s4 + $0x400] ss:$8 sps:$4 sm:$0xff]   ;;  %v12799_v8 = vld [vmem:[#allocation2 + $0x98] sm:$0xff] }
 0x1b6   : > { %v12722_v6 = vsel %vm11921_vm1, %v1446_v17, %v1453_v34  ;;  %v11128_v60 = vld [vmem:[%s16116_s4 + $0x4d4] ss:$8 sps:$4 sm:$0xff]   ;;  %v2343_v32 = vrot.slane %v12799_v8, 5 }
 0x1b7   : > { %7965 = vmatmul.mubr.bf16.gmra.mxu0 %v10350_v55  ;;  %8018 = vmatmul.mubr.bf16.gmra.mxu1 %v10100_v29  ;;  %v12707_v55 = vld [vmem:[#allocation2 + $0x180] sm:$0xff]  ;;  %v12712_v13 = vsel %vm11881_vm14, %v1445_v3, %v12391_v41  ;;  %v11104_v41 = vld [vmem:[%s16116_s4 + $0x414] ss:$8 sps:$4 sm:$0xff]   ;;  %1626 = vst [vmem:[#allocation2 + $0x20] sm:$0xff] %v12722_v6 }
 0x1b8   : > { %8200 = vmatprep.mubr.bf16.mxu0 %v10085_v31  ;;  %8027 = vmatprep.mubr.bf16.mxu1 %v10119_v50  ;;  %v11099_v29 = vld [vmem:[%s16116_s4 + $0x420] ss:$8 sps:$4 sm:$0xff]   ;;  %1625 = vst [vmem:[#allocation2 + $0x38] sm:$0xff] %v12712_v13  ;;  %v2329_v10 = vrot.slane %v12707_v55, 5  ;;  %v12739_v31 = vpop.f32.mrf.mxu1  ;;  %v10102_v50 = vcombine.low %v2470_v36, %v12624_v63  ;;  %v2210_v63 = vld [vmem:[#allocation2 + $0x130] sm:$0x11]  ;;  %v10120_v36 = vcombine.low %v2472_v0, %v12644_v21 }
 0x1b9   : > { %8366 = vmatpush1.bf16.msra.mxu1 %v11085_v12  ;;  %v1628_v12 = vsel %vm11931_vm3, %v1455_v18, %v1627_v59  ;;  %v2332_v22 = vrot.slane %v2210_v63, 5  ;;  %v11117_v21 = vld [vmem:[%s16116_s4 + $0x4e4] ss:$8 sps:$4 sm:$0xff]   ;;  %v11115_v18 = vld [vmem:[%s16116_s4 + $0x4e0] ss:$8 sps:$4 sm:$0xff]  }
 0x1ba   : > { %8367 = vmatprep.subr.bf16.mxu1 %v11091_v48  ;;  %1629 = vst [vmem:[#allocation2 + $0x88] sm:$0x11] %v1628_v12  ;;  %v10136_v48 = vcombine.low %v2316_v49, %v12684_v58  ;;  %v11134_v58 = vld [vmem:[%s16116_s4 + $0x540] ss:$8 sps:$4 sm:$0xff]   ;;  %v2330_v49 = vsel %vm12607_vm6, %v10035_v54, %v2329_v10  ;;  %v11147_v3 = vld [vmem:[%s16116_s4 + $0x524] ss:$8 sps:$4 sm:$0xff]  }
 0x1bb   : > { %v2216_v63 = vld [vmem:[#allocation2 + $0xe8] sm:$0x11]  ;;  %v11150_v54 = vld [vmem:[%s16116_s4 + $0x4b4] ss:$8 sps:$4 sm:$0xff]  }
 0x1bd   : > { %8368 = vmatpush1.bf16.msra.mxu1 %v11089_v16  ;;  %v2331_v16 = vrot.slane %v2329_v10, 4 }
 0x1be   : > { %8369 = vmatprep.subr.bf16.mxu1 %v11095_v20 }
 0x1bf   : > { %8201 = vmatmul.mubr.bf16.vlgmr.msra.gmra.mxu0 %v10084_v15  ;;  %8028 = vmatmul.mubr.bf16.gmra.mxu1 %v10118_v46  ;;  %v2333_v37 = vsel %vm12607_vm6, %v2331_v16, %v2332_v22  ;;  %v10154_v15 = vcombine.low %v2323_v5, %v2326_v51  ;;  %v2474_v46 = vld [vmem:[#allocation2 + $0x148] sm:$0xff]  ;;  %v12820_v51 = vpop.f32.mrf.mxu0  ;;  %v2214_v22 = vld [vmem:[#allocation2 + $0x158] sm:$0xee] }
 0x1c0   : > { %8210 = vmatprep.mubr.bf16.mxu0 %v10103_v11  ;;  %8037 = vmatprep.mubr.bf16.mxu1 %v10137_v35  ;;  %v10173_v11 = vcombine.high %v2330_v49, %v2333_v37  ;;  %v2213_v35 = vld [vmem:[#allocation2 + $0x1a0] sm:$0x11]  ;;  %v10138_v0 = vcombine.low %v2474_v46, %v12672_v9 }
 0x1c1   : > { %8370 = vmatpush1.bf16.msra.mxu1 %v11093_v61  ;;  %8555 = vmatpush1.bf16.msra.mxu0 %v11118_v52  ;;  %v2336_v61 = vrot.slane %v12760_v24, 5  ;;  %v10139_v52 = vcombine.high %v2474_v46, %v12672_v9  ;;  %v2339_v34 = vrot.slane %v2213_v35, 5  ;;  %v11139_v9 = vld [vmem:[%s16116_s4 + $0x4c4] ss:$8 sps:$4 sm:$0xff]   ;;  %v12840_v16 = vpop.f32.mrf.mxu0  ;;  %v11148_v35 = vld [vmem:[%s16116_s4 + $0x4b0] ss:$8 sps:$4 sm:$0xff]  }
 0x1c2   : > { %8371 = vmatprep.subr.bf16.mxu1 %v11101_v30  ;;  %8556 = vmatprep.subr.bf16.mxu0 %v11125_v23  ;;  %v11110_v30 = vld [vmem:[%s16116_s4 + $0x4f0] ss:$8 sps:$4 sm:$0xff]  }
 0x1c3   : > { %v2338_v17 = vrot.slane %v2336_v61, 4  ;;  %v2211_v23 = vld [vmem:[#allocation2 + $0x138] sm:$0xee]  ;;  %v12863_v46 = vpop.f32.mrf.mxu0 }
 0x1c5   : > { %8372 = vmatpush1.bf16.msra.mxu1 %v11099_v29  ;;  %8557 = vmatpush1.bf16.msra.mxu0 %v11123_v62  ;;  %v11153_v29 = vld [vmem:[%s16116_s4 + $0x514] ss:$8 sps:$4 sm:$0xff]  }
 0x1c6   : > { %8373 = vmatprep.subr.bf16.mxu1 %v11104_v41  ;;  %v12755_v14 = vpop.f32.mrf.mxu1  ;;  %8558 = vmatprep.subr.bf16.mxu0 %v11131_v28  ;;  %v10036_v41 = vrot.slane %v2211_v23, 9  ;;  %v2340_v28 = vsel %vm12607_vm6, %v2338_v17, %v2339_v34  ;;  %v11159_v23 = vld [vmem:[%s16116_s4 + $0x4a4] ss:$8 sps:$4 sm:$0xff]  }
 0x1c7   : > { %8211 = vmatmul.mubr.bf16.gmra.mxu0 %v10102_v50  ;;  %8038 = vmatmul.mubr.bf16.gmra.mxu1 %v10136_v48  ;;  %v10172_v50 = vcombine.low %v2330_v49, %v2333_v37  ;;  %v2476_v48 = vld [vmem:[#allocation2 + $0xd8] sm:$0xff]  ;;  %v11165_v34 = vld [vmem:[%s16116_s4 + $0x5e4] ss:$8 sps:$4 sm:$0xff]  }
 0x1c8   : > { %8220 = vmatprep.mubr.bf16.mxu0 %v10121_v33  ;;  %8047 = vmatprep.mubr.bf16.mxu1 %v10155_v47  ;;  %v12762_v20 = vpop.f32.mrf.mxu1  ;;  %v2337_v5 = vsel %vm12607_vm6, %v10036_v41, %v2336_v61  ;;  %v10157_v33 = vcombine.high %v2476_v48, %v12707_v55  ;;  %v11162_v37 = vld [vmem:[%s16116_s4 + $0x5f4] ss:$8 sps:$4 sm:$0xff]   ;;  %v10037_v61 = vrot.slane %v2214_v22, 9  ;;  %v12888_v41 = vld [vmem:[#allocation2 + $0x168] sm:$0xff] }
 0x1c9   : > { %8374 = vmatpush1.bf16.msra.mxu1 %v11102_v7  ;;  %8559 = vmatpush1.bf16.msra.mxu0 %v11129_v45  ;;  %v11126_v7 = vld [vmem:[%s16116_s4 + $0x4d0] ss:$8 sps:$4 sm:$0xff]   ;;  %v10191_v47 = vcombine.high %v2337_v5, %v2340_v28 }
 0x1ca   : > { %8375 = vmatprep.subr.bf16.mxu1 %v11107_v25  ;;  %8560 = vmatprep.subr.bf16.mxu0 %v11136_v40  ;;  %v12779_v53 = vpop.f32.mrf.mxu1  ;;  %v11151_v45 = vld [vmem:[%s16116_s4 + $0x510] ss:$8 sps:$4 sm:$0xff]   ;;  %v11156_v25 = vld [vmem:[%s16116_s4 + $0x504] ss:$8 sps:$4 sm:$0xff]   ;;  %v2345_v40 = vrot.slane %v2343_v32, 4 }
 0x1cc   : > { %v12797_v59 = vpop.f32.mrf.mxu1 }
 0x1cd   : > { %8376 = vmatpush1.bf16.msra.mxu1 %v11105_v43  ;;  %8561 = vmatpush1.bf16.msra.mxu0 %v11134_v58  ;;  %v12844_v43 = vld [vmem:[#allocation2 + $0xa8] sm:$0xff]  ;;  %v2346_v58 = vrot.slane %v2216_v63, 5 }
 0x1ce   : > { %8377 = vmatprep.subr.bf16.mxu1 %v11112_v57  ;;  %8562 = vmatprep.subr.bf16.mxu0 %v11142_v2  ;;  %v11137_v57 = vld [vmem:[%s16116_s4 + $0x4c0] ss:$8 sps:$4 sm:$0xff]  }
 0x1cf   : > { %8221 = vmatmul.mubr.bf16.gmra.mxu0 %v10120_v36  ;;  %8048 = vmatmul.mubr.bf16.gmra.mxu1 %v10154_v15  ;;  %v11154_v2 = vld [vmem:[%s16116_s4 + $0x500] ss:$8 sps:$4 sm:$0xff]   ;;  %v12860_v15 = vsel %vm12607_vm6, %v2345_v40, %v2346_v58  ;;  %v2350_v36 = vrot.slane %v12844_v43, 5 }
 0x1d0   : > { %8230 = vmatprep.mubr.bf16.mxu0 %v10139_v52  ;;  %8057 = vmatprep.mubr.bf16.mxu1 %v10173_v11  ;;  %v12822_v10 = vpop.f32.mrf.mxu1  ;;  %v2478_v52 = vld [vmem:[#allocation2 + $0x138] sm:$0xff]  ;;  %v2344_v11 = vsel %vm12607_vm6, %v10037_v61, %v2343_v32 }
 0x1d1   : > { %8378 = vmatpush2.bf16.msra.mxu1 %v11110_v30  ;;  %8563 = vmatpush1.bf16.msra.mxu0 %v11140_v26  ;;  %v10156_v30 = vcombine.low %v2476_v48, %v12707_v55  ;;  %v10190_v26 = vcombine.low %v2337_v5, %v2340_v28  ;;  %v10209_v17 = vcombine.high %v2344_v11, %v12860_v15  ;;  %v2219_v55 = vld [vmem:[#allocation2 + $0x28] sm:$0x11]  ;;  %v11168_v5 = vld [vmem:[%s16116_s4 + $0x494] ss:$8 sps:$4 sm:$0xff]   ;;  %v11166_v61 = vld [vmem:[%s16116_s4 + $0x490] ss:$8 sps:$4 sm:$0xff]  }
 0x1d2   : > { %8379 = vmatprep.subr.bf16.mxu1 %v11117_v21  ;;  %8564 = vmatprep.subr.bf16.mxu0 %v11147_v3  ;;  %v12842_v27 = vpop.f32.mrf.mxu1  ;;  %v11160_v21 = vld [vmem:[%s16116_s4 + $0x5f0] ss:$8 sps:$4 sm:$0xff]   ;;  %v10175_v3 = vcombine.high %v2478_v52, %v12760_v24  ;;  %v2353_v28 = vrot.slane %v2219_v55, 5  ;;  %v10174_v22 = vcombine.low %v2478_v52, %v12760_v24  ;;  %v10208_v58 = vcombine.low %v2344_v11, %v12860_v15  ;;  %v11182_v55 = vld [vmem:[%s16116_s4 + $0x5b4] ss:$8 sps:$4 sm:$0xff]  }
 0x1d4   : > { %v12865_v49 = vpop.f32.mrf.mxu1 }
 0x1d5   : > { %8380 = vmatpush2.bf16.msra.mxu1 %v11115_v18  ;;  %8565 = vmatpush1.bf16.msra.mxu0 %v11145_v42  ;;  %v2352_v18 = vrot.slane %v2350_v36, 4  ;;  %v12884_v42 = vpop.f32.mrf.mxu0 }
 0x1d6   : > { %8381 = vmatprep.subr.bf16.mxu1 %v11128_v60  ;;  %8566 = vmatprep.subr.bf16.mxu0 %v11153_v29  ;;  %v12886_v60 = vpop.f32.mrf.mxu1  ;;  %v2217_v29 = vld [vmem:[#allocation2 + $0x80] sm:$0xee] }
 0x1d7   : > { %8231 = vmatmul.mubr.bf16.gmra.mxu0 %v10138_v0  ;;  %8058 = vmatmul.mubr.bf16.gmra.mxu1 %v10172_v50  ;;  %v11157_v50 = vld [vmem:[%s16116_s4 + $0x4a0] ss:$8 sps:$4 sm:$0xff]  }
 0x1d8   : > { %8240 = vmatprep.mubr.bf16.mxu0 %v10157_v33  ;;  %8067 = vmatprep.mubr.bf16.mxu1 %v10191_v47  ;;  %v11163_v0 = vld [vmem:[%s16116_s4 + $0x5e0] ss:$8 sps:$4 sm:$0xff]   ;;  %v2354_v33 = vsel %vm12607_vm6, %v2352_v18, %v2353_v28  ;;  %v2357_v47 = vrot.slane %v12888_v41, 5 }
 0x1d9   : > { %8382 = vmatpush2.bf16.msra.mxu1 %v11126_v7  ;;  %8567 = vmatpush1.bf16.msra.mxu0 %v11151_v45  ;;  %v11171_v7 = vld [vmem:[%s16116_s4 + $0x5d4] ss:$8 sps:$4 sm:$0xff]   ;;  %v10038_v45 = vrot.slane %v2217_v29, 9 }
 0x1da   : > { %8383 = vmatprep.subr.bf16.mxu1 %v11139_v9  ;;  %8568 = vmatprep.subr.bf16.mxu0 %v11156_v25  ;;  %v2222_v25 = vld [vmem:[#allocation2 + $0xb8] sm:$0x11]  ;;  %v2359_v11 = vrot.slane %v2357_v47, 4 }
 0x1dd   : > { %8384 = vmatpush2.bf16.msra.mxu1 %v11137_v57  ;;  %8569 = vmatpush1.bf16.msra.mxu0 %v11154_v2  ;;  %v2480_v57 = vld [vmem:[#allocation2 + $0x158] sm:$0xff]  ;;  %v2351_v2 = vsel %vm12607_vm6, %v10038_v45, %v2350_v36  ;;  %v11176_v36 = vld [vmem:[%s16116_s4 + $0x5c4] ss:$8 sps:$4 sm:$0xff]  }
 0x1de   : > { %8385 = vmatprep.subr.bf16.mxu1 %v11150_v54  ;;  %8570 = vmatprep.subr.bf16.mxu0 %v11162_v37  ;;  %v10193_v24 = vcombine.high %v2480_v57, %v12799_v8  ;;  %v10227_v15 = vcombine.high %v2351_v2, %v2354_v33  ;;  %v2482_v45 = vld [vmem:[#allocation2 + $0x80] sm:$0xff] }
 0x1df   : > { %8241 = vmatmul.mubr.bf16.gmra.mxu0 %v10156_v30  ;;  %8068 = vmatmul.mubr.bf16.gmra.mxu1 %v10190_v26  ;;  %v11179_v26 = vld [vmem:[%s16116_s4 + $0x484] ss:$8 sps:$4 sm:$0xff]  }
 0x1e0   : > { %8250 = vmatprep.mubr.bf16.mxu0 %v10175_v3  ;;  %8077 = vmatprep.mubr.bf16.mxu1 %v10209_v17  ;;  %v11174_v3 = vld [vmem:[%s16116_s4 + $0x5c0] ss:$8 sps:$4 sm:$0xff]  }
 0x1e1   : > { %v7826_v32 = vpop.f32.mrf.mxu0  ;;  %8386 = vmatpush2.bf16.msra.mxu1 %v11148_v35  ;;  %8571 = vmatpush2.bf16.msra.mxu0 %v11160_v21  ;;  %v2360_v35 = vrot.slane %v2222_v25, 5  ;;  %v11177_v17 = vld [vmem:[%s16116_s4 + $0x480] ss:$8 sps:$4 sm:$0xff]   ;;  %v11185_v25 = vld [vmem:[%s16116_s4 + $0x5a4] ss:$8 sps:$4 sm:$0xff]  }
 0x1e2   : > { %v12897_v48 = vadd.f32 %v7826_v32, %v12755_v14  ;;  %8387 = vmatprep.subr.bf16.mxu1 %v11159_v23  ;;  %8572 = vmatprep.subr.bf16.mxu0 %v11165_v34  ;;  %v2220_v14 = vld [vmem:[#allocation2] sm:$0xee]  ;;  %v11188_v23 = vld [vmem:[%s16116_s4 + $0x674] ss:$8 sps:$4 sm:$0xff]   ;;  %v2223_v32 = vld [vmem:[#allocation2 + $0x1a8] sm:$0xee] }
 0x1e3   : > { %v7828_v63 = vpop.f32.mrf.mxu0  ;;  %v12908_v9 = vpop.f32.mrf.mxu1  ;;  %v10039_v52 = vrot.slane %v2220_v14, 9  ;;  %v2361_v18 = vsel %vm12607_vm6, %v2359_v11, %v2360_v35  ;;  %v2226_v35 = vld [vmem:[#allocation2 + $0xa0] sm:$0xee] }
 0x1e4   : > { %v12911_v40 = vadd.f32 %v7828_v63, %v12762_v20  ;;  %v11169_v20 = vld [vmem:[%s16116_s4 + $0x5d0] ss:$8 sps:$4 sm:$0xff]   ;;  %v10211_v63 = vcombine.high %v2482_v45, %v12844_v43 }
 0x1e5   : > { %v7830_v54 = vpop.f32.mrf.mxu0  ;;  %v12917_v37 = vpop.f32.mrf.mxu1  ;;  %8388 = vmatpush2.bf16.msra.mxu1 %v11157_v50  ;;  %8573 = vmatpush2.bf16.msra.mxu0 %v11163_v0  ;;  %v2358_v34 = vsel %vm12607_vm6, %v10039_v52, %v2357_v47  ;;  %v2225_v50 = vld [vmem:[#allocation2 + $0x50] sm:$0x11] }
 0x1e6   : > { %v12927_v30 = vadd.f32 %v7830_v54, %v12779_v53  ;;  %8389 = vmatprep.subr.bf16.mxu1 %v11168_v5  ;;  %8574 = vmatprep.subr.bf16.mxu0 %v11171_v7  ;;  %v12937_v53 = vld [vmem:[#allocation2 + $0x140] sm:$0xff]  ;;  %v10192_v5 = vcombine.low %v2480_v57, %v12799_v8  ;;  %v10226_v7 = vcombine.low %v2351_v2, %v2354_v33  ;;  %v11180_v47 = vld [vmem:[%s16116_s4 + $0x5b0] ss:$8 sps:$4 sm:$0xff]   ;;  %v10040_v8 = vrot.slane %v2223_v32, 9 }
 0x1e7   : > { %8251 = vmatmul.mubr.bf16.gmra.mxu0 %v10174_v22  ;;  %8078 = vmatmul.mubr.bf16.gmra.mxu1 %v10208_v58  ;;  %v12935_v21 = vpop.f32.mrf.mxu1  ;;  %v2364_v29 = vrot.slane %v12937_v53, 5  ;;  %v12958_v0 = vpop.f32.mrf.mxu0  ;;  %v10245_v14 = vcombine.high %v2358_v34, %v2361_v18  ;;  %v2367_v22 = vrot.slane %v2225_v50, 5  ;;  %v12970_v57 = vld [vmem:[#allocation2 + $0x170] sm:$0xff] }
 0x1e8   : > { %8260 = vmatprep.mubr.bf16.mxu0 %v10193_v24  ;;  %8087 = vmatprep.mubr.bf16.mxu1 %v10227_v15  ;;  %v11191_v15 = vld [vmem:[%s16116_s4 + $0x594] ss:$8 sps:$4 sm:$0xff]   ;;  %v2371_v52 = vrot.slane %v12970_v57, 5 }
 0x1e9   : > { %8390 = vmatpush2.bf16.msra.mxu1 %v11166_v61  ;;  %8575 = vmatpush2.bf16.msra.mxu0 %v11169_v20  ;;  %v12956_v28 = vpop.f32.mrf.mxu1  ;;  %v2366_v33 = vrot.slane %v2364_v29, 4  ;;  %v11183_v61 = vld [vmem:[%s16116_s4 + $0x5a0] ss:$8 sps:$4 sm:$0xff]  }
 0x1ea   : > { %8576 = vmatprep.subr.bf16.mxu0 %v11176_v36  ;;  %8391 = vmatprep.subr.bf16.mxu1 %v11179_v26  ;;  %v2484_v36 = vld [vmem:[#allocation2] sm:$0xff]  ;;  %v2365_v26 = vsel %vm12607_vm6, %v10040_v8, %v2364_v29  ;;  %v11189_v29 = vld [vmem:[%s16116_s4 + $0x590] ss:$8 sps:$4 sm:$0xff]  }
 0x1eb   : > { %v10229_v50 = vcombine.high %v2484_v36, %v12888_v41 }
 0x1ed   : > { %8577 = vmatpush2.bf16.msra.mxu0 %v11174_v3  ;;  %8392 = vmatpush2.bf16.msra.mxu1 %v11177_v17  ;;  %v2228_v3 = vld [vmem:[#allocation2 + $0x198] sm:$0x11] }
 0x1ee   : > { %8578 = vmatprep.subr.bf16.mxu0 %v11182_v55  ;;  %8747 = vmatprep.subr.bf16.mxu1 %v11188_v23  ;;  %v10210_v55 = vcombine.low %v2482_v45, %v12844_v43  ;;  %v10244_v23 = vcombine.low %v2358_v34, %v2361_v18  ;;  %v11194_v43 = vld [vmem:[%s16116_s4 + $0x584] ss:$8 sps:$4 sm:$0xff]   ;;  %v2373_v34 = vrot.slane %v2371_v52, 4  ;;  %v2374_v18 = vrot.slane %v2228_v3, 5 }
 0x1ef   : > { %8261 = vmatmul.mubr.bf16.gmra.mxu0 %v10192_v5  ;;  %8088 = vmatmul.mubr.bf16.gmra.mxu1 %v10226_v7 }
 0x1f0   : > { %v12968_v58 = vpop.f32.mrf.mxu1  ;;  %8270 = vmatprep.mubr.bf16.mxu0 %v10211_v63  ;;  %8097 = vmatprep.mubr.bf16.mxu1 %v10245_v14  ;;  %v7836_v2 = vpop.f32.mrf.mxu0  ;;  %v11192_v63 = vld [vmem:[%s16116_s4 + $0x580] ss:$8 sps:$4 sm:$0xff]  }
 0x1f1   : > { %v12973_v54 = vadd.f32 %v7836_v2, %v12822_v10  ;;  %8579 = vmatpush2.bf16.msra.mxu0 %v11180_v47  ;;  %v2368_v10 = vsel %vm12607_vm6, %v2366_v33, %v2367_v22  ;;  %v13007_v47 = vld [vmem:[#allocation2 + $0x190] sm:$0xff]  ;;  %v2229_v22 = vld [vmem:[#allocation2 + $0xc0] sm:$0xee]  ;;  %v2231_v2 = vld [vmem:[#allocation2 + $0xc8] sm:$0x11] }
 0x1f2   : > { %v7838_v20 = vpop.f32.mrf.mxu0  ;;  %v12978_v24 = vpop.f32.mrf.mxu1  ;;  %8580 = vmatprep.subr.bf16.mxu0 %v11185_v25  ;;  %v10263_v5 = vcombine.high %v2365_v26, %v2368_v10  ;;  %v2486_v25 = vld [vmem:[#allocation2 + $0x1a8] sm:$0xff]  ;;  %v2378_v33 = vrot.slane %v13007_v47, 5 }
 0x1f3   : > { %v12989_v11 = vadd.f32 %v7838_v20, %v12842_v27  ;;  %v10228_v20 = vcombine.low %v2484_v36, %v12888_v41  ;;  %v10247_v3 = vcombine.high %v2486_v25, %v12937_v53  ;;  %v13029_v41 = vld [vmem:[#allocation2 + $0x150] sm:$0xff] }
 0x1f4   : > { %v7840_v17 = vpop.f32.mrf.mxu0  ;;  %v12999_v27 = vpop.f32.mrf.mxu1 }
 0x1f5   : > { %v12993_v32 = vadd.f32 %v7840_v17, %v12865_v49  ;;  %8581 = vmatpush2.bf16.msra.mxu0 %v11183_v61  ;;  %v10041_v49 = vrot.slane %v2226_v35, 9 }
 0x1f6   : > { %v7842_v7 = vpop.f32.mrf.mxu0  ;;  %8582 = vmatprep.subr.bf16.mxu0 %v11191_v15  ;;  %v13012_v14 = vpop.f32.mrf.mxu1  ;;  %v10262_v15 = vcombine.low %v2365_v26, %v2368_v10  ;;  %v11224_v26 = vld [vmem:[%s16116_s4 + $0x774] ss:$8 sps:$4 sm:$0xff]  }
 0x1f7   : > { %8271 = vmatmul.mubr.bf16.gmra.mxu0 %v10210_v55  ;;  %8098 = vmatmul.mubr.bf16.gmra.mxu1 %v10244_v23  ;;  %v13005_v45 = vadd.f32 %v7842_v7, %v12886_v60  ;;  %v2372_v8 = vsel %vm12607_vm6, %v10041_v49, %v2371_v52  ;;  %v2375_v60 = vsel %vm12607_vm6, %v2373_v34, %v2374_v18  ;;  %v10042_v23 = vrot.slane %v2229_v22, 9  ;;  %v2234_v22 = vld [vmem:[#allocation2 + $0x30] sm:$0x11] }
 0x1f8   : > { %8280 = vmatprep.mubr.bf16.mxu0 %v10229_v50  ;;  %8107 = vmatprep.mubr.bf16.mxu1 %v10263_v5  ;;  %v10281_v17 = vcombine.high %v2372_v8, %v2375_v60  ;;  %v2381_v50 = vrot.slane %v2231_v2, 5  ;;  %v2385_v34 = vrot.slane %v13029_v41, 5 }
 0x1f9   : > { %16153 = vst [vmem:[#allocation7_spill] sm:$0xff] %v13005_v45  ;;  %8583 = vmatpush2.bf16.msra.mxu0 %v11189_v29  ;;  %v2380_v29 = vrot.slane %v2378_v33, 4 }
 0x1fa   : > { %8584 = vmatprep.subr.bf16.mxu0 %v11194_v43  ;;  %v2488_v43 = vld [vmem:[#allocation2 + $0xa0] sm:$0xff] }
 0x1fb   : > { %v2382_v49 = vsel %vm12607_vm6, %v2380_v29, %v2381_v50  ;;  %v2490_v29 = vld [vmem:[#allocation2 + $0xc0] sm:$0xff] }
 0x1fc   : > { %v7846_v61 = vpop.f32.mrf.mxu0 }
 0x1fd   : > { %v13021_v35 = vadd.f32 %v7846_v61, %v12908_v9  ;;  %8585 = vmatpush2.bf16.msra.mxu0 %v11192_v63  ;;  %v2232_v63 = vld [vmem:[#allocation2 + $0xf0] sm:$0xee]  ;;  %v10280_v61 = vcombine.low %v2372_v8, %v2375_v60  ;;  %v2235_v60 = vld [vmem:[#allocation2 + $0xf8] sm:$0xee] }
 0x1fe   : > { %v7848_v55 = vpop.f32.mrf.mxu0  ;;  %v13024_v52 = vpop.f32.mrf.mxu1  ;;  %8940 = vmatprep.subr.bf16.mxu0 %v11224_v26 }
 0x1ff   : > { %16154 = vst [vmem:[#allocation8_spill] sm:$0xff] %v13021_v35  ;;  %8281 = vmatmul.mubr.bf16.gmra.mxu0 %v10228_v20  ;;  %8108 = vmatmul.mubr.bf16.gmra.mxu1 %v10262_v15  ;;  %v13027_v5 = vadd.f32 %v7848_v55, %v12917_v37  ;;  %v2379_v37 = vsel %vm12607_vm6, %v10042_v23, %v2378_v33  ;;  %v10043_v33 = vrot.slane %v2232_v63, 9  ;;  %v13051_v55 = vld [vmem:[#allocation2 + $0x18] sm:$0xff] }
 0x200   : > { %8290 = vmatprep.mubr.bf16.mxu0 %v10247_v3  ;;  %8117 = vmatprep.mubr.bf16.mxu1 %v10281_v17  ;;  %v7850_v9 = vpop.f32.mrf.mxu0  ;;  %v13031_v36 = vpop.f32.mrf.mxu1  ;;  %v10265_v20 = vcombine.high %v2488_v43, %v12970_v57  ;;  %v10299_v15 = vcombine.high %v2379_v37, %v2382_v49  ;;  %v2387_v3 = vrot.slane %v2385_v34, 4  ;;  %v2388_v17 = vrot.slane %v2234_v22, 5 }
 0x201   : > { %16155 = vst [vmem:[#allocation9_spill] sm:$0xff] %v13027_v5  ;;  %v13037_v10 = vadd.f32 %v7850_v9, %v12935_v21  ;;  %v10246_v21 = vcombine.low %v2486_v25, %v12937_v53  ;;  %v2386_v53 = vsel %vm12607_vm6, %v10043_v33, %v2385_v34  ;;  %v2392_v50 = vrot.slane %v13051_v55, 5  ;;  %v2237_v9 = vld [vmem:[#allocation2 + $0x8] sm:$0x11] }
 0x202   : > { %v7852_v7 = vpop.f32.mrf.mxu0  ;;  %v13047_v2 = vpop.f32.mrf.mxu1  ;;  %v2389_v25 = vsel %vm12607_vm6, %v2387_v3, %v2388_v17  ;;  %v10264_v63 = vcombine.low %v2488_v43, %v12970_v57  ;;  %v10298_v22 = vcombine.low %v2379_v37, %v2382_v49  ;;  %v10283_v34 = vcombine.high %v2490_v29, %v13007_v47  ;;  %v13075_v43 = vld [vmem:[#allocation2 + $0x70] sm:$0xff]  ;;  %v13079_v37 = vld [vmem:[#allocation2 + $0x160] sm:$0xff] }
 0x203   : > { %16156 = vst [vmem:[#allocation10_spill] sm:$0xff] %v13037_v10  ;;  %v13045_v18 = vadd.f32 %v7852_v7, %v12956_v28  ;;  %v2394_v33 = vrot.slane %v2392_v50, 4  ;;  %v2395_v3 = vrot.slane %v2237_v9, 5  ;;  %v2492_v9 = vld [vmem:[#allocation2 + $0xf0] sm:$0xff]  ;;  %v16170_v5 = vcombine.high %v12712_v13, %v12722_v6 }
 0x204   : > { %v13053_v28 = vpop.f32.mrf.mxu1 }
 0x205   : > { %16157 = vst [vmem:[#allocation11_spill] sm:$0xff] %v13045_v18 }
 0x207   : > { %8291 = vmatmul.mubr.bf16.gmra.mxu0 %v10246_v21  ;;  %8118 = vmatmul.mubr.bf16.gmra.mxu1 %v10280_v61  ;;  %v10317_v61 = vcombine.high %v2386_v53, %v2389_v25 }
 0x208   : > { %8300 = vmatprep.mubr.bf16.mxu0 %v10265_v20  ;;  %8127 = vmatprep.mubr.bf16.mxu1 %v10299_v15  ;;  %v10044_v20 = vrot.slane %v2235_v60, 9  ;;  %v2532_v60 = vld [vmem:[#allocation2 + $0x48] sm:$0xff] }
 0x209   : > { %v2581_v12 = vshrl.u32 %v2532_v60, 16 }
 0x20a   : > { %v7856_v23 = vpop.f32.mrf.mxu0 }
 0x20b   : > { %v13060_v8 = vadd.f32 %v7856_v23, %v12968_v58  ;;  %v2393_v23 = vsel %vm12607_vm6, %v10044_v20, %v2392_v50  ;;  %v2584_v50 = vshll.u32 %v2532_v60, 16  ;;  %v10301_v20 = vcombine.high %v2492_v9, %v13029_v41  ;;  %v13100_v60 = vld [vmem:[#allocation2 + $0x178] sm:$0xff] }
 0x20c   : > { %v7858_v26 = vpop.f32.mrf.mxu0  ;;  %v13063_v7 = vpop.f32.mrf.mxu1 }
 0x20d   : > { %16158 = vst [vmem:[#allocation12_spill] sm:$0xff] %v13060_v8  ;;  %v13067_v21 = vadd.f32 %v7858_v26, %v12978_v24  ;;  %v2238_v26 = vld [vmem:[#allocation2 + $0x60] sm:$0xee]  ;;  %v2537_v8 = vld [vmem:[#allocation2 + $0x108] sm:$0x11] }
 0x20e   : > { %v7860_v15 = vpop.f32.mrf.mxu0  ;;  %v13070_v58 = vpop.f32.mrf.mxu1  ;;  %v10045_v4 = vrot.slane %v2238_v26, 9  ;;  %v2494_v26 = vld [vmem:[#allocation2 + $0xf8] sm:$0xff] }
 0x20f   : > { %16159 = vst [vmem:[#allocation13_spill] sm:$0xff] %v13067_v21  ;;  %8301 = vmatmul.mubr.bf16.gmra.mxu0 %v10264_v63  ;;  %8128 = vmatmul.mubr.bf16.gmra.mxu1 %v10298_v22  ;;  %v13073_v17 = vadd.f32 %v7860_v15, %v12999_v27  ;;  %v2396_v27 = vsel %vm12607_vm6, %v2394_v33, %v2395_v3  ;;  %v2399_v63 = vrot.slane %v13075_v43, 5  ;;  %v2590_v22 = vshll.u32 %v13079_v37, 16 }
 0x210   : > { %8310 = vmatprep.mubr.bf16.mxu0 %v10283_v34  ;;  %8137 = vmatprep.mubr.bf16.mxu1 %v10317_v61  ;;  %v7862_v57 = vpop.f32.mrf.mxu0  ;;  %v13077_v24 = vpop.f32.mrf.mxu1  ;;  %v2594_v34 = vshrl.u32 %v13079_v37, 16  ;;  %v2240_v61 = vld [vmem:[#allocation2 + $0x68] sm:$0x11]  ;;  %v10335_v62 = vcombine.high %v2393_v23, %v2396_v27 }
 0x211   : > { %16160 = vst [vmem:[#allocation14_spill] sm:$0xff] %v13073_v17  ;;  %v13082_v49 = vadd.f32 %v7862_v57, %v13012_v14  ;;  %v10282_v14 = vcombine.low %v2490_v29, %v13007_v47  ;;  %v10316_v57 = vcombine.low %v2386_v53, %v2389_v25  ;;  %v2401_v3 = vrot.slane %v2399_v63, 4 }
 0x212   : > { %v13091_v15 = vpop.f32.mrf.mxu1  ;;  %v2402_v1 = vrot.slane %v2240_v61, 5  ;;  %v2596_v17 = vrot.slane %v2594_v34, 4  ;;  %v2583_v53 = vrot.slane %v2581_v12, 4  ;;  %v2586_v25 = vrot.slane %v2584_v50, 5 }
 0x213   : > { %16161 = vst [vmem:[#allocation15_spill] sm:$0xff] %v13082_v49  ;;  %v2592_v49 = vrot.slane %v2590_v22, 5  ;;  %v10300_v12 = vcombine.low %v2492_v9, %v13029_v41 }
 0x215   : > { %v2597_v34 = vor.u32 %v2596_v17, %v2592_v49 }
 0x217   : > { %8311 = vmatmul.mubr.bf16.gmra.mxu0 %v10282_v14  ;;  %8138 = vmatmul.mubr.bf16.gmra.mxu1 %v10316_v57  ;;  %v7866_v33 = vpop.f32.mrf.mxu0  ;;  %v2534_v57 = vld [vmem:[#allocation2 + $0x128] sm:$0x11] }
 0x218   : > { %8320 = vmatprep.mubr.bf16.mxu0 %v10301_v20  ;;  %8147 = vmatprep.mubr.bf16.mxu1 %v10335_v62  ;;  %v13096_v21 = vadd.f32 %v7866_v33, %v13024_v52  ;;  %v13098_v47 = vpop.f32.mrf.mxu1  ;;  %v2400_v62 = vsel %vm12607_vm6, %v10045_v4, %v2399_v63  ;;  %v2403_v52 = vsel %vm12607_vm6, %v2401_v3, %v2402_v1  ;;  %v2535_v20 = vld [vmem:[#allocation2 + $0x40] sm:$0xff]  ;;  %v2600_v1 = vshll.u32 %v2534_v57, 16  ;;  %v2538_v57 = vld [vmem:[#allocation2 + $0x110] sm:$0xff] }
 0x219   : > { %v7868_v29 = vpop.f32.mrf.mxu0  ;;  %v10319_v4 = vcombine.high %v2494_v26, %v13051_v55  ;;  %v10353_v3 = vcombine.high %v2400_v62, %v2403_v52  ;;  %v2605_v41 = vshrl.u32 %v2535_v20, 16  ;;  %v2608_v9 = vshll.u32 %v2535_v20, 16 }
 0x21a   : > { %16162 = vst [vmem:[#allocation16_spill] sm:$0xff] %v13096_v21  ;;  %v13103_v14 = vadd.f32 %v7868_v29, %v13031_v36  ;;  %v13105_v61 = vpop.f32.mrf.mxu1  ;;  %v2614_v36 = vshll.u32 %v13100_v60, 16  ;;  %v2618_v29 = vshrl.u32 %v13100_v60, 16  ;;  %v2587_v21 = vor.u32 %v2586_v25, %v2583_v53 }
 0x21b   : > { %v7870_v22 = vpop.f32.mrf.mxu0  ;;  %v2602_v25 = vrot.slane %v2600_v1, 5  ;;  %v2632_v1 = vshll.u32 %v2538_v57, 16 }
 0x21c   : > { %16163 = vst [vmem:[#allocation17_spill] sm:$0xff] %v13103_v14  ;;  %v13113_v50 = vadd.f32 %v7870_v22, %v13047_v2  ;;  %v13115_v33 = vpop.f32.mrf.mxu1  ;;  %v10334_v14 = vcombine.low %v2393_v23, %v2396_v27  ;;  %v2598_v2 = vrot.slane %v2597_v34, 4  ;;  %v2620_v23 = vrot.slane %v2618_v29, 4  ;;  %v13127_v27 = vld [vmem:[#allocation2 + $0x90] sm:$0xff] }
 0x21d   : > { %v7872_v63 = vpop.f32.mrf.mxu0  ;;  %v2588_v53 = vrot.slane %v2587_v21, 4 }
 0x21e   : > { %16164 = vst [vmem:[#allocation18_spill] sm:$0xff] %v13113_v50  ;;  %v13121_v17 = vadd.f32 %v7872_v63, %v13053_v28  ;;  %v13123_v22 = vpop.f32.mrf.mxu1  ;;  %v13125_v50 = vrot.slane %v2614_v36, 5  ;;  %v2607_v28 = vrot.slane %v2605_v41, 4  ;;  %v2610_v63 = vrot.slane %v2608_v9, 5 }
 0x21f   : > { %8321 = vmatmul.mubr.bf16.gmra.mxu0 %v10300_v12  ;;  %8148 = vmatmul.mubr.bf16.gmra.mxu1 %v10334_v14  ;;  %v13133_v14 = vsel %vm11754_vm2, %v2598_v2, %v2602_v25  ;;  %v2638_v12 = vshll.u32 %v13127_v27, 16  ;;  %v2642_v36 = vshrl.u32 %v13127_v27, 16  ;;  %v10352_v41 = vcombine.low %v2400_v62, %v2403_v52  ;;  %v13159_v52 = vld [vmem:[#allocation2 + $0x100] sm:$0xff] }
 0x220   : > { %16165 = vst [vmem:[#allocation19_spill] sm:$0xff] %v13121_v17  ;;  %8330 = vmatprep.mubr.bf16.mxu0 %v10319_v4  ;;  %8157 = vmatprep.mubr.bf16.mxu1 %v10353_v3  ;;  %v13129_v17 = vld [vmem:[#allocation2 + $0x60] sm:$0xff]  ;;  %v2621_v29 = vor.u32 %v2620_v23, %v13125_v50  ;;  %v2629_v4 = vshrl.u32 %v2538_v57, 16  ;;  %v10318_v3 = vcombine.low %v2494_v26, %v13051_v55  ;;  %v2624_v25 = vshll.u32 %v2537_v8, 16  ;;  %v3028_v57 = vld [vmem:[#allocation2 + $0x48] sm:$0xee] }
 0x221   : > { %v2593_v9 = vsel %vm11754_vm2, %v2588_v53, %v2592_v49  ;;  %v10337_v10 = vcombine.high %v13129_v17, %v13075_v43  ;;  %v2611_v23 = vor.u32 %v2610_v63, %v2607_v28  ;;  %v3126_v26 = vrot.slane %v13079_v37, 5 }
 0x222   : > { %v13157_v49 = vrot.slane %v2638_v12, 5  ;;  %v2644_v8 = vrot.slane %v2642_v36, 4  ;;  %v2631_v28 = vrot.slane %v2629_v4, 4  ;;  %v2634_v63 = vrot.slane %v2632_v1, 5  ;;  %v2540_v36 = vld [vmem:[#allocation2 + $0x118] sm:$0x11] }
 0x223   : > { %v7876_v20 = vpop.f32.mrf.mxu0  ;;  %v13135_v34 = vpop.f32.mrf.mxu1  ;;  %v2612_v12 = vrot.slane %v2611_v23, 4  ;;  %v10046_v4 = vrot.slane %v3028_v57, 9  ;;  %v2648_v57 = vshll.u32 %v2540_v36, 16 }
 0x224   : > { %v13140_v21 = vadd.f32 %v7876_v20, %v13063_v7  ;;  %v10087_v7 = vcombine.high %v2593_v9, %v13133_v14  ;;  %v2645_v1 = vor.u32 %v2644_v8, %v13157_v49 }
 0x225   : > { %v7878_v2 = vpop.f32.mrf.mxu0  ;;  %v13146_v18 = vpop.f32.mrf.mxu1 }
 0x226   : > { %16166 = vst [vmem:[#allocation20_spill] sm:$0xff] %v13140_v21  ;;  %v13152_v20 = vadd.f32 %v7878_v2, %v13070_v58  ;;  %v2622_v58 = vrot.slane %v2621_v29, 4  ;;  %v3030_v29 = vld [vmem:[#allocation2 + $0x128] sm:$0x11]  ;;  %v2646_v8 = vrot.slane %v2645_v1, 4 }
 0x227   : > { %8331 = vmatmul.mubr.bf16.gmra.mxu0 %v10318_v3  ;;  %8158 = vmatmul.mubr.bf16.gmra.mxu1 %v10352_v41  ;;  %v7880_v55 = vpop.f32.mrf.mxu0  ;;  %v13155_v62 = vpop.f32.mrf.mxu1  ;;  %v2626_v41 = vrot.slane %v2624_v25, 5  ;;  %v10086_v25 = vcombine.low %v2593_v9, %v13133_v14  ;;  %v3031_v21 = vld [vmem:[#allocation2 + $0x40] sm:$0xee] }
 0x228   : > { %16167 = vst [vmem:[#allocation21_spill] sm:$0xff] %v13152_v20  ;;  %8340 = vmatprep.mubr.bf16.mxu0 %v10337_v10  ;;  %8393 = vmatprep.mubr.bf16.mxu1 %v10087_v7  ;;  %v13162_v53 = vadd.f32 %v7880_v55, %v13077_v24  ;;  %v2541_v20 = vld [vmem:[#allocation2 + $0x148] sm:$0xff]  ;;  %v2662_v10 = vshll.u32 %v13159_v52, 16  ;;  %v2666_v7 = vshrl.u32 %v13159_v52, 16  ;;  %v10336_v24 = vcombine.low %v13129_v17, %v13075_v43 }
 0x229   : > { %v7882_v3 = vpop.f32.mrf.mxu0  ;;  %v13164_v2 = vpop.f32.mrf.mxu1  ;;  %v13180_v23 = vsel %vm11754_vm2, %v2622_v58, %v2626_v41  ;;  %v3128_v55 = vrot.slane %v3126_v26, 4  ;;  %v11197_v43 = vld [vmem:[%s16116_s4 + $0x664] ss:$8 sps:$4 sm:$0xff]   ;;  %v2653_v14 = vshrl.u32 %v2541_v20, 16  ;;  %v2656_v9 = vshll.u32 %v2541_v20, 16 }
 0x22a   : > { %16168 = vst [vmem:[#allocation22_spill] sm:$0xff] %v13162_v53  ;;  %v13167_v37 = vadd.f32 %v7882_v3, %v13091_v15  ;;  %v11186_v15 = vld [vmem:[%s16116_s4 + $0x670] ss:$8 sps:$4 sm:$0xff]   ;;  %v2635_v3 = vor.u32 %v2634_v63, %v2631_v28  ;;  %v3129_v53 = vrot.slane %v3030_v29, 5  ;;  %v13191_v58 = vrot.slane %v2662_v10, 5 }
 0x22b   : > { %v2668_v41 = vrot.slane %v2666_v7, 4  ;;  %v13195_v28 = vadd.f32 %v12820_v51, %v12674_v19  ;;  %v3033_v20 = vld [vmem:[#allocation2 + $0x108] sm:$0x11]  ;;  %v13206_v19 = vsel %vm12607_vm6, %v10046_v4, %v3126_v26  ;;  %v2543_v7 = vld [vmem:[#allocation2 + $0x58] sm:$0x11]  ;;  %v16172_v26 = vrot.slane %v13100_v60, 5 }
 0x22c   : > { %16169 = vst [vmem:[#allocation23_spill] sm:$0xff] %v13167_v37  ;;  %v2617_v37 = vsel %vm11754_vm2, %v2612_v12, %v13125_v50  ;;  %v13210_v51 = vsel %vm12607_vm6, %v3128_v55, %v3129_v53  ;;  %v11195_v12 = vld [vmem:[%s16116_s4 + $0x660] ss:$8 sps:$4 sm:$0xff]   ;;  %v2636_v10 = vrot.slane %v2635_v3, 4  ;;  %v11200_v53 = vld [vmem:[%s16116_s4 + $0x654] ss:$8 sps:$4 sm:$0xff]  }
 0x22d   : > { %v13185_v17 = vpop.f32.mrf.mxu1  ;;  %v10105_v36 = vcombine.high %v2617_v37, %v13180_v23  ;;  %v3135_v4 = vrot.slane %v16172_v26, 4  ;;  %v2655_v1 = vrot.slane %v2653_v14, 4  ;;  %v10047_v3 = vrot.slane %v3031_v21, 9 }
 0x22e   : > { %v3136_v26 = vrot.slane %v3033_v20, 5  ;;  %v13243_v21 = vsel %vm11754_vm2, %v2636_v10, %v13157_v49  ;;  %v11198_v20 = vld [vmem:[%s16116_s4 + $0x650] ss:$8 sps:$4 sm:$0xff]  }
 0x22f   : > { %8341 = vmatmul.mubr.bf16.gmra.mxu0 %v10336_v24  ;;  %8394 = vmatmul.mubr.bf16.vlgmr.msra.gmra.mxu1 %v10086_v25  ;;  %v7886_v63 = vpop.f32.mrf.mxu0  ;;  %v13215_v24 = vld [vmem:[#allocation2 + $0x180] sm:$0xff]  ;;  %v13217_v29 = vpop.f32.mrf.mxu1  ;;  %v2658_v25 = vrot.slane %v2656_v9, 5 }
 0x230   : > { %8350 = vmatprep.mubr.bf16.mxu0 %v16170_v5  ;;  %8748 = vmatpush1.bf16.msra.mxu1 %v11186_v15  ;;  %v13202_v50 = vadd.f32 %v7886_v63, %v13098_v47  ;;  %v2650_v47 = vrot.slane %v2648_v57, 5  ;;  %v10104_v15 = vcombine.low %v2617_v37, %v13180_v23  ;;  %v2544_v57 = vld [vmem:[#allocation2 + $0xd8] sm:$0xff]  ;;  %v2690_v14 = vshrl.u32 %v13215_v24, 16 }
 0x231   : > { %8403 = vmatprep.mubr.bf16.mxu1 %v10105_v36  ;;  %v7888_v5 = vpop.f32.mrf.mxu0  ;;  %8749 = vmatprep.subr.bf16.mxu1 %v11197_v43  ;;  %v2669_v43 = vor.u32 %v2668_v41, %v13191_v58  ;;  %v10089_v37 = vcombine.high %v13206_v19, %v13210_v51  ;;  %v2672_v23 = vshll.u32 %v2543_v7, 16  ;;  %v13247_v9 = vsel %vm12607_vm6, %v3135_v4, %v3136_v26  ;;  %v13249_v41 = vpop.f32.mrf.mxu1  ;;  %v11203_v4 = vld [vmem:[%s16116_s4 + $0x644] ss:$8 sps:$4 sm:$0xff]  }
 0x232   : > { %16171 = vst [vmem:[#allocation24_spill] sm:$0xff] %v13202_v50  ;;  %v13226_v55 = vadd.f32 %v7888_v5, %v13105_v61  ;;  %v13231_v36 = vsel %vm11754_vm2, %v2646_v8, %v2650_v47  ;;  %v2686_v50 = vshll.u32 %v13215_v24, 16  ;;  %v2680_v5 = vshll.u32 %v2544_v57, 16 }
 0x233   : > { %v7890_v63 = vpop.f32.mrf.mxu0  ;;  %v10123_v49 = vcombine.high %v13243_v21, %v13231_v36  ;;  %v2670_v10 = vrot.slane %v2669_v43, 4  ;;  %v16126_v7 = vrot.slane %v13127_v27, 5  ;;  %v13278_v43 = vadd.f32 %v12884_v42, %v12739_v31  ;;  %v13292_v42 = vpop.f32.mrf.mxu1 }
 0x234   : > { %16173 = vst [vmem:[#allocation25_spill] sm:$0xff] %v13226_v55  ;;  %v13238_v61 = vadd.f32 %v7890_v63, %v13115_v33  ;;  %8750 = vmatpush1.bf16.msra.mxu1 %v11195_v12  ;;  %v2659_v33 = vor.u32 %v2658_v25, %v2655_v1  ;;  %v2677_v12 = vshrl.u32 %v2544_v57, 16  ;;  %v13265_v63 = vadd.f32 %v12840_v16, %v12690_v38 }
 0x235   : > { %v7892_v8 = vpop.f32.mrf.mxu0  ;;  %8751 = vmatprep.subr.bf16.mxu1 %v11200_v53  ;;  %v13269_v53 = vadd.f32 %v12863_v46, %v12714_v44  ;;  %v13274_v1 = vrot.slane %v2686_v50, 5  ;;  %v2692_v25 = vrot.slane %v2690_v14, 4  ;;  %v10088_v38 = vcombine.low %v13206_v19, %v13210_v51  ;;  %v3036_v46 = vld [vmem:[#allocation2 + $0x118] sm:$0x11] }
 0x236   : > { %16174 = vst [vmem:[#allocation26_spill] sm:$0xff] %v13238_v61  ;;  %v13255_v47 = vadd.f32 %v7892_v8, %v13123_v22  ;;  %v16176_v22 = vcombine.low %v12712_v13, %v12722_v6  ;;  %v16177_v44 = vrot.slane %v13100_v60, 5  ;;  %v2674_v13 = vrot.slane %v2672_v23, 5  ;;  %v3034_v6 = vld [vmem:[#allocation2 + $0x110] sm:$0xee]  ;;  %v13288_v50 = vld [vmem:[#allocation2 + $0x78] sm:$0xff] }
 0x237   : > { %8404 = vmatmul.mubr.bf16.gmra.mxu1 %v10104_v15  ;;  %v2660_v19 = vrot.slane %v2659_v33, 4  ;;  %v11201_v60 = vld [vmem:[%s16116_s4 + $0x640] ss:$8 sps:$4 sm:$0xff]   ;;  %v2679_v51 = vrot.slane %v2677_v12, 4  ;;  %v2682_v15 = vrot.slane %v2680_v5, 5  ;;  %v10122_v57 = vcombine.low %v13243_v21, %v13231_v36 }
 0x238   : > { %16175 = vst [vmem:[#allocation27_spill] sm:$0xff] %v13255_v47  ;;  %8351 = vmatmul.mubr.bf16.gmra.mxu0 %v16176_v22  ;;  %8413 = vmatprep.mubr.bf16.mxu1 %v10123_v49  ;;  %v13286_v16 = vsel %vm12607_vm6, %v10047_v3, %v16177_v44  ;;  %v2547_v3 = vld [vmem:[#allocation2 + $0x138] sm:$0xff]  ;;  %v13303_v14 = vsel %vm11754_vm2, %v2670_v10, %v2674_v13  ;;  %v2546_v23 = vld [vmem:[#allocation2 + $0x130] sm:$0x11]  ;;  %v16127_v36 = vrot.slane %v13159_v52, 5  ;;  %v2710_v21 = vshll.u32 %v13288_v50, 16 }
 0x239   : > { %8586 = vmatprep.mubr.bf16.mxu0 %v10089_v37  ;;  %8752 = vmatpush1.bf16.msra.mxu1 %v11198_v20  ;;  %v10107_v26 = vcombine.high %v13286_v16, %v13247_v9  ;;  %v3142_v37 = vrot.slane %v16126_v7, 4  ;;  %v11206_v8 = vld [vmem:[%s16116_s4 + $0x634] ss:$8 sps:$4 sm:$0xff]   ;;  %v2693_v33 = vor.u32 %v2692_v25, %v13274_v1  ;;  %v2714_v12 = vshrl.u32 %v13288_v50, 16 }
 0x23a   : > { %8753 = vmatprep.subr.bf16.mxu1 %v11203_v4  ;;  %v3143_v49 = vrot.slane %v3036_v46, 5  ;;  %v2701_v10 = vshrl.u32 %v2547_v3, 16  ;;  %v2704_v4 = vshll.u32 %v2547_v3, 16  ;;  %v13322_v13 = vsel %vm11754_vm2, %v2660_v19, %v13191_v58  ;;  %v11222_v46 = vld [vmem:[%s16116_s4 + $0x770] ss:$8 sps:$4 sm:$0xff]  }
 0x23b   : > { %v7896_v20 = vpop.f32.mrf.mxu0  ;;  %v10048_v25 = vrot.slane %v3034_v6, 9  ;;  %v2683_v31 = vor.u32 %v2682_v15, %v2679_v51  ;;  %v2696_v7 = vshll.u32 %v2546_v23, 16  ;;  %v13332_v3 = vadd.f32 %v12958_v0, %v12797_v59  ;;  %v3037_v19 = vld [vmem:[#allocation2 + $0x148] sm:$0xee] }
 0x23c   : > { %v13315_v5 = vadd.f32 %v7896_v20, %v13135_v34  ;;  %v11204_v34 = vld [vmem:[%s16116_s4 + $0x630] ss:$8 sps:$4 sm:$0xff]   ;;  %v10141_v58 = vcombine.high %v13322_v13, %v13303_v14  ;;  %v13341_v6 = vsel %vm12607_vm6, %v3142_v37, %v3143_v49  ;;  %v11209_v51 = vld [vmem:[%s16116_s4 + $0x624] ss:$8 sps:$4 sm:$0xff]   ;;  %v2694_v15 = vrot.slane %v2693_v33, 4 }
 0x23d   : > { %v7898_v22 = vpop.f32.mrf.mxu0  ;;  %v13317_v44 = vpop.f32.mrf.mxu1  ;;  %8754 = vmatpush1.bf16.msra.mxu1 %v11201_v60  ;;  %v3039_v60 = vld [vmem:[#allocation2 + $0x58] sm:$0x11]  ;;  %v11227_v59 = vld [vmem:[%s16116_s4 + $0x764] ss:$8 sps:$4 sm:$0xff]   ;;  %v3149_v37 = vrot.slane %v16127_v36, 4  ;;  %v13353_v23 = vrot.slane %v2710_v21, 5 }
 0x23e   : > { %16178 = vst [vmem:[#allocation28_spill] sm:$0xff] %v13315_v5  ;;  %v13335_v20 = vadd.f32 %v7898_v22, %v13146_v18  ;;  %8755 = vmatprep.subr.bf16.mxu1 %v11206_v8  ;;  %v13355_v8 = vrot.slane %v2714_v12, 4  ;;  %v13357_v49 = vld [vmem:[#allocation2 + $0x98] sm:$0xff]  ;;  %v13368_v33 = vld [vmem:[#allocation2 + $0x1a0] sm:$0x11]  ;;  %v2703_v36 = vrot.slane %v2701_v10, 4 }
 0x23f   : > { %v7900_v0 = vpop.f32.mrf.mxu0  ;;  %8414 = vmatmul.mubr.bf16.gmra.mxu1 %v10122_v57  ;;  %v13349_v18 = vpop.f32.mrf.mxu1  ;;  %v2706_v21 = vrot.slane %v2704_v4, 5  ;;  %v11207_v12 = vld [vmem:[%s16116_s4 + $0x620] ss:$8 sps:$4 sm:$0xff]  }
 0x240   : > { %16179 = vst [vmem:[#allocation29_spill] sm:$0xff] %v13335_v20  ;;  %8587 = vmatmul.mubr.bf16.vlgmr.msra.gmra.mxu0 %v10088_v38  ;;  %v13360_v22 = vadd.f32 %v7900_v0, %v13155_v62  ;;  %8423 = vmatprep.mubr.bf16.mxu1 %v10141_v58  ;;  %v16181_v38 = vrot.slane %v13127_v27, 5  ;;  %v2684_v58 = vrot.slane %v2683_v31, 4  ;;  %v2698_v27 = vrot.slane %v2696_v7, 5  ;;  %v11225_v10 = vld [vmem:[%s16116_s4 + $0x760] ss:$8 sps:$4 sm:$0xff]  }
 0x241   : > { %8596 = vmatprep.mubr.bf16.mxu0 %v10107_v26  ;;  %v7902_v20 = vpop.f32.mrf.mxu0  ;;  %v13375_v26 = vpop.f32.mrf.mxu1  ;;  %v3150_v0 = vrot.slane %v3039_v60, 5  ;;  %8756 = vmatpush1.bf16.msra.mxu1 %v11204_v34  ;;  %v2738_v31 = vshrl.u32 %v13357_v49, 16  ;;  %v11212_v7 = vld [vmem:[%s16116_s4 + $0x614] ss:$8 sps:$4 sm:$0xff]   ;;  %v2717_v60 = vor.u32 %v13355_v8, %v13353_v23  ;;  %v11210_v8 = vld [vmem:[%s16116_s4 + $0x610] ss:$8 sps:$4 sm:$0xff]  }
 0x242   : > { %16180 = vst [vmem:[#allocation30_spill] sm:$0xff] %v13360_v22  ;;  %v13366_v57 = vsel %vm12607_vm6, %v10048_v25, %v16181_v38  ;;  %v2550_v25 = vld [vmem:[#allocation2 + $0x158] sm:$0xff]  ;;  %8941 = vmatpush1.bf16.msra.mxu0 %v11222_v46  ;;  %v13381_v4 = vadd.f32 %v7902_v20, %v13164_v2  ;;  %v10140_v38 = vcombine.low %v13322_v13, %v13303_v14  ;;  %v2734_v22 = vshll.u32 %v13357_v49, 16 }
 0x243   : > { %v10125_v62 = vcombine.high %v13366_v57, %v13341_v6  ;;  %8757 = vmatprep.subr.bf16.mxu1 %v11209_v51  ;;  %8942 = vmatprep.subr.bf16.mxu0 %v11227_v59  ;;  %v11233_v34 = vld [vmem:[%s16116_s4 + $0x754] ss:$8 sps:$4 sm:$0xff]   ;;  %v7906_v46 = vpop.f32.mrf.mxu0  ;;  %v13393_v2 = vpop.f32.mrf.mxu1  ;;  %v13397_v14 = vsel %vm11754_vm2, %v2694_v15, %v2698_v27  ;;  %v10049_v13 = vrot.slane %v3037_v19, 9  ;;  %v13401_v20 = vsel %vm12607_vm6, %v3149_v37, %v3150_v0  ;;  %v11236_v27 = vld [vmem:[%s16116_s4 + $0x744] ss:$8 sps:$4 sm:$0xff]  }
 0x244   : > { %16182 = vst [vmem:[#allocation31_spill] sm:$0xff] %v13381_v4  ;;  %v13406_v51 = vadd.f32 %v7906_v46, %v13185_v17  ;;  %v2707_v59 = vor.u32 %v2706_v21, %v2703_v36  ;;  %v13408_v4 = vld [vmem:[#allocation2 + $0xe8] sm:$0x11]  ;;  %v2725_v5 = vshrl.u32 %v2550_v25, 16  ;;  %v2728_v47 = vshll.u32 %v2550_v25, 16 }
 0x245   : > { %v7908_v61 = vpop.f32.mrf.mxu0  ;;  %v13413_v19 = vsel %vm11754_vm2, %v2684_v58, %v13274_v1  ;;  %v16184_v15 = vrot.slane %v13159_v52, 5  ;;  %v2720_v17 = vshll.u32 %v13368_v33, 16  ;;  %v16128_v36 = vrot.slane %v13215_v24, 5  ;;  %8758 = vmatpush1.bf16.msra.mxu1 %v11207_v12  ;;  %v11231_v1 = vld [vmem:[%s16116_s4 + $0x750] ss:$8 sps:$4 sm:$0xff]  }
 0x246   : > { %16183 = vst [vmem:[#allocation32_spill] sm:$0xff] %v13406_v51  ;;  %8943 = vmatpush1.bf16.msra.mxu0 %v11225_v10  ;;  %v13430_v52 = vadd.f32 %v7908_v61, %v13217_v29  ;;  %v10159_v21 = vcombine.high %v13413_v19, %v13397_v14  ;;  %v13434_v58 = vrot.slane %v2734_v22, 5  ;;  %v13436_v33 = vrot.slane %v2738_v31, 4  ;;  %8759 = vmatprep.subr.bf16.mxu1 %v11212_v7  ;;  %v11215_v12 = vld [vmem:[%s16116_s4 + $0x604] ss:$8 sps:$4 sm:$0xff]  }
 0x247   : > { %v13419_v37 = vsel %vm12607_vm6, %v10049_v13, %v16184_v15  ;;  %8944 = vmatprep.subr.bf16.mxu0 %v11233_v34  ;;  %v16186_v29 = vcombine.low %v13286_v16, %v13247_v9  ;;  %v7910_v22 = vpop.f32.mrf.mxu0  ;;  %v13449_v0 = vpop.f32.mrf.mxu1  ;;  %8424 = vmatmul.mubr.bf16.gmra.mxu1 %v10140_v38  ;;  %v2718_v31 = vrot.slane %v2717_v60, 4  ;;  %v3040_v7 = vld [vmem:[#allocation2 + $0xd8] sm:$0xee]  ;;  %v3042_v34 = vld [vmem:[#allocation2 + $0x130] sm:$0x11]  ;;  %v2708_v16 = vrot.slane %v2707_v59, 4 }
 0x248   : > { %16185 = vst [vmem:[#allocation33_spill] sm:$0xff] %v13430_v52  ;;  %v13456_v9 = vadd.f32 %v7910_v22, %v13249_v41  ;;  %8433 = vmatprep.mubr.bf16.mxu1 %v10159_v21  ;;  %v13458_v46 = vrot.slane %v2725_v5, 4  ;;  %v13460_v13 = vrot.slane %v2728_v47, 5  ;;  %v13462_v38 = vld [vmem:[#allocation2 + $0x1a0] sm:$0x11]  ;;  %v13464_v15 = vld [vmem:[#allocation2 + $0xa8] sm:$0xff] }
 0x249   : > { %8597 = vmatmul.mubr.bf16.gmra.mxu0 %v16186_v29  ;;  %v11213_v60 = vld [vmem:[%s16116_s4 + $0x600] ss:$8 sps:$4 sm:$0xff]   ;;  %v7912_v29 = vpop.f32.mrf.mxu0  ;;  %v13471_v41 = vpop.f32.mrf.mxu1  ;;  %v2722_v21 = vrot.slane %v2720_v17, 5  ;;  %v3156_v5 = vrot.slane %v16128_v36, 4  ;;  %v2744_v47 = vshll.u32 %v13408_v4, 16  ;;  %8760 = vmatpush1.bf16.msra.mxu1 %v11210_v8  ;;  %v10050_v10 = vrot.slane %v3040_v7, 9 }
 0x24a   : > { %8606 = vmatprep.mubr.bf16.mxu0 %v10125_v62  ;;  %16187 = vst [vmem:[#allocation34_spill] sm:$0xff] %v13456_v9  ;;  %v10158_v62 = vcombine.low %v13413_v19, %v13397_v14  ;;  %v2553_v59 = vld [vmem:[#allocation2 + $0x80] sm:$0xff]  ;;  %8945 = vmatpush1.bf16.msra.mxu0 %v11231_v1  ;;  %v13480_v25 = vadd.f32 %v7912_v29, %v13292_v42  ;;  %v11218_v4 = vld [vmem:[%s16116_s4 + $0x6f4] ss:$8 sps:$4 sm:$0xff]   ;;  %v3157_v1 = vrot.slane %v3042_v34, 5  ;;  %v13506_v36 = vld [vmem:[#allocation2 + $0x168] sm:$0xff] }
 0x24b   : > { %v11234_v22 = vld [vmem:[%s16116_s4 + $0x740] ss:$8 sps:$4 sm:$0xff]   ;;  %v2741_v14 = vor.u32 %v13436_v33, %v13434_v58  ;;  %8761 = vmatprep.subr.bf16.mxu1 %v11215_v12  ;;  %8946 = vmatprep.subr.bf16.mxu0 %v11236_v27  ;;  %v11242_v17 = vld [vmem:[%s16116_s4 + $0x734] ss:$8 sps:$4 sm:$0xff]   ;;  %v13491_v8 = vpop.f32.mrf.mxu1  ;;  %v13495_v42 = vsel %vm11754_vm2, %v2718_v31, %v2722_v21  ;;  %v2758_v33 = vshll.u32 %v13464_v15, 16  ;;  %v2762_v12 = vshrl.u32 %v13464_v15, 16 }
 0x24c   : > { %16188 = vst [vmem:[#allocation35_spill] sm:$0xff] %v13480_v25  ;;  %v13502_v7 = vsel %vm11754_vm2, %v2708_v16, %v13353_v23  ;;  %v2731_v27 = vor.u32 %v13460_v13, %v13458_v46  ;;  %v2749_v29 = vshrl.u32 %v2553_v59, 16  ;;  %v2752_v61 = vshll.u32 %v2553_v59, 16  ;;  %v2556_v19 = vld [vmem:[#allocation2] sm:$0xff]  ;;  %v13520_v46 = vld [vmem:[#allocation2 + $0x138] sm:$0xee] }
 0x24d   : > { %v7916_v31 = vpop.f32.mrf.mxu0  ;;  %v13508_v21 = vpop.f32.mrf.mxu1  ;;  %v16189_v34 = vrot.slane %v13215_v24, 5  ;;  %v13518_v23 = vsel %vm12607_vm6, %v3156_v5, %v3157_v1  ;;  %v2746_v16 = vrot.slane %v2744_v47, 5  ;;  %v3164_v13 = vrot.slane %v13462_v38, 5  ;;  %8762 = vmatpush1.bf16.msra.mxu1 %v11213_v60  ;;  %v11216_v59 = vld [vmem:[%s16116_s4 + $0x6f0] ss:$8 sps:$4 sm:$0xff]  }
 0x24e   : > { %8947 = vmatpush1.bf16.msra.mxu0 %v11234_v22  ;;  %v11240_v24 = vld [vmem:[%s16116_s4 + $0x730] ss:$8 sps:$4 sm:$0xff]   ;;  %v10177_v5 = vcombine.high %v13502_v7, %v13495_v42  ;;  %v2742_v47 = vrot.slane %v2741_v14, 4  ;;  %v16191_v1 = vrot.slane %v13288_v50, 5  ;;  %8763 = vmatprep.subr.bf16.mxu1 %v11218_v4  ;;  %v11221_v60 = vld [vmem:[%s16116_s4 + $0x6e4] ss:$8 sps:$4 sm:$0xff]  }
 0x24f   : > { %v13514_v25 = vsel %vm12607_vm6, %v10050_v10, %v16189_v34  ;;  %v13530_v10 = vadd.f32 %v7916_v31, %v13317_v44  ;;  %8948 = vmatprep.subr.bf16.mxu0 %v11242_v17  ;;  %v11245_v22 = vld [vmem:[%s16116_s4 + $0x724] ss:$8 sps:$4 sm:$0xff]   ;;  %v16192_v44 = vcombine.low %v13366_v57, %v13341_v6  ;;  %v7918_v31 = vpop.f32.mrf.mxu0  ;;  %v13545_v34 = vpop.f32.mrf.mxu1  ;;  %8434 = vmatmul.mubr.bf16.gmra.mxu1 %v10158_v62  ;;  %v2764_v4 = vrot.slane %v2762_v12, 4 }
 0x250   : > { %v3163_v38 = vrot.slane %v16191_v1, 4  ;;  %v2555_v14 = vld [vmem:[#allocation2 + $0x28] sm:$0x11]  ;;  %v13547_v1 = vrot.slane %v2758_v33, 5  ;;  %v2776_v9 = vshll.u32 %v2556_v19, 16  ;;  %v16193_v17 = vcombine.high %v13419_v37, %v13401_v20  ;;  %8443 = vmatprep.mubr.bf16.mxu1 %v10177_v5 }
 0x251   : > { %16190 = vst [vmem:[#allocation36_spill] sm:$0xff] %v13530_v10  ;;  %8607 = vmatmul.mubr.bf16.gmra.mxu0 %v16192_v44  ;;  %v2773_v10 = vshrl.u32 %v2556_v19, 16  ;;  %v13553_v52 = vadd.f32 %v7918_v31, %v13349_v18  ;;  %v2732_v6 = vrot.slane %v2731_v27, 4  ;;  %v13555_v57 = vrot.slane %v2749_v29, 4  ;;  %v7920_v51 = vpop.f32.mrf.mxu0  ;;  %v13559_v33 = vpop.f32.mrf.mxu1  ;;  %8764 = vmatpush2.bf16.msra.mxu1 %v11216_v59  ;;  %v11219_v18 = vld [vmem:[%s16116_s4 + $0x6e0] ss:$8 sps:$4 sm:$0xff]  }
 0x252   : > { %8616 = vmatprep.mubr.bf16.mxu0 %v16193_v17  ;;  %v2754_v44 = vrot.slane %v2752_v61, 5  ;;  %v10176_v62 = vcombine.low %v13502_v7, %v13495_v42  ;;  %v2782_v12 = vshll.u32 %v13506_v36, 16  ;;  %v2786_v17 = vshrl.u32 %v13506_v36, 16  ;;  %8949 = vmatpush1.bf16.msra.mxu0 %v11240_v24  ;;  %v11243_v61 = vld [vmem:[%s16116_s4 + $0x720] ss:$8 sps:$4 sm:$0xff]  }
 0x253   : > { %16194 = vst [vmem:[#allocation37_spill] sm:$0xff] %v13553_v52  ;;  %v13572_v42 = vadd.f32 %v7920_v51, %v13375_v26  ;;  %v10051_v7 = vrot.slane %v13520_v46, 9  ;;  %v13577_v27 = vsel %vm12607_vm6, %v3163_v38, %v3164_v13  ;;  %v2768_v29 = vshll.u32 %v2555_v14, 16  ;;  %8765 = vmatprep.subr.bf16.mxu1 %v11221_v60  ;;  %v11230_v59 = vld [vmem:[%s16116_s4 + $0x6d4] ss:$8 sps:$4 sm:$0xff]   ;;  %8950 = vmatprep.subr.bf16.mxu0 %v11245_v22  ;;  %v7922_v5 = vpop.f32.mrf.mxu0  ;;  %v13585_v26 = vpop.f32.mrf.mxu1 }
 0x254   : > { %v11251_v24 = vld [vmem:[%s16116_s4 + $0x714] ss:$8 sps:$4 sm:$0xff]   ;;  %v13589_v51 = vsel %vm11754_vm2, %v2742_v47, %v2746_v16  ;;  %v2765_v46 = vor.u32 %v2764_v4, %v13547_v1  ;;  %v13594_v38 = vrot.slane %v2773_v10, 4  ;;  %v13596_v60 = vrot.slane %v2776_v9, 5  ;;  %v13604_v19 = vld [vmem:[#allocation2 + $0xe8] sm:$0x11] }
 0x255   : > { %16195 = vst [vmem:[#allocation38_spill] sm:$0xff] %v13572_v42  ;;  %v13592_v13 = vld [vmem:[#allocation2 + $0x158] sm:$0xee]  ;;  %v13599_v22 = vadd.f32 %v7922_v5, %v13393_v2  ;;  %v10161_v31 = vcombine.high %v13514_v25, %v13518_v23  ;;  %v2755_v14 = vor.u32 %v2754_v44, %v13555_v57  ;;  %v3168_v16 = vrot.slane %v13357_v49, 5  ;;  %v2558_v47 = vld [vmem:[#allocation2 + $0xb8] sm:$0x11]  ;;  %v13609_v42 = vpop.f32.mrf.mxu1  ;;  %8766 = vmatpush2.bf16.msra.mxu1 %v11219_v18 }
 0x256   : > { %v13607_v4 = vld [vmem:[#allocation2 + $0x1a8] sm:$0xff]  ;;  %v13614_v9 = vsel %vm11754_vm2, %v2732_v6, %v13434_v58  ;;  %v16197_v2 = vrot.slane %v13288_v50, 5  ;;  %v13622_v57 = vrot.slane %v2782_v12, 5  ;;  %v13624_v44 = vrot.slane %v2786_v17, 4  ;;  %v11228_v49 = vld [vmem:[%s16116_s4 + $0x6d0] ss:$8 sps:$4 sm:$0xff]   ;;  %8951 = vmatpush1.bf16.msra.mxu0 %v11243_v61  ;;  %8767 = vmatprep.subr.bf16.mxu1 %v11230_v59 }
 0x257   : > { %16196 = vst [vmem:[#allocation39_spill] sm:$0xff] %v13599_v22  ;;  %v11249_v58 = vld [vmem:[%s16116_s4 + $0x710] ss:$8 sps:$4 sm:$0xff]   ;;  %v10195_v50 = vcombine.high %v13614_v9, %v13589_v51  ;;  %v2770_v12 = vrot.slane %v2768_v29, 5  ;;  %v10052_v17 = vrot.slane %v13592_v13, 9  ;;  %8952 = vmatprep.subr.bf16.mxu0 %v11251_v24  ;;  %v16198_v5 = vcombine.low %v13419_v37, %v13401_v20  ;;  %8444 = vmatmul.mubr.bf16.gmra.mxu1 %v10176_v62  ;;  %v13651_v24 = vld [vmem:[#allocation2 + $0x140] sm:$0xff] }
 0x258   : > { %v13620_v10 = vsel %vm12607_vm6, %v10051_v7, %v16197_v2  ;;  %v11239_v18 = vld [vmem:[%s16116_s4 + $0x6c4] ss:$8 sps:$4 sm:$0xff]   ;;  %v7926_v7 = vpop.f32.mrf.mxu0  ;;  %v13646_v2 = vpop.f32.mrf.mxu1  ;;  %v2766_v29 = vrot.slane %v2765_v46, 4  ;;  %v3171_v59 = vrot.slane %v13604_v19, 5  ;;  %v2779_v13 = vor.u32 %v13596_v60, %v13594_v38 }
 0x259   : > { %v11254_v61 = vld [vmem:[%s16116_s4 + $0x704] ss:$8 sps:$4 sm:$0xff]   ;;  %8617 = vmatmul.mubr.bf16.gmra.mxu0 %v16198_v5  ;;  %v2792_v6 = vshll.u32 %v2558_v47, 16  ;;  %v13654_v22 = vadd.f32 %v7926_v7, %v13449_v0  ;;  %8453 = vmatprep.mubr.bf16.mxu1 %v10195_v50  ;;  %v2756_v52 = vrot.slane %v2755_v14, 4  ;;  %v2797_v37 = vshrl.u32 %v13607_v4, 16 }
 0x25a   : > { %8626 = vmatprep.mubr.bf16.mxu0 %v10161_v31  ;;  %v13656_v20 = vld [vmem:[#allocation2 + $0x28] sm:$0x11]  ;;  %v2800_v62 = vshll.u32 %v13607_v4, 16  ;;  %v7928_v46 = vpop.f32.mrf.mxu0  ;;  %v10194_v19 = vcombine.low %v13614_v9, %v13589_v51  ;;  %v13662_v38 = vpop.f32.mrf.mxu1  ;;  %v3170_v60 = vrot.slane %v3168_v16, 4  ;;  %v2789_v0 = vor.u32 %v13624_v44, %v13622_v57  ;;  %8768 = vmatpush2.bf16.msra.mxu1 %v11228_v49  ;;  %v11248_v49 = vld [vmem:[%s16116_s4 + $0x6b4] ss:$8 sps:$4 sm:$0xff]  }
 0x25b   : > { %16199 = vst [vmem:[#allocation40_spill] sm:$0xff] %v13654_v22  ;;  %v11237_v14 = vld [vmem:[%s16116_s4 + $0x6c0] ss:$8 sps:$4 sm:$0xff]   ;;  %8953 = vmatpush1.bf16.msra.mxu0 %v11249_v58  ;;  %v13674_v51 = vadd.f32 %v7928_v46, %v13471_v41  ;;  %v10179_v4 = vcombine.high %v13620_v10, %v13577_v27  ;;  %v2806_v9 = vshll.u32 %v13651_v24, 16  ;;  %v2810_v44 = vshrl.u32 %v13651_v24, 16  ;;  %8769 = vmatprep.subr.bf16.mxu1 %v11239_v18 }
 0x25c   : > { %v11252_v47 = vld [vmem:[%s16116_s4 + $0x700] ss:$8 sps:$4 sm:$0xff]   ;;  %8954 = vmatprep.subr.bf16.mxu0 %v11254_v61  ;;  %v11260_v58 = vld [vmem:[%s16116_s4 + $0x7f4] ss:$8 sps:$4 sm:$0xff]   ;;  %v7930_v50 = vpop.f32.mrf.mxu0  ;;  %v13686_v41 = vpop.f32.mrf.mxu1  ;;  %v13690_v7 = vsel %vm11754_vm2, %v2766_v29, %v2770_v12  ;;  %v13694_v5 = vsel %vm12607_vm6, %v10052_v17, %v3168_v16  ;;  %v2780_v18 = vrot.slane %v2779_v13, 4  ;;  %v2794_v46 = vrot.slane %v2792_v6, 5 }
 0x25d   : > { %16200 = vst [vmem:[#allocation41_spill] sm:$0xff] %v13674_v51  ;;  %v13696_v31 = vld [vmem:[#allocation2 + $0x50] sm:$0x11]  ;;  %v13699_v61 = vadd.f32 %v7930_v50, %v13491_v8  ;;  %v13701_v51 = vld [vmem:[#allocation2 + $0x80] sm:$0xee]  ;;  %v3178_v22 = vrot.slane %v13656_v20, 5  ;;  %v13715_v6 = vsel %vm11754_vm2, %v2756_v52, %v13547_v1  ;;  %v13719_v8 = vsel %vm12607_vm6, %v3170_v60, %v3171_v59 }
 0x25e   : > { %v13704_v55 = vrot.slane %v2797_v37, 4  ;;  %v13706_v35 = vrot.slane %v2800_v62, 5  ;;  %v2562_v12 = vld [vmem:[#allocation2 + $0xa0] sm:$0xff]  ;;  %v13708_v29 = vld [vmem:[#allocation2 + $0x170] sm:$0xff]  ;;  %v7932_v16 = vpop.f32.mrf.mxu0  ;;  %v13710_v17 = vpop.f32.mrf.mxu1  ;;  %v2790_v13 = vrot.slane %v2789_v0, 4  ;;  %v16202_v20 = vrot.slane %v13464_v15, 5  ;;  %8770 = vmatpush2.bf16.msra.mxu1 %v11237_v14 }
 0x25f   : > { %16201 = vst [vmem:[#allocation42_spill] sm:$0xff] %v13699_v61  ;;  %v11246_v62 = vld [vmem:[%s16116_s4 + $0x6b0] ss:$8 sps:$4 sm:$0xff]   ;;  %8955 = vmatpush1.bf16.msra.mxu0 %v11252_v47  ;;  %v13730_v52 = vadd.f32 %v7932_v16, %v13508_v21  ;;  %v10213_v1 = vcombine.high %v13715_v6, %v13690_v7  ;;  %v13734_v59 = vrot.slane %v2806_v9, 5  ;;  %v13736_v60 = vrot.slane %v2810_v44, 4  ;;  %8771 = vmatprep.subr.bf16.mxu1 %v11248_v49 }
 0x260   : > { %v3177_v37 = vrot.slane %v16202_v20, 4  ;;  %v11258_v50 = vld [vmem:[%s16116_s4 + $0x7f0] ss:$8 sps:$4 sm:$0xff]   ;;  %v11257_v0 = vld [vmem:[%s16116_s4 + $0x6a4] ss:$8 sps:$4 sm:$0xff]   ;;  %8956 = vmatprep.subr.bf16.mxu0 %v11260_v58  ;;  %v7936_v47 = vpop.f32.mrf.mxu0  ;;  %v16204_v21 = vcombine.low %v13514_v25, %v13518_v23  ;;  %v13747_v16 = vpop.f32.mrf.mxu1  ;;  %8454 = vmatmul.mubr.bf16.gmra.mxu1 %v10194_v19  ;;  %v2821_v9 = vshrl.u32 %v2562_v12, 16  ;;  %v2803_v25 = vor.u32 %v13706_v35, %v13704_v55 }
 0x261   : > { %16203 = vst [vmem:[#allocation43_spill] sm:$0xff] %v13730_v52  ;;  %v11263_v14 = vld [vmem:[%s16116_s4 + $0x7e4] ss:$8 sps:$4 sm:$0xff]   ;;  %v2824_v44 = vshll.u32 %v2562_v12, 16  ;;  %v2830_v49 = vshll.u32 %v13708_v29, 16  ;;  %v2834_v20 = vshrl.u32 %v13708_v29, 16  ;;  %v13752_v58 = vadd.f32 %v7936_v47, %v13545_v34  ;;  %8463 = vmatprep.mubr.bf16.mxu1 %v10213_v1 }
 0x262   : > { %8627 = vmatmul.mubr.bf16.gmra.mxu0 %v16204_v21  ;;  %v2816_v23 = vshll.u32 %v13696_v31, 16  ;;  %v13759_v19 = vld [vmem:[#allocation2] sm:$0xee]  ;;  %v13761_v12 = vld [vmem:[#allocation2 + $0xb8] sm:$0x11]  ;;  %v7938_v21 = vpop.f32.mrf.mxu0  ;;  %v13763_v61 = vpop.f32.mrf.mxu1  ;;  %v10197_v34 = vcombine.high %v13694_v5, %v13719_v8  ;;  %v10053_v1 = vrot.slane %v13701_v51, 9  ;;  %v13775_v35 = vsel %vm12607_vm6, %v3177_v37, %v3178_v22  ;;  %8772 = vmatpush2.bf16.msra.mxu1 %v11246_v62 }
 0x263   : > { %16205 = vst [vmem:[#allocation44_spill] sm:$0xff] %v13752_v58  ;;  %8636 = vmatprep.mubr.bf16.mxu0 %v10179_v4  ;;  %v13770_v4 = vsel %vm11754_vm2, %v2780_v18, %v13622_v57  ;;  %v11255_v55 = vld [vmem:[%s16116_s4 + $0x6a0] ss:$8 sps:$4 sm:$0xff]   ;;  %8957 = vmatpush2.bf16.msra.mxu0 %v11258_v50  ;;  %v13784_v47 = vadd.f32 %v7938_v21, %v13559_v33  ;;  %v3182_v51 = vrot.slane %v13506_v36, 5  ;;  %v11266_v18 = vld [vmem:[%s16116_s4 + $0x694] ss:$8 sps:$4 sm:$0xff]  }
 0x264   : > { %v11261_v31 = vld [vmem:[%s16116_s4 + $0x7e0] ss:$8 sps:$4 sm:$0xff]   ;;  %v13788_v57 = vsel %vm11754_vm2, %v2790_v13, %v2794_v46  ;;  %v2813_v22 = vor.u32 %v13736_v60, %v13734_v59  ;;  %8773 = vmatprep.subr.bf16.mxu1 %v11257_v0  ;;  %8958 = vmatprep.subr.bf16.mxu0 %v11263_v14  ;;  %v11269_v33 = vld [vmem:[%s16116_s4 + $0x7d4] ss:$8 sps:$4 sm:$0xff]   ;;  %v7940_v37 = vpop.f32.mrf.mxu0  ;;  %v13799_v62 = vpop.f32.mrf.mxu1  ;;  %v13801_v46 = vrot.slane %v2821_v9, 4  ;;  %v13803_v13 = vrot.slane %v2824_v44, 5 }
 0x265   : > { %16206 = vst [vmem:[#allocation45_spill] sm:$0xff] %v13784_v47  ;;  %v13805_v50 = vrot.slane %v2830_v49, 5  ;;  %v13807_v36 = vrot.slane %v2834_v20, 4  ;;  %v13810_v60 = vadd.f32 %v7940_v37, %v13585_v26  ;;  %v16208_v0 = vrot.slane %v13464_v15, 5  ;;  %v2564_v47 = vld [vmem:[#allocation2 + $0x198] sm:$0x11] }
 0x266   : > { %v2804_v21 = vrot.slane %v2803_v25, 4  ;;  %v2818_v52 = vrot.slane %v2816_v23, 5  ;;  %v13818_v9 = vld [vmem:[#allocation2 + $0xc0] sm:$0xff]  ;;  %v13820_v44 = vld [vmem:[#allocation2 + $0x190] sm:$0xff]  ;;  %v7942_v49 = vpop.f32.mrf.mxu0  ;;  %v10212_v20 = vcombine.low %v13715_v6, %v13690_v7  ;;  %v13824_v58 = vpop.f32.mrf.mxu1  ;;  %v10054_v26 = vrot.slane %v13759_v19, 9  ;;  %8774 = vmatpush2.bf16.msra.mxu1 %v11255_v55 }
 0x267   : > { %16207 = vst [vmem:[#allocation46_spill] sm:$0xff] %v13810_v60  ;;  %v13816_v14 = vsel %vm12607_vm6, %v10053_v1, %v16208_v0  ;;  %v3185_v1 = vrot.slane %v13761_v12, 5  ;;  %8959 = vmatpush2.bf16.msra.mxu0 %v11261_v31  ;;  %v11264_v25 = vld [vmem:[%s16116_s4 + $0x690] ss:$8 sps:$4 sm:$0xff]   ;;  %v13837_v7 = vadd.f32 %v7942_v49, %v13609_v42  ;;  %v10231_v6 = vcombine.high %v13770_v4, %v13788_v57  ;;  %v11272_v12 = vld [vmem:[%s16116_s4 + $0x7c4] ss:$8 sps:$4 sm:$0xff]  }
 0x268   : > { %v11267_v23 = vld [vmem:[%s16116_s4 + $0x7d0] ss:$8 sps:$4 sm:$0xff]   ;;  %v2814_v37 = vrot.slane %v2813_v22, 4  ;;  %v3184_v19 = vrot.slane %v3182_v51, 4  ;;  %8775 = vmatprep.subr.bf16.mxu1 %v11266_v18  ;;  %8960 = vmatprep.subr.bf16.mxu0 %v11269_v33  ;;  %v11275_v55 = vld [vmem:[%s16116_s4 + $0x684] ss:$8 sps:$4 sm:$0xff]   ;;  %v7946_v31 = vpop.f32.mrf.mxu0  ;;  %v16210_v42 = vcombine.low %v13620_v10, %v13577_v27  ;;  %v13850_v0 = vpop.f32.mrf.mxu1  ;;  %v2827_v22 = vor.u32 %v13803_v13, %v13801_v46 }
 0x269   : > { %16209 = vst [vmem:[#allocation47_spill] sm:$0xff] %v13837_v7  ;;  %8464 = vmatmul.mubr.bf16.gmra.mxu1 %v10212_v20  ;;  %v2837_v18 = vor.u32 %v13807_v36, %v13805_v50  ;;  %v2840_v33 = vshll.u32 %v2564_v47, 16  ;;  %v3055_v49 = vld [vmem:[#allocation2 + $0x1a8] sm:$0xee]  ;;  %v3189_v15 = vrot.slane %v13651_v24, 5  ;;  %v13858_v7 = vadd.f32 %v7946_v31, %v13646_v2 }
 0x26a   : > { %8637 = vmatmul.mubr.bf16.gmra.mxu0 %v16210_v42  ;;  %8473 = vmatprep.mubr.bf16.mxu1 %v10231_v6  ;;  %v10215_v27 = vcombine.high %v13816_v14, %v13775_v35  ;;  %v3057_v10 = vld [vmem:[#allocation2 + $0x50] sm:$0x11]  ;;  %v2845_v20 = vshrl.u32 %v13818_v9, 16  ;;  %v2848_v46 = vshll.u32 %v13818_v9, 16  ;;  %v7948_v13 = vpop.f32.mrf.mxu0  ;;  %v13864_v42 = vpop.f32.mrf.mxu1  ;;  %v13869_v24 = vsel %vm11754_vm2, %v2804_v21, %v13734_v59  ;;  %v11270_v36 = vld [vmem:[%s16116_s4 + $0x7c0] ss:$8 sps:$4 sm:$0xff]  }
 0x26b   : > { %16211 = vst [vmem:[#allocation48_spill] sm:$0xff] %v13858_v7  ;;  %8646 = vmatprep.mubr.bf16.mxu0 %v10197_v34  ;;  %v13873_v2 = vsel %vm12607_vm6, %v10054_v26, %v3182_v51  ;;  %v2854_v34 = vshll.u32 %v13820_v44, 16  ;;  %v2858_v47 = vshrl.u32 %v13820_v44, 16  ;;  %8776 = vmatpush2.bf16.msra.mxu1 %v11264_v25  ;;  %v11273_v9 = vld [vmem:[%s16116_s4 + $0x680] ss:$8 sps:$4 sm:$0xff]   ;;  %v13884_v59 = vadd.f32 %v7948_v13, %v13662_v38 }
 0x26c   : > { %8961 = vmatpush2.bf16.msra.mxu0 %v11267_v23  ;;  %v13888_v51 = vsel %vm11754_vm2, %v2814_v37, %v2818_v52  ;;  %v13892_v21 = vsel %vm12607_vm6, %v3184_v19, %v3185_v1  ;;  %v10055_v26 = vrot.slane %v3055_v49, 9  ;;  %8777 = vmatprep.subr.bf16.mxu1 %v11275_v55  ;;  %v11280_v25 = vld [vmem:[%s16116_s4 + $0x7b4] ss:$8 sps:$4 sm:$0xff]   ;;  %v7950_v23 = vpop.f32.mrf.mxu0  ;;  %v13900_v6 = vpop.f32.mrf.mxu1  ;;  %v2828_v52 = vrot.slane %v2827_v22, 4 }
 0x26d   : > { %16212 = vst [vmem:[#allocation49_spill] sm:$0xff] %v13884_v59  ;;  %8962 = vmatprep.subr.bf16.mxu0 %v11272_v12  ;;  %v11286_v38 = vld [vmem:[%s16116_s4 + $0x874] ss:$8 sps:$4 sm:$0xff]   ;;  %v2838_v37 = vrot.slane %v2837_v18, 4  ;;  %v2842_v31 = vrot.slane %v2840_v33, 5  ;;  %v3191_v13 = vrot.slane %v3189_v15, 4  ;;  %v13903_v1 = vadd.f32 %v7950_v23, %v13686_v41 }
 0x26e   : > { %v3192_v19 = vrot.slane %v3057_v10, 5  ;;  %v2847_v12 = vrot.slane %v2845_v20, 4  ;;  %v2850_v55 = vrot.slane %v2848_v46, 5  ;;  %v7952_v49 = vpop.f32.mrf.mxu0  ;;  %v10230_v59 = vcombine.low %v13770_v4, %v13788_v57  ;;  %v13907_v7 = vpop.f32.mrf.mxu1  ;;  %v11278_v41 = vld [vmem:[%s16116_s4 + $0x7b0] ss:$8 sps:$4 sm:$0xff]  }
 0x26f   : > { %v13911_v45 = vrot.slane %v2854_v34, 5  ;;  %v2860_v22 = vrot.slane %v2858_v47, 4  ;;  %8778 = vmatpush2.bf16.msra.mxu1 %v11273_v9  ;;  %v13917_v18 = vadd.f32 %v7952_v49, %v13710_v17  ;;  %v10249_v4 = vcombine.high %v13869_v24, %v13888_v51  ;;  %v2567_v33 = vld [vmem:[#allocation2 + $0xc8] sm:$0x11]  ;;  %v2568_v10 = vld [vmem:[#allocation2 + $0xf0] sm:$0xff] }
 0x270   : > { %8963 = vmatpush2.bf16.msra.mxu0 %v11270_v36  ;;  %v11283_v20 = vld [vmem:[%s16116_s4 + $0x7a4] ss:$8 sps:$4 sm:$0xff]   ;;  %9133 = vmatprep.subr.bf16.mxu1 %v11286_v38  ;;  %v7956_v46 = vpop.f32.mrf.mxu0  ;;  %v16213_v34 = vcombine.low %v13694_v5, %v13719_v8  ;;  %v13929_v17 = vpop.f32.mrf.mxu1  ;;  %v13934_v47 = vsel %vm11754_vm2, %v2828_v52, %v13805_v50  ;;  %v13938_v36 = vsel %vm11754_vm2, %v2838_v37, %v2842_v31  ;;  %v2872_v37 = vshll.u32 %v2568_v10, 16 }
 0x271   : > { %8964 = vmatprep.subr.bf16.mxu0 %v11280_v25  ;;  %8474 = vmatmul.mubr.bf16.gmra.mxu1 %v10230_v59  ;;  %v13942_v9 = vsel %vm12607_vm6, %v10055_v26, %v3189_v15  ;;  %v3058_v25 = vld [vmem:[#allocation2 + $0xa0] sm:$0xee]  ;;  %v13945_v5 = vadd.f32 %v7956_v46, %v13747_v16  ;;  %v13949_v8 = vsel %vm12607_vm6, %v3191_v13, %v3192_v19  ;;  %v13951_v59 = vld [vmem:[#allocation2 + $0x150] sm:$0xff]  ;;  %v2864_v15 = vshll.u32 %v2567_v33, 16  ;;  %v2571_v46 = vld [vmem:[#allocation2 + $0xf8] sm:$0xff] }
 0x272   : > { %8647 = vmatmul.mubr.bf16.gmra.mxu0 %v16213_v34  ;;  %8483 = vmatprep.mubr.bf16.mxu1 %v10249_v4  ;;  %v2851_v50 = vor.u32 %v2850_v55, %v2847_v12  ;;  %v7958_v38 = vpop.f32.mrf.mxu0  ;;  %v13953_v23 = vpop.f32.mrf.mxu1  ;;  %v2861_v52 = vor.u32 %v2860_v22, %v13911_v45  ;;  %v2869_v26 = vshrl.u32 %v2568_v10, 16  ;;  %v11281_v16 = vld [vmem:[%s16116_s4 + $0x7a0] ss:$8 sps:$4 sm:$0xff]   ;;  %v10248_v31 = vcombine.low %v13869_v24, %v13888_v51  ;;  %v11289_v12 = vld [vmem:[%s16116_s4 + $0x794] ss:$8 sps:$4 sm:$0xff]  }
 0x273   : > { %8656 = vmatprep.mubr.bf16.mxu0 %v10215_v27  ;;  %v13960_v27 = vadd.f32 %v7958_v38, %v13763_v61  ;;  %v10056_v13 = vrot.slane %v3058_v25, 9  ;;  %v3196_v19 = vrot.slane %v13708_v29, 5  ;;  %v10267_v61 = vcombine.high %v13934_v47, %v13938_v36 }
 0x274   : > { %8965 = vmatpush2.bf16.msra.mxu0 %v11278_v41  ;;  %v7960_v55 = vpop.f32.mrf.mxu0  ;;  %v13968_v49 = vpop.f32.mrf.mxu1  ;;  %v3060_v41 = vld [vmem:[#allocation2 + $0x198] sm:$0x11]  ;;  %v2878_v24 = vshll.u32 %v13951_v59, 16  ;;  %v2882_v51 = vshrl.u32 %v13951_v59, 16  ;;  %v2852_v10 = vrot.slane %v2851_v50, 4  ;;  %v2862_v38 = vrot.slane %v2861_v52, 4 }
 0x275   : > { %8966 = vmatprep.subr.bf16.mxu0 %v11283_v20  ;;  %v13977_v29 = vadd.f32 %v7960_v55, %v13799_v62  ;;  %v2570_v20 = vld [vmem:[#allocation2 + $0x30] sm:$0x11]  ;;  %v2866_v22 = vrot.slane %v2864_v15, 5  ;;  %v2871_v60 = vrot.slane %v2869_v26, 4  ;;  %v2874_v57 = vrot.slane %v2872_v37, 5 }
 0x276   : > { %v7962_v34 = vpop.f32.mrf.mxu0  ;;  %v13983_v25 = vpop.f32.mrf.mxu1  ;;  %v11287_v62 = vld [vmem:[%s16116_s4 + $0x790] ss:$8 sps:$4 sm:$0xff]   ;;  %v13993_v50 = vsel %vm12607_vm6, %v10056_v13, %v3196_v19  ;;  %v3198_v4 = vrot.slane %v3196_v19, 4  ;;  %v3199_v33 = vrot.slane %v3060_v41, 5  ;;  %v11292_v52 = vld [vmem:[%s16116_s4 + $0x784] ss:$8 sps:$4 sm:$0xff]   ;;  %v16216_v26 = vcombine.low %v13816_v14, %v13775_v35 }
 0x277   : > { %16214 = vst [vmem:[#allocation50_spill] sm:$0xff] %v13977_v29  ;;  %v13989_v55 = vadd.f32 %v7962_v34, %v13824_v58  ;;  %v13995_v29 = vld [vmem:[#allocation2 + $0x18] sm:$0xff]  ;;  %v14003_v37 = vrot.slane %v2878_v24, 5  ;;  %v3061_v13 = vld [vmem:[#allocation2 + $0xc0] sm:$0xee]  ;;  %v2893_v19 = vshrl.u32 %v2571_v46, 16  ;;  %v14017_v35 = vsel %vm11754_vm2, %v2852_v10, %v13911_v45 }
 0x278   : > { %8967 = vmatpush2.bf16.msra.mxu0 %v11281_v16  ;;  %v7966_v15 = vpop.f32.mrf.mxu0  ;;  %v8019_v58 = vpop.f32.mrf.mxu1  ;;  %v2884_v16 = vrot.slane %v2882_v51, 4  ;;  %v2896_v41 = vshll.u32 %v2571_v46, 16  ;;  %v2888_v14 = vshll.u32 %v2570_v20, 16  ;;  %v2875_v51 = vor.u32 %v2874_v57, %v2871_v60 }
 0x279   : > { %16215 = vst [vmem:[#allocation51_spill] sm:$0xff] %v13989_v55  ;;  %8968 = vmatprep.subr.bf16.mxu0 %v11289_v12  ;;  %8484 = vmatmul.mubr.bf16.gmra.mxu1 %v10248_v31  ;;  %v14006_v34 = vadd.f32 %v7966_v15, %v13850_v0  ;;  %v16217_v12 = vcombine.high %v13873_v2, %v13892_v21  ;;  %v2902_v46 = vshll.u32 %v13995_v29, 16  ;;  %v2906_v15 = vshrl.u32 %v13995_v29, 16 }
 0x27a   : > { %8657 = vmatmul.mubr.bf16.gmra.mxu0 %v16216_v26  ;;  %v14012_v55 = vadd.f32 %v8019_v58, %v12897_v48  ;;  %8493 = vmatprep.mubr.bf16.mxu1 %v10267_v61  ;;  %v7968_v31 = vpop.f32.mrf.mxu0  ;;  %v8021_v24 = vpop.f32.mrf.mxu1  ;;  %v14021_v0 = vsel %vm11754_vm2, %v2862_v38, %v2866_v22  ;;  %v11290_v48 = vld [vmem:[%s16116_s4 + $0x780] ss:$8 sps:$4 sm:$0xff]   ;;  %v14036_v22 = vsel %vm12607_vm6, %v3198_v4, %v3199_v33  ;;  %v10057_v60 = vrot.slane %v3061_v13, 9 }
 0x27b   : > { %8666 = vmatprep.mubr.bf16.mxu0 %v16217_v12  ;;  %v14029_v45 = vadd.f32 %v7968_v31, %v13864_v42  ;;  %v14032_v61 = vadd.f32 %v8021_v24, %v12911_v40  ;;  %v2885_v20 = vor.u32 %v2884_v16, %v14003_v37  ;;  %v3063_v38 = vld [vmem:[#allocation2 + $0xc8] sm:$0x11]  ;;  %v2895_v26 = vrot.slane %v2893_v19, 4 }
 0x27c   : > { %8969 = vmatpush2.bf16.msra.mxu0 %v11287_v62  ;;  %v7970_v57 = vpop.f32.mrf.mxu0  ;;  %v8023_v10 = vpop.f32.mrf.mxu1  ;;  %v3203_v62 = vrot.slane %v13820_v44, 5  ;;  %v2898_v58 = vrot.slane %v2896_v41, 5  ;;  %v10284_v4 = vcombine.low %v14017_v35, %v14021_v0  ;;  %v10285_v33 = vcombine.high %v14017_v35, %v14021_v0  ;;  %v2573_v24 = vld [vmem:[#allocation2 + $0x8] sm:$0x11]  ;;  %v2574_v35 = vld [vmem:[#allocation2 + $0x60] sm:$0xff] }
 0x27d   : > { %8970 = vmatprep.subr.bf16.mxu0 %v11292_v52  ;;  %v14041_v42 = vadd.f32 %v7970_v57, %v13900_v6  ;;  %v14044_v40 = vadd.f32 %v8023_v10, %v12927_v30  ;;  %v2876_v16 = vrot.slane %v2875_v51, 4  ;;  %v2890_v12 = vrot.slane %v2888_v14, 5 }
 0x27e   : > { %v7972_v52 = vpop.f32.mrf.mxu0  ;;  %v8025_v13 = vpop.f32.mrf.mxu1  ;;  %v14050_v31 = vrot.slane %v2902_v46, 5  ;;  %v2908_v44 = vrot.slane %v2906_v15, 4  ;;  %v8010_v6 = vadd.f32 %v13929_v17, %v13195_v28  ;;  %v3206_v41 = vrot.slane %v3063_v38, 5 }
 0x27f   : > { %v14055_v30 = vadd.f32 %v7972_v52, %v13907_v7  ;;  %v14058_v19 = vadd.f32 %v8025_v13, %v13332_v3  ;;  %v16218_v14 = vcombine.low %v13873_v2, %v13892_v21  ;;  %v16219_v46 = vcombine.low %v13934_v47, %v13938_v36  ;;  %v14080_v47 = vld [vmem:[#allocation2 + $0x70] sm:$0xff] }
 0x280   : > { %8971 = vmatpush2.bf16.msra.mxu0 %v11290_v48  ;;  %v8202_v0 = vpop.f32.mrf.mxu0  ;;  %v8029_v51 = vpop.f32.mrf.mxu1  ;;  %v2886_v28 = vrot.slane %v2885_v20, 4  ;;  %v14068_v7 = vsel %vm12607_vm6, %v10057_v60, %v3203_v62  ;;  %v3205_v3 = vrot.slane %v3203_v62, 4  ;;  %v2899_v17 = vor.u32 %v2898_v58, %v2895_v26 }
 0x281   : > { %8494 = vmatmul.mubr.bf16.gmra.mxu1 %v16219_v46  ;;  %v8012_v15 = vadd.f32 %v13953_v23, %v13265_v63  ;;  %v14072_v48 = vadd.f32 %v8202_v0, %v8010_v6  ;;  %v16220_v2 = vcombine.high %v13942_v9, %v13949_v8  ;;  %v14078_v21 = vadd.f32 %v8029_v51, %v12973_v54  ;;  %v16221_v51 = vld [vmem:[#allocation7_spill] sm:$0xff] }
 0x282   : > { %8667 = vmatmul.mubr.bf16.gmra.mxu0 %v16218_v14  ;;  %8503 = vmatprep.mubr.bf16.mxu1 %v10285_v33  ;;  %v8204_v36 = vpop.f32.mrf.mxu0  ;;  %v8031_v60 = vpop.f32.mrf.mxu1  ;;  %v2909_v57 = vor.u32 %v2908_v44, %v14050_v31  ;;  %v2912_v10 = vshll.u32 %v2573_v24, 16  ;;  %v2917_v20 = vshrl.u32 %v2574_v35, 16  ;;  %v2920_v38 = vshll.u32 %v2574_v35, 16 }
 0x283   : > { %8676 = vmatprep.mubr.bf16.mxu0 %v16220_v2  ;;  %v8014_v63 = vadd.f32 %v13968_v49, %v13269_v53  ;;  %v14085_v23 = vadd.f32 %v8204_v36, %v8012_v15  ;;  %v14088_v62 = vadd.f32 %v8031_v60, %v12989_v11  ;;  %v14093_v54 = vsel %vm11754_vm2, %v2876_v16, %v14003_v37  ;;  %v2577_v36 = vld [vmem:[#allocation2 + $0x38] sm:$0xff] }
 0x284   : > { %v8206_v26 = vpop.f32.mrf.mxu0  ;;  %v8033_v58 = vpop.f32.mrf.mxu1  ;;  %v14097_v33 = vsel %vm11754_vm2, %v2886_v28, %v2890_v12  ;;  %v14101_v52 = vsel %vm12607_vm6, %v3205_v3, %v3206_v41  ;;  %v2926_v53 = vshll.u32 %v14080_v47, 16  ;;  %v2930_v11 = vshrl.u32 %v14080_v47, 16 }
 0x285   : > { %v8016_v49 = vadd.f32 %v13983_v25, %v13278_v43  ;;  %v14107_v13 = vadd.f32 %v8206_v26, %v8014_v63  ;;  %v14110_v37 = vadd.f32 %v8033_v58, %v12993_v32  ;;  %v2900_v16 = vrot.slane %v2899_v17, 4  ;;  %v2576_v17 = vld [vmem:[#allocation2 + $0x68] sm:$0x11]  ;;  %v16224_v58 = vld [vmem:[#allocation9_spill] sm:$0xff] }
 0x286   : > { %v8208_v44 = vpop.f32.mrf.mxu0  ;;  %v8035_v12 = vpop.f32.mrf.mxu1  ;;  %v2910_v6 = vrot.slane %v2909_v57, 4  ;;  %v2914_v24 = vrot.slane %v2912_v10, 5  ;;  %v2919_v35 = vrot.slane %v2917_v20, 4  ;;  %v2922_v41 = vrot.slane %v2920_v38, 5  ;;  %v16223_v57 = vld [vmem:[#allocation8_spill] sm:$0xff] }
 0x287   : > { %v14112_v0 = vadd.f32 %v8208_v44, %v8016_v49  ;;  %v10269_v14 = vcombine.high %v13993_v50, %v14036_v22  ;;  %v14117_v46 = vadd.f32 %v8035_v12, %v16221_v51  ;;  %v10303_v43 = vcombine.high %v14093_v54, %v14097_v33  ;;  %v3064_v20 = vld [vmem:[#allocation2 + $0xf0] sm:$0xee] }
 0x288   : > { %v8212_v32 = vpop.f32.mrf.mxu0  ;;  %v16222_v25 = vcombine.low %v13942_v9, %v13949_v8  ;;  %v10268_v28 = vcombine.low %v13993_v50, %v14036_v22  ;;  %v8039_v3 = vpop.f32.mrf.mxu1  ;;  %v2928_v15 = vrot.slane %v2926_v53, 5  ;;  %v2932_v2 = vrot.slane %v2930_v11, 4  ;;  %v14134_v8 = vld [vmem:[#allocation2 + $0x20] sm:$0xff]  ;;  %v3066_v11 = vld [vmem:[#allocation2 + $0x30] sm:$0x11] }
 0x289   : > { %8504 = vmatmul.mubr.bf16.gmra.mxu1 %v10284_v4  ;;  %v14127_v60 = vadd.f32 %v8212_v32, %v14012_v55  ;;  %v14130_v10 = vadd.f32 %v8039_v3, %v16223_v57  ;;  %v10287_v9 = vcombine.high %v14068_v7, %v14101_v52  ;;  %v14139_v4 = vsel %vm11754_vm2, %v2900_v16, %v14050_v31 }
 0x28a   : > { %8677 = vmatmul.mubr.bf16.gmra.mxu0 %v16222_v25  ;;  %8513 = vmatprep.mubr.bf16.mxu1 %v10303_v43  ;;  %v8214_v50 = vpop.f32.mrf.mxu0  ;;  %v8041_v22 = vpop.f32.mrf.mxu1  ;;  %v14143_v55 = vsel %vm11754_vm2, %v2910_v6, %v2914_v24  ;;  %v3210_v38 = vrot.slane %v13951_v59, 5  ;;  %v2923_v63 = vor.u32 %v2922_v41, %v2919_v35  ;;  %v2936_v49 = vshll.u32 %v2576_v17, 16  ;;  %v16225_v35 = vld [vmem:[#allocation10_spill] sm:$0xff] }
 0x28b   : > { %8686 = vmatprep.mubr.bf16.mxu0 %v10269_v14  ;;  %v14147_v26 = vadd.f32 %v8214_v50, %v14032_v61  ;;  %v14150_v53 = vadd.f32 %v8041_v22, %v16224_v58  ;;  %v2941_v44 = vshrl.u32 %v2577_v36, 16  ;;  %v2933_v16 = vor.u32 %v2932_v2, %v2928_v15 }
 0x28c   : > { %v8216_v12 = vpop.f32.mrf.mxu0  ;;  %v8043_v31 = vpop.f32.mrf.mxu1  ;;  %v2944_v14 = vshll.u32 %v2577_v36, 16  ;;  %v2950_v6 = vshll.u32 %v14134_v8, 16  ;;  %v2954_v24 = vshrl.u32 %v14134_v8, 16  ;;  %v10302_v61 = vcombine.low %v14093_v54, %v14097_v33 }
 0x28d   : > { %v14155_v59 = vadd.f32 %v8216_v12, %v14044_v40  ;;  %v14160_v41 = vadd.f32 %v8043_v31, %v16225_v35  ;;  %v10058_v51 = vrot.slane %v3064_v20, 9  ;;  %v10321_v25 = vcombine.high %v14139_v4, %v14143_v55  ;;  %v16226_v40 = vld [vmem:[#allocation11_spill] sm:$0xff] }
 0x28e   : > { %v8218_v43 = vpop.f32.mrf.mxu0  ;;  %v8045_v32 = vpop.f32.mrf.mxu1  ;;  %v3212_v3 = vrot.slane %v3210_v38, 4  ;;  %v3213_v17 = vrot.slane %v3066_v11, 5  ;;  %v2924_v2 = vrot.slane %v2923_v63, 4  ;;  %v2938_v50 = vrot.slane %v2936_v49, 5  ;;  %v16227_v63 = vld [vmem:[#allocation12_spill] sm:$0xff] }
 0x28f   : > { %v14165_v36 = vadd.f32 %v8218_v43, %v14058_v19  ;;  %v14168_v57 = vadd.f32 %v8045_v32, %v16226_v40  ;;  %v2943_v54 = vrot.slane %v2941_v44, 4  ;;  %v2934_v20 = vrot.slane %v2933_v16, 4  ;;  %v2579_v11 = vld [vmem:[#allocation2 + $0x88] sm:$0x11] }
 0x290   : > { %v8222_v33 = vpop.f32.mrf.mxu0  ;;  %v8049_v22 = vpop.f32.mrf.mxu1  ;;  %v2946_v58 = vrot.slane %v2944_v14, 5  ;;  %v2952_v12 = vrot.slane %v2950_v6, 5  ;;  %v2956_v31 = vrot.slane %v2954_v24, 4  ;;  %v3214_v44 = vsel %vm12607_vm6, %v3212_v3, %v3213_v17  ;;  %v3067_v6 = vld [vmem:[#allocation2 + $0xf8] sm:$0xee] }
 0x291   : > { %8514 = vmatmul.mubr.bf16.gmra.mxu1 %v10302_v61  ;;  %v14171_v35 = vadd.f32 %v8222_v33, %v14078_v21  ;;  %v14174_v19 = vadd.f32 %v8049_v22, %v16227_v63  ;;  %v16228_v21 = vld [vmem:[#allocation13_spill] sm:$0xff]  ;;  %v3069_v24 = vld [vmem:[#allocation2 + $0x8] sm:$0x11]  ;;  %v3217_v61 = vrot.slane %v13995_v29, 5  ;;  %v2960_v17 = vshll.u32 %v2579_v11, 16  ;;  %v16229_v33 = vld [vmem:[#allocation14_spill] sm:$0xff] }
 0x292   : > { %8687 = vmatmul.mubr.bf16.gmra.mxu0 %v10268_v28  ;;  %8523 = vmatprep.mubr.bf16.mxu1 %v10321_v25  ;;  %v8224_v43 = vpop.f32.mrf.mxu0  ;;  %v8051_v49 = vpop.f32.mrf.mxu1  ;;  %v14178_v28 = vsel %vm12607_vm6, %v10058_v51, %v3210_v38  ;;  %v2939_v38 = vsel %vm11754_vm2, %v2934_v20, %v2938_v50  ;;  %v2947_v51 = vor.u32 %v2946_v58, %v2943_v54  ;;  %v10059_v50 = vrot.slane %v3067_v6, 9  ;;  %v16230_v58 = vld [vmem:[#allocation15_spill] sm:$0xff] }
 0x293   : > { %8696 = vmatprep.mubr.bf16.mxu0 %v10287_v9  ;;  %v14183_v16 = vadd.f32 %v8224_v43, %v14088_v62  ;;  %v14186_v14 = vadd.f32 %v8051_v49, %v16228_v21  ;;  %v2929_v9 = vsel %vm11754_vm2, %v2924_v2, %v2928_v15  ;;  %v2957_v3 = vor.u32 %v2956_v31, %v2952_v12  ;;  %v16231_v21 = vld [vmem:[#allocation16_spill] sm:$0xff] }
 0x294   : > { %v8226_v32 = vpop.f32.mrf.mxu0  ;;  %v8053_v25 = vpop.f32.mrf.mxu1  ;;  %v10286_v62 = vcombine.low %v14068_v7, %v14101_v52  ;;  %v10320_v29 = vcombine.low %v14139_v4, %v14143_v55  ;;  %v10305_v22 = vcombine.high %v14178_v28, %v3214_v44  ;;  %v3220_v54 = vrot.slane %v3069_v24, 5 }
 0x295   : > { %v14196_v40 = vadd.f32 %v8226_v32, %v14110_v37  ;;  %v14199_v15 = vadd.f32 %v8053_v25, %v16229_v33  ;;  %v10339_v52 = vcombine.high %v2929_v9, %v2939_v38  ;;  %v3219_v37 = vrot.slane %v3217_v61, 4  ;;  %v16232_v25 = vld [vmem:[#allocation17_spill] sm:$0xff] }
 0x296   : > { %v8228_v2 = vpop.f32.mrf.mxu0  ;;  %v8055_v63 = vpop.f32.mrf.mxu1  ;;  %v2948_v43 = vrot.slane %v2947_v51, 4  ;;  %v2958_v49 = vrot.slane %v2957_v3, 4  ;;  %v2962_v4 = vrot.slane %v2960_v17, 5  ;;  %v3218_v51 = vsel %vm12607_vm6, %v10059_v50, %v3217_v61  ;;  %v3072_v61 = vld [vmem:[#allocation2 + $0x68] sm:$0x11] }
 0x297   : > { %v14205_v20 = vadd.f32 %v8228_v2, %v14117_v46  ;;  %v14208_v7 = vadd.f32 %v8055_v63, %v16230_v58  ;;  %v16234_v63 = vld [vmem:[#allocation18_spill] sm:$0xff]  ;;  %v10304_v50 = vcombine.low %v14178_v28, %v3214_v44  ;;  %v16238_v44 = vld [vmem:[#allocation20_spill] sm:$0xff] }
 0x298   : > { %v8232_v31 = vpop.f32.mrf.mxu0  ;;  %v8059_v11 = vpop.f32.mrf.mxu1  ;;  %v2953_v33 = vsel %vm11754_vm2, %v2948_v43, %v2952_v12  ;;  %v2963_v2 = vsel %vm11754_vm2, %v2958_v49, %v2962_v4 }
 0x299   : > { %8524 = vmatmul.mubr.bf16.gmra.mxu1 %v10320_v29  ;;  %v14211_v55 = vadd.f32 %v8232_v31, %v14130_v10  ;;  %v14214_v6 = vadd.f32 %v8059_v11, %v16231_v21  ;;  %v3221_v10 = vsel %vm12607_vm6, %v3219_v37, %v3220_v54  ;;  %v3070_v29 = vld [vmem:[#allocation2 + $0x60] sm:$0xee]  ;;  %v16236_v11 = vld [vmem:[#allocation19_spill] sm:$0xff] }
 0x29a   : > { %8697 = vmatmul.mubr.bf16.gmra.mxu0 %v10286_v62  ;;  %8533 = vmatprep.mubr.bf16.mxu1 %v10339_v52  ;;  %v8234_v46 = vpop.f32.mrf.mxu0  ;;  %v8061_v24 = vpop.f32.mrf.mxu1  ;;  %v10338_v52 = vcombine.low %v2929_v9, %v2939_v38  ;;  %v10323_v37 = vcombine.high %v3218_v51, %v3221_v10  ;;  %v10060_v49 = vrot.slane %v3070_v29, 9 }
 0x29b   : > { %8706 = vmatprep.mubr.bf16.mxu0 %v10305_v22  ;;  %v14217_v32 = vadd.f32 %v8234_v46, %v14150_v53  ;;  %v14220_v62 = vadd.f32 %v8061_v24, %v16232_v25  ;;  %v3224_v53 = vrot.slane %v14080_v47, 5  ;;  %v10357_v47 = vcombine.high %v2953_v33, %v2963_v2 }
 0x29c   : > { %v8236_v3 = vpop.f32.mrf.mxu0  ;;  %v8063_v17 = vpop.f32.mrf.mxu1  ;;  %v3227_v46 = vrot.slane %v3072_v61, 5 }
 0x29d   : > { %v14232_v22 = vadd.f32 %v8236_v3, %v14160_v41  ;;  %v14235_v58 = vadd.f32 %v8063_v17, %v16234_v63  ;;  %v3226_v21 = vrot.slane %v3224_v53, 4  ;;  %v16240_v3 = vld [vmem:[#allocation21_spill] sm:$0xff]  ;;  %v14260_v29 = vsel %vm12607_vm6, %v10060_v49, %v3224_v53  ;;  %v16242_v53 = vld [vmem:[#allocation22_spill] sm:$0xff]  ;;  %v3075_v49 = vld [vmem:[#allocation2 + $0x88] sm:$0x11] }
 0x29e   : > { %v8238_v54 = vpop.f32.mrf.mxu0  ;;  %v8065_v31 = vpop.f32.mrf.mxu1 }
 0x29f   : > { %16233 = vst [vmem:[#allocation7_spill] sm:$0xff] %v14232_v22  ;;  %v14239_v12 = vadd.f32 %v8238_v54, %v14168_v57  ;;  %v14242_v43 = vadd.f32 %v8065_v31, %v16236_v11  ;;  %v14250_v57 = vld [vmem:[#allocation2 + $0x178] sm:$0xff]  ;;  %v14266_v61 = vsel %vm12607_vm6, %v3226_v21, %v3227_v46  ;;  %v10322_v31 = vcombine.low %v3218_v51, %v3221_v10  ;;  %v16244_v51 = vld [vmem:[#allocation23_spill] sm:$0xff]  ;;  %v14612_v22 = vld [vmem:[#allocation2 + $0x80] sm:$0xff] }
 0x2a0   : > { %v8242_v41 = vpop.f32.mrf.mxu0  ;;  %v8069_v4 = vpop.f32.mrf.mxu1  ;;  %v3073_v54 = vld [vmem:[#allocation2 + $0x38] sm:$0xee] }
 0x2a1   : > { %16235 = vst [vmem:[#allocation8_spill] sm:$0xff] %v14239_v12  ;;  %8534 = vmatmul.mubr.bf16.gmra.mxu1 %v10338_v52  ;;  %v14245_v28 = vadd.f32 %v8242_v41, %v14174_v19  ;;  %v14248_v9 = vadd.f32 %v8069_v4, %v16238_v44  ;;  %v14262_v19 = vld [vmem:[#allocation2 + $0x40] sm:$0xff]  ;;  %v3231_v52 = vrot.slane %v14134_v8, 5  ;;  %v10356_v4 = vcombine.low %v2953_v33, %v2963_v2 }
 0x2a2   : > { %8707 = vmatmul.mubr.bf16.gmra.mxu0 %v10304_v50  ;;  %8543 = vmatprep.mubr.bf16.mxu1 %v10357_v47  ;;  %v8244_v38 = vpop.f32.mrf.mxu0  ;;  %v8071_v24 = vpop.f32.mrf.mxu1  ;;  %v10091_v46 = vcombine.high %v14262_v19, %v14250_v57  ;;  %v3414_v8 = vshrl.u32 %v14262_v19, 16  ;;  %v3417_v44 = vshll.u32 %v14262_v19, 16 }
 0x2a3   : > { %16237 = vst [vmem:[#allocation9_spill] sm:$0xff] %v14245_v28  ;;  %8716 = vmatprep.mubr.bf16.mxu0 %v10323_v37  ;;  %v14253_v25 = vadd.f32 %v8244_v38, %v14186_v14  ;;  %v14256_v17 = vadd.f32 %v8071_v24, %v16240_v3  ;;  %v3423_v14 = vshll.u32 %v14250_v57, 16  ;;  %v3427_v37 = vshrl.u32 %v14250_v57, 16 }
 0x2a4   : > { %v8246_v63 = vpop.f32.mrf.mxu0  ;;  %v8073_v50 = vpop.f32.mrf.mxu1  ;;  %v10061_v24 = vrot.slane %v3073_v54, 9  ;;  %v3233_v2 = vrot.slane %v3231_v52, 4 }
 0x2a5   : > { %16239 = vst [vmem:[#allocation10_spill] sm:$0xff] %v14253_v25  ;;  %v14272_v11 = vadd.f32 %v8246_v63, %v14199_v15  ;;  %v14275_v47 = vadd.f32 %v8073_v50, %v16242_v53  ;;  %v10341_v15 = vcombine.high %v14260_v29, %v14266_v61  ;;  %v3234_v63 = vrot.slane %v3075_v49, 5 }
 0x2a6   : > { %v8248_v41 = vpop.f32.mrf.mxu0  ;;  %v8075_v21 = vpop.f32.mrf.mxu1  ;;  %v14289_v50 = vrot.slane %v3423_v14, 5  ;;  %v3429_v53 = vrot.slane %v3427_v37, 4  ;;  %v16248_v14 = vld [vmem:[#allocation25_spill] sm:$0xff]  ;;  %v14309_v37 = vld [vmem:[#allocation2 + $0x110] sm:$0xff] }
 0x2a7   : > { %16241 = vst [vmem:[#allocation11_spill] sm:$0xff] %v14272_v11  ;;  %v14282_v38 = vadd.f32 %v8248_v41, %v14208_v7  ;;  %v14287_v10 = vadd.f32 %v8075_v21, %v16244_v51  ;;  %v16246_v7 = vld [vmem:[#allocation24_spill] sm:$0xff] }
 0x2a8   : > { %v8252_v3 = vpop.f32.mrf.mxu0  ;;  %v8079_v33 = vpop.f32.mrf.mxu1  ;;  %v14297_v21 = vld [vmem:[#allocation2 + $0x90] sm:$0xff] }
 0x2a9   : > { %16243 = vst [vmem:[#allocation12_spill] sm:$0xff] %v14282_v38  ;;  %8544 = vmatmul.mubr.bf16.gmra.mxu1 %v10356_v4  ;;  %v14292_v11 = vadd.f32 %v8252_v3, %v14214_v6  ;;  %v14295_v41 = vadd.f32 %v8079_v33, %v16246_v7  ;;  %v3419_v38 = vrot.slane %v3417_v44, 5  ;;  %v14307_v6 = vsel %vm12607_vm6, %v10061_v24, %v3231_v52 }
 0x2aa   : > { %8717 = vmatmul.mubr.bf16.gmra.mxu0 %v10322_v31  ;;  %8779 = vmatprep.mubr.bf16.mxu1 %v10091_v46  ;;  %v8254_v54 = vpop.f32.mrf.mxu0  ;;  %v8081_v51 = vpop.f32.mrf.mxu1  ;;  %v3416_v31 = vrot.slane %v3414_v8, 4  ;;  %v14313_v3 = vsel %vm12607_vm6, %v3233_v2, %v3234_v63  ;;  %v3430_v44 = vor.u32 %v3429_v53, %v14289_v50  ;;  %v3451_v33 = vshrl.u32 %v14297_v21, 16  ;;  %v11284_v2 = vld [vmem:[%s16116_s4 + $0x870] ss:$8 sps:$4 sm:$0xff]  }
 0x2ab   : > { %16245 = vst [vmem:[#allocation13_spill] sm:$0xff] %v14292_v11  ;;  %8726 = vmatprep.mubr.bf16.mxu0 %v10341_v15  ;;  %v14300_v4 = vadd.f32 %v8254_v54, %v14220_v62  ;;  %v14303_v49 = vadd.f32 %v8081_v51, %v16248_v14  ;;  %v3367_v15 = vld [vmem:[#allocation2 + $0x108] sm:$0x11]  ;;  %v3447_v62 = vshll.u32 %v14297_v21, 16  ;;  %v10340_v7 = vcombine.low %v14260_v29, %v14266_v61  ;;  %v16250_v54 = vld [vmem:[#allocation26_spill] sm:$0xff] }
 0x2ac   : > { %v8256_v46 = vpop.f32.mrf.mxu0  ;;  %v8083_v8 = vpop.f32.mrf.mxu1  ;;  %v10090_v24 = vcombine.low %v14262_v19, %v14250_v57  ;;  %v3420_v14 = vor.u32 %v3419_v38, %v3416_v31  ;;  %v3433_v56 = vshll.u32 %v3367_v15, 16  ;;  %v11295_v29 = vld [vmem:[%s16116_s4 + $0x864] ss:$8 sps:$4 sm:$0xff]   ;;  %v3441_v61 = vshll.u32 %v14309_v37, 16 }
 0x2ad   : > { %16247 = vst [vmem:[#allocation14_spill] sm:$0xff] %v14300_v4  ;;  %v14321_v52 = vadd.f32 %v8256_v46, %v14235_v58  ;;  %v14326_v51 = vadd.f32 %v8083_v8, %v16250_v54  ;;  %v3438_v58 = vshrl.u32 %v14309_v37, 16  ;;  %v10359_v19 = vcombine.high %v14307_v6, %v14313_v3  ;;  %v16252_v46 = vld [vmem:[#allocation27_spill] sm:$0xff] }
 0x2ae   : > { %v8258_v63 = vpop.f32.mrf.mxu0  ;;  %v8085_v53 = vpop.f32.mrf.mxu1  ;;  %v10109_v31 = vcombine.high %v14309_v37, %v14297_v21  ;;  %v3431_v15 = vrot.slane %v3430_v44, 4  ;;  %v3453_v4 = vrot.slane %v3451_v33, 4  ;;  %v3435_v33 = vrot.slane %v3433_v56, 5 }
 0x2af   : > { %16249 = vst [vmem:[#allocation15_spill] sm:$0xff] %v14321_v52  ;;  %v14337_v57 = vadd.f32 %v8258_v63, %v14242_v43  ;;  %v14342_v8 = vadd.f32 %v8085_v53, %v16252_v46  ;;  %v14346_v52 = vrot.slane %v3447_v62, 5  ;;  %v16254_v63 = vld [vmem:[#allocation28_spill] sm:$0xff]  ;;  %v3370_v53 = vld [vmem:[#allocation2 + $0x118] sm:$0x11]  ;;  %v3421_v62 = vrot.slane %v3420_v14, 4 }
 0x2b0   : > { %v8262_v54 = vpop.f32.mrf.mxu0  ;;  %v8089_v38 = vpop.f32.mrf.mxu1  ;;  %v14374_v56 = vsel %vm11754_vm2, %v3431_v15, %v3435_v33 }
 0x2b1   : > { %16251 = vst [vmem:[#allocation16_spill] sm:$0xff] %v14337_v57  ;;  %8780 = vmatmul.mubr.bf16.vlgmr.msra.gmra.mxu1 %v10090_v24  ;;  %v14349_v43 = vadd.f32 %v8262_v54, %v14248_v9  ;;  %v14352_v57 = vadd.f32 %v8089_v38, %v16254_v63  ;;  %v14357_v24 = vld [vmem:[#allocation2 + $0x100] sm:$0xff]  ;;  %v3440_v9 = vrot.slane %v3438_v58, 4  ;;  %v3443_v54 = vrot.slane %v3441_v61, 5  ;;  %v16256_v63 = vld [vmem:[#allocation29_spill] sm:$0xff] }
 0x2b2   : > { %8727 = vmatmul.mubr.bf16.gmra.mxu0 %v10340_v7  ;;  %9134 = vmatpush1.bf16.msra.mxu1 %v11284_v2  ;;  %v11293_v7 = vld [vmem:[%s16116_s4 + $0x860] ss:$8 sps:$4 sm:$0xff]   ;;  %v8264_v46 = vpop.f32.mrf.mxu0  ;;  %v8091_v44 = vpop.f32.mrf.mxu1  ;;  %v10108_v38 = vcombine.low %v14309_v37, %v14297_v21  ;;  %v3454_v58 = vor.u32 %v3453_v4, %v14346_v52  ;;  %v3471_v61 = vshll.u32 %v14357_v24, 16  ;;  %v10358_v21 = vcombine.low %v14307_v6, %v14313_v3  ;;  %v11298_v6 = vld [vmem:[%s16116_s4 + $0x850] ss:$8 sps:$4 sm:$0xff]  }
 0x2b3   : > { %16253 = vst [vmem:[#allocation17_spill] sm:$0xff] %v14349_v43  ;;  %8736 = vmatprep.mubr.bf16.mxu0 %v10359_v19  ;;  %8789 = vmatprep.mubr.bf16.mxu1 %v10109_v31  ;;  %v11300_v19 = vld [vmem:[%s16116_s4 + $0x854] ss:$8 sps:$4 sm:$0xff]   ;;  %v14363_v2 = vadd.f32 %v8264_v46, %v14256_v17  ;;  %v14368_v43 = vadd.f32 %v8091_v44, %v16256_v63  ;;  %v14370_v31 = vld [vmem:[#allocation2 + $0x148] sm:$0xff]  ;;  %v3475_v17 = vshrl.u32 %v14357_v24, 16  ;;  %v16258_v46 = vld [vmem:[#allocation30_spill] sm:$0xff] }
 0x2b4   : > { %9135 = vmatprep.subr.bf16.mxu1 %v11295_v29  ;;  %v8266_v14 = vpop.f32.mrf.mxu0  ;;  %v8093_v29 = vpop.f32.mrf.mxu1  ;;  %v3457_v63 = vshll.u32 %v3370_v53, 16  ;;  %v14390_v4 = vsel %vm11754_vm2, %v3421_v62, %v14289_v50  ;;  %v3465_v3 = vshll.u32 %v14370_v31, 16  ;;  %v10127_v62 = vcombine.high %v14370_v31, %v14357_v24 }
 0x2b5   : > { %16255 = vst [vmem:[#allocation18_spill] sm:$0xff] %v14363_v2  ;;  %v14382_v37 = vadd.f32 %v8266_v14, %v14275_v47  ;;  %v14385_v44 = vadd.f32 %v8093_v29, %v16258_v46  ;;  %v3444_v2 = vor.u32 %v3443_v54, %v3440_v9  ;;  %v3462_v47 = vshrl.u32 %v14370_v31, 16  ;;  %v16260_v14 = vld [vmem:[#allocation31_spill] sm:$0xff] }
 0x2b6   : > { %9136 = vmatpush1.bf16.msra.mxu1 %v11293_v7  ;;  %v8268_v15 = vpop.f32.mrf.mxu0  ;;  %v8095_v33 = vpop.f32.mrf.mxu1  ;;  %v10093_v53 = vcombine.high %v14390_v4, %v14374_v56  ;;  %v11305_v9 = vld [vmem:[%s16116_s4 + $0x844] ss:$8 sps:$4 sm:$0xff]   ;;  %v3455_v29 = vrot.slane %v3454_v58, 4  ;;  %v3477_v46 = vrot.slane %v3475_v17, 4 }
 0x2b7   : > { %16257 = vst [vmem:[#allocation19_spill] sm:$0xff] %v14382_v37  ;;  %9137 = vmatprep.subr.bf16.mxu1 %v11300_v19  ;;  %v14398_v7 = vadd.f32 %v8268_v15, %v14287_v10  ;;  %v14403_v50 = vadd.f32 %v8095_v33, %v16260_v14  ;;  %v14410_v10 = vrot.slane %v3471_v61, 5  ;;  %v16262_v33 = vld [vmem:[#allocation32_spill] sm:$0xff]  ;;  %v14420_v37 = vld [vmem:[#allocation2 + $0x180] sm:$0xff]  ;;  %v3445_v25 = vrot.slane %v3444_v2, 4 }
 0x2b8   : > { %v8272_v54 = vpop.f32.mrf.mxu0  ;;  %v8099_v19 = vpop.f32.mrf.mxu1  ;;  %v3464_v58 = vrot.slane %v3462_v47, 4  ;;  %v3467_v61 = vrot.slane %v3465_v3, 5  ;;  %v11308_v2 = vld [vmem:[%s16116_s4 + $0x834] ss:$8 sps:$4 sm:$0xff]   ;;  %v16266_v3 = vld [vmem:[#allocation34_spill] sm:$0xff] }
 0x2b9   : > { %16259 = vst [vmem:[#allocation20_spill] sm:$0xff] %v14398_v7  ;;  %8790 = vmatmul.mubr.bf16.gmra.mxu1 %v10108_v38  ;;  %v14413_v15 = vadd.f32 %v8272_v54, %v14295_v41  ;;  %v14416_v14 = vadd.f32 %v8099_v19, %v16262_v33  ;;  %v14418_v7 = vld [vmem:[#allocation2 + $0xd8] sm:$0xff]  ;;  %v3459_v38 = vrot.slane %v3457_v63, 5  ;;  %v11303_v41 = vld [vmem:[%s16116_s4 + $0x840] ss:$8 sps:$4 sm:$0xff]  }
 0x2ba   : > { %8737 = vmatmul.mubr.bf16.gmra.mxu0 %v10358_v21  ;;  %8799 = vmatprep.mubr.bf16.mxu1 %v10127_v62  ;;  %v8274_v11 = vpop.f32.mrf.mxu0  ;;  %v8101_v21 = vpop.f32.mrf.mxu1  ;;  %v16264_v62 = vld [vmem:[#allocation33_spill] sm:$0xff]  ;;  %v3486_v33 = vshrl.u32 %v14418_v7, 16 }
 0x2bb   : > { %16261 = vst [vmem:[#allocation21_spill] sm:$0xff] %v14413_v15  ;;  %8972 = vmatprep.mubr.bf16.mxu0 %v10093_v53  ;;  %9138 = vmatpush1.bf16.msra.mxu1 %v11298_v6  ;;  %v14426_v17 = vadd.f32 %v8274_v11, %v14303_v49  ;;  %v10126_v53 = vcombine.low %v14370_v31, %v14357_v24  ;;  %v3373_v19 = vld [vmem:[#allocation2 + $0x58] sm:$0x11]  ;;  %v3495_v49 = vshll.u32 %v14420_v37, 16  ;;  %v3499_v24 = vshrl.u32 %v14420_v37, 16 }
 0x2bc   : > { %v14431_v54 = vadd.f32 %v8101_v21, %v16264_v62  ;;  %9139 = vmatprep.subr.bf16.mxu1 %v11305_v9  ;;  %v8276_v63 = vpop.f32.mrf.mxu0  ;;  %v14438_v6 = vsel %vm11754_vm2, %v3455_v29, %v3459_v38  ;;  %v8103_v47 = vpop.f32.mrf.mxu1  ;;  %v3478_v11 = vor.u32 %v3477_v46, %v14410_v10  ;;  %v3489_v21 = vshll.u32 %v14418_v7, 16 }
 0x2bd   : > { %16263 = vst [vmem:[#allocation22_spill] sm:$0xff] %v14426_v17  ;;  %v14444_v31 = vadd.f32 %v8276_v63, %v14326_v51  ;;  %v14447_v9 = vadd.f32 %v8103_v47, %v16266_v3  ;;  %v10092_v29 = vcombine.low %v14390_v4, %v14374_v56  ;;  %v14456_v46 = vsel %vm11754_vm2, %v3445_v25, %v14346_v52  ;;  %v11306_v63 = vld [vmem:[%s16116_s4 + $0x830] ss:$8 sps:$4 sm:$0xff]   ;;  %v16268_v4 = vld [vmem:[#allocation35_spill] sm:$0xff] }
 0x2be   : > { %v8278_v38 = vpop.f32.mrf.mxu0  ;;  %v8105_v62 = vpop.f32.mrf.mxu1  ;;  %v3468_v17 = vor.u32 %v3467_v61, %v3464_v58  ;;  %v3481_v51 = vshll.u32 %v3373_v19, 16  ;;  %v10111_v56 = vcombine.high %v14456_v46, %v14438_v6  ;;  %v10145_v25 = vcombine.high %v14418_v7, %v14420_v37  ;;  %v11311_v52 = vld [vmem:[%s16116_s4 + $0x824] ss:$8 sps:$4 sm:$0xff]  }
 0x2bf   : > { %16265 = vst [vmem:[#allocation23_spill] sm:$0xff] %v14444_v31  ;;  %9140 = vmatpush1.bf16.msra.mxu1 %v11303_v41  ;;  %v14462_v47 = vadd.f32 %v8278_v38, %v14342_v8  ;;  %v14467_v3 = vadd.f32 %v8105_v62, %v16268_v4  ;;  %v3479_v8 = vrot.slane %v3478_v11, 4  ;;  %v14474_v41 = vrot.slane %v3495_v49, 5  ;;  %v16270_v62 = vld [vmem:[#allocation36_spill] sm:$0xff] }
 0x2c0   : > { %9141 = vmatprep.subr.bf16.mxu1 %v11308_v2  ;;  %v8282_v58 = vpop.f32.mrf.mxu0  ;;  %v8109_v61 = vpop.f32.mrf.mxu1  ;;  %v3501_v19 = vrot.slane %v3499_v24, 4  ;;  %v14482_v2 = vld [vmem:[#allocation2 + $0x78] sm:$0xff]  ;;  %v3491_v31 = vrot.slane %v3489_v21, 5  ;;  %v3469_v28 = vrot.slane %v3468_v17, 4  ;;  %v3376_v11 = vld [vmem:[#allocation2 + $0x130] sm:$0x11]  ;;  %v10144_v24 = vcombine.low %v14418_v7, %v14420_v37 }
 0x2c1   : > { %16267 = vst [vmem:[#allocation24_spill] sm:$0xff] %v14462_v47  ;;  %8800 = vmatmul.mubr.bf16.gmra.mxu1 %v10126_v53  ;;  %v14477_v38 = vadd.f32 %v8282_v58, %v14352_v57  ;;  %v14480_v4 = vadd.f32 %v8109_v61, %v16270_v62  ;;  %v3488_v47 = vrot.slane %v3486_v33, 4  ;;  %v3483_v53 = vrot.slane %v3481_v51, 5  ;;  %v11309_v57 = vld [vmem:[%s16116_s4 + $0x820] ss:$8 sps:$4 sm:$0xff]   ;;  %v14495_v33 = vld [vmem:[#allocation2 + $0x138] sm:$0xff] }
 0x2c2   : > { %8973 = vmatmul.mubr.bf16.vlgmr.msra.gmra.mxu0 %v10092_v29  ;;  %8809 = vmatprep.mubr.bf16.mxu1 %v10145_v25  ;;  %v8284_v15 = vpop.f32.mrf.mxu0  ;;  %v8111_v29 = vpop.f32.mrf.mxu1  ;;  %v11316_v17 = vld [vmem:[%s16116_s4 + $0x814] ss:$8 sps:$4 sm:$0xff]   ;;  %v3519_v37 = vshll.u32 %v14482_v2, 16  ;;  %v3523_v7 = vshrl.u32 %v14482_v2, 16  ;;  %v3505_v62 = vshll.u32 %v3376_v11, 16 }
 0x2c3   : > { %16269 = vst [vmem:[#allocation25_spill] sm:$0xff] %v14477_v38  ;;  %8982 = vmatprep.mubr.bf16.mxu0 %v10111_v56  ;;  %9142 = vmatpush1.bf16.msra.mxu1 %v11306_v63  ;;  %v14488_v49 = vadd.f32 %v8284_v15, %v14368_v43  ;;  %v16272_v56 = vld [vmem:[#allocation37_spill] sm:$0xff]  ;;  %v14502_v51 = vsel %vm11754_vm2, %v3479_v8, %v3483_v53  ;;  %v3379_v38 = vld [vmem:[#allocation2 + $0x1a0] sm:$0x11] }
 0x2c4   : > { %v14493_v25 = vadd.f32 %v8111_v29, %v16272_v56  ;;  %9143 = vmatprep.subr.bf16.mxu1 %v11311_v52  ;;  %v8286_v21 = vpop.f32.mrf.mxu0  ;;  %v8113_v43 = vpop.f32.mrf.mxu1  ;;  %v3502_v15 = vor.u32 %v3501_v19, %v14474_v41  ;;  %v16274_v52 = vld [vmem:[#allocation38_spill] sm:$0xff]  ;;  %v3492_v61 = vor.u32 %v3491_v31, %v3488_v47  ;;  %v10110_v29 = vcombine.low %v14456_v46, %v14438_v6  ;;  %v11314_v31 = vld [vmem:[%s16116_s4 + $0x810] ss:$8 sps:$4 sm:$0xff]   ;;  %v16276_v46 = vld [vmem:[#allocation39_spill] sm:$0xff] }
 0x2c5   : > { %16271 = vst [vmem:[#allocation26_spill] sm:$0xff] %v14488_v49  ;;  %v14508_v63 = vadd.f32 %v8286_v21, %v14385_v44  ;;  %v14511_v58 = vadd.f32 %v8113_v43, %v16274_v52  ;;  %v14518_v19 = vsel %vm11754_vm2, %v3469_v28, %v14410_v10  ;;  %v3510_v56 = vshrl.u32 %v14495_v33, 16  ;;  %v14535_v10 = vld [vmem:[#allocation2 + $0x98] sm:$0xff] }
 0x2c6   : > { %v8288_v8 = vpop.f32.mrf.mxu0  ;;  %v8115_v53 = vpop.f32.mrf.mxu1  ;;  %v3513_v44 = vshll.u32 %v14495_v33, 16  ;;  %v10129_v6 = vcombine.high %v14518_v19, %v14502_v51  ;;  %v10163_v28 = vcombine.high %v14495_v33, %v14482_v2  ;;  %v3503_v43 = vrot.slane %v3502_v15, 4  ;;  %v14548_v49 = vld [vmem:[#allocation2 + $0x158] sm:$0xff]  ;;  %v16331_v39 = vld [vmem:[#allocation23_spill] sm:$0xff] }
 0x2c7   : > { %16273 = vst [vmem:[#allocation27_spill] sm:$0xff] %v14508_v63  ;;  %9144 = vmatpush1.bf16.msra.mxu1 %v11309_v57  ;;  %v14526_v47 = vadd.f32 %v8288_v8, %v14403_v50  ;;  %v14531_v11 = vadd.f32 %v8115_v53, %v16276_v46  ;;  %v11321_v57 = vld [vmem:[%s16116_s4 + $0x804] ss:$8 sps:$4 sm:$0xff]   ;;  %v14540_v52 = vrot.slane %v3519_v37, 5  ;;  %v3525_v8 = vrot.slane %v3523_v7, 4  ;;  %v16278_v46 = vld [vmem:[#allocation40_spill] sm:$0xff] }
 0x2c8   : > { %9145 = vmatprep.subr.bf16.mxu1 %v11316_v17  ;;  %v8292_v21 = vpop.f32.mrf.mxu0  ;;  %v8119_v50 = vpop.f32.mrf.mxu1  ;;  %v3493_v17 = vrot.slane %v3492_v61, 4  ;;  %v3507_v63 = vrot.slane %v3505_v62, 5  ;;  %v3515_v15 = vrot.slane %v3513_v44, 5  ;;  %v3543_v37 = vshll.u32 %v14535_v10, 16  ;;  %v16280_v62 = vld [vmem:[#allocation41_spill] sm:$0xff] }
 0x2c9   : > { %16275 = vst [vmem:[#allocation28_spill] sm:$0xff] %v14526_v47  ;;  %8810 = vmatmul.mubr.bf16.gmra.mxu1 %v10144_v24  ;;  %v14543_v53 = vadd.f32 %v8292_v21, %v14416_v14  ;;  %v14546_v47 = vadd.f32 %v8119_v50, %v16278_v46  ;;  %v3512_v24 = vrot.slane %v3510_v56, 4  ;;  %v3547_v7 = vshrl.u32 %v14535_v10, 16  ;;  %v11319_v14 = vld [vmem:[%s16116_s4 + $0x800] ss:$8 sps:$4 sm:$0xff]  }
 0x2ca   : > { %8983 = vmatmul.mubr.bf16.gmra.mxu0 %v10110_v29  ;;  %8819 = vmatprep.mubr.bf16.mxu1 %v10163_v28  ;;  %v8294_v29 = vpop.f32.mrf.mxu0  ;;  %v8121_v12 = vpop.f32.mrf.mxu1  ;;  %v10162_v61 = vcombine.low %v14495_v33, %v14482_v2  ;;  %v11326_v56 = vld [vmem:[%s16116_s4 + $0x8f4] ss:$8 sps:$4 sm:$0xff]   ;;  %v3534_v50 = vshrl.u32 %v14548_v49, 16  ;;  %v3537_v2 = vshll.u32 %v14548_v49, 16 }
 0x2cb   : > { %16277 = vst [vmem:[#allocation29_spill] sm:$0xff] %v14543_v53  ;;  %8992 = vmatprep.mubr.bf16.mxu0 %v10129_v6  ;;  %9146 = vmatpush1.bf16.msra.mxu1 %v11314_v31  ;;  %v14556_v6 = vadd.f32 %v8294_v29, %v14431_v54  ;;  %v14561_v28 = vadd.f32 %v8121_v12, %v16280_v62  ;;  %v3529_v29 = vshll.u32 %v3379_v38, 16  ;;  %v3549_v53 = vrot.slane %v3547_v7, 4 }
 0x2cc   : > { %9147 = vmatprep.subr.bf16.mxu1 %v11321_v57  ;;  %v8296_v44 = vpop.f32.mrf.mxu0  ;;  %v14568_v31 = vsel %vm11754_vm2, %v3503_v43, %v3507_v63  ;;  %v8123_v21 = vpop.f32.mrf.mxu1  ;;  %v3526_v54 = vor.u32 %v3525_v8, %v14540_v52  ;;  %v10128_v12 = vcombine.low %v14518_v19, %v14502_v51  ;;  %v16282_v57 = vld [vmem:[#allocation42_spill] sm:$0xff]  ;;  %v14584_v63 = vsel %vm11754_vm2, %v3493_v17, %v14474_v41  ;;  %v16284_v19 = vld [vmem:[#allocation43_spill] sm:$0xff] }
 0x2cd   : > { %16279 = vst [vmem:[#allocation30_spill] sm:$0xff] %v14556_v6  ;;  %v14576_v33 = vadd.f32 %v8296_v44, %v14447_v9  ;;  %v14579_v46 = vadd.f32 %v8123_v21, %v16282_v57  ;;  %v3516_v8 = vor.u32 %v3515_v15, %v3512_v24  ;;  %v14586_v6 = vrot.slane %v3543_v37, 5  ;;  %v11324_v9 = vld [vmem:[%s16116_s4 + $0x8f0] ss:$8 sps:$4 sm:$0xff]   ;;  %v14601_v17 = vld [vmem:[#allocation2 + $0xa8] sm:$0xff] }
 0x2ce   : > { %v8298_v62 = vpop.f32.mrf.mxu0  ;;  %v8125_v43 = vpop.f32.mrf.mxu1  ;;  %v10147_v38 = vcombine.high %v14584_v63, %v14568_v31  ;;  %v10181_v41 = vcombine.high %v14548_v49, %v14535_v10  ;;  %v11331_v24 = vld [vmem:[%s16116_s4 + $0x8e4] ss:$8 sps:$4 sm:$0xff]   ;;  %v3527_v37 = vrot.slane %v3526_v54, 4  ;;  %v3536_v7 = vrot.slane %v3534_v50, 4  ;;  %v16285_v57 = vld [vmem:[#allocation44_spill] sm:$0xff] }
 0x2cf   : > { %16281 = vst [vmem:[#allocation31_spill] sm:$0xff] %v14576_v33  ;;  %9148 = vmatpush1.bf16.msra.mxu1 %v11319_v14  ;;  %v14592_v51 = vadd.f32 %v8298_v62, %v14467_v3  ;;  %v14597_v44 = vadd.f32 %v8125_v43, %v16284_v19  ;;  %v3539_v14 = vrot.slane %v3537_v2, 5  ;;  %v3382_v43 = vld [vmem:[#allocation2 + $0xe8] sm:$0x11]  ;;  %v3517_v33 = vrot.slane %v3516_v8, 4 }
 0x2d0   : > { %9149 = vmatprep.subr.bf16.mxu1 %v11326_v56  ;;  %v8302_v15 = vpop.f32.mrf.mxu0  ;;  %v8129_v3 = vpop.f32.mrf.mxu1  ;;  %v3531_v56 = vrot.slane %v3529_v29, 5  ;;  %v3567_v54 = vshll.u32 %v14601_v17, 16  ;;  %v3571_v50 = vshrl.u32 %v14601_v17, 16  ;;  %v16287_v29 = vld [vmem:[#allocation45_spill] sm:$0xff] }
 0x2d1   : > { %16283 = vst [vmem:[#allocation32_spill] sm:$0xff] %v14592_v51  ;;  %8820 = vmatmul.mubr.bf16.gmra.mxu1 %v10162_v61  ;;  %v14607_v21 = vadd.f32 %v8302_v15, %v14480_v4  ;;  %v14610_v62 = vadd.f32 %v8129_v3, %v16285_v57  ;;  %v3550_v61 = vor.u32 %v3549_v53, %v14586_v6  ;;  %v11329_v4 = vld [vmem:[%s16116_s4 + $0x8e0] ss:$8 sps:$4 sm:$0xff]   ;;  %v11336_v53 = vld [vmem:[%s16116_s4 + $0x8d4] ss:$8 sps:$4 sm:$0xff]   ;;  %v3553_v3 = vshll.u32 %v3382_v43, 16 }
 0x2d2   : > { %8993 = vmatmul.mubr.bf16.gmra.mxu0 %v10128_v12  ;;  %8829 = vmatprep.mubr.bf16.mxu1 %v10181_v41  ;;  %v8304_v19 = vpop.f32.mrf.mxu0  ;;  %v8131_v51 = vpop.f32.mrf.mxu1  ;;  %v10180_v12 = vcombine.low %v14548_v49, %v14535_v10  ;;  %v14635_v41 = vsel %vm11754_vm2, %v3527_v37, %v3531_v56  ;;  %v3540_v15 = vor.u32 %v3539_v14, %v3536_v7  ;;  %v16289_v10 = vld [vmem:[#allocation46_spill] sm:$0xff]  ;;  %v3561_v57 = vshll.u32 %v14612_v22, 16 }
 0x2d3   : > { %9002 = vmatprep.mubr.bf16.mxu0 %v10147_v38  ;;  %9150 = vmatpush2.bf16.msra.mxu1 %v11324_v9  ;;  %v14621_v2 = vadd.f32 %v8304_v19, %v14493_v25  ;;  %v14626_v8 = vadd.f32 %v8131_v51, %v16287_v29  ;;  %v10146_v9 = vcombine.low %v14584_v63, %v14568_v31  ;;  %v3551_v37 = vrot.slane %v3550_v61, 4  ;;  %v16291_v29 = vld [vmem:[#allocation47_spill] sm:$0xff] }
 0x2d4   : > { %9151 = vmatprep.subr.bf16.mxu1 %v11331_v24  ;;  %v8306_v38 = vpop.f32.mrf.mxu0  ;;  %v8133_v25 = vpop.f32.mrf.mxu1  ;;  %v3558_v24 = vshrl.u32 %v14612_v22, 16  ;;  %v14648_v31 = vsel %vm11754_vm2, %v3517_v33, %v14540_v52  ;;  %v14650_v7 = vrot.slane %v3567_v54, 5  ;;  %v3573_v14 = vrot.slane %v3571_v50, 4  ;;  %v14665_v33 = vld [vmem:[#allocation2] sm:$0xff] }
 0x2d5   : > { %16286 = vst [vmem:[#allocation33_spill] sm:$0xff] %v14621_v2  ;;  %v14638_v49 = vadd.f32 %v8306_v38, %v14511_v58  ;;  %v14641_v51 = vadd.f32 %v8133_v25, %v16289_v10  ;;  %v11334_v58 = vld [vmem:[%s16116_s4 + $0x8d0] ss:$8 sps:$4 sm:$0xff]   ;;  %v10165_v43 = vcombine.high %v14648_v31, %v14635_v41  ;;  %v10199_v52 = vcombine.high %v14612_v22, %v14601_v17  ;;  %v11339_v61 = vld [vmem:[%s16116_s4 + $0x8c4] ss:$8 sps:$4 sm:$0xff]  }
 0x2d6   : > { %v8308_v19 = vpop.f32.mrf.mxu0  ;;  %v8135_v63 = vpop.f32.mrf.mxu1  ;;  %v3541_v50 = vrot.slane %v3540_v15, 4  ;;  %v14670_v25 = vld [vmem:[#allocation2 + $0x168] sm:$0xff]  ;;  %v3582_v15 = vshrl.u32 %v14665_v33, 16 }
 0x2d7   : > { %16288 = vst [vmem:[#allocation34_spill] sm:$0xff] %v14638_v49  ;;  %9152 = vmatpush2.bf16.msra.mxu1 %v11329_v4  ;;  %v14656_v56 = vadd.f32 %v8308_v19, %v14531_v11  ;;  %v14661_v38 = vadd.f32 %v8135_v63, %v16291_v29  ;;  %v3555_v4 = vrot.slane %v3553_v3, 5  ;;  %v16292_v19 = vld [vmem:[#allocation48_spill] sm:$0xff]  ;;  %v3560_v29 = vrot.slane %v3558_v24, 4  ;;  %v11337_v3 = vld [vmem:[%s16116_s4 + $0x8c0] ss:$8 sps:$4 sm:$0xff]  }
 0x2d8   : > { %9153 = vmatprep.subr.bf16.mxu1 %v11336_v53  ;;  %v8312_v54 = vpop.f32.mrf.mxu0  ;;  %v8139_v11 = vpop.f32.mrf.mxu1  ;;  %v3385_v53 = vld [vmem:[#allocation2 + $0x28] sm:$0x11] }
 0x2d9   : > { %16290 = vst [vmem:[#allocation35_spill] sm:$0xff] %v14656_v56  ;;  %8830 = vmatmul.mubr.bf16.gmra.mxu1 %v10180_v12  ;;  %v14673_v10 = vadd.f32 %v8312_v54, %v14546_v47  ;;  %v14676_v63 = vadd.f32 %v8139_v11, %v16292_v19  ;;  %v3563_v56 = vrot.slane %v3561_v57, 5  ;;  %v14680_v12 = vsel %vm11754_vm2, %v3551_v37, %v3555_v4  ;;  %v16294_v57 = vld [vmem:[#allocation49_spill] sm:$0xff] }
 0x2da   : > { %9003 = vmatmul.mubr.bf16.gmra.mxu0 %v10146_v9  ;;  %8839 = vmatprep.mubr.bf16.mxu1 %v10199_v52  ;;  %v8314_v49 = vpop.f32.mrf.mxu0  ;;  %v8141_v2 = vpop.f32.mrf.mxu1  ;;  %v3574_v9 = vor.u32 %v3573_v14, %v14650_v7  ;;  %v3585_v47 = vshll.u32 %v14665_v33, 16  ;;  %v3591_v37 = vshll.u32 %v14670_v25, 16  ;;  %v3595_v52 = vshrl.u32 %v14670_v25, 16  ;;  %v11342_v14 = vld [vmem:[%s16116_s4 + $0x8b4] ss:$8 sps:$4 sm:$0xff]  }
 0x2db   : > { %9012 = vmatprep.mubr.bf16.mxu0 %v10165_v43  ;;  %9154 = vmatpush2.bf16.msra.mxu1 %v11334_v58  ;;  %v14689_v24 = vadd.f32 %v8314_v49, %v14561_v28  ;;  %v14692_v43 = vadd.f32 %v8141_v2, %v16294_v57  ;;  %v10164_v58 = vcombine.low %v14648_v31, %v14635_v41  ;;  %v3577_v11 = vshll.u32 %v3385_v53, 16 }
 0x2dc   : > { %9155 = vmatprep.subr.bf16.mxu1 %v11339_v61  ;;  %v8316_v54 = vpop.f32.mrf.mxu0  ;;  %v10198_v28 = vcombine.low %v14612_v22, %v14601_v17  ;;  %v8143_v49 = vpop.f32.mrf.mxu1  ;;  %v10217_v2 = vcombine.high %v14665_v33, %v14670_v25  ;;  %v14711_v61 = vsel %vm11754_vm2, %v3541_v50, %v14586_v6  ;;  %v3564_v41 = vor.u32 %v3563_v56, %v3560_v29  ;;  %v3388_v56 = vld [vmem:[#allocation2 + $0xb8] sm:$0x11] }
 0x2dd   : > { %16293 = vst [vmem:[#allocation36_spill] sm:$0xff] %v14689_v24  ;;  %v14706_v4 = vadd.f32 %v8316_v54, %v14579_v46  ;;  %v14714_v19 = vadd.f32 %v8143_v49, %v13903_v1  ;;  %v10183_v22 = vcombine.high %v14711_v61, %v14680_v12  ;;  %v3575_v57 = vrot.slane %v3574_v9, 4  ;;  %v11340_v46 = vld [vmem:[%s16116_s4 + $0x8b0] ss:$8 sps:$4 sm:$0xff]   ;;  %v11347_v9 = vld [vmem:[%s16116_s4 + $0x8a4] ss:$8 sps:$4 sm:$0xff]  }
 0x2de   : > { %v8318_v31 = vpop.f32.mrf.mxu0  ;;  %v8145_v17 = vpop.f32.mrf.mxu1  ;;  %v3584_v24 = vrot.slane %v3582_v15, 4  ;;  %v3587_v53 = vrot.slane %v3585_v47, 5  ;;  %v14727_v50 = vrot.slane %v3591_v37, 5  ;;  %v3597_v29 = vrot.slane %v3595_v52, 4  ;;  %v14738_v52 = vld [vmem:[#allocation2 + $0x1a8] sm:$0xff] }
 0x2df   : > { %9156 = vmatpush2.bf16.msra.mxu1 %v11337_v3  ;;  %v14722_v6 = vadd.f32 %v8318_v31, %v14597_v44  ;;  %v14725_v1 = vadd.f32 %v8145_v17, %v13917_v18  ;;  %v3579_v3 = vrot.slane %v3577_v11, 5  ;;  %v3565_v37 = vrot.slane %v3564_v41, 4  ;;  %v11352_v31 = vld [vmem:[%s16116_s4 + $0x894] ss:$8 sps:$4 sm:$0xff]  }
 0x2e0   : > { %9157 = vmatprep.subr.bf16.mxu1 %v11342_v14  ;;  %v8322_v15 = vpop.f32.mrf.mxu0  ;;  %v8149_v47 = vpop.f32.mrf.mxu1  ;;  %v14740_v14 = vld [vmem:[#allocation2 + $0x140] sm:$0xff]  ;;  %v3588_v11 = vor.u32 %v3587_v53, %v3584_v24  ;;  %v3598_v41 = vor.u32 %v3597_v29, %v14727_v50  ;;  %v10216_v24 = vcombine.low %v14665_v33, %v14670_v25 }
 0x2e1   : > { %8840 = vmatmul.mubr.bf16.gmra.mxu1 %v10198_v28  ;;  %v14733_v44 = vadd.f32 %v8322_v15, %v14610_v62  ;;  %v14736_v18 = vadd.f32 %v8149_v47, %v13945_v5  ;;  %v3601_v28 = vshll.u32 %v3388_v56, 16  ;;  %v11345_v62 = vld [vmem:[%s16116_s4 + $0x8a0] ss:$8 sps:$4 sm:$0xff]   ;;  %v3619_v56 = vshrl.u32 %v14740_v14, 16 }
 0x2e2   : > { %9013 = vmatmul.mubr.bf16.gmra.mxu0 %v10164_v58  ;;  %8849 = vmatprep.mubr.bf16.mxu1 %v10217_v2  ;;  %v8324_v54 = vpop.f32.mrf.mxu0  ;;  %v8151_v49 = vpop.f32.mrf.mxu1  ;;  %v14744_v58 = vsel %vm11754_vm2, %v3575_v57, %v3579_v3  ;;  %v3606_v57 = vshrl.u32 %v14738_v52, 16  ;;  %v14771_v53 = vsel %vm11754_vm2, %v3565_v37, %v14650_v7  ;;  %v16296_v29 = vld [vmem:[#allocation50_spill] sm:$0xff]  ;;  %v10182_v15 = vcombine.low %v14711_v61, %v14680_v12  ;;  %v11350_v7 = vld [vmem:[%s16116_s4 + $0x890] ss:$8 sps:$4 sm:$0xff]   ;;  %v16298_v37 = vld [vmem:[#allocation51_spill] sm:$0xff] }
 0x2e3   : > { %9022 = vmatprep.mubr.bf16.mxu0 %v10183_v22  ;;  %9158 = vmatpush2.bf16.msra.mxu1 %v11340_v46  ;;  %v14750_v5 = vadd.f32 %v8324_v54, %v14626_v8  ;;  %v14753_v2 = vadd.f32 %v8151_v49, %v13960_v27  ;;  %v3609_v46 = vshll.u32 %v14738_v52, 16  ;;  %v3615_v8 = vshll.u32 %v14740_v14, 16 }
 0x2e4   : > { %9159 = vmatprep.subr.bf16.mxu1 %v11347_v9  ;;  %v8326_v22 = vpop.f32.mrf.mxu0  ;;  %v8153_v17 = vpop.f32.mrf.mxu1  ;;  %v10201_v3 = vcombine.high %v14771_v53, %v14744_v58  ;;  %v10235_v54 = vcombine.high %v14738_v52, %v14740_v14  ;;  %v3603_v33 = vrot.slane %v3601_v28, 5  ;;  %v3589_v12 = vrot.slane %v3588_v11, 4  ;;  %v11355_v28 = vld [vmem:[%s16116_s4 + $0x884] ss:$8 sps:$4 sm:$0xff]  }
 0x2e5   : > { %v14764_v27 = vadd.f32 %v8326_v22, %v14641_v51  ;;  %v14774_v9 = vadd.f32 %v8153_v17, %v16296_v29  ;;  %v3599_v61 = vrot.slane %v3598_v41, 4  ;;  %v14791_v22 = vld [vmem:[#allocation2 + $0xa0] sm:$0xff]  ;;  %v14793_v17 = vld [vmem:[#allocation2 + $0x170] sm:$0xff] }
 0x2e6   : > { %v8328_v47 = vpop.f32.mrf.mxu0  ;;  %v8155_v51 = vpop.f32.mrf.mxu1 }
 0x2e7   : > { %16295 = vst [vmem:[#allocation37_spill] sm:$0xff] %v14764_v27  ;;  %9160 = vmatpush2.bf16.msra.mxu1 %v11345_v62  ;;  %v14786_v25 = vadd.f32 %v8328_v47, %v14661_v38  ;;  %v14789_v49 = vadd.f32 %v8155_v51, %v16298_v37  ;;  %v3608_v38 = vrot.slane %v3606_v57, 4  ;;  %v3611_v47 = vrot.slane %v3609_v46, 5 }
 0x2e8   : > { %9161 = vmatprep.subr.bf16.mxu1 %v11352_v31  ;;  %v8332_v62 = vpop.f32.mrf.mxu0  ;;  %v8159_v29 = vpop.f32.mrf.mxu1  ;;  %v3621_v51 = vrot.slane %v3619_v56, 4  ;;  %v3391_v31 = vld [vmem:[#allocation2 + $0x50] sm:$0x11]  ;;  %v3639_v57 = vshll.u32 %v14793_v17, 16  ;;  %v3643_v46 = vshrl.u32 %v14793_v17, 16  ;;  %v14822_v56 = vsel %vm11754_vm2, %v3589_v12, %v14727_v50 }
 0x2e9   : > { %16297 = vst [vmem:[#allocation38_spill] sm:$0xff] %v14786_v25  ;;  %8850 = vmatmul.mubr.bf16.gmra.mxu1 %v10216_v24  ;;  %v14798_v25 = vrot.slane %v3615_v8, 5  ;;  %v14801_v11 = vadd.f32 %v8332_v62, %v14676_v63  ;;  %v14804_v41 = vadd.f32 %v8159_v29, %v14006_v34  ;;  %v3633_v24 = vshll.u32 %v14791_v22, 16  ;;  %v11353_v63 = vld [vmem:[%s16116_s4 + $0x880] ss:$8 sps:$4 sm:$0xff]  }
 0x2ea   : > { %9023 = vmatmul.mubr.bf16.gmra.mxu0 %v10182_v15  ;;  %8859 = vmatprep.mubr.bf16.mxu1 %v10235_v54  ;;  %v8334_v37 = vpop.f32.mrf.mxu0  ;;  %v8161_v27 = vpop.f32.mrf.mxu1  ;;  %v3630_v15 = vshrl.u32 %v14791_v22, 16  ;;  %v14826_v54 = vsel %vm11754_vm2, %v3599_v61, %v3603_v33  ;;  %v3612_v62 = vor.u32 %v3611_v47, %v3608_v38  ;;  %v10234_v50 = vcombine.low %v14738_v52, %v14740_v14  ;;  %v3394_v61 = vld [vmem:[#allocation2 + $0x198] sm:$0x11]  ;;  %v14851_v14 = vld [vmem:[#allocation2 + $0xc0] sm:$0xff] }
 0x2eb   : > { %9032 = vmatprep.mubr.bf16.mxu0 %v10201_v3  ;;  %9162 = vmatpush2.bf16.msra.mxu1 %v11350_v7  ;;  %v14814_v34 = vadd.f32 %v8334_v37, %v14692_v43  ;;  %v14817_v8 = vadd.f32 %v8161_v27, %v14029_v45  ;;  %v3622_v29 = vor.u32 %v3621_v51, %v14798_v25  ;;  %v3625_v43 = vshll.u32 %v3391_v31, 16 }
 0x2ec   : > { %9163 = vmatprep.subr.bf16.mxu1 %v11355_v28  ;;  %v8336_v3 = vpop.f32.mrf.mxu0  ;;  %v8163_v7 = vpop.f32.mrf.mxu1  ;;  %v10200_v45 = vcombine.low %v14771_v53, %v14744_v58  ;;  %v3632_v37 = vrot.slane %v3630_v15, 4  ;;  %v3635_v38 = vrot.slane %v3633_v24, 5  ;;  %v14839_v47 = vrot.slane %v3639_v57, 5 }
 0x2ed   : > { %v14832_v27 = vadd.f32 %v8336_v3, %v14714_v19  ;;  %v14837_v12 = vadd.f32 %v8163_v7, %v14041_v42  ;;  %v3645_v51 = vrot.slane %v3643_v46, 4  ;;  %v10219_v19 = vcombine.high %v14822_v56, %v14826_v54 }
 0x2ee   : > { %v8338_v28 = vpop.f32.mrf.mxu0  ;;  %v8165_v33 = vpop.f32.mrf.mxu1  ;;  %v10253_v42 = vcombine.high %v14791_v22, %v14793_v17  ;;  %v3613_v15 = vrot.slane %v3612_v62, 4  ;;  %v3623_v24 = vrot.slane %v3622_v29, 4  ;;  %v3627_v57 = vrot.slane %v3625_v43, 5 }
 0x2ef   : > { %9164 = vmatpush2.bf16.msra.mxu1 %v11353_v63  ;;  %v14842_v58 = vadd.f32 %v8338_v28, %v14725_v1  ;;  %v14847_v52 = vadd.f32 %v8165_v33, %v14055_v30  ;;  %v14859_v30 = vld [vmem:[#allocation2 + $0x190] sm:$0xff]  ;;  %v3649_v63 = vshll.u32 %v3394_v61, 16  ;;  %v3636_v28 = vor.u32 %v3635_v38, %v3632_v37 }
 0x2f0   : > { %v8342_v53 = vpop.f32.mrf.mxu0  ;;  %v8395_v31 = vpop.f32.mrf.mxu1  ;;  %v3654_v62 = vshrl.u32 %v14851_v14, 16  ;;  %v3657_v29 = vshll.u32 %v14851_v14, 16  ;;  %v14875_v33 = vsel %vm11754_vm2, %v3613_v15, %v14798_v25  ;;  %v3628_v61 = vsel %vm11754_vm2, %v3623_v24, %v3627_v57 }
 0x2f1   : > { %8860 = vmatmul.mubr.bf16.gmra.mxu1 %v10234_v50  ;;  %v14854_v1 = vadd.f32 %v8342_v53, %v14736_v18  ;;  %v14857_v46 = vadd.f32 %v8395_v31, %v14072_v48  ;;  %v10252_v48 = vcombine.low %v14791_v22, %v14793_v17  ;;  %v3663_v38 = vshll.u32 %v14859_v30, 16 }
 0x2f2   : > { %9033 = vmatmul.mubr.bf16.gmra.mxu0 %v10200_v45  ;;  %8869 = vmatprep.mubr.bf16.mxu1 %v10253_v42  ;;  %v8344_v3 = vpop.f32.mrf.mxu0  ;;  %v8397_v7 = vpop.f32.mrf.mxu1  ;;  %v3646_v45 = vor.u32 %v3645_v51, %v14839_v47  ;;  %v10218_v22 = vcombine.low %v14822_v56, %v14826_v54  ;;  %v3651_v51 = vrot.slane %v3649_v63, 5  ;;  %v3637_v42 = vrot.slane %v3636_v28, 4  ;;  %v14898_v63 = vld [vmem:[#allocation2 + $0xf0] sm:$0xff] }
 0x2f3   : > { %9042 = vmatprep.mubr.bf16.mxu0 %v10219_v19  ;;  %v14865_v18 = vadd.f32 %v8344_v3, %v14753_v2  ;;  %v14870_v43 = vadd.f32 %v8397_v7, %v14085_v23  ;;  %v3667_v2 = vshrl.u32 %v14859_v30, 16  ;;  %v3656_v31 = vrot.slane %v3654_v62, 4  ;;  %v3397_v3 = vld [vmem:[#allocation2 + $0xc8] sm:$0x11] }
 0x2f4   : > { %v8346_v50 = vpop.f32.mrf.mxu0  ;;  %v8399_v37 = vpop.f32.mrf.mxu1  ;;  %v3647_v53 = vrot.slane %v3646_v45, 4  ;;  %v3659_v15 = vrot.slane %v3657_v29, 5  ;;  %v10237_v57 = vcombine.high %v14875_v33, %v3628_v61  ;;  %v3665_v7 = vrot.slane %v3663_v38, 5 }
 0x2f5   : > { %v14884_v23 = vadd.f32 %v8346_v50, %v14774_v9  ;;  %v14887_v17 = vadd.f32 %v8399_v37, %v14107_v13  ;;  %v10271_v9 = vcombine.high %v14851_v14, %v14859_v30  ;;  %v3669_v28 = vrot.slane %v3667_v2, 4 }
 0x2f6   : > { %v8348_v25 = vpop.f32.mrf.mxu0  ;;  %v8401_v19 = vpop.f32.mrf.mxu1  ;;  %v14915_v50 = vsel %vm11754_vm2, %v3647_v53, %v3651_v51  ;;  %v3673_v38 = vshll.u32 %v3397_v3, 16  ;;  %v3678_v2 = vshrl.u32 %v14898_v63, 16  ;;  %v14940_v3 = vld [vmem:[#allocation2 + $0xf8] sm:$0xff] }
 0x2f7   : > { %v14890_v24 = vadd.f32 %v8348_v25, %v14789_v49  ;;  %v14894_v56 = vadd.f32 %v8401_v19, %v14112_v0  ;;  %v14906_v0 = vld [vmem:[#allocation2 + $0x150] sm:$0xff]  ;;  %v3670_v19 = vor.u32 %v3669_v28, %v3665_v7 }
 0x2f8   : > { %v8352_v13 = vpop.f32.mrf.mxu0  ;;  %v8405_v54 = vpop.f32.mrf.mxu1  ;;  %v3691_v51 = vshrl.u32 %v14906_v0, 16 }
 0x2f9   : > { %8870 = vmatmul.mubr.bf16.gmra.mxu1 %v10252_v48  ;;  %v14901_v49 = vadd.f32 %v8352_v13, %v14804_v41  ;;  %v14904_v45 = vadd.f32 %v8405_v54, %v14127_v60  ;;  %v14911_v48 = vsel %vm11754_vm2, %v3637_v42, %v14839_v47  ;;  %v3660_v41 = vor.u32 %v3659_v15, %v3656_v31 }
 0x2fa   : > { %9043 = vmatmul.mubr.bf16.gmra.mxu0 %v10218_v22  ;;  %8879 = vmatprep.mubr.bf16.mxu1 %v10271_v9  ;;  %v8354_v62 = vpop.f32.mrf.mxu0  ;;  %v8407_v29 = vpop.f32.mrf.mxu1  ;;  %v3681_v47 = vshll.u32 %v14898_v63, 16  ;;  %v3687_v42 = vshll.u32 %v14906_v0, 16  ;;  %v10236_v31 = vcombine.low %v14875_v33, %v3628_v61  ;;  %v10289_v13 = vcombine.high %v14898_v63, %v14906_v0 }
 0x2fb   : > { %9052 = vmatprep.mubr.bf16.mxu0 %v10237_v57  ;;  %v14918_v37 = vadd.f32 %v8354_v62, %v14817_v8  ;;  %v14921_v60 = vadd.f32 %v8407_v29, %v14147_v26  ;;  %v10270_v8 = vcombine.low %v14851_v14, %v14859_v30  ;;  %v10255_v57 = vcombine.high %v14911_v48, %v14915_v50  ;;  %v14948_v30 = vld [vmem:[#allocation2 + $0x18] sm:$0xff] }
 0x2fc   : > { %v8356_v22 = vpop.f32.mrf.mxu0  ;;  %v8409_v25 = vpop.f32.mrf.mxu1  ;;  %v3661_v54 = vrot.slane %v3660_v41, 4  ;;  %v3680_v33 = vrot.slane %v3678_v2, 4  ;;  %v3671_v62 = vrot.slane %v3670_v19, 4  ;;  %v3683_v29 = vrot.slane %v3681_v47, 5 }
 0x2fd   : > { %v14928_v53 = vadd.f32 %v8356_v22, %v14837_v12  ;;  %v14933_v26 = vadd.f32 %v8409_v25, %v14155_v59  ;;  %v3675_v59 = vrot.slane %v3673_v38, 5  ;;  %v14950_v22 = vrot.slane %v3687_v42, 5 }
 0x2fe   : > { %v8358_v15 = vpop.f32.mrf.mxu0  ;;  %v8411_v9 = vpop.f32.mrf.mxu1  ;;  %v3693_v41 = vrot.slane %v3691_v51, 4  ;;  %v3702_v38 = vshrl.u32 %v14940_v3, 16  ;;  %v3705_v2 = vshll.u32 %v14940_v3, 16  ;;  %v3711_v19 = vshll.u32 %v14948_v30, 16 }
 0x2ff   : > { %v14943_v12 = vadd.f32 %v8358_v15, %v14847_v52  ;;  %v14946_v14 = vadd.f32 %v8411_v9, %v14165_v36  ;;  %v3400_v52 = vld [vmem:[#allocation2 + $0x30] sm:$0x11]  ;;  %v3715_v47 = vshrl.u32 %v14948_v30, 16  ;;  %v14974_v15 = vsel %vm11754_vm2, %v3671_v62, %v3675_v59 }
 0x300   : > { %v8588_v61 = vpop.f32.mrf.mxu0  ;;  %v8415_v28 = vpop.f32.mrf.mxu1  ;;  %v3684_v9 = vor.u32 %v3683_v29, %v3680_v33  ;;  %v10288_v59 = vcombine.low %v14898_v63, %v14906_v0  ;;  %v14987_v33 = vrot.slane %v3711_v19, 5  ;;  %v15007_v19 = vld [vmem:[#allocation2 + $0x70] sm:$0xff] }
 0x301   : > { %8880 = vmatmul.mubr.bf16.gmra.mxu1 %v10270_v8  ;;  %v14953_v25 = vadd.f32 %v8588_v61, %v14857_v46  ;;  %v14956_v36 = vadd.f32 %v8415_v28, %v14171_v35  ;;  %v14970_v35 = vsel %vm11754_vm2, %v3661_v54, %v3665_v7  ;;  %v3697_v61 = vshll.u32 %v3400_v52, 16  ;;  %v3403_v52 = vld [vmem:[#allocation2 + $0x8] sm:$0x11] }
 0x302   : > { %9053 = vmatmul.mubr.bf16.gmra.mxu0 %v10236_v31  ;;  %8889 = vmatprep.mubr.bf16.mxu1 %v10289_v13  ;;  %v8590_v31 = vpop.f32.mrf.mxu0  ;;  %v8417_v8 = vpop.f32.mrf.mxu1  ;;  %v3694_v13 = vor.u32 %v3693_v41, %v14950_v22  ;;  %v3704_v28 = vrot.slane %v3702_v38, 4  ;;  %v10254_v7 = vcombine.low %v14911_v48, %v14915_v50  ;;  %v3717_v29 = vrot.slane %v3715_v47, 4  ;;  %v14999_v50 = vld [vmem:[#allocation2 + $0x60] sm:$0xff] }
 0x303   : > { %9062 = vmatprep.mubr.bf16.mxu0 %v10255_v57  ;;  %v14963_v42 = vadd.f32 %v8590_v31, %v14870_v43  ;;  %v14966_v46 = vadd.f32 %v8417_v8, %v14183_v16  ;;  %v3707_v31 = vrot.slane %v3705_v2, 5  ;;  %v10307_v48 = vcombine.high %v14940_v3, %v14948_v30 }
 0x304   : > { %v8592_v51 = vpop.f32.mrf.mxu0  ;;  %v8419_v57 = vpop.f32.mrf.mxu1  ;;  %v3685_v38 = vrot.slane %v3684_v9, 4  ;;  %v3695_v2 = vrot.slane %v3694_v13, 4 }
 0x305   : > { %v14978_v43 = vadd.f32 %v8592_v51, %v14887_v17  ;;  %v14981_v16 = vadd.f32 %v8419_v57, %v14196_v40  ;;  %v10273_v40 = vcombine.high %v14970_v35, %v14974_v15  ;;  %v3708_v47 = vor.u32 %v3707_v31, %v3704_v28  ;;  %v11356_v51 = vld [vmem:[%s16119_s7 + $0x78] sm:$0xff]  }
 0x306   : > { %v8594_v54 = vpop.f32.mrf.mxu0  ;;  %v8421_v62 = vpop.f32.mrf.mxu1  ;;  %v11357_v57 = vld [vmem:[%s16119_s7 + $0x38] sm:$0xff]   ;;  %v10306_v28 = vcombine.low %v14940_v3, %v14948_v30  ;;  %10707 = vmatprep.subr.bf16.mxu0 %v11356_v51  ;;  %v10272_v3 = vcombine.low %v14970_v35, %v14974_v15  ;;  %v16300_v30 = vld [vmem:[#allocation7_spill] sm:$0xff] }
 0x307   : > { %v14990_v41 = vadd.f32 %v8594_v54, %v14894_v56  ;;  %v14995_v17 = vadd.f32 %v8421_v62, %v14205_v20  ;;  %v3699_v56 = vrot.slane %v3697_v61, 5  ;;  %v3721_v61 = vshll.u32 %v3403_v52, 16  ;;  %10708 = vmatpush3.bf16.msra.mxu0 %v11357_v57 }
 0x308   : > { %v8425_v0 = vpop.f32.mrf.mxu1  ;;  %v3690_v62 = vsel %vm11754_vm2, %v3685_v38, %v14950_v22 }
 0x309   : > { %v8598_v63 = vpop.f32.mrf.mxu0  ;;  %8890 = vmatmul.mubr.bf16.gmra.mxu1 %v10288_v59  ;;  %v15005_v20 = vadd.f32 %v8425_v0, %v14211_v55  ;;  %v3726_v55 = vshrl.u32 %v14999_v50, 16 }
 0x30a   : > { %9063 = vmatmul.mubr.bf16.gmra.mxu0 %v10254_v7  ;;  %v15002_v8 = vadd.f32 %v8598_v63, %v14904_v45  ;;  %8899 = vmatprep.mubr.bf16.mxu1 %v10307_v48  ;;  %v8427_v13 = vpop.f32.mrf.mxu1  ;;  %v3718_v45 = vor.u32 %v3717_v29, %v14987_v33  ;;  %v3729_v7 = vshll.u32 %v14999_v50, 16  ;;  %v3700_v29 = vsel %vm11754_vm2, %v3695_v2, %v3699_v56 }
 0x30b   : > { %9072 = vmatprep.mubr.bf16.mxu0 %v10273_v40  ;;  %v8600_v9 = vpop.f32.mrf.mxu0  ;;  %v15024_v31 = vadd.f32 %v8427_v13, %v14217_v32  ;;  %v3735_v48 = vshll.u32 %v15007_v19, 16  ;;  %v3709_v63 = vrot.slane %v3708_v47, 4  ;;  %v3723_v2 = vrot.slane %v3721_v61, 5  ;;  %v16302_v13 = vld [vmem:[#allocation8_spill] sm:$0xff]  ;;  %v15049_v47 = vld [vmem:[#allocation2 + $0x38] sm:$0xff] }
 0x30c   : > { %v15019_v54 = vadd.f32 %v8600_v9, %v14921_v60  ;;  %v8429_v40 = vpop.f32.mrf.mxu1  ;;  %v3739_v60 = vshrl.u32 %v15007_v19, 16  ;;  %v3719_v38 = vrot.slane %v3718_v45, 4  ;;  %v3728_v56 = vrot.slane %v3726_v55, 4 }
 0x30d   : > { %v8602_v59 = vpop.f32.mrf.mxu0  ;;  %v15039_v52 = vadd.f32 %v8429_v40, %v16300_v30  ;;  %v3731_v51 = vrot.slane %v3729_v7, 5  ;;  %v10291_v57 = vcombine.high %v3690_v62, %v3700_v29  ;;  %v3737_v45 = vrot.slane %v3735_v48, 5  ;;  %v3406_v40 = vld [vmem:[#allocation2 + $0x68] sm:$0x11] }
 0x30e   : > { %16299 = vst [vmem:[#allocation39_spill] sm:$0xff] %v15019_v54  ;;  %v15036_v32 = vadd.f32 %v8602_v59, %v14933_v26  ;;  %v8431_v0 = vpop.f32.mrf.mxu1  ;;  %v10325_v26 = vcombine.high %v14999_v50, %v15007_v19  ;;  %v3741_v61 = vrot.slane %v3739_v60, 4  ;;  %v15057_v59 = vld [vmem:[#allocation2 + $0x20] sm:$0xff]  ;;  %v15066_v48 = vsel %vm11754_vm2, %v3719_v38, %v3723_v2 }
 0x30f   : > { %v8604_v22 = vpop.f32.mrf.mxu0  ;;  %v15045_v54 = vadd.f32 %v8431_v0, %v16302_v13  ;;  %v3753_v13 = vshll.u32 %v15049_v47, 16  ;;  %v3763_v38 = vshrl.u32 %v15057_v59, 16 }
 0x310   : > { %v15042_v9 = vadd.f32 %v8604_v22, %v14946_v14  ;;  %v8435_v15 = vpop.f32.mrf.mxu1  ;;  %v16304_v14 = vld [vmem:[#allocation9_spill] sm:$0xff] }
 0x311   : > { %v8608_v35 = vpop.f32.mrf.mxu0  ;;  %8900 = vmatmul.mubr.bf16.gmra.mxu1 %v10306_v28  ;;  %v15055_v7 = vadd.f32 %v8435_v15, %v16304_v14  ;;  %v15062_v28 = vsel %vm11754_vm2, %v3709_v63, %v14987_v33  ;;  %v3742_v15 = vor.u32 %v3741_v61, %v3737_v45  ;;  %v3745_v33 = vshll.u32 %v3406_v40, 16 }
 0x312   : > { %16301 = vst [vmem:[#allocation40_spill] sm:$0xff] %v15042_v9  ;;  %9073 = vmatmul.mubr.bf16.gmra.mxu0 %v10272_v3  ;;  %v15052_v55 = vadd.f32 %v8608_v35, %v14956_v36  ;;  %8909 = vmatprep.mubr.bf16.mxu1 %v10325_v26  ;;  %v8437_v22 = vpop.f32.mrf.mxu1  ;;  %v3732_v36 = vor.u32 %v3731_v51, %v3728_v56  ;;  %v16306_v3 = vld [vmem:[#allocation10_spill] sm:$0xff]  ;;  %v3759_v63 = vshll.u32 %v15057_v59, 16  ;;  %v16308_v56 = vld [vmem:[#allocation11_spill] sm:$0xff]  ;;  %v15098_v9 = vld [vmem:[#allocation2 + $0x178] sm:$0xff] }
 0x313   : > { %9082 = vmatprep.mubr.bf16.mxu0 %v10291_v57  ;;  %v8610_v30 = vpop.f32.mrf.mxu0  ;;  %v15072_v0 = vadd.f32 %v8437_v22, %v16306_v3  ;;  %v3750_v57 = vshrl.u32 %v15049_v47, 16  ;;  %v10290_v14 = vcombine.low %v3690_v62, %v3700_v29  ;;  %v10309_v22 = vcombine.high %v15062_v28, %v15066_v48 }
 0x314   : > { %16303 = vst [vmem:[#allocation41_spill] sm:$0xff] %v15052_v55  ;;  %v15069_v60 = vadd.f32 %v8610_v30, %v14966_v46  ;;  %v8439_v35 = vpop.f32.mrf.mxu1  ;;  %v10324_v46 = vcombine.low %v14999_v50, %v15007_v19  ;;  %v10343_v40 = vcombine.high %v15049_v47, %v15057_v59  ;;  %v3733_v3 = vrot.slane %v3732_v36, 4 }
 0x315   : > { %v8612_v26 = vpop.f32.mrf.mxu0  ;;  %v15084_v51 = vadd.f32 %v8439_v35, %v16308_v56  ;;  %v3752_v50 = vrot.slane %v3750_v57, 4  ;;  %v3755_v19 = vrot.slane %v3753_v13, 5  ;;  %v3743_v29 = vrot.slane %v3742_v15, 4  ;;  %v3409_v57 = vld [vmem:[#allocation2 + $0x88] sm:$0x11]  ;;  %v11358_v13 = vld [vmem:[%s16119_s7 + $0x70] sm:$0xff]  }
 0x316   : > { %16305 = vst [vmem:[#allocation42_spill] sm:$0xff] %v15069_v60  ;;  %v15079_v2 = vadd.f32 %v8612_v26, %v14981_v16  ;;  %v8441_v61 = vpop.f32.mrf.mxu1  ;;  %v16309_v16 = vld [vmem:[#allocation12_spill] sm:$0xff]  ;;  %v3747_v56 = vrot.slane %v3745_v33, 5  ;;  %v3765_v55 = vrot.slane %v3763_v38, 4  ;;  %10709 = vmatprep.subr.bf16.mxu0 %v11358_v13 }
 0x317   : > { %v8614_v30 = vpop.f32.mrf.mxu0  ;;  %v15094_v26 = vadd.f32 %v8441_v61, %v16309_v16  ;;  %v11359_v15 = vld [vmem:[%s16119_s7 + $0x30] sm:$0xff]   ;;  %v3756_v16 = vor.u32 %v3755_v19, %v3752_v50 }
 0x318   : > { %16307 = vst [vmem:[#allocation43_spill] sm:$0xff] %v15079_v2  ;;  %v15091_v60 = vadd.f32 %v8614_v30, %v14995_v17  ;;  %v8445_v62 = vpop.f32.mrf.mxu1  ;;  %v15096_v2 = vrot.slane %v3759_v63, 5  ;;  %v16312_v17 = vld [vmem:[#allocation13_spill] sm:$0xff]  ;;  %v15112_v38 = vld [vmem:[#allocation2 + $0xb0] sm:$0xff]  ;;  %10710 = vmatpush3.bf16.msra.mxu0 %v11359_v15 }
 0x319   : > { %16310 = vst [vmem:[#allocation44_spill] sm:$0xff] %v15094_v26  ;;  %v8618_v35 = vpop.f32.mrf.mxu0  ;;  %8910 = vmatmul.mubr.bf16.gmra.mxu1 %v10324_v46  ;;  %v15104_v30 = vadd.f32 %v8445_v62, %v16312_v17  ;;  %v3777_v46 = vshll.u32 %v15112_v38, 16  ;;  %v3748_v62 = vsel %vm11754_vm2, %v3743_v29, %v3747_v56  ;;  %v3757_v15 = vrot.slane %v3756_v16, 4 }
 0x31a   : > { %9083 = vmatmul.mubr.bf16.gmra.mxu0 %v10290_v14  ;;  %v15101_v36 = vadd.f32 %v8618_v35, %v15005_v20  ;;  %8919 = vmatprep.mubr.bf16.mxu1 %v10343_v40  ;;  %v8447_v63 = vpop.f32.mrf.mxu1  ;;  %v3774_v20 = vshrl.u32 %v15112_v38, 16  ;;  %v15124_v40 = vsel %vm11754_vm2, %v3733_v3, %v3737_v45  ;;  %v3766_v26 = vor.u32 %v3765_v55, %v15096_v2 }
 0x31b   : > { %9092 = vmatprep.mubr.bf16.mxu0 %v10309_v22  ;;  %v8620_v33 = vpop.f32.mrf.mxu0  ;;  %v16313_v22 = vld [vmem:[#allocation14_spill] sm:$0xff]  ;;  %v10361_v45 = vcombine.high %v15112_v38, %v15112_v38  ;;  %v10308_v3 = vcombine.low %v15062_v28, %v15066_v48  ;;  %v10342_v55 = vcombine.low %v15049_v47, %v15057_v59  ;;  %v10327_v56 = vcombine.high %v15124_v40, %v3748_v62 }
 0x31c   : > { %16311 = vst [vmem:[#allocation45_spill] sm:$0xff] %v15101_v36  ;;  %v15117_v14 = vadd.f32 %v8620_v33, %v15024_v31  ;;  %v15120_v61 = vadd.f32 %v8447_v63, %v16313_v22  ;;  %v8449_v17 = vpop.f32.mrf.mxu1  ;;  %v3769_v36 = vshll.u32 %v3409_v57, 16  ;;  %v3959_v31 = vrot.slane %v15098_v9, 5  ;;  %v16314_v63 = vld [vmem:[#allocation15_spill] sm:$0xff]  ;;  %v16316_v57 = vld [vmem:[#allocation16_spill] sm:$0xff] }
 0x31d   : > { %v8622_v35 = vpop.f32.mrf.mxu0  ;;  %v15134_v22 = vadd.f32 %v8449_v17, %v16314_v63  ;;  %v3776_v29 = vrot.slane %v3774_v20, 4  ;;  %v15142_v9 = vrot.slane %v3777_v46, 5  ;;  %v3412_v17 = vld [vmem:[#allocation2 + $0x188] sm:$0x11]  ;;  %v3767_v47 = vrot.slane %v3766_v26, 4 }
 0x31e   : > { %v15131_v33 = vadd.f32 %v8622_v35, %v15039_v52  ;;  %v8451_v19 = vpop.f32.mrf.mxu1  ;;  %v3863_v35 = vld [vmem:[#allocation2 + $0x108] sm:$0x11]  ;;  %v3771_v59 = vrot.slane %v3769_v36, 5  ;;  %v3861_v20 = vld [vmem:[#allocation2 + $0x40] sm:$0xee]  ;;  %v3961_v46 = vrot.slane %v3959_v31, 4 }
 0x31f   : > { %v8624_v50 = vpop.f32.mrf.mxu0  ;;  %v15149_v13 = vadd.f32 %v8451_v19, %v16316_v57  ;;  %v15157_v19 = vld [vmem:[#allocation2 + $0x90] sm:$0xff]  ;;  %v16320_v36 = vld [vmem:[#allocation18_spill] sm:$0xff] }
 0x320   : > { %v15145_v52 = vadd.f32 %v8624_v50, %v15045_v54  ;;  %v8455_v48 = vpop.f32.mrf.mxu1  ;;  %v16318_v54 = vld [vmem:[#allocation17_spill] sm:$0xff] }
 0x321   : > { %16317 = vst [vmem:[#allocation47_spill] sm:$0xff] %v15149_v13  ;;  %8920 = vmatmul.mubr.bf16.gmra.mxu1 %v10342_v55  ;;  %v15155_v50 = vadd.f32 %v8455_v48, %v16318_v54  ;;  %v3962_v13 = vrot.slane %v3863_v35, 5  ;;  %v3793_v55 = vshll.u32 %v3412_v17, 16  ;;  %v3966_v17 = vrot.slane %v15157_v19, 5 }
 0x322   : > { %16315 = vst [vmem:[#allocation46_spill] sm:$0xff] %v15145_v52  ;;  %v8628_v28 = vpop.f32.mrf.mxu0  ;;  %9093 = vmatmul.mubr.bf16.gmra.mxu0 %v10308_v3  ;;  %8929 = vmatprep.mubr.bf16.mxu1 %v10361_v45  ;;  %v8457_v57 = vpop.f32.mrf.mxu1  ;;  %v3780_v3 = vor.u32 %v15142_v9, %v3776_v29  ;;  %v10360_v29 = vcombine.low %v15112_v38, %v15112_v38 }
 0x323   : > { %v15152_v63 = vadd.f32 %v8628_v28, %v15055_v7  ;;  %9102 = vmatprep.mubr.bf16.mxu0 %v10327_v56  ;;  %v15164_v52 = vadd.f32 %v8457_v57, %v16320_v36  ;;  %v3762_v7 = vsel %vm11754_vm2, %v3757_v15, %v15096_v2  ;;  %v10062_v56 = vrot.slane %v3861_v20, 9  ;;  %v16323_v2 = vld [vmem:[#allocation19_spill] sm:$0xff] }
 0x324   : > { %v8630_v16 = vpop.f32.mrf.mxu0  ;;  %v3772_v28 = vsel %vm11754_vm2, %v3767_v47, %v3771_v59  ;;  %v8459_v48 = vpop.f32.mrf.mxu1  ;;  %v10326_v54 = vcombine.low %v15124_v40, %v3748_v62  ;;  %v3781_v57 = vrot.slane %v3780_v3, 4  ;;  %v3795_v36 = vrot.slane %v3793_v55, 5  ;;  %v3866_v40 = vld [vmem:[#allocation2 + $0x118] sm:$0x11]  ;;  %v3868_v3 = vld [vmem:[#allocation2 + $0x100] sm:$0xff]  ;;  %v11360_v55 = vld [vmem:[%s16119_s7 + $0x68] sm:$0xff]  }
 0x325   : > { %v15161_v26 = vadd.f32 %v8630_v16, %v15072_v0  ;;  %v3963_v0 = vsel %vm12607_vm6, %v3961_v46, %v3962_v13  ;;  %v15181_v15 = vadd.f32 %v8459_v48, %v16323_v2  ;;  %v3960_v59 = vsel %vm12607_vm6, %v10062_v56, %v3959_v31  ;;  %v16325_v13 = vld [vmem:[#allocation20_spill] sm:$0xff]  ;;  %v11361_v56 = vld [vmem:[%s16119_s7 + $0x28] sm:$0xff]   ;;  %10711 = vmatprep.subr.bf16.mxu0 %v11360_v55 }
 0x326   : > { %v8632_v45 = vpop.f32.mrf.mxu0  ;;  %v8461_v47 = vpop.f32.mrf.mxu1  ;;  %v10095_v19 = vcombine.high %v3960_v59, %v3963_v0  ;;  %v3968_v48 = vrot.slane %v3966_v17, 4  ;;  %10712 = vmatpush3.bf16.msra.mxu0 %v11361_v56 }
 0x327   : > { %16319 = vst [vmem:[#allocation48_spill] sm:$0xff] %v15161_v26  ;;  %v15178_v16 = vadd.f32 %v8632_v45, %v15084_v51  ;;  %v10345_v26 = vcombine.high %v3762_v7, %v3772_v28  ;;  %v15188_v46 = vadd.f32 %v8461_v47, %v16325_v13  ;;  %v3864_v45 = vld [vmem:[#allocation2 + $0x110] sm:$0xee]  ;;  %v16329_v13 = vld [vmem:[#allocation22_spill] sm:$0xff] }
 0x328   : > { %v15183_v20 = vpop.f32.mrf.mxu0 }
 0x329   : > { %16322 = vst [vmem:[#allocation49_spill] sm:$0xff] %v15178_v16  ;;  %16324 = vst [vmem:[#allocation50_spill] sm:$0xff] %v15183_v20  ;;  %v8465_v51 = vpop.f32.mrf.mxu1  ;;  %8930 = vmatmul.mubr.bf16.gmra.mxu1 %v10360_v29  ;;  %v16328_v16 = vld [vmem:[#allocation21_spill] sm:$0xff]  ;;  %v3973_v20 = vrot.slane %v3868_v3, 5 }
 0x32a   : > { %16326 = vst [vmem:[#allocation51_spill] sm:$0xff] %v15188_v46  ;;  %v8638_v62 = vpop.f32.mrf.mxu0  ;;  %9103 = vmatmul.mubr.bf16.gmra.mxu0 %v10326_v54  ;;  %v15194_v31 = vadd.f32 %v8465_v51, %v16328_v16  ;;  %9165 = vmatprep.mubr.bf16.mxu1 %v10095_v19  ;;  %v3969_v16 = vrot.slane %v3866_v40, 5  ;;  %v10063_v46 = vrot.slane %v3864_v45, 9  ;;  %v3869_v3 = vld [vmem:[#allocation2 + $0x58] sm:$0x11] }
 0x32b   : > { %v15191_v2 = vadd.f32 %v8638_v62, %v15104_v30  ;;  %9112 = vmatprep.mubr.bf16.mxu0 %v10345_v26  ;;  %v8467_v54 = vpop.f32.mrf.mxu1  ;;  %v3786_v30 = vsel %vm11754_vm2, %v3781_v57, %v15142_v9  ;;  %v3796_v26 = vsel %vm11754_vm2, %v3781_v57, %v3795_v36  ;;  %v10344_v36 = vcombine.low %v3762_v7, %v3772_v28  ;;  %v16334_v7 = vld [vmem:[#allocation25_spill] sm:$0xff] }
 0x32c   : > { %v8640_v29 = vpop.f32.mrf.mxu0  ;;  %v15211_v19 = vadd.f32 %v8467_v54, %v16329_v13  ;;  %v3967_v45 = vsel %vm12607_vm6, %v10063_v46, %v3966_v17  ;;  %v16332_v54 = vld [vmem:[#allocation24_spill] sm:$0xff] }
 0x32d   : > { %16327 = vst [vmem:[#allocation7_spill] sm:$0xff] %v15191_v2  ;;  %v15208_v47 = vadd.f32 %v8640_v29, %v15120_v61  ;;  %v8469_v51 = vpop.f32.mrf.mxu1  ;;  %v3970_v2 = vsel %vm12607_vm6, %v3968_v48, %v3969_v16  ;;  %v10363_v61 = vcombine.high %v3786_v30, %v3796_v26  ;;  %v10094_v29 = vcombine.low %v3960_v59, %v3963_v0  ;;  %v3867_v0 = vld [vmem:[#allocation2 + $0x148] sm:$0xee]  ;;  %v3871_v59 = vld [vmem:[#allocation2 + $0x180] sm:$0xff] }
 0x32e   : > { %v8642_v62 = vpop.f32.mrf.mxu0  ;;  %v15219_v57 = vadd.f32 %v8469_v51, %v16331_v39  ;;  %v10113_v48 = vcombine.high %v3967_v45, %v3970_v2  ;;  %v3975_v16 = vrot.slane %v3973_v20, 4  ;;  %v3976_v51 = vrot.slane %v3869_v3, 5 }
 0x32f   : > { %v15216_v9 = vadd.f32 %v8642_v62, %v15134_v22  ;;  %v8471_v55 = vpop.f32.mrf.mxu1  ;;  %v10112_v3 = vcombine.low %v3967_v45, %v3970_v2  ;;  %v3874_v45 = vld [vmem:[#allocation2 + $0x78] sm:$0xff] }
 0x330   : > { %v15221_v40 = vpop.f32.mrf.mxu0  ;;  %v15226_v13 = vadd.f32 %v8471_v55, %v16332_v54  ;;  %v16335_v55 = vld [vmem:[#allocation26_spill] sm:$0xff] }
 0x331   : > { %16330 = vst [vmem:[#allocation8_spill] sm:$0xff] %v15216_v9  ;;  %v8475_v22 = vpop.f32.mrf.mxu1  ;;  %9166 = vmatmul.mubr.bf16.vlgmr.msra.gmra.mxu1 %v10094_v29  ;;  %v10362_v29 = vcombine.low %v3786_v30, %v3796_v26  ;;  %v10064_v9 = vrot.slane %v3867_v0, 9  ;;  %v3872_v0 = vld [vmem:[#allocation2 + $0x130] sm:$0x11] }
 0x332   : > { %16333 = vst [vmem:[#allocation9_spill] sm:$0xff] %v15226_v13  ;;  %v8648_v56 = vpop.f32.mrf.mxu0  ;;  %9113 = vmatmul.mubr.bf16.gmra.mxu0 %v10344_v36  ;;  %v8476_v28 = vadd.f32 %v8475_v22, %v16334_v7  ;;  %9175 = vmatprep.mubr.bf16.mxu1 %v10113_v48  ;;  %v16337_v48 = vld [vmem:[#allocation27_spill] sm:$0xff] }
 0x333   : > { %v15229_v62 = vadd.f32 %v8648_v56, %v15155_v50  ;;  %9122 = vmatprep.mubr.bf16.mxu0 %v10363_v61  ;;  %v8477_v46 = vpop.f32.mrf.mxu1  ;;  %v3977_v50 = vsel %vm12607_vm6, %v3975_v16, %v3976_v51  ;;  %v3980_v56 = vrot.slane %v3871_v59, 5  ;;  %v16341_v51 = vld [vmem:[#allocation29_spill] sm:$0xff] }
 0x334   : > { %v8650_v17 = vpop.f32.mrf.mxu0  ;;  %v8478_v36 = vadd.f32 %v8477_v46, %v16335_v55  ;;  %v16338_v46 = vld [vmem:[#allocation28_spill] sm:$0xff] }
 0x335   : > { %v15233_v39 = vadd.f32 %v8650_v17, %v15164_v52  ;;  %v8479_v13 = vpop.f32.mrf.mxu1  ;;  %v3974_v17 = vsel %vm12607_vm6, %v10064_v9, %v3973_v20  ;;  %v3982_v59 = vrot.slane %v3980_v56, 4  ;;  %v11362_v20 = vld [vmem:[%s16119_s7 + $0x60] sm:$0xff]  }
 0x336   : > { %v8652_v54 = vpop.f32.mrf.mxu0  ;;  %v8480_v22 = vadd.f32 %v8479_v13, %v16337_v48  ;;  %v10131_v26 = vcombine.high %v3974_v17, %v3977_v50  ;;  %v11363_v9 = vld [vmem:[%s16119_s7 + $0x20] sm:$0xff]   ;;  %v3983_v48 = vrot.slane %v3872_v0, 5  ;;  %10713 = vmatprep.subr.bf16.mxu0 %v11362_v20 }
 0x337   : > { %v15239_v61 = vadd.f32 %v8652_v54, %v15181_v15  ;;  %v8481_v52 = vpop.f32.mrf.mxu1  ;;  %v3870_v15 = vld [vmem:[#allocation2 + $0xd8] sm:$0xee]  ;;  %10714 = vmatpush3.bf16.msra.mxu0 %v11363_v9 }
 0x338   : > { %v15242_v7 = vpop.f32.mrf.mxu0  ;;  %v15247_v30 = vadd.f32 %v8481_v52, %v16338_v46 }
 0x339   : > { %16336 = vst [vmem:[#allocation10_spill] sm:$0xff] %v15239_v61  ;;  %v8485_v16 = vpop.f32.mrf.mxu1  ;;  %9176 = vmatmul.mubr.bf16.gmra.mxu1 %v10112_v3 }
 0x33a   : > { %16339 = vst [vmem:[#allocation11_spill] sm:$0xff] %v15247_v30  ;;  %v8658_v55 = vpop.f32.mrf.mxu0  ;;  %9123 = vmatmul.mubr.bf16.gmra.mxu0 %v10362_v29  ;;  %v8486_v2 = vadd.f32 %v8485_v16, %v16341_v51  ;;  %9185 = vmatprep.mubr.bf16.mxu1 %v10131_v26  ;;  %v3984_v16 = vsel %vm12607_vm6, %v3982_v59, %v3983_v48  ;;  %v3987_v51 = vrot.slane %v3874_v45, 5  ;;  %v3873_v48 = vld [vmem:[#allocation2 + $0x138] sm:$0xee] }
 0x33b   : > { %v15250_v13 = vadd.f32 %v8658_v55, %v15194_v31  ;;  %v8487_v29 = vpop.f32.mrf.mxu1  ;;  %v16343_v31 = vld [vmem:[#allocation30_spill] sm:$0xff]  ;;  %v10065_v55 = vrot.slane %v3870_v15, 9 }
 0x33c   : > { %v8660_v54 = vpop.f32.mrf.mxu0  ;;  %v8488_v52 = vadd.f32 %v8487_v29, %v16343_v31  ;;  %v16347_v29 = vld [vmem:[#allocation32_spill] sm:$0xff]  ;;  %v3989_v9 = vrot.slane %v3987_v51, 4 }
 0x33d   : > { %16340 = vst [vmem:[#allocation12_spill] sm:$0xff] %v15250_v13  ;;  %v15260_v3 = vadd.f32 %v8660_v54, %v15211_v19  ;;  %v8489_v26 = vpop.f32.mrf.mxu1  ;;  %v16345_v13 = vld [vmem:[#allocation31_spill] sm:$0xff]  ;;  %v10130_v19 = vcombine.low %v3974_v17, %v3977_v50  ;;  %v3981_v20 = vsel %vm12607_vm6, %v10065_v55, %v3980_v56  ;;  %v3877_v50 = vld [vmem:[#allocation2 + $0x98] sm:$0xff] }
 0x33e   : > { %v8662_v46 = vpop.f32.mrf.mxu0  ;;  %v8490_v61 = vadd.f32 %v8489_v26, %v16345_v13  ;;  %v10149_v15 = vcombine.high %v3981_v20, %v3984_v16  ;;  %v16351_v55 = vld [vmem:[#allocation33_spill] sm:$0xff] }
 0x33f   : > { %16342 = vst [vmem:[#allocation13_spill] sm:$0xff] %v15260_v3  ;;  %v15266_v30 = vadd.f32 %v8662_v46, %v15219_v57  ;;  %v8491_v54 = vpop.f32.mrf.mxu1  ;;  %v3875_v3 = vld [vmem:[#allocation2 + $0x1a0] sm:$0x11] }
 0x340   : > { %v15269_v0 = vpop.f32.mrf.mxu0  ;;  %v15274_v31 = vadd.f32 %v8491_v54, %v16347_v29  ;;  %v3990_v26 = vrot.slane %v3875_v3, 5  ;;  %v16353_v3 = vld [vmem:[#allocation35_spill] sm:$0xff] }
 0x341   : > { %16344 = vst [vmem:[#allocation14_spill] sm:$0xff] %v15266_v30  ;;  %16346 = vst [vmem:[#allocation15_spill] sm:$0xff] %v15269_v0  ;;  %v8495_v45 = vpop.f32.mrf.mxu1  ;;  %9186 = vmatmul.mubr.bf16.gmra.mxu1 %v10130_v19  ;;  %v10066_v30 = vrot.slane %v3873_v48, 9  ;;  %v3878_v48 = vld [vmem:[#allocation2 + $0xe8] sm:$0x11] }
 0x342   : > { %16348 = vst [vmem:[#allocation16_spill] sm:$0xff] %v15274_v31  ;;  %v8668_v59 = vpop.f32.mrf.mxu0  ;;  %v8496_v13 = vadd.f32 %v8495_v45, %v14607_v21  ;;  %9195 = vmatprep.mubr.bf16.mxu1 %v10149_v15  ;;  %v3991_v19 = vsel %vm12607_vm6, %v3989_v9, %v3990_v26  ;;  %v16352_v21 = vld [vmem:[#allocation34_spill] sm:$0xff]  ;;  %v3876_v9 = vld [vmem:[#allocation2 + $0x158] sm:$0xee]  ;;  %v3997_v26 = vrot.slane %v3878_v48, 5 }
 0x343   : > { %v15276_v57 = vadd.f32 %v8668_v59, %v8476_v28  ;;  %v8497_v46 = vpop.f32.mrf.mxu1  ;;  %v3994_v28 = vrot.slane %v3877_v50, 5 }
 0x344   : > { %v8670_v17 = vpop.f32.mrf.mxu0  ;;  %v8498_v54 = vadd.f32 %v8497_v46, %v16351_v55 }
 0x345   : > { %16349 = vst [vmem:[#allocation17_spill] sm:$0xff] %v15276_v57  ;;  %v15279_v56 = vadd.f32 %v8670_v17, %v8478_v36  ;;  %v8499_v31 = vpop.f32.mrf.mxu1  ;;  %v10148_v57 = vcombine.low %v3981_v20, %v3984_v16  ;;  %v3988_v36 = vsel %vm12607_vm6, %v10066_v30, %v3987_v51  ;;  %v3880_v16 = vld [vmem:[#allocation2 + $0xa8] sm:$0xff]  ;;  %v11364_v30 = vld [vmem:[%s16119_s7 + $0x58] sm:$0xff]  }
 0x346   : > { %v8672_v29 = vpop.f32.mrf.mxu0  ;;  %v8500_v15 = vadd.f32 %v8499_v31, %v16352_v21  ;;  %v10167_v46 = vcombine.high %v3988_v36, %v3991_v19  ;;  %v11365_v51 = vld [vmem:[%s16119_s7 + $0x18] sm:$0xff]   ;;  %10715 = vmatprep.subr.bf16.mxu0 %v11364_v30  ;;  %v10166_v48 = vcombine.low %v3988_v36, %v3991_v19  ;;  %v3883_v19 = vld [vmem:[#allocation2 + $0x168] sm:$0xff] }
 0x347   : > { %16350 = vst [vmem:[#allocation18_spill] sm:$0xff] %v15279_v56  ;;  %v15284_v59 = vadd.f32 %v8672_v29, %v8480_v22  ;;  %v8501_v0 = vpop.f32.mrf.mxu1  ;;  %v3996_v22 = vrot.slane %v3994_v28, 4  ;;  %v16356_v29 = vld [vmem:[#allocation36_spill] sm:$0xff]  ;;  %10716 = vmatpush3.bf16.msra.mxu0 %v11365_v51  ;;  %v3879_v51 = vld [vmem:[#allocation2 + $0x80] sm:$0xee] }
 0x348   : > { %v15287_v45 = vpop.f32.mrf.mxu0  ;;  %v15292_v17 = vadd.f32 %v8501_v0, %v16353_v3 }
 0x349   : > { %v8505_v56 = vpop.f32.mrf.mxu1  ;;  %9196 = vmatmul.mubr.bf16.gmra.mxu1 %v10148_v57  ;;  %v3998_v3 = vsel %vm12607_vm6, %v3996_v22, %v3997_v26 }
 0x34a   : > { %16354 = vst [vmem:[#allocation6_spill] sm:$0xff] %v15292_v17  ;;  %v8678_v55 = vpop.f32.mrf.mxu0  ;;  %v8506_v31 = vadd.f32 %v8505_v56, %v14673_v10  ;;  %9205 = vmatprep.mubr.bf16.mxu1 %v10167_v46  ;;  %v10067_v56 = vrot.slane %v3876_v9, 9  ;;  %v4001_v46 = vrot.slane %v3880_v16, 5 }
 0x34b   : > { %v15294_v50 = vadd.f32 %v8678_v55, %v8486_v2  ;;  %v8507_v20 = vpop.f32.mrf.mxu1 }
 0x34c   : > { %v8680_v0 = vpop.f32.mrf.mxu0  ;;  %v8508_v2 = vadd.f32 %v8507_v20, %v16356_v29  ;;  %v3881_v20 = vld [vmem:[#allocation2 + $0x28] sm:$0x11]  ;;  %v4003_v16 = vrot.slane %v4001_v46, 4 }
 0x34d   : > { %16355 = vst [vmem:[#allocation19_spill] sm:$0xff] %v15294_v50  ;;  %v15303_v57 = vadd.f32 %v8680_v0, %v8488_v52  ;;  %v8509_v10 = vpop.f32.mrf.mxu1  ;;  %v3995_v0 = vsel %vm12607_vm6, %v10067_v56, %v3994_v28 }
 0x34e   : > { %v8682_v21 = vpop.f32.mrf.mxu0  ;;  %v8510_v17 = vadd.f32 %v8509_v10, %v14706_v4  ;;  %v10185_v9 = vcombine.high %v3995_v0, %v3998_v3 }
 0x34f   : > { %v15308_v55 = vadd.f32 %v8682_v21, %v8490_v61  ;;  %v8511_v52 = vpop.f32.mrf.mxu1  ;;  %v4004_v21 = vrot.slane %v3881_v20, 5  ;;  %v10184_v20 = vcombine.low %v3995_v0, %v3998_v3  ;;  %v3886_v3 = vld [vmem:[#allocation2 + $0x140] sm:$0xff]  ;;  %v11367_v0 = vld [vmem:[%s16119_s7 + $0x10] sm:$0xff]  }
 0x350   : > { %v15311_v50 = vpop.f32.mrf.mxu0  ;;  %v15316_v30 = vadd.f32 %v8511_v52, %v14722_v6  ;;  %v10068_v52 = vrot.slane %v3879_v51, 9 }
 0x351   : > { %v8515_v22 = vpop.f32.mrf.mxu1  ;;  %9206 = vmatmul.mubr.bf16.gmra.mxu1 %v10166_v48  ;;  %v4005_v48 = vsel %vm12607_vm6, %v4003_v16, %v4004_v21 }
 0x352   : > { %16357 = vst [vmem:[#allocation20_spill] sm:$0xff] %v15316_v30  ;;  %v8688_v29 = vpop.f32.mrf.mxu0  ;;  %v8516_v4 = vadd.f32 %v8515_v22, %v14733_v44  ;;  %9215 = vmatprep.mubr.bf16.mxu1 %v10185_v9  ;;  %v16360_v44 = vld [vmem:[#allocation37_spill] sm:$0xff]  ;;  %v3882_v22 = vld [vmem:[#allocation2] sm:$0xee] }
 0x353   : > { %v15318_v61 = vadd.f32 %v8688_v29, %v8496_v13  ;;  %v8517_v26 = vpop.f32.mrf.mxu1  ;;  %v4008_v13 = vrot.slane %v3883_v19, 5  ;;  %v3884_v30 = vld [vmem:[#allocation2 + $0xb8] sm:$0x11] }
 0x354   : > { %v8690_v36 = vpop.f32.mrf.mxu0  ;;  %v8518_v6 = vadd.f32 %v8517_v26, %v14750_v5  ;;  %v4002_v5 = vsel %vm12607_vm6, %v10068_v52, %v4001_v46  ;;  %v4011_v21 = vrot.slane %v3884_v30, 5  ;;  %v11366_v46 = vld [vmem:[%s16119_s7 + $0x50] sm:$0xff]  }
 0x355   : > { %16358 = vst [vmem:[#allocation21_spill] sm:$0xff] %v15318_v61  ;;  %v15321_v28 = vadd.f32 %v8690_v36, %v8498_v54  ;;  %v8519_v56 = vpop.f32.mrf.mxu1  ;;  %v16361_v36 = vld [vmem:[#allocation38_spill] sm:$0xff]  ;;  %v10203_v51 = vcombine.high %v4002_v5, %v4005_v48  ;;  %v4010_v19 = vrot.slane %v4008_v13, 4  ;;  %10717 = vmatprep.subr.bf16.mxu0 %v11366_v46 }
 0x356   : > { %v8692_v10 = vpop.f32.mrf.mxu0  ;;  %v8520_v9 = vadd.f32 %v8519_v56, %v16360_v44  ;;  %10718 = vmatpush3.bf16.msra.mxu0 %v11367_v0  ;;  %v3889_v0 = vld [vmem:[#allocation2 + $0x170] sm:$0xff] }
 0x357   : > { %16359 = vst [vmem:[#allocation22_spill] sm:$0xff] %v15321_v28  ;;  %v15326_v29 = vadd.f32 %v8692_v10, %v8500_v15  ;;  %v8521_v54 = vpop.f32.mrf.mxu1  ;;  %v10069_v15 = vrot.slane %v3882_v22, 9  ;;  %v4012_v22 = vsel %vm12607_vm6, %v4010_v19, %v4011_v21 }
 0x358   : > { %v15329_v61 = vpop.f32.mrf.mxu0  ;;  %v15334_v26 = vadd.f32 %v8521_v54, %v16361_v36  ;;  %v4015_v54 = vrot.slane %v3886_v3, 5 }
 0x359   : > { %v8525_v16 = vpop.f32.mrf.mxu1  ;;  %9216 = vmatmul.mubr.bf16.gmra.mxu1 %v10184_v20 }
 0x35a   : > { %16362 = vst [vmem:[#allocation23_spill] sm:$0xff] %v15334_v26  ;;  %v8698_v28 = vpop.f32.mrf.mxu0  ;;  %v8526_v56 = vadd.f32 %v8525_v16, %v14801_v11  ;;  %9225 = vmatprep.mubr.bf16.mxu1 %v10203_v51  ;;  %v4009_v11 = vsel %vm12607_vm6, %v10069_v15, %v4008_v13  ;;  %v3885_v16 = vld [vmem:[#allocation2 + $0x1a8] sm:$0xee]  ;;  %v4017_v21 = vrot.slane %v4015_v54, 4 }
 0x35b   : > { %v15336_v10 = vadd.f32 %v8698_v28, %v8506_v31  ;;  %v8527_v44 = vpop.f32.mrf.mxu1  ;;  %v10221_v26 = vcombine.high %v4009_v11, %v4012_v22  ;;  %v10070_v19 = vrot.slane %v3885_v16, 9 }
 0x35c   : > { %v8700_v52 = vpop.f32.mrf.mxu0  ;;  %v8528_v30 = vadd.f32 %v8527_v44, %v14814_v34  ;;  %v10202_v34 = vcombine.low %v4002_v5, %v4005_v48 }
 0x35d   : > { %v15345_v20 = vadd.f32 %v8700_v52, %v8508_v2  ;;  %v8529_v28 = vpop.f32.mrf.mxu1  ;;  %v3887_v2 = vld [vmem:[#allocation2 + $0x50] sm:$0x11] }
 0x35e   : > { %v8702_v31 = vpop.f32.mrf.mxu0  ;;  %v8530_v51 = vadd.f32 %v8529_v28, %v14832_v27  ;;  %v4018_v3 = vrot.slane %v3887_v2, 5 }
 0x35f   : > { %v15352_v36 = vadd.f32 %v8702_v31, %v8510_v17  ;;  %v8531_v46 = vpop.f32.mrf.mxu1 }
 0x360   : > { %v15355_v52 = vpop.f32.mrf.mxu0  ;;  %v15358_v44 = vadd.f32 %v8531_v46, %v14842_v58  ;;  %v4019_v16 = vsel %vm12607_vm6, %v4017_v21, %v4018_v3 }
 0x361   : > { %v8535_v15 = vpop.f32.mrf.mxu1  ;;  %9226 = vmatmul.mubr.bf16.gmra.mxu1 %v10202_v34  ;;  %v4016_v34 = vsel %vm12607_vm6, %v10070_v19, %v4015_v54 }
 0x362   : > { %16363 = vst [vmem:[#allocation24_spill] sm:$0xff] %v15358_v44  ;;  %v8708_v13 = vpop.f32.mrf.mxu0  ;;  %v8536_v27 = vadd.f32 %v8535_v15, %v14854_v1  ;;  %9235 = vmatprep.mubr.bf16.mxu1 %v10221_v26  ;;  %v3888_v26 = vld [vmem:[#allocation2 + $0xa0] sm:$0xee] }
 0x363   : > { %v15360_v17 = vadd.f32 %v8708_v13, %v8516_v4  ;;  %v8537_v28 = vpop.f32.mrf.mxu1  ;;  %v4022_v4 = vrot.slane %v3889_v0, 5  ;;  %v3890_v13 = vld [vmem:[#allocation2 + $0x198] sm:$0x11]  ;;  %v10071_v19 = vrot.slane %v3888_v26, 9  ;;  %v3892_v0 = vld [vmem:[#allocation2 + $0x190] sm:$0xff] }
 0x364   : > { %v8710_v31 = vpop.f32.mrf.mxu0  ;;  %v8538_v58 = vadd.f32 %v8537_v28, %v14865_v18  ;;  %v10239_v28 = vcombine.high %v4016_v34, %v4019_v16  ;;  %v4025_v3 = vrot.slane %v3890_v13, 5 }
 0x365   : > { %v15363_v48 = vadd.f32 %v8710_v31, %v8518_v6  ;;  %v8539_v46 = vpop.f32.mrf.mxu1  ;;  %v10220_v6 = vcombine.low %v4009_v11, %v4012_v22  ;;  %v4024_v21 = vrot.slane %v4022_v4, 4  ;;  %v11368_v11 = vld [vmem:[%s16119_s7 + $0x48] sm:$0xff]  }
 0x366   : > { %v8712_v5 = vpop.f32.mrf.mxu0  ;;  %v8540_v1 = vadd.f32 %v8539_v46, %v14884_v23  ;;  %10719 = vmatprep.subr.bf16.mxu0 %v11368_v11 }
 0x367   : > { %v15370_v2 = vadd.f32 %v8712_v5, %v8520_v9  ;;  %v8541_v31 = vpop.f32.mrf.mxu1  ;;  %v4026_v13 = vsel %vm12607_vm6, %v4024_v21, %v4025_v3 }
 0x368   : > { %v15373_v15 = vpop.f32.mrf.mxu0  ;;  %v15376_v18 = vadd.f32 %v8541_v31, %v14890_v24  ;;  %v11369_v24 = vld [vmem:[%s16119_s7 + $0x8] sm:$0xff]  }
 0x369   : > { %v8545_v54 = vpop.f32.mrf.mxu1  ;;  %9236 = vmatmul.mubr.bf16.gmra.mxu1 %v10220_v6  ;;  %v4029_v6 = vrot.slane %v3892_v0, 5  ;;  %10720 = vmatpush3.bf16.msra.mxu0 %v11369_v24  ;;  %v3895_v24 = vld [vmem:[#allocation2 + $0x150] sm:$0xff] }
 0x36a   : > { %16364 = vst [vmem:[#allocation25_spill] sm:$0xff] %v15376_v18  ;;  %v8718_v44 = vpop.f32.mrf.mxu0  ;;  %v8546_v23 = vadd.f32 %v8545_v54, %v14901_v49  ;;  %9245 = vmatprep.mubr.bf16.mxu1 %v10239_v28  ;;  %v4023_v49 = vsel %vm12607_vm6, %v10071_v19, %v4022_v4  ;;  %v3891_v54 = vld [vmem:[#allocation2 + $0xc0] sm:$0xee] }
 0x36b   : > { %v15378_v9 = vadd.f32 %v8718_v44, %v8526_v56  ;;  %v8547_v5 = vpop.f32.mrf.mxu1  ;;  %v10257_v18 = vcombine.high %v4023_v49, %v4026_v13  ;;  %v10072_v21 = vrot.slane %v3891_v54, 9  ;;  %v4031_v3 = vrot.slane %v4029_v6, 4 }
 0x36c   : > { %v8720_v22 = vpop.f32.mrf.mxu0  ;;  %v8548_v26 = vadd.f32 %v8547_v5, %v14918_v37  ;;  %v10238_v37 = vcombine.low %v4016_v34, %v4019_v16 }
 0x36d   : > { %v15387_v46 = vadd.f32 %v8720_v22, %v8528_v30  ;;  %v8549_v44 = vpop.f32.mrf.mxu1  ;;  %v3893_v30 = vld [vmem:[#allocation2 + $0xc8] sm:$0x11]  ;;  %v4030_v54 = vsel %vm12607_vm6, %v10072_v21, %v4029_v6 }
 0x36e   : > { %v8722_v56 = vpop.f32.mrf.mxu0  ;;  %v8550_v28 = vadd.f32 %v8549_v44, %v14928_v53  ;;  %v4032_v0 = vrot.slane %v3893_v30, 5  ;;  %v4036_v30 = vrot.slane %v3895_v24, 5 }
 0x36f   : > { %v15394_v31 = vadd.f32 %v8722_v56, %v8530_v51  ;;  %v8551_v11 = vpop.f32.mrf.mxu1 }
 0x370   : > { %v15397_v22 = vpop.f32.mrf.mxu0  ;;  %v15400_v5 = vadd.f32 %v8551_v11, %v14943_v12 }
 0x371   : > { %v8781_v19 = vpop.f32.mrf.mxu1  ;;  %9246 = vmatmul.mubr.bf16.gmra.mxu1 %v10238_v37  ;;  %v3894_v37 = vld [vmem:[#allocation2 + $0xf0] sm:$0xee] }
 0x372   : > { %v8728_v4 = vpop.f32.mrf.mxu0  ;;  %v15405_v53 = vadd.f32 %v8781_v19, %v14953_v25  ;;  %9255 = vmatprep.mubr.bf16.mxu1 %v10257_v18 }
 0x373   : > { %v15402_v51 = vadd.f32 %v8728_v4, %v8536_v27  ;;  %v8783_v34 = vpop.f32.mrf.mxu1  ;;  %v4033_v27 = vsel %vm12607_vm6, %v4031_v3, %v4032_v0  ;;  %v10073_v3 = vrot.slane %v3894_v37, 9  ;;  %v4038_v0 = vrot.slane %v4036_v30, 4 }
 0x374   : > { %v8730_v56 = vpop.f32.mrf.mxu0  ;;  %v15410_v12 = vadd.f32 %v8783_v34, %v14963_v42  ;;  %v10256_v42 = vcombine.low %v4023_v49, %v4026_v13  ;;  %v10275_v34 = vcombine.high %v4030_v54, %v4033_v27  ;;  %v11370_v49 = vld [vmem:[%s16119_s7 + $0x40] sm:$0xff]  }
 0x375   : > { %v15407_v16 = vadd.f32 %v8730_v56, %v8538_v58  ;;  %v8785_v11 = vpop.f32.mrf.mxu1  ;;  %v3896_v58 = vld [vmem:[#allocation2 + $0x30] sm:$0x11]  ;;  %10721 = vmatprep.subr.bf16.mxu0 %v11370_v49  ;;  %v10274_v49 = vcombine.low %v4030_v54, %v4033_v27  ;;  %v16375_v27 = vld [vmem:[#allocation42_spill] sm:$0xff] }
 0x376   : > { %v8732_v44 = vpop.f32.mrf.mxu0  ;;  %v15419_v18 = vadd.f32 %v8785_v11, %v14978_v43 }
 0x377   : > { %v15416_v25 = vadd.f32 %v8732_v44, %v8540_v1  ;;  %v8787_v19 = vpop.f32.mrf.mxu1  ;;  %v4039_v1 = vrot.slane %v3896_v58, 5  ;;  %v3898_v44 = vld [vmem:[#allocation2 + $0x18] sm:$0xff]  ;;  %v16368_v58 = vld [vmem:[#allocation39_spill] sm:$0xff] }
 0x378   : > { %16365 = vst [vmem:[#allocation26_spill] sm:$0xff] %v15419_v18  ;;  %v15421_v4 = vpop.f32.mrf.mxu0  ;;  %v15424_v56 = vadd.f32 %v8787_v19, %v14990_v41  ;;  %v11371_v41 = vld [vmem:[%s16119_s7] sm:$0xff]   ;;  %v4037_v19 = vsel %vm12607_vm6, %v10073_v3, %v4036_v30 }
 0x379   : > { %v8791_v21 = vpop.f32.mrf.mxu1  ;;  %9256 = vmatmul.mubr.bf16.gmra.mxu1 %v10256_v42  ;;  %10722 = vmatpush3.bf16.msra.mxu0 %v11371_v41  ;;  %v16373_v41 = vld [vmem:[#allocation41_spill] sm:$0xff] }
 0x37a   : > { %16366 = vst [vmem:[#allocation27_spill] sm:$0xff] %v15424_v56  ;;  %v8738_v6 = vpop.f32.mrf.mxu0  ;;  %v15429_v43 = vadd.f32 %v8791_v21, %v15002_v8  ;;  %9265 = vmatprep.mubr.bf16.mxu1 %v10275_v34  ;;  %v4040_v34 = vsel %vm12607_vm6, %v4038_v0, %v4039_v1 }
 0x37b   : > { %v15426_v24 = vadd.f32 %v8738_v6, %v8546_v23  ;;  %v8793_v11 = vpop.f32.mrf.mxu1  ;;  %v4043_v6 = vrot.slane %v3898_v44, 5  ;;  %v10293_v30 = vcombine.high %v4037_v19, %v4040_v34  ;;  %v10292_v18 = vcombine.low %v4037_v19, %v4040_v34 }
 0x37c   : > { %16367 = vst [vmem:[#allocation28_spill] sm:$0xff] %v15429_v43  ;;  %v8740_v13 = vpop.f32.mrf.mxu0  ;;  %v15440_v23 = vadd.f32 %v8793_v11, %v16368_v58 }
 0x37d   : > { %v15437_v37 = vadd.f32 %v8740_v13, %v8548_v26  ;;  %v8795_v42 = vpop.f32.mrf.mxu1  ;;  %v3897_v26 = vld [vmem:[#allocation2 + $0xf8] sm:$0xee]  ;;  %v3899_v13 = vld [vmem:[#allocation2 + $0x8] sm:$0x11] }
 0x37e   : > { %16369 = vst [vmem:[#allocation29_spill] sm:$0xff] %v15440_v23  ;;  %v8742_v8 = vpop.f32.mrf.mxu0  ;;  %v15449_v43 = vadd.f32 %v8795_v42, %v15036_v32  ;;  %v16371_v23 = vld [vmem:[#allocation40_spill] sm:$0xff]  ;;  %v10074_v1 = vrot.slane %v3897_v26, 9  ;;  %v4046_v44 = vrot.slane %v3899_v13, 5 }
 0x37f   : > { %v15446_v21 = vadd.f32 %v8742_v8, %v8550_v28  ;;  %v8797_v58 = vpop.f32.mrf.mxu1  ;;  %v4045_v28 = vrot.slane %v4043_v6, 4  ;;  %v3901_v8 = vld [vmem:[#allocation2 + $0x70] sm:$0xff] }
 0x380   : > { %16370 = vst [vmem:[#allocation30_spill] sm:$0xff] %v15449_v43  ;;  %v15451_v11 = vpop.f32.mrf.mxu0  ;;  %v15454_v56 = vadd.f32 %v8797_v58, %v16371_v23  ;;  %v4050_v13 = vrot.slane %v3901_v8, 5  ;;  %v16382_v8 = vld [vmem:[#allocation45_spill] sm:$0xff] }
 0x381   : > { %v8801_v0 = vpop.f32.mrf.mxu1  ;;  %9266 = vmatmul.mubr.bf16.gmra.mxu1 %v10274_v49  ;;  %v4044_v49 = vsel %vm12607_vm6, %v10074_v1, %v4043_v6  ;;  %v4047_v26 = vsel %vm12607_vm6, %v4045_v28, %v4046_v44 }
 0x382   : > { %16372 = vst [vmem:[#allocation31_spill] sm:$0xff] %v15454_v56  ;;  %v15456_v3 = vpop.f32.mrf.mxu0  ;;  %v15459_v32 = vadd.f32 %v8801_v0, %v16373_v41  ;;  %9275 = vmatprep.mubr.bf16.mxu1 %v10293_v30  ;;  %v16378_v0 = vld [vmem:[#allocation43_spill] sm:$0xff]  ;;  %v3900_v30 = vld [vmem:[#allocation2 + $0x60] sm:$0xee]  ;;  %v4052_v28 = vrot.slane %v4050_v13, 4 }
 0x383   : > { %v8803_v54 = vpop.f32.mrf.mxu1  ;;  %v10075_v1 = vrot.slane %v3900_v30, 9 }
 0x384   : > { %16374 = vst [vmem:[#allocation32_spill] sm:$0xff] %v15459_v32  ;;  %v15461_v42 = vpop.f32.mrf.mxu0  ;;  %v15464_v43 = vadd.f32 %v8803_v54, %v16375_v27  ;;  %v3902_v32 = vld [vmem:[#allocation2 + $0x68] sm:$0x11] }
 0x385   : > { %v8805_v58 = vpop.f32.mrf.mxu1  ;;  %v4053_v44 = vrot.slane %v3902_v32, 5 }
 0x386   : > { %16376 = vst [vmem:[#allocation33_spill] sm:$0xff] %v15464_v43  ;;  %v15466_v23 = vpop.f32.mrf.mxu0  ;;  %v15473_v41 = vadd.f32 %v8805_v58, %v16378_v0  ;;  %v10311_v43 = vcombine.high %v4044_v49, %v4047_v26  ;;  %v3904_v0 = vld [vmem:[#allocation2 + $0x20] sm:$0xff] }
 0x387   : > { %16377 = vst [vmem:[#allocation34_spill] sm:$0xff] %v15466_v23  ;;  %v8807_v54 = vpop.f32.mrf.mxu1  ;;  %v4054_v32 = vsel %vm12607_vm6, %v4052_v28, %v4053_v44  ;;  %v4057_v30 = vrot.slane %v3904_v0, 5 }
 0x388   : > { %16379 = vst [vmem:[#allocation35_spill] sm:$0xff] %v15473_v41  ;;  %v15475_v56 = vpop.f32.mrf.mxu0  ;;  %v15478_v27 = vadd.f32 %v8807_v54, %v15091_v60 }
 0x389   : > { %v8811_v6 = vpop.f32.mrf.mxu1  ;;  %9276 = vmatmul.mubr.bf16.gmra.mxu1 %v10292_v18  ;;  %v4051_v18 = vsel %vm12607_vm6, %v10075_v1, %v4050_v13  ;;  %v4059_v28 = vrot.slane %v4057_v30, 4 }
 0x38a   : > { %16380 = vst [vmem:[#allocation36_spill] sm:$0xff] %v15478_v27  ;;  %v15480_v23 = vpop.f32.mrf.mxu0  ;;  %v15483_v58 = vadd.f32 %v8811_v6, %v16382_v8  ;;  %9285 = vmatprep.mubr.bf16.mxu1 %v10311_v43  ;;  %v3903_v43 = vld [vmem:[#allocation2 + $0x38] sm:$0xee]  ;;  %v3905_v8 = vld [vmem:[#allocation2 + $0x88] sm:$0x11]  ;;  %v10310_v27 = vcombine.low %v4044_v49, %v4047_v26  ;;  %v4064_v49 = vrot.slane %v15112_v38, 5  ;;  %v10328_v38 = vcombine.low %v4051_v18, %v4054_v32 }
 0x38b   : > { %16381 = vst [vmem:[#allocation37_spill] sm:$0xff] %v15480_v23  ;;  %v8813_v19 = vpop.f32.mrf.mxu1  ;;  %v10076_v1 = vrot.slane %v3903_v43, 9  ;;  %v4060_v44 = vrot.slane %v3905_v8, 5  ;;  %v16394_v26 = vld [vmem:[#allocation48_spill] sm:$0xff]  ;;  %v16397_v8 = vld [vmem:[#allocation50_spill] sm:$0xff] }
 0x38c   : > { %16383 = vst [vmem:[#allocation38_spill] sm:$0xff] %v15483_v58  ;;  %v15485_v41 = vpop.f32.mrf.mxu0  ;;  %v15488_v34 = vadd.f32 %v8813_v19, %v15117_v14  ;;  %v16389_v19 = vld [vmem:[#allocation46_spill] sm:$0xff] }
 0x38d   : > { %16384 = vst [vmem:[#allocation39_spill] sm:$0xff] %v15485_v41  ;;  %v8815_v54 = vpop.f32.mrf.mxu1  ;;  %v4061_v43 = vsel %vm12607_vm6, %v4059_v28, %v4060_v44  ;;  %v16399_v28 = vld [vmem:[#allocation7_spill] sm:$0xff] }
 0x38e   : > { %16385 = vst [vmem:[#allocation40_spill] sm:$0xff] %v15488_v34  ;;  %v15490_v60 = vpop.f32.mrf.mxu0  ;;  %v15497_v6 = vadd.f32 %v8815_v54, %v15131_v33 }
 0x38f   : > { %16386 = vst [vmem:[#allocation41_spill] sm:$0xff] %v15490_v60  ;;  %v8817_v14 = vpop.f32.mrf.mxu1  ;;  %v10329_v60 = vcombine.high %v4051_v18, %v4054_v32 }
 0x390   : > { %16387 = vst [vmem:[#allocation42_spill] sm:$0xff] %v15497_v6  ;;  %v15499_v58 = vpop.f32.mrf.mxu0  ;;  %v15502_v34 = vadd.f32 %v8817_v14, %v16389_v19  ;;  %v3906_v19 = vld [vmem:[#allocation2 + $0xe0] sm:$0xee] }
 0x391   : > { %16388 = vst [vmem:[#allocation43_spill] sm:$0xff] %v15499_v58  ;;  %v8821_v13 = vpop.f32.mrf.mxu1  ;;  %9286 = vmatmul.mubr.bf16.gmra.mxu1 %v10310_v27  ;;  %v4058_v27 = vsel %vm12607_vm6, %v10076_v1, %v4057_v30 }
 0x392   : > { %16390 = vst [vmem:[#allocation45_spill] sm:$0xff] %v15502_v34  ;;  %v15504_v41 = vpop.f32.mrf.mxu0  ;;  %v15507_v33 = vadd.f32 %v8821_v13, %v15152_v63  ;;  %9295 = vmatprep.mubr.bf16.mxu1 %v10329_v60  ;;  %v3908_v34 = vld [vmem:[#allocation2 + $0x188] sm:$0x11]  ;;  %v16396_v63 = vld [vmem:[#allocation44_spill] sm:$0xff]  ;;  %v10347_v23 = vcombine.high %v4058_v27, %v4061_v43 }
 0x393   : > { %16391 = vst [vmem:[#allocation46_spill] sm:$0xff] %v15504_v41  ;;  %v8823_v54 = vpop.f32.mrf.mxu1  ;;  %v8635_v60 = vadd.f32 %v16397_v8, %v16396_v63  ;;  %v4067_v41 = vrot.slane %v3908_v34, 5 }
 0x394   : > { %16392 = vst [vmem:[#allocation52_spill] sm:$0xff] %v15507_v33  ;;  %v15509_v0 = vpop.f32.mrf.mxu0  ;;  %v15513_v14 = vadd.f32 %v8823_v54, %v16394_v26  ;;  %v16398_v33 = vld [vmem:[#allocation49_spill] sm:$0xff]  ;;  %v10077_v26 = vrot.slane %v3906_v19, 9 }
 0x395   : > { %16393 = vst [vmem:[#allocation53_spill] sm:$0xff] %v15509_v0  ;;  %v8825_v6 = vpop.f32.mrf.mxu1 }
 0x396   : > { %16395 = vst [vmem:[#allocation48_spill] sm:$0xff] %v15513_v14  ;;  %v15521_v13 = vpop.f32.mrf.mxu0  ;;  %v15524_v0 = vadd.f32 %v8825_v6, %v16398_v33  ;;  %v4066_v14 = vrot.slane %v4064_v49, 4  ;;  %v4065_v6 = vsel %vm12607_vm6, %v10077_v26, %v4064_v49  ;;  %v16400_v33 = vld [vmem:[#allocation47_spill] sm:$0xff] }
 0x397   : > { %v8827_v54 = vpop.f32.mrf.mxu1  ;;  %v8645_v19 = vadd.f32 %v15221_v40, %v16400_v33 }
 0x398   : > { %v15526_v58 = vadd.f32 %v8827_v54, %v8635_v60  ;;  %v15528_v1 = vpop.f32.mrf.mxu0  ;;  %v4068_v18 = vsel %vm12607_vm6, %v4066_v14, %v4067_v41  ;;  %v16401_v60 = vld [vmem:[#allocation8_spill] sm:$0xff]  ;;  %v10346_v54 = vcombine.low %v4058_v27, %v4061_v43 }
 0x399   : > { %v8831_v30 = vpop.f32.mrf.mxu1  ;;  %9296 = vmatmul.mubr.bf16.gmra.mxu1 %v10328_v38  ;;  %v10364_v26 = vcombine.low %v4065_v6, %v4068_v18 }
 0x39a   : > { %v15531_v44 = vadd.f32 %v8831_v30, %v16399_v28  ;;  %9305 = vmatprep.mubr.bf16.mxu1 %v10347_v23  ;;  %v15542_v8 = vpop.f32.mrf.mxu0  ;;  %v10365_v23 = vcombine.high %v4065_v6, %v4068_v18  ;;  %v16409_v6 = vld [vmem:[#allocation13_spill] sm:$0xff] }
 0x39b   : > { %v8833_v63 = vpop.f32.mrf.mxu1 }
 0x39c   : > { %v15538_v34 = vadd.f32 %v8833_v63, %v15208_v47  ;;  %v15549_v35 = vpop.f32.mrf.mxu0  ;;  %v16403_v63 = vld [vmem:[#allocation51_spill] sm:$0xff] }
 0x39d   : > { %v8835_v32 = vpop.f32.mrf.mxu1  ;;  %v8655_v27 = vadd.f32 %v15242_v7, %v16403_v63 }
 0x39e   : > { %v15545_v38 = vadd.f32 %v8835_v32, %v16401_v60  ;;  %v15559_v43 = vpop.f32.mrf.mxu0  ;;  %v16404_v32 = vld [vmem:[#allocation10_spill] sm:$0xff] }
 0x39f   : > { %v8837_v30 = vpop.f32.mrf.mxu1 }
 0x3a0   : > { %v15547_v28 = vadd.f32 %v8837_v30, %v8645_v19 }
 0x3a1   : > { %v8841_v49 = vpop.f32.mrf.mxu1  ;;  %9306 = vmatmul.mubr.bf16.gmra.mxu1 %v10346_v54  ;;  %v16407_v54 = vld [vmem:[#allocation12_spill] sm:$0xff] }
 0x3a2   : > { %v15552_v47 = vadd.f32 %v8841_v49, %v15229_v62  ;;  %9315 = vmatprep.mubr.bf16.mxu1 %v10365_v23  ;;  %v15566_v23 = vpop.f32.mrf.mxu0  ;;  %v16411_v49 = vld [vmem:[#allocation9_spill] sm:$0xff] }
 0x3a3   : > { %v8843_v41 = vpop.f32.mrf.mxu1 }
 0x3a4   : > { %v15555_v40 = vadd.f32 %v8843_v41, %v15233_v39  ;;  %v16412_v41 = vld [vmem:[#allocation15_spill] sm:$0xff] }
 0x3a5   : > { %v8845_v14 = vpop.f32.mrf.mxu1  ;;  %v8665_v63 = vadd.f32 %v16412_v41, %v16411_v49  ;;  %v16419_v49 = vld [vmem:[#allocation11_spill] sm:$0xff] }
 0x3a6   : > { %16402 = vst [vmem:[#allocation44_spill] sm:$0xff] %v15555_v40  ;;  %v15562_v33 = vadd.f32 %v8845_v14, %v16404_v32  ;;  %v15576_v14 = vpop.f32.mrf.mxu0  ;;  %v16413_v32 = vld [vmem:[#allocation14_spill] sm:$0xff]  ;;  %v8675_v41 = vadd.f32 %v15287_v45, %v16419_v49  ;;  %v16425_v45 = vld [vmem:[#allocation16_spill] sm:$0xff] }
 0x3a7   : > { %v8847_v19 = vpop.f32.mrf.mxu1  ;;  %v8685_v49 = vadd.f32 %v15311_v50, %v16425_v45  ;;  %v16432_v50 = vld [vmem:[#allocation6_spill] sm:$0xff] }
 0x3a8   : > { %16405 = vst [vmem:[#allocation50_spill] sm:$0xff] %v15562_v33  ;;  %v15564_v60 = vadd.f32 %v8847_v19, %v8655_v27  ;;  %v15583_v33 = vpop.f32.mrf.mxu0  ;;  %v8695_v45 = vadd.f32 %v15329_v61, %v16432_v50  ;;  %v16437_v61 = vld [vmem:[#allocation20_spill] sm:$0xff] }
 0x3a9   : > { %v8851_v62 = vpop.f32.mrf.mxu1  ;;  %9316 = vmatmul.mubr.bf16.gmra.mxu1 %v10364_v26  ;;  %v8705_v50 = vadd.f32 %v15355_v52, %v16437_v61  ;;  %v16442_v52 = vld [vmem:[#allocation23_spill] sm:$0xff] }
 0x3aa   : > { %16406 = vst [vmem:[#allocation49_spill] sm:$0xff] %v15564_v60  ;;  %v15569_v39 = vadd.f32 %v8851_v62, %v16407_v54  ;;  %v16415_v62 = vld [vmem:[#allocation17_spill] sm:$0xff]  ;;  %v15593_v40 = vpop.f32.mrf.mxu0  ;;  %v8715_v61 = vadd.f32 %v15373_v15, %v16442_v52  ;;  %v16447_v15 = vld [vmem:[#allocation24_spill] sm:$0xff] }
 0x3ab   : > { %v8853_v30 = vpop.f32.mrf.mxu1  ;;  %v8725_v52 = vadd.f32 %v15397_v22, %v16447_v15  ;;  %v16452_v22 = vld [vmem:[#allocation25_spill] sm:$0xff] }
 0x3ac   : > { %16408 = vst [vmem:[#allocation7_spill] sm:$0xff] %v15569_v39  ;;  %v15572_v18 = vadd.f32 %v8853_v30, %v16409_v6  ;;  %v16417_v6 = vld [vmem:[#allocation18_spill] sm:$0xff]  ;;  %v8735_v15 = vadd.f32 %v15421_v4, %v16452_v22 }
 0x3ad   : > { %v8855_v7 = vpop.f32.mrf.mxu1  ;;  %v9326_v4 = vld [vmem:[%s16117_s5] sm:$0x3] }
 0x3ae   : > { %16410 = vst [vmem:[#allocation47_spill] sm:$0xff] %v15572_v18  ;;  %v15579_v27 = vadd.f32 %v8855_v7, %v16413_v32 }
 0x3af   : > { %v8857_v19 = vpop.f32.mrf.mxu1 }
 0x3b0   : > { %v15581_v26 = vadd.f32 %v8857_v19, %v8665_v63 }
 0x3b1   : > { %v8861_v60 = vpop.f32.mrf.mxu1 }
 0x3b2   : > { %16414 = vst [vmem:[#allocation8_spill] sm:$0xff] %v15581_v26  ;;  %v15586_v54 = vadd.f32 %v8861_v60, %v16415_v62  ;;  %v15600_v26 = vpop.f32.mrf.mxu0  ;;  %v16422_v60 = vld [vmem:[#allocation19_spill] sm:$0xff] }
 0x3b3   : > { %v8863_v30 = vpop.f32.mrf.mxu1 }
 0x3b4   : > { %16416 = vst [vmem:[#allocation51_spill] sm:$0xff] %v15586_v54  ;;  %v15589_v18 = vadd.f32 %v8863_v30, %v16417_v6  ;;  %v15610_v54 = vpop.f32.mrf.mxu0 }
 0x3b5   : > { %v8865_v39 = vpop.f32.mrf.mxu1 }
 0x3b6   : > { %16418 = vst [vmem:[#allocation10_spill] sm:$0xff] %v15589_v18  ;;  %v15596_v7 = vadd.f32 %v8865_v39, %v15284_v59 }
 0x3b7   : > { %v8867_v63 = vpop.f32.mrf.mxu1 }
 0x3b8   : > { %16420 = vst [vmem:[#allocation12_spill] sm:$0xff] %v15596_v7  ;;  %v15598_v32 = vadd.f32 %v8867_v63, %v8675_v41 }
 0x3b9   : > { %v8871_v19 = vpop.f32.mrf.mxu1 }
 0x3ba   : > { %16421 = vst [vmem:[#allocation13_spill] sm:$0xff] %v15598_v32  ;;  %v15603_v62 = vadd.f32 %v8871_v19, %v16422_v60  ;;  %v15617_v32 = vpop.f32.mrf.mxu0  ;;  %v16428_v19 = vld [vmem:[#allocation21_spill] sm:$0xff] }
 0x3bb   : > { %v8873_v30 = vpop.f32.mrf.mxu1 }
 0x3bc   : > { %16423 = vst [vmem:[#allocation9_spill] sm:$0xff] %v15603_v62  ;;  %v15606_v6 = vadd.f32 %v8873_v30, %v15303_v57  ;;  %v16430_v30 = vld [vmem:[#allocation22_spill] sm:$0xff]  ;;  %v15627_v7 = vpop.f32.mrf.mxu0 }
 0x3bd   : > { %v8875_v18 = vpop.f32.mrf.mxu1 }
 0x3be   : > { %16424 = vst [vmem:[#allocation15_spill] sm:$0xff] %v15606_v6  ;;  %v15613_v59 = vadd.f32 %v8875_v18, %v15308_v55 }
 0x3bf   : > { %v8877_v39 = vpop.f32.mrf.mxu1 }
 0x3c0   : > { %16426 = vst [vmem:[#allocation14_spill] sm:$0xff] %v15613_v59  ;;  %v15615_v41 = vadd.f32 %v8877_v39, %v8685_v49 }
 0x3c1   : > { %v8881_v63 = vpop.f32.mrf.mxu1 }
 0x3c2   : > { %16427 = vst [vmem:[#allocation17_spill] sm:$0xff] %v15615_v41  ;;  %v15620_v60 = vadd.f32 %v8881_v63, %v16428_v19  ;;  %v15634_v41 = vpop.f32.mrf.mxu0 }
 0x3c3   : > { %v8883_v57 = vpop.f32.mrf.mxu1 }
 0x3c4   : > { %16429 = vst [vmem:[#allocation18_spill] sm:$0xff] %v15620_v60  ;;  %v15623_v6 = vadd.f32 %v8883_v57, %v16430_v30 }
 0x3c5   : > { %v8885_v62 = vpop.f32.mrf.mxu1 }
 0x3c6   : > { %16431 = vst [vmem:[#allocation11_spill] sm:$0xff] %v15623_v6  ;;  %v15630_v55 = vadd.f32 %v8885_v62, %v15326_v29  ;;  %v15644_v6 = vpop.f32.mrf.mxu0 }
 0x3c7   : > { %v8887_v18 = vpop.f32.mrf.mxu1 }
 0x3c8   : > { %16433 = vst [vmem:[#allocation19_spill] sm:$0xff] %v15630_v55  ;;  %v15632_v49 = vadd.f32 %v8887_v18, %v8695_v45  ;;  %v16474_v55 = vld [vmem:[#allocation46_spill] sm:$0xff] }
 0x3c9   : > { %v8891_v39 = vpop.f32.mrf.mxu1 }
 0x3ca   : > { %16434 = vst [vmem:[#allocation16_spill] sm:$0xff] %v15632_v49  ;;  %v15637_v63 = vadd.f32 %v8891_v39, %v15336_v10  ;;  %v15651_v49 = vpop.f32.mrf.mxu0 }
 0x3cb   : > { %v8893_v19 = vpop.f32.mrf.mxu1 }
 0x3cc   : > { %16435 = vst [vmem:[#allocation21_spill] sm:$0xff] %v15637_v63  ;;  %v15640_v57 = vadd.f32 %v8893_v19, %v15345_v20  ;;  %v16471_v63 = vld [vmem:[#allocation43_spill] sm:$0xff] }
 0x3cd   : > { %v8895_v30 = vpop.f32.mrf.mxu1 }
 0x3ce   : > { %16436 = vst [vmem:[#allocation22_spill] sm:$0xff] %v15640_v57  ;;  %v15647_v29 = vadd.f32 %v8895_v30, %v15352_v36  ;;  %v15661_v57 = vpop.f32.mrf.mxu0 }
 0x3cf   : > { %v8897_v62 = vpop.f32.mrf.mxu1 }
 0x3d0   : > { %16438 = vst [vmem:[#allocation6_spill] sm:$0xff] %v15647_v29  ;;  %v15649_v45 = vadd.f32 %v8897_v62, %v8705_v50  ;;  %v16470_v29 = vld [vmem:[#allocation31_spill] sm:$0xff] }
 0x3d1   : > { %v8901_v18 = vpop.f32.mrf.mxu1 }
 0x3d2   : > { %16439 = vst [vmem:[#allocation20_spill] sm:$0xff] %v15649_v45  ;;  %v15654_v10 = vadd.f32 %v8901_v18, %v15360_v17  ;;  %v15668_v45 = vpop.f32.mrf.mxu0 }
 0x3d3   : > { %v8903_v20 = vpop.f32.mrf.mxu1 }
 0x3d4   : > { %16440 = vst [vmem:[#allocation54_spill] sm:$0xff] %v15654_v10  ;;  %v15657_v39 = vadd.f32 %v8903_v20, %v15363_v48  ;;  %v16468_v10 = vld [vmem:[#allocation30_spill] sm:$0xff] }
 0x3d5   : > { %v8905_v19 = vpop.f32.mrf.mxu1 }
 0x3d6   : > { %16441 = vst [vmem:[#allocation55_spill] sm:$0xff] %v15657_v39  ;;  %v15664_v36 = vadd.f32 %v8905_v19, %v15370_v2  ;;  %v15678_v39 = vpop.f32.mrf.mxu0 }
 0x3d7   : > { %v8907_v30 = vpop.f32.mrf.mxu1 }
 0x3d8   : > { %16443 = vst [vmem:[#allocation23_spill] sm:$0xff] %v15664_v36  ;;  %v15666_v50 = vadd.f32 %v8907_v30, %v8715_v61 }
 0x3d9   : > { %v8911_v62 = vpop.f32.mrf.mxu1 }
 0x3da   : > { %16444 = vst [vmem:[#allocation56_spill] sm:$0xff] %v15666_v50  ;;  %v15671_v17 = vadd.f32 %v8911_v62, %v15378_v9  ;;  %v15685_v50 = vpop.f32.mrf.mxu0 }
 0x3db   : > { %v8913_v48 = vpop.f32.mrf.mxu1 }
 0x3dc   : > { %16445 = vst [vmem:[#allocation57_spill] sm:$0xff] %v15671_v17  ;;  %v15674_v18 = vadd.f32 %v8913_v48, %v15387_v46  ;;  %v16466_v17 = vld [vmem:[#allocation29_spill] sm:$0xff] }
 0x3dd   : > { %v8915_v20 = vpop.f32.mrf.mxu1 }
 0x3de   : > { %16446 = vst [vmem:[#allocation58_spill] sm:$0xff] %v15674_v18  ;;  %v15681_v2 = vadd.f32 %v8915_v20, %v15394_v31  ;;  %v15695_v18 = vpop.f32.mrf.mxu0 }
 0x3df   : > { %v8917_v19 = vpop.f32.mrf.mxu1 }
 0x3e0   : > { %16448 = vst [vmem:[#allocation24_spill] sm:$0xff] %v15681_v2  ;;  %v15683_v61 = vadd.f32 %v8917_v19, %v8725_v52 }
 0x3e1   : > { %v8921_v30 = vpop.f32.mrf.mxu1 }
 0x3e2   : > { %16449 = vst [vmem:[#allocation59_spill] sm:$0xff] %v15683_v61  ;;  %v15688_v9 = vadd.f32 %v8921_v30, %v15402_v51  ;;  %v15702_v61 = vpop.f32.mrf.mxu0 }
 0x3e3   : > { %v8923_v46 = vpop.f32.mrf.mxu1 }
 0x3e4   : > { %16450 = vst [vmem:[#allocation60_spill] sm:$0xff] %v15688_v9  ;;  %v15691_v62 = vadd.f32 %v8923_v46, %v15407_v16 }
 0x3e5   : > { %v8925_v48 = vpop.f32.mrf.mxu1 }
 0x3e6   : > { %16451 = vst [vmem:[#allocation61_spill] sm:$0xff] %v15691_v62  ;;  %v15698_v31 = vadd.f32 %v8925_v48, %v15416_v25  ;;  %v8745_v25 = vadd.f32 %v15451_v11, %v15400_v5  ;;  %v15715_v48 = vpop.f32.mrf.mxu0  ;;  %v8977_v5 = vadd.f32 %v15461_v42, %v15410_v12  ;;  %v16463_v42 = vld [vmem:[#allocation27_spill] sm:$0xff] }
 0x3e7   : > { %v8927_v20 = vpop.f32.mrf.mxu1 }
 0x3e8   : > { %16453 = vst [vmem:[#allocation25_spill] sm:$0xff] %v15698_v31  ;;  %v15700_v52 = vadd.f32 %v8927_v20, %v8735_v15  ;;  %v15732_v11 = vpop.f32.mrf.mxu0 }
 0x3e9   : > { %v8931_v19 = vpop.f32.mrf.mxu1 }
 0x3ea   : > { %16454 = vst [vmem:[#allocation62_spill] sm:$0xff] %v15700_v52  ;;  %v15705_v51 = vadd.f32 %v8931_v19, %v15426_v24  ;;  %v8975_v24 = vadd.f32 %v15456_v3, %v15405_v53  ;;  %v16461_v53 = vld [vmem:[#allocation26_spill] sm:$0xff]  ;;  %v15743_v62 = vpop.f32.mrf.mxu0 }
 0x3eb   : > { %v8933_v16 = vpop.f32.mrf.mxu1  ;;  %v16462_v3 = vld [vmem:[#allocation34_spill] sm:$0xff] }
 0x3ec   : > { %16455 = vst [vmem:[#allocation63_spill] sm:$0xff] %v15705_v51  ;;  %v15708_v30 = vadd.f32 %v8933_v16, %v15437_v37  ;;  %v16459_v37 = vld [vmem:[#allocation4_spill] sm:$0xff]  ;;  %v15757_v36 = vpop.f32.mrf.mxu0 }
 0x3ed   : > { %v8935_v46 = vpop.f32.mrf.mxu1  ;;  %v15725_v19 = vrot.slane %v9326_v4, %v16459_v37 }
 0x3ee   : > { %16456 = vst [vmem:[#allocation64_spill] sm:$0xff] %v15708_v30  ;;  %v15718_v22 = vadd.f32 %v8935_v46, %v15446_v21  ;;  %v9402_v30 = vld [vmem:[%s16118_s6] sm:$0x3] }
 0x3ef   : > { %v8937_v15 = vpop.f32.mrf.mxu1 }
 0x3f0   : > { %16457 = vst [vmem:[#allocation65_spill] sm:$0xff] %v15718_v22  ;;  %v15722_v20 = vadd.f32 %v8937_v15, %v8745_v25  ;;  %v16460_v22 = vld [vmem:[#allocation5_spill] sm:$0xff]  ;;  %v8979_v25 = vadd.f32 %v16462_v3, %v16461_v53  ;;  %v16464_v53 = vld [vmem:[#allocation28_spill] sm:$0xff] }
 0x3f1   : > { %v9167_v16 = vpop.f32.mrf.mxu1  ;;  %v15735_v51 = vrot.slane %v9326_v4, %v16460_v22  ;;  %v15749_v4 = vrot.slane %v9402_v30, %v16460_v22  ;;  %v16465_v3 = vld [vmem:[#allocation37_spill] sm:$0xff] }
 0x3f2   : > { %16458 = vst [vmem:[#allocation66_spill] sm:$0xff] %v15722_v20  ;;  %v9168_v21 = vadd.f32 %v9167_v16, %v8975_v24  ;;  %v15741_v20 = vrot.slane %v9402_v30, %v16459_v37  ;;  %v8981_v24 = vadd.f32 %v15475_v56, %v16463_v42 }
 0x3f3   : > { %v9169_v46 = vpop.f32.mrf.mxu1 }
 0x3f4   : > { %v9338_v15 = vmul.f32 %v15725_v19, %v9168_v21  ;;  %v9170_v52 = vadd.f32 %v9169_v46, %v8977_v5  ;;  %v8985_v21 = vadd.f32 %v16465_v3, %v16464_v53 }
 0x3f5   : > { %v9171_v31 = vpop.f32.mrf.mxu1 }
 0x3f6   : > { %v9172_v12 = vadd.f32 %v9171_v31, %v8979_v25  ;;  %v9339_v16 = vmul.f32 %v15735_v51, %v9170_v52  ;;  %v9414_v37 = vadd.f32 %v15741_v20, %v9338_v15  ;;  %v16467_v31 = vld [vmem:[#allocation39_spill] sm:$0xff] }
 0x3f7   : > { %v9173_v9 = vpop.f32.mrf.mxu1  ;;  %v8987_v25 = vadd.f32 %v16467_v31, %v16466_v17 }
 0x3f8   : > { %v9340_v5 = vmul.f32 %v15725_v19, %v9172_v12  ;;  %v9174_v46 = vadd.f32 %v9173_v9, %v8981_v24  ;;  %v9415_v30 = vadd.f32 %v15749_v4, %v9339_v16  ;;  %v9478_v53 = vmax.f32 %v9414_v37, 0.0  ;;  %v16469_v12 = vld [vmem:[#allocation41_spill] sm:$0xff] }
 0x3f9   : > { %v9177_v2 = vpop.f32.mrf.mxu1  ;;  %v8989_v9 = vadd.f32 %v16469_v12, %v16468_v10 }
 0x3fa   : > { %v9416_v56 = vadd.f32 %v15741_v20, %v9340_v5  ;;  %v9178_v52 = vadd.f32 %v9177_v2, %v8985_v21  ;;  %v9341_v22 = vmul.f32 %v15735_v51, %v9174_v46  ;;  %v8991_v5 = vadd.f32 %v16471_v63, %v16470_v29  ;;  %v15768_v2 = vpop.f32.mrf.mxu0  ;;  %v16475_v63 = vld [vmem:[#allocation33_spill] sm:$0xff] }
 0x3fb   : > { %v9179_v42 = vpop.f32.mrf.mxu1  ;;  %16472 = vst [vmem:[#allocation4_spill] sm:$0xff] %v15768_v2  ;;  %v9479_v21 = vmax.f32 %v9415_v30, 0.0  ;;  %v16476_v29 = vld [vmem:[#allocation53_spill] sm:$0xff] }
 0x3fc   : > { %v9480_v3 = vmax.f32 %v9416_v56, 0.0  ;;  %v9180_v15 = vadd.f32 %v9179_v42, %v8987_v25  ;;  %v9417_v24 = vadd.f32 %v15749_v4, %v9341_v22  ;;  %v9342_v17 = vmul.f32 %v15725_v19, %v9178_v52  ;;  %v16473_v42 = vld [vmem:[#allocation32_spill] sm:$0xff] }
 0x3fd   : > { %v9181_v31 = vpop.f32.mrf.mxu1  ;;  %v8995_v10 = vadd.f32 %v16474_v55, %v16473_v42  ;;  %v8997_v2 = vadd.f32 %v16476_v29, %v16475_v63  ;;  %v16478_v42 = vld [vmem:[#allocation36_spill] sm:$0xff]  ;;  %v16479_v29 = vld [vmem:[#allocation38_spill] sm:$0xff] }
 0x3fe   : > { %v9542_v16 = vpack.c.bf16 %v9480_v3, %v9478_v53  ;;  %v9481_v46 = vmax.f32 %v9417_v24, 0.0  ;;  %v9343_v37 = vmul.f32 %v15735_v51, %v9180_v15  ;;  %v9182_v56 = vadd.f32 %v9181_v31, %v8989_v9  ;;  %v15777_v53 = vpop.f32.mrf.mxu0  ;;  %v16477_v24 = vld [vmem:[#allocation35_spill] sm:$0xff] }
 0x3ff   : > { %v9183_v25 = vpop.f32.mrf.mxu1  ;;  %v9418_v22 = vadd.f32 %v15741_v20, %v9342_v17  ;;  %v8999_v17 = vadd.f32 %v15521_v13, %v16477_v24 }
 0x400   : > { %v9184_v12 = vadd.f32 %v9183_v25, %v8991_v5  ;;  %v9344_v52 = vmul.f32 %v15725_v19, %v9182_v56  ;;  %v9543_v59 = vpack.c.bf16 %v9481_v46, %v9479_v21  ;;  %v9419_v15 = vadd.f32 %v15749_v4, %v9343_v37  ;;  %v15788_v37 = vpop.f32.mrf.mxu0 }
 0x401   : > { %v9187_v60 = vpop.f32.mrf.mxu1  ;;  %v9482_v46 = vmax.f32 %v9418_v22, 0.0 }
 0x402   : > { %v9345_v30 = vmul.f32 %v15735_v51, %v9184_v12  ;;  %v9188_v3 = vadd.f32 %v9187_v60, %v8995_v10  ;;  %v9420_v9 = vadd.f32 %v15741_v20, %v9344_v52  ;;  %9741 = vmatprep.mubr.bf16.mxu0 %v9543_v59  ;;  %v9001_v60 = vadd.f32 %v15528_v1, %v16478_v42  ;;  %v15797_v24 = vpop.f32.mrf.mxu0 }
 0x403   : > { %v9189_v55 = vpop.f32.mrf.mxu1  ;;  %9742 = vmatmul.mubr.bf16.vlgmr.msra.gmra.mxu0 %v9542_v16  ;;  %v9483_v52 = vmax.f32 %v9419_v15, 0.0 }
 0x404   : > { %v9421_v31 = vadd.f32 %v15749_v4, %v9345_v30  ;;  %v9346_v5 = vmul.f32 %v15725_v19, %v9188_v3  ;;  %v9190_v21 = vadd.f32 %v9189_v55, %v8997_v2  ;;  %v9484_v56 = vmax.f32 %v9420_v9, 0.0  ;;  %v16480_v3 = vld [vmem:[#allocation40_spill] sm:$0xff] }
 0x405   : > { %v9191_v25 = vpop.f32.mrf.mxu1  ;;  %v9005_v30 = vadd.f32 %v15542_v8, %v16479_v29  ;;  %v9007_v1 = vadd.f32 %v15549_v35, %v16480_v3  ;;  %v16481_v35 = vld [vmem:[#allocation42_spill] sm:$0xff]  ;;  %v16483_v3 = vld [vmem:[#allocation52_spill] sm:$0xff] }
 0x406   : > { %v9485_v10 = vmax.f32 %v9421_v31, 0.0  ;;  %v9347_v59 = vmul.f32 %v15735_v51, %v9190_v21  ;;  %v9192_v12 = vadd.f32 %v9191_v25, %v8999_v17  ;;  %v9544_v13 = vpack.c.bf16 %v9484_v56, %v9482_v46 }
 0x407   : > { %v9193_v63 = vpop.f32.mrf.mxu1  ;;  %v9422_v2 = vadd.f32 %v15741_v20, %v9346_v5  ;;  %v9009_v42 = vadd.f32 %v15559_v43, %v16481_v35 }
 0x408   : > { %v9348_v16 = vmul.f32 %v15725_v19, %v9192_v12  ;;  %v9194_v22 = vadd.f32 %v9193_v63, %v9001_v60  ;;  %v9545_v55 = vpack.c.bf16 %v9485_v10, %v9483_v52  ;;  %v9423_v17 = vadd.f32 %v15749_v4, %v9347_v59  ;;  %v16482_v59 = vld [vmem:[#allocation45_spill] sm:$0xff]  ;;  %v15808_v52 = vpop.f32.mrf.mxu0 }
 0x409   : > { %v9197_v9 = vpop.f32.mrf.mxu1  ;;  %v9486_v5 = vmax.f32 %v9422_v2, 0.0  ;;  %v9011_v12 = vadd.f32 %v15566_v23, %v16482_v59  ;;  %v16484_v23 = vld [vmem:[#allocation48_spill] sm:$0xff]  ;;  %v9021_v59 = vadd.f32 %v15600_v26, %v15526_v58  ;;  %v9027_v58 = vadd.f32 %v15617_v32, %v15538_v34 }
 0x40a   : > { %v9424_v15 = vadd.f32 %v15741_v20, %v9348_v16  ;;  %v9349_v31 = vmul.f32 %v15735_v51, %v9194_v22  ;;  %v9198_v21 = vadd.f32 %v9197_v9, %v9005_v30  ;;  %9749 = vmatprep.mubr.bf16.mxu0 %v9545_v55  ;;  %v9487_v63 = vmax.f32 %v9423_v17, 0.0  ;;  %v15817_v17 = vpop.f32.mrf.mxu0 }
 0x40b   : > { %v9199_v8 = vpop.f32.mrf.mxu1  ;;  %9750 = vmatmul.mubr.bf16.gmra.mxu0 %v9544_v13  ;;  %v9015_v13 = vadd.f32 %v15576_v14, %v16483_v3  ;;  %v9029_v34 = vadd.f32 %v15627_v7, %v15545_v38 }
 0x40c   : > { %v9488_v46 = vmax.f32 %v9424_v15, 0.0  ;;  %v9425_v56 = vadd.f32 %v15749_v4, %v9349_v31  ;;  %v9200_v25 = vadd.f32 %v9199_v8, %v9007_v1  ;;  %v9350_v60 = vmul.f32 %v15725_v19, %v9198_v21 }
 0x40d   : > { %v9201_v10 = vpop.f32.mrf.mxu1  ;;  %v9017_v31 = vadd.f32 %v15583_v33, %v16484_v23 }
 0x40e   : > { %v9546_v29 = vpack.c.bf16 %v9488_v46, %v9486_v5  ;;  %v9489_v30 = vmax.f32 %v9425_v56, 0.0  ;;  %v9351_v2 = vmul.f32 %v15735_v51, %v9200_v25  ;;  %v9202_v16 = vadd.f32 %v9201_v10, %v9009_v42 }
 0x40f   : > { %v9203_v22 = vpop.f32.mrf.mxu1  ;;  %v9426_v9 = vadd.f32 %v15741_v20, %v9350_v60  ;;  %v9019_v56 = vadd.f32 %v15593_v40, %v15524_v0 }
 0x410   : > { %v9204_v1 = vadd.f32 %v9203_v22, %v9011_v12  ;;  %v9547_v43 = vpack.c.bf16 %v9489_v30, %v9487_v63  ;;  %v9352_v55 = vmul.f32 %v15725_v19, %v9202_v16  ;;  %v9427_v5 = vadd.f32 %v15749_v4, %v9351_v2  ;;  %v15828_v12 = vpop.f32.mrf.mxu0 }
 0x411   : > { %v9207_v15 = vpop.f32.mrf.mxu1  ;;  %v9490_v33 = vmax.f32 %v9426_v9, 0.0  ;;  %v9025_v22 = vadd.f32 %v15610_v54, %v15531_v44 }
 0x412   : > { %v9353_v21 = vmul.f32 %v15735_v51, %v9204_v1  ;;  %v9208_v8 = vadd.f32 %v9207_v15, %v9015_v13  ;;  %9757 = vmatprep.mubr.bf16.mxu0 %v9547_v43  ;;  %v9428_v14 = vadd.f32 %v15741_v20, %v9352_v55  ;;  %v9491_v16 = vmax.f32 %v9427_v5, 0.0  ;;  %v15837_v43 = vpop.f32.mrf.mxu0 }
 0x413   : > { %v9209_v46 = vpop.f32.mrf.mxu1  ;;  %9758 = vmatmul.mubr.bf16.gmra.mxu0 %v9546_v29 }
 0x414   : > { %v9429_v25 = vadd.f32 %v15749_v4, %v9353_v21  ;;  %v9354_v35 = vmul.f32 %v15725_v19, %v9208_v8  ;;  %v9210_v42 = vadd.f32 %v9209_v46, %v9017_v31  ;;  %v9492_v60 = vmax.f32 %v9428_v14, 0.0  ;;  %v15848_v46 = vpop.f32.mrf.mxu0 }
 0x415   : > { %v9211_v10 = vpop.f32.mrf.mxu1  ;;  %v9031_v14 = vadd.f32 %v15634_v41, %v15547_v28  ;;  %v16485_v28 = vld [vmem:[#allocation44_spill] sm:$0xff] }
 0x416   : > { %v9493_v63 = vmax.f32 %v9429_v25, 0.0  ;;  %v9355_v30 = vmul.f32 %v15735_v51, %v9210_v42  ;;  %v9212_v2 = vadd.f32 %v9211_v10, %v9019_v56  ;;  %v9548_v0 = vpack.c.bf16 %v9492_v60, %v9490_v33 }
 0x417   : > { %v9213_v40 = vpop.f32.mrf.mxu1  ;;  %v9430_v29 = vadd.f32 %v15741_v20, %v9354_v35  ;;  %v9035_v10 = vadd.f32 %v15644_v6, %v15552_v47  ;;  %v9037_v41 = vadd.f32 %v15651_v49, %v16485_v28 }
 0x418   : > { %v9356_v3 = vmul.f32 %v15725_v19, %v9212_v2  ;;  %v9214_v13 = vadd.f32 %v9213_v40, %v9021_v59  ;;  %v9549_v1 = vpack.c.bf16 %v9493_v63, %v9491_v16  ;;  %v9431_v9 = vadd.f32 %v15749_v4, %v9355_v30  ;;  %v15857_v2 = vpop.f32.mrf.mxu0 }
 0x419   : > { %v9217_v26 = vpop.f32.mrf.mxu1  ;;  %v9494_v54 = vmax.f32 %v9430_v29, 0.0 }
 0x41a   : > { %v9432_v55 = vadd.f32 %v15741_v20, %v9356_v3  ;;  %v9357_v15 = vmul.f32 %v15735_v51, %v9214_v13  ;;  %v9218_v23 = vadd.f32 %v9217_v26, %v9025_v22  ;;  %9765 = vmatprep.mubr.bf16.mxu0 %v9549_v1  ;;  %v9495_v56 = vmax.f32 %v9431_v9, 0.0  ;;  %v16486_v22 = vld [vmem:[#allocation50_spill] sm:$0xff]  ;;  %v16487_v9 = vld [vmem:[#allocation49_spill] sm:$0xff] }
 0x41b   : > { %v9219_v44 = vpop.f32.mrf.mxu1  ;;  %9766 = vmatmul.mubr.bf16.gmra.mxu0 %v9548_v0  ;;  %v9039_v29 = vadd.f32 %v15661_v57, %v16486_v22 }
 0x41c   : > { %v9496_v31 = vmax.f32 %v9432_v55, 0.0  ;;  %v9433_v21 = vadd.f32 %v15749_v4, %v9357_v15  ;;  %v9220_v8 = vadd.f32 %v9219_v44, %v9027_v58  ;;  %v9358_v32 = vmul.f32 %v15725_v19, %v9218_v23  ;;  %v15868_v15 = vpop.f32.mrf.mxu0 }
 0x41d   : > { %v9221_v5 = vpop.f32.mrf.mxu1  ;;  %v9041_v55 = vadd.f32 %v15668_v45, %v16487_v9 }
 0x41e   : > { %v9550_v25 = vpack.c.bf16 %v9496_v31, %v9494_v54  ;;  %v9497_v35 = vmax.f32 %v9433_v21, 0.0  ;;  %v9359_v42 = vmul.f32 %v15735_v51, %v9220_v8  ;;  %v9222_v33 = vadd.f32 %v9221_v5, %v9029_v34  ;;  %v16488_v8 = vld [vmem:[#allocation7_spill] sm:$0xff] }
 0x41f   : > { %v9223_v60 = vpop.f32.mrf.mxu1  ;;  %v9434_v7 = vadd.f32 %v15741_v20, %v9358_v32  ;;  %v9045_v34 = vadd.f32 %v15678_v39, %v16488_v8 }
 0x420   : > { %v9224_v59 = vadd.f32 %v9223_v60, %v9031_v14  ;;  %v9551_v38 = vpack.c.bf16 %v9497_v35, %v9495_v56  ;;  %v9360_v63 = vmul.f32 %v15725_v19, %v9222_v33  ;;  %v9435_v40 = vadd.f32 %v15749_v4, %v9359_v42  ;;  %v16489_v56 = vld [vmem:[#allocation47_spill] sm:$0xff]  ;;  %v15877_v42 = vpop.f32.mrf.mxu0 }
 0x421   : > { %v9227_v30 = vpop.f32.mrf.mxu1  ;;  %v9498_v49 = vmax.f32 %v9434_v7, 0.0  ;;  %v9047_v45 = vadd.f32 %v15685_v50, %v16489_v56  ;;  %v9049_v50 = vadd.f32 %v15695_v18, %v15579_v27 }
 0x422   : > { %v9361_v16 = vmul.f32 %v15735_v51, %v9224_v59  ;;  %v9228_v0 = vadd.f32 %v9227_v30, %v9035_v10  ;;  %9773 = vmatprep.mubr.bf16.mxu0 %v9551_v38  ;;  %v9436_v47 = vadd.f32 %v15741_v20, %v9360_v63  ;;  %v9499_v31 = vmax.f32 %v9435_v40, 0.0  ;;  %v15888_v40 = vpop.f32.mrf.mxu0 }
 0x423   : > { %v9229_v6 = vpop.f32.mrf.mxu1  ;;  %9774 = vmatmul.mubr.bf16.gmra.mxu0 %v9550_v25 }
 0x424   : > { %v9437_v3 = vadd.f32 %v15749_v4, %v9361_v16  ;;  %v9362_v13 = vmul.f32 %v15725_v19, %v9228_v0  ;;  %v9230_v58 = vadd.f32 %v9229_v6, %v9037_v41  ;;  %v9500_v26 = vmax.f32 %v9436_v47, 0.0  ;;  %v16490_v16 = vld [vmem:[#allocation8_spill] sm:$0xff] }
 0x425   : > { %v9231_v1 = vpop.f32.mrf.mxu1  ;;  %v9051_v0 = vadd.f32 %v15702_v61, %v16490_v16  ;;  %v16492_v61 = vld [vmem:[#allocation10_spill] sm:$0xff] }
 0x426   : > { %v9501_v23 = vmax.f32 %v9437_v3, 0.0  ;;  %v9363_v44 = vmul.f32 %v15735_v51, %v9230_v58  ;;  %v9232_v54 = vadd.f32 %v9231_v1, %v9039_v29  ;;  %v9552_v57 = vpack.c.bf16 %v9500_v26, %v9498_v49  ;;  %v16491_v58 = vld [vmem:[#allocation51_spill] sm:$0xff] }
 0x427   : > { %v9233_v21 = vpop.f32.mrf.mxu1  ;;  %v9438_v32 = vadd.f32 %v15741_v20, %v9362_v13  ;;  %v9055_v49 = vadd.f32 %v15715_v48, %v16491_v58 }
 0x428   : > { %v9364_v5 = vmul.f32 %v15725_v19, %v9232_v54  ;;  %v9234_v14 = vadd.f32 %v9233_v21, %v9041_v55  ;;  %v9553_v35 = vpack.c.bf16 %v9501_v23, %v9499_v31  ;;  %v9439_v33 = vadd.f32 %v15749_v4, %v9363_v44  ;;  %v15897_v23 = vpop.f32.mrf.mxu0  ;;  %v16493_v21 = vld [vmem:[#allocation12_spill] sm:$0xff] }
 0x429   : > { %v9237_v25 = vpop.f32.mrf.mxu1  ;;  %v9502_v38 = vmax.f32 %v9438_v32, 0.0  ;;  %v9057_v55 = vadd.f32 %v15732_v11, %v16492_v61  ;;  %v9059_v8 = vadd.f32 %v15743_v62, %v16493_v21  ;;  %v16499_v61 = vld [vmem:[#allocation17_spill] sm:$0xff] }
 0x42a   : > { %v9440_v60 = vadd.f32 %v15741_v20, %v9364_v5  ;;  %v9365_v10 = vmul.f32 %v15735_v51, %v9234_v14  ;;  %v9238_v59 = vadd.f32 %v9237_v25, %v9045_v34  ;;  %9781 = vmatprep.mubr.bf16.mxu0 %v9553_v35  ;;  %v9503_v47 = vmax.f32 %v9439_v33, 0.0  ;;  %v15908_v35 = vpop.f32.mrf.mxu0 }
 0x42b   : > { %v9239_v39 = vpop.f32.mrf.mxu1  ;;  %9782 = vmatmul.mubr.bf16.gmra.mxu0 %v9552_v57 }
 0x42c   : > { %v9504_v7 = vmax.f32 %v9440_v60, 0.0  ;;  %v9441_v63 = vadd.f32 %v15749_v4, %v9365_v10  ;;  %v9240_v30 = vadd.f32 %v9239_v39, %v9047_v45  ;;  %v9366_v28 = vmul.f32 %v15725_v19, %v9238_v59  ;;  %v16494_v45 = vld [vmem:[#allocation13_spill] sm:$0xff] }
 0x42d   : > { %v9241_v41 = vpop.f32.mrf.mxu1  ;;  %v9061_v25 = vadd.f32 %v15757_v36, %v16494_v45 }
 0x42e   : > { %v9554_v6 = vpack.c.bf16 %v9504_v7, %v9502_v38  ;;  %v9505_v22 = vmax.f32 %v9441_v63, 0.0  ;;  %v9367_v29 = vmul.f32 %v15735_v51, %v9240_v30  ;;  %v9242_v3 = vadd.f32 %v9241_v41, %v9049_v50  ;;  %v16495_v38 = vld [vmem:[#allocation9_spill] sm:$0xff]  ;;  %v16496_v7 = vld [vmem:[#allocation4_spill] sm:$0xff]  ;;  %v16497_v41 = vld [vmem:[#allocation15_spill] sm:$0xff] }
 0x42f   : > { %v9243_v13 = vpop.f32.mrf.mxu1  ;;  %v9442_v18 = vadd.f32 %v15741_v20, %v9366_v28  ;;  %v9065_v63 = vadd.f32 %v16496_v7, %v16495_v38  ;;  %v9067_v36 = vadd.f32 %v15777_v53, %v16497_v41  ;;  %v16498_v53 = vld [vmem:[#allocation14_spill] sm:$0xff] }
 0x430   : > { %v9244_v26 = vadd.f32 %v9243_v13, %v9051_v0  ;;  %v9555_v27 = vpack.c.bf16 %v9505_v22, %v9503_v47  ;;  %v9368_v1 = vmul.f32 %v15725_v19, %v9242_v3  ;;  %v9443_v31 = vadd.f32 %v15749_v4, %v9367_v29  ;;  %v15917_v47 = vpop.f32.mrf.mxu0 }
 0x431   : > { %v9247_v9 = vpop.f32.mrf.mxu1  ;;  %v9506_v11 = vmax.f32 %v9442_v18, 0.0  ;;  %v9069_v18 = vadd.f32 %v15788_v37, %v16498_v53 }
 0x432   : > { %v9369_v44 = vmul.f32 %v15735_v51, %v9244_v26  ;;  %v9248_v54 = vadd.f32 %v9247_v9, %v9055_v49  ;;  %9789 = vmatprep.mubr.bf16.mxu0 %v9555_v27  ;;  %v9444_v48 = vadd.f32 %v15741_v20, %v9368_v1  ;;  %v9507_v59 = vmax.f32 %v9443_v31, 0.0 }
 0x433   : > { %v9249_v57 = vpop.f32.mrf.mxu1  ;;  %9790 = vmatmul.mubr.bf16.gmra.mxu0 %v9554_v6 }
 0x434   : > { %v9445_v34 = vadd.f32 %v15749_v4, %v9369_v44  ;;  %v9370_v32 = vmul.f32 %v15725_v19, %v9248_v54  ;;  %v9250_v5 = vadd.f32 %v9249_v57, %v9057_v55  ;;  %v9508_v14 = vmax.f32 %v9444_v48, 0.0  ;;  %v15928_v44 = vpop.f32.mrf.mxu0 }
 0x435   : > { %v9251_v56 = vpop.f32.mrf.mxu1  ;;  %v9071_v55 = vadd.f32 %v15797_v24, %v16499_v61  ;;  %v16501_v24 = vld [vmem:[#allocation11_spill] sm:$0xff] }
 0x436   : > { %v9509_v33 = vmax.f32 %v9445_v34, 0.0  ;;  %v9371_v60 = vmul.f32 %v15735_v51, %v9250_v5  ;;  %v9252_v10 = vadd.f32 %v9251_v56, %v9059_v8  ;;  %v9556_v62 = vpack.c.bf16 %v9508_v14, %v9506_v11  ;;  %v16500_v34 = vld [vmem:[#allocation18_spill] sm:$0xff] }
 0x437   : > { %v9253_v39 = vpop.f32.mrf.mxu1  ;;  %v9446_v30 = vadd.f32 %v15741_v20, %v9370_v32  ;;  %v9075_v32 = vadd.f32 %v15808_v52, %v16500_v34  ;;  %v9077_v45 = vadd.f32 %v15817_v17, %v16501_v24 }
 0x438   : > { %v9372_v50 = vmul.f32 %v15725_v19, %v9252_v10  ;;  %v9254_v28 = vadd.f32 %v9253_v39, %v9061_v25  ;;  %v9557_v0 = vpack.c.bf16 %v9509_v33, %v9507_v59  ;;  %v9447_v6 = vadd.f32 %v15749_v4, %v9371_v60  ;;  %v15937_v25 = vpop.f32.mrf.mxu0 }
 0x439   : > { %v9257_v16 = vpop.f32.mrf.mxu1  ;;  %v9510_v58 = vmax.f32 %v9446_v30, 0.0 }
 0x43a   : > { %v9448_v22 = vadd.f32 %v15741_v20, %v9372_v50  ;;  %v9373_v29 = vmul.f32 %v15735_v51, %v9254_v28  ;;  %v9258_v3 = vadd.f32 %v9257_v16, %v9065_v63  ;;  %9797 = vmatprep.mubr.bf16.mxu0 %v9557_v0  ;;  %v9511_v54 = vmax.f32 %v9447_v6, 0.0  ;;  %v16503_v28 = vld [vmem:[#allocation16_spill] sm:$0xff] }
 0x43b   : > { %v9259_v13 = vpop.f32.mrf.mxu1  ;;  %9798 = vmatmul.mubr.bf16.gmra.mxu0 %v9556_v62  ;;  %v16502_v62 = vld [vmem:[#allocation19_spill] sm:$0xff]  ;;  %v9081_v41 = vadd.f32 %v15837_v43, %v16503_v28 }
 0x43c   : > { %v9512_v49 = vmax.f32 %v9448_v22, 0.0  ;;  %v9449_v26 = vadd.f32 %v15749_v4, %v9373_v29  ;;  %v9260_v27 = vadd.f32 %v9259_v13, %v9067_v36  ;;  %v9374_v1 = vmul.f32 %v15725_v19, %v9258_v3  ;;  %v15948_v36 = vpop.f32.mrf.mxu0  ;;  %v16504_v3 = vld [vmem:[#allocation21_spill] sm:$0xff] }
 0x43d   : > { %v9261_v9 = vpop.f32.mrf.mxu1  ;;  %v9079_v39 = vadd.f32 %v15828_v12, %v16502_v62  ;;  %v9085_v13 = vadd.f32 %v15848_v46, %v16504_v3  ;;  %v16511_v3 = vld [vmem:[#allocation56_spill] sm:$0xff] }
 0x43e   : > { %v9558_v31 = vpack.c.bf16 %v9512_v49, %v9510_v58  ;;  %v9513_v48 = vmax.f32 %v9449_v26, 0.0  ;;  %v9375_v57 = vmul.f32 %v15735_v51, %v9260_v27  ;;  %v9262_v21 = vadd.f32 %v9261_v9, %v9069_v18  ;;  %v16505_v27 = vld [vmem:[#allocation22_spill] sm:$0xff] }
 0x43f   : > { %v9263_v8 = vpop.f32.mrf.mxu1  ;;  %v9450_v11 = vadd.f32 %v15741_v20, %v9374_v1  ;;  %v9087_v43 = vadd.f32 %v15857_v2, %v16505_v27  ;;  %v15957_v1 = vpop.f32.mrf.mxu0  ;;  %v16506_v2 = vld [vmem:[#allocation6_spill] sm:$0xff] }
 0x440   : > { %v9264_v5 = vadd.f32 %v9263_v8, %v9071_v55  ;;  %v9559_v37 = vpack.c.bf16 %v9513_v48, %v9511_v54  ;;  %v9376_v14 = vmul.f32 %v15725_v19, %v9262_v21  ;;  %v9451_v10 = vadd.f32 %v15749_v4, %v9375_v57 }
 0x441   : > { %v9267_v56 = vpop.f32.mrf.mxu1  ;;  %v9514_v17 = vmax.f32 %v9450_v11, 0.0  ;;  %v9089_v8 = vadd.f32 %v15868_v15, %v16506_v2  ;;  %v15968_v11 = vpop.f32.mrf.mxu0 }
 0x442   : > { %v9377_v33 = vmul.f32 %v15735_v51, %v9264_v5  ;;  %v9268_v60 = vadd.f32 %v9267_v56, %v9075_v32  ;;  %9805 = vmatprep.mubr.bf16.mxu0 %v9559_v37  ;;  %v9452_v52 = vadd.f32 %v15741_v20, %v9376_v14  ;;  %v9515_v22 = vmax.f32 %v9451_v10, 0.0  ;;  %v16507_v5 = vld [vmem:[#allocation20_spill] sm:$0xff]  ;;  %v16508_v10 = vld [vmem:[#allocation54_spill] sm:$0xff] }
 0x443   : > { %v9269_v59 = vpop.f32.mrf.mxu1  ;;  %9806 = vmatmul.mubr.bf16.gmra.mxu0 %v9558_v31  ;;  %v9091_v37 = vadd.f32 %v15877_v42, %v16507_v5  ;;  %v16509_v42 = vld [vmem:[#allocation55_spill] sm:$0xff] }
 0x444   : > { %v9453_v38 = vadd.f32 %v15749_v4, %v9377_v33  ;;  %v9378_v7 = vmul.f32 %v15725_v19, %v9268_v60  ;;  %v9270_v63 = vadd.f32 %v9269_v59, %v9077_v45  ;;  %v9516_v30 = vmax.f32 %v9452_v52, 0.0 }
 0x445   : > { %v9271_v50 = vpop.f32.mrf.mxu1  ;;  %v9095_v52 = vadd.f32 %v15888_v40, %v16508_v10 }
 0x446   : > { %v9517_v16 = vmax.f32 %v9453_v38, 0.0  ;;  %v9379_v0 = vmul.f32 %v15735_v51, %v9270_v63  ;;  %v9272_v6 = vadd.f32 %v9271_v50, %v9079_v39  ;;  %v9560_v12 = vpack.c.bf16 %v9516_v30, %v9514_v17  ;;  %v9116_v63 = vpop.f32.mrf.mxu0 }
 0x447   : > { %v9273_v29 = vpop.f32.mrf.mxu1  ;;  %v9454_v58 = vadd.f32 %v15741_v20, %v9378_v7  ;;  %v9097_v7 = vadd.f32 %v15897_v23, %v16509_v42  ;;  %v16516_v42 = vld [vmem:[#allocation60_spill] sm:$0xff] }
 0x448   : > { %v9380_v49 = vmul.f32 %v15725_v19, %v9272_v6  ;;  %v9274_v26 = vadd.f32 %v9273_v29, %v9081_v41  ;;  %v9561_v18 = vpack.c.bf16 %v9517_v16, %v9515_v22  ;;  %v9455_v9 = vadd.f32 %v15749_v4, %v9379_v0  ;;  %v16510_v41 = vld [vmem:[#allocation23_spill] sm:$0xff] }
 0x449   : > { %v9277_v53 = vpop.f32.mrf.mxu1  ;;  %v9518_v31 = vmax.f32 %v9454_v58, 0.0  ;;  %v9099_v16 = vadd.f32 %v15908_v35, %v16510_v41  ;;  %v9118_v58 = vpop.f32.mrf.mxu0 }
 0x44a   : > { %v9456_v61 = vadd.f32 %v15741_v20, %v9380_v49  ;;  %v9381_v55 = vmul.f32 %v15735_v51, %v9274_v26  ;;  %v9278_v54 = vadd.f32 %v9277_v53, %v9085_v13  ;;  %9813 = vmatprep.mubr.bf16.mxu0 %v9561_v18  ;;  %v9519_v14 = vmax.f32 %v9455_v9, 0.0  ;;  %v16512_v18 = vld [vmem:[#allocation57_spill] sm:$0xff] }
 0x44b   : > { %v9279_v46 = vpop.f32.mrf.mxu1  ;;  %9814 = vmatmul.mubr.bf16.gmra.mxu0 %v9560_v12  ;;  %v9101_v13 = vadd.f32 %v15917_v47, %v16511_v3  ;;  %v9105_v9 = vadd.f32 %v15928_v44, %v16512_v18 }
 0x44c   : > { %v9520_v48 = vmax.f32 %v9456_v61, 0.0  ;;  %v9457_v57 = vadd.f32 %v15749_v4, %v9381_v55  ;;  %v9280_v21 = vadd.f32 %v9279_v46, %v9087_v43  ;;  %v9382_v34 = vmul.f32 %v15725_v19, %v9278_v54  ;;  %v16513_v46 = vld [vmem:[#allocation58_spill] sm:$0xff] }
 0x44d   : > { %v9281_v32 = vpop.f32.mrf.mxu1 }
 0x44e   : > { %v9562_v56 = vpack.c.bf16 %v9520_v48, %v9518_v31  ;;  %v9521_v24 = vmax.f32 %v9457_v57, 0.0  ;;  %v9383_v45 = vmul.f32 %v15735_v51, %v9280_v21  ;;  %v9282_v33 = vadd.f32 %v9281_v32, %v9089_v8  ;;  %v9120_v57 = vpop.f32.mrf.mxu0 }
 0x44f   : > { %v9283_v60 = vpop.f32.mrf.mxu1  ;;  %v9458_v62 = vadd.f32 %v15741_v20, %v9382_v34  ;;  %v9107_v31 = vadd.f32 %v15937_v25, %v16513_v46 }
 0x450   : > { %v9284_v59 = vadd.f32 %v9283_v60, %v9091_v37  ;;  %v9563_v15 = vpack.c.bf16 %v9521_v24, %v9519_v14  ;;  %v9384_v39 = vmul.f32 %v15725_v19, %v9282_v33  ;;  %v9459_v50 = vadd.f32 %v15749_v4, %v9383_v45  ;;  %v16515_v33 = vld [vmem:[#allocation59_spill] sm:$0xff]  ;;  %v9124_v10 = vpop.f32.mrf.mxu0 }
 0x451   : > { %v9287_v38 = vpop.f32.mrf.mxu1  ;;  %v9522_v23 = vmax.f32 %v9458_v62, 0.0  ;;  %v9111_v60 = vadd.f32 %v15957_v1, %v16515_v33  ;;  %v16522_v33 = vld [vmem:[#allocation65_spill] sm:$0xff] }
 0x452   : > { %v9385_v17 = vmul.f32 %v15735_v51, %v9284_v59  ;;  %v9288_v30 = vadd.f32 %v9287_v38, %v9095_v52  ;;  %9821 = vmatprep.mubr.bf16.mxu0 %v9563_v15  ;;  %v9460_v28 = vadd.f32 %v15741_v20, %v9384_v39  ;;  %v9523_v43 = vmax.f32 %v9459_v50, 0.0  ;;  %v9126_v41 = vpop.f32.mrf.mxu0 }
 0x453   : > { %v9289_v40 = vpop.f32.mrf.mxu1  ;;  %9822 = vmatmul.mubr.bf16.gmra.mxu0 %v9562_v56  ;;  %v16514_v56 = vld [vmem:[#allocation24_spill] sm:$0xff] }
 0x454   : > { %v9461_v0 = vadd.f32 %v15749_v4, %v9385_v17  ;;  %v9386_v6 = vmul.f32 %v15725_v19, %v9288_v30  ;;  %v9290_v22 = vadd.f32 %v9289_v40, %v9097_v7  ;;  %v9524_v12 = vmax.f32 %v9460_v28, 0.0  ;;  %v16517_v40 = vld [vmem:[#allocation61_spill] sm:$0xff] }
 0x455   : > { %v9291_v29 = vpop.f32.mrf.mxu1  ;;  %v9109_v25 = vadd.f32 %v15948_v36, %v16514_v56  ;;  %v9115_v7 = vadd.f32 %v15968_v11, %v16516_v42  ;;  %v9117_v1 = vadd.f32 %v9116_v63, %v16517_v40  ;;  %v16518_v11 = vld [vmem:[#allocation25_spill] sm:$0xff] }
 0x456   : > { %v9525_v49 = vmax.f32 %v9461_v0, 0.0  ;;  %v9387_v26 = vmul.f32 %v15735_v51, %v9290_v22  ;;  %v9292_v27 = vadd.f32 %v9291_v29, %v9099_v16  ;;  %v9564_v53 = vpack.c.bf16 %v9524_v12, %v9522_v23 }
 0x457   : > { %v9293_v35 = vpop.f32.mrf.mxu1  ;;  %v9462_v61 = vadd.f32 %v15741_v20, %v9386_v6  ;;  %v9119_v12 = vadd.f32 %v9118_v58, %v16518_v11  ;;  %v16520_v58 = vld [vmem:[#allocation63_spill] sm:$0xff] }
 0x458   : > { %v9388_v55 = vmul.f32 %v15725_v19, %v9292_v27  ;;  %v9294_v54 = vadd.f32 %v9293_v35, %v9101_v13  ;;  %v9565_v48 = vpack.c.bf16 %v9525_v49, %v9523_v43  ;;  %v9463_v21 = vadd.f32 %v15749_v4, %v9387_v26  ;;  %v16519_v27 = vld [vmem:[#allocation62_spill] sm:$0xff] }
 0x459   : > { %v9297_v47 = vpop.f32.mrf.mxu1  ;;  %v9526_v32 = vmax.f32 %v9462_v61, 0.0  ;;  %v9121_v43 = vadd.f32 %v9120_v57, %v16519_v27  ;;  %v9125_v46 = vadd.f32 %v9124_v10, %v16520_v58  ;;  %v16523_v10 = vld [vmem:[#allocation66_spill] sm:$0xff] }
 0x45a   : > { %v9464_v2 = vadd.f32 %v15741_v20, %v9388_v55  ;;  %v9389_v8 = vmul.f32 %v15735_v51, %v9294_v54  ;;  %v9298_v34 = vadd.f32 %v9297_v47, %v9105_v9  ;;  %9829 = vmatprep.mubr.bf16.mxu0 %v9565_v48  ;;  %v9527_v52 = vmax.f32 %v9463_v21, 0.0  ;;  %v16521_v21 = vld [vmem:[#allocation64_spill] sm:$0xff] }
 0x45b   : > { %v9299_v44 = vpop.f32.mrf.mxu1  ;;  %9830 = vmatmul.mubr.bf16.gmra.mxu0 %v9564_v53  ;;  %v9128_v53 = vpop.f32.mrf.mxu0 }
 0x45c   : > { %v9528_v5 = vmax.f32 %v9464_v2, 0.0  ;;  %v9465_v37 = vadd.f32 %v15749_v4, %v9389_v8  ;;  %v9300_v14 = vadd.f32 %v9299_v44, %v9107_v31  ;;  %v9390_v24 = vmul.f32 %v15725_v19, %v9298_v34 }
 0x45d   : > { %v9301_v45 = vpop.f32.mrf.mxu1  ;;  %v9127_v2 = vadd.f32 %v9126_v41, %v16521_v21  ;;  %v9130_v57 = vpop.f32.mrf.mxu0 }
 0x45e   : > { %v9566_v59 = vpack.c.bf16 %v9528_v5, %v9526_v32  ;;  %v9529_v15 = vmax.f32 %v9465_v37, 0.0  ;;  %v9391_v62 = vmul.f32 %v15735_v51, %v9300_v14  ;;  %v9302_v39 = vadd.f32 %v9301_v45, %v9109_v25 }
 0x45f   : > { %v9303_v38 = vpop.f32.mrf.mxu1  ;;  %v9466_v36 = vadd.f32 %v15741_v20, %v9390_v24 }
 0x460   : > { %v9304_v17 = vadd.f32 %v9303_v38, %v9111_v60  ;;  %v9567_v30 = vpack.c.bf16 %v9529_v15, %v9527_v52  ;;  %v9392_v50 = vmul.f32 %v15725_v19, %v9302_v39  ;;  %v9467_v6 = vadd.f32 %v15749_v4, %v9391_v62 }
 0x461   : > { %v9307_v28 = vpop.f32.mrf.mxu1  ;;  %v9530_v49 = vmax.f32 %v9466_v36, 0.0  ;;  %v9129_v60 = vadd.f32 %v9128_v53, %v16522_v33  ;;  %v9131_v52 = vadd.f32 %v9130_v57, %v16523_v10 }
 0x462   : > { %v9393_v16 = vmul.f32 %v15735_v51, %v9304_v17  ;;  %v9308_v0 = vadd.f32 %v9307_v28, %v9115_v7  ;;  %9837 = vmatprep.mubr.bf16.mxu0 %v9567_v30  ;;  %v9468_v22 = vadd.f32 %v15741_v20, %v9392_v50  ;;  %v9531_v61 = vmax.f32 %v9467_v6, 0.0 }
 0x463   : > { %v9309_v23 = vpop.f32.mrf.mxu1  ;;  %9838 = vmatmul.mubr.bf16.gmra.mxu0 %v9566_v59 }
 0x464   : > { %v9469_v29 = vadd.f32 %v15749_v4, %v9393_v16  ;;  %v9394_v3 = vmul.f32 %v15725_v19, %v9308_v0  ;;  %v9310_v13 = vadd.f32 %v9309_v23, %v9117_v1  ;;  %v9532_v63 = vmax.f32 %v9468_v22, 0.0 }
 0x465   : > { %v9311_v26 = vpop.f32.mrf.mxu1 }
 0x466   : > { %v9533_v35 = vmax.f32 %v9469_v29, 0.0  ;;  %v9395_v18 = vmul.f32 %v15735_v51, %v9310_v13  ;;  %v9312_v9 = vadd.f32 %v9311_v26, %v9119_v12  ;;  %v9568_v55 = vpack.c.bf16 %v9532_v63, %v9530_v49 }
 0x467   : > { %v9313_v54 = vpop.f32.mrf.mxu1  ;;  %v9470_v31 = vadd.f32 %v15741_v20, %v9394_v3 }
 0x468   : > { %v9396_v47 = vmul.f32 %v15725_v19, %v9312_v9  ;;  %v9314_v48 = vadd.f32 %v9313_v54, %v9121_v43  ;;  %v9569_v34 = vpack.c.bf16 %v9533_v35, %v9531_v61  ;;  %v9471_v44 = vadd.f32 %v15749_v4, %v9395_v18 }
 0x469   : > { %v9317_v8 = vpop.f32.mrf.mxu1  ;;  %v9534_v56 = vmax.f32 %v9470_v31, 0.0 }
 0x46a   : > { %v9472_v32 = vadd.f32 %v15741_v20, %v9396_v47  ;;  %v9397_v5 = vmul.f32 %v15735_v51, %v9314_v48  ;;  %v9318_v37 = vadd.f32 %v9317_v8, %v9125_v46  ;;  %9845 = vmatprep.mubr.bf16.mxu0 %v9569_v34  ;;  %v9535_v62 = vmax.f32 %v9471_v44, 0.0 }
 0x46b   : > { %v9319_v14 = vpop.f32.mrf.mxu1  ;;  %9846 = vmatmul.mubr.bf16.gmra.mxu0 %v9568_v55 }
 0x46c   : > { %v9536_v25 = vmax.f32 %v9472_v32, 0.0  ;;  %v9473_v24 = vadd.f32 %v15749_v4, %v9397_v5  ;;  %v9320_v45 = vadd.f32 %v9319_v14, %v9127_v2  ;;  %v9398_v59 = vmul.f32 %v15725_v19, %v9318_v37 }
 0x46d   : > { %v9321_v15 = vpop.f32.mrf.mxu1 }
 0x46e   : > { %v9570_v39 = vpack.c.bf16 %v9536_v25, %v9534_v56  ;;  %v9537_v38 = vmax.f32 %v9473_v24, 0.0  ;;  %v9399_v42 = vmul.f32 %v15735_v51, %v9320_v45  ;;  %v9322_v7 = vadd.f32 %v9321_v15, %v9129_v60 }
 0x46f   : > { %v9323_v17 = vpop.f32.mrf.mxu1  ;;  %v9474_v50 = vadd.f32 %v15741_v20, %v9398_v59 }
 0x470   : > { %v9324_v30 = vadd.f32 %v9323_v17, %v9131_v52  ;;  %v9571_v36 = vpack.c.bf16 %v9537_v38, %v9535_v62  ;;  %v9400_v28 = vmul.f32 %v15725_v19, %v9322_v7  ;;  %v9475_v40 = vadd.f32 %v15749_v4, %v9399_v42 }
 0x471   : > { %v9538_v0 = vmax.f32 %v9474_v50, 0.0 }
 0x472   : > { %v9401_v1 = vmul.f32 %v15735_v51, %v9324_v30  ;;  %9853 = vmatprep.mubr.bf16.mxu0 %v9571_v36  ;;  %v9476_v41 = vadd.f32 %v15741_v20, %v9400_v28  ;;  %v9539_v22 = vmax.f32 %v9475_v40, 0.0  ;;  %v16038_v51 = vld [vmem:[%s16120_s8] ss:$0 sm:$0xff] }
 0x473   : > { %9854 = vmatmul.mubr.bf16.gmra.mxu0 %v9570_v39 }
 0x474   : > { %v9477_v16 = vadd.f32 %v15749_v4, %v9401_v1  ;;  %v9540_v6 = vmax.f32 %v9476_v41, 0.0 }
 0x476   : > { %v9541_v23 = vmax.f32 %v9477_v16, 0.0  ;;  %v9572_v11 = vpack.c.bf16 %v9540_v6, %v9538_v0 }
 0x478   : > { %v9573_v12 = vpack.c.bf16 %v9541_v23, %v9539_v22 }
 0x47a   : > { %9861 = vmatprep.mubr.bf16.mxu0 %v9573_v12 }
 0x47b   : > { %9862 = vmatmul.mubr.bf16.gmra.mxu0 %v9572_v11 }
 0x4c3   : > { %v10723_v19 = vpop.f32.mrf.mxu0 }
 0x4c5   : > { %v10724_v29 = vpop.f32.mrf.mxu0 }
 0x4c6   : > { %v10725_v20 = vadd.f32 %v10724_v29, %v10723_v19 }
 0x4c7   : > { %v10726_v4 = vpop.f32.mrf.mxu0 }
 0x4c8   : > { %v9744_v3 = vadd.f32 %v10725_v20, %v16038_v51 }
 0x4c9   : > { %v10727_v13 = vpop.f32.mrf.mxu0 }
 0x4ca   : > { %9870 = vst [vmem:[%s16043_s11] sm:$0xff] %v9744_v3  ;;  %v10728_v49 = vadd.f32 %v10727_v13, %v10726_v4 }
 0x4cb   : > { %v10729_v63 = vpop.f32.mrf.mxu0 }
 0x4cc   : > { %v9747_v26 = vadd.f32 %v10728_v49, %v16038_v51 }
 0x4cd   : > { %v10730_v27 = vpop.f32.mrf.mxu0 }
 0x4ce   : > { %9871 = vst [vmem:[%s16043_s11 + $0x8] sm:$0xff] %v9747_v26  ;;  %v10731_v43 = vadd.f32 %v10730_v27, %v10729_v63 }
 0x4cf   : > { %v10732_v53 = vpop.f32.mrf.mxu0 }
 0x4d0   : > { %v9752_v35 = vadd.f32 %v10731_v43, %v16038_v51 }
 0x4d1   : > { %v10733_v18 = vpop.f32.mrf.mxu0 }
 0x4d2   : > { %9872 = vst [vmem:[%s16043_s11 + $0x10] sm:$0xff] %v9752_v35  ;;  %v10734_v9 = vadd.f32 %v10733_v18, %v10732_v53 }
 0x4d3   : > { %v10735_v61 = vpop.f32.mrf.mxu0 }
 0x4d4   : > { %v9755_v55 = vadd.f32 %v10734_v9, %v16038_v51 }
 0x4d5   : > { %v10736_v54 = vpop.f32.mrf.mxu0 }
 0x4d6   : > { %9873 = vst [vmem:[%s16043_s11 + $0x18] sm:$0xff] %v9755_v55  ;;  %v10737_v58 = vadd.f32 %v10736_v54, %v10735_v61 }
 0x4d7   : > { %v10738_v46 = vpop.f32.mrf.mxu0 }
 0x4d8   : > { %v9760_v31 = vadd.f32 %v10737_v58, %v16038_v51 }
 0x4d9   : > { %v10739_v47 = vpop.f32.mrf.mxu0 }
 0x4da   : > { %9874 = vst [vmem:[%s16043_s11 + $0x20] sm:$0xff] %v9760_v31  ;;  %v10740_v48 = vadd.f32 %v10739_v47, %v10738_v46 }
 0x4db   : > { %v10741_v21 = vpop.f32.mrf.mxu0 }
 0x4dc   : > { %v9763_v2 = vadd.f32 %v10740_v48, %v16038_v51 }
 0x4dd   : > { %v10742_v8 = vpop.f32.mrf.mxu0 }
 0x4de   : > { %9875 = vst [vmem:[%s16043_s11 + $0x28] sm:$0xff] %v9763_v2  ;;  %v10743_v34 = vadd.f32 %v10742_v8, %v10741_v21 }
 0x4df   : > { %v10744_v57 = vpop.f32.mrf.mxu0 }
 0x4e0   : > { %v9768_v44 = vadd.f32 %v10743_v34, %v16038_v51 }
 0x4e1   : > { %v10745_v32 = vpop.f32.mrf.mxu0 }
 0x4e2   : > { %9876 = vst [vmem:[%s16043_s11 + $0x30] sm:$0xff] %v9768_v44  ;;  %v10746_v5 = vadd.f32 %v10745_v32, %v10744_v57 }
 0x4e3   : > { %v10747_v37 = vpop.f32.mrf.mxu0 }
 0x4e4   : > { %v9771_v14 = vadd.f32 %v10746_v5, %v16038_v51 }
 0x4e5   : > { %v10748_v56 = vpop.f32.mrf.mxu0 }
 0x4e6   : > { %9877 = vst [vmem:[%s16043_s11 + $0x38] sm:$0xff] %v9771_v14  ;;  %v10749_v25 = vadd.f32 %v10748_v56, %v10747_v37 }
 0x4e7   : > { %v10750_v24 = vpop.f32.mrf.mxu0 }
 0x4e8   : > { %v9776_v45 = vadd.f32 %v10749_v25, %v16038_v51 }
 0x4e9   : > { %v10751_v33 = vpop.f32.mrf.mxu0 }
 0x4ea   : > { %9878 = vst [vmem:[%s16043_s11 + $0x40] sm:$0xff] %v9776_v45  ;;  %v10752_v60 = vadd.f32 %v10751_v33, %v10750_v24 }
 0x4eb   : > { %v10753_v10 = vpop.f32.mrf.mxu0 }
 0x4ec   : > { %v9779_v52 = vadd.f32 %v10752_v60, %v16038_v51 }
 0x4ed   : > { %v10754_v59 = vpop.f32.mrf.mxu0 }
 0x4ee   : > { %9879 = vst [vmem:[%s16043_s11 + $0x48] sm:$0xff] %v9779_v52  ;;  %v10755_v15 = vadd.f32 %v10754_v59, %v10753_v10 }
 0x4ef   : > { %v10756_v62 = vpop.f32.mrf.mxu0 }
 0x4f0   : > { %v9784_v39 = vadd.f32 %v10755_v15, %v16038_v51 }
 0x4f1   : > { %v10757_v38 = vpop.f32.mrf.mxu0 }
 0x4f2   : > { %9880 = vst [vmem:[%s16043_s11 + $0x50] sm:$0xff] %v9784_v39  ;;  %v10758_v42 = vadd.f32 %v10757_v38, %v10756_v62 }
 0x4f3   : > { %v10759_v7 = vpop.f32.mrf.mxu0 }
 0x4f4   : > { %v9787_v17 = vadd.f32 %v10758_v42, %v16038_v51 }
 0x4f5   : > { %v10760_v30 = vpop.f32.mrf.mxu0 }
 0x4f6   : > { %9881 = vst [vmem:[%s16043_s11 + $0x58] sm:$0xff] %v9787_v17  ;;  %v10761_v36 = vadd.f32 %v10760_v30, %v10759_v7 }
 0x4f7   : > { %v10762_v50 = vpop.f32.mrf.mxu0 }
 0x4f8   : > { %v9792_v28 = vadd.f32 %v10761_v36, %v16038_v51 }
 0x4f9   : > { %v10763_v40 = vpop.f32.mrf.mxu0 }
 0x4fa   : > { %9882 = vst [vmem:[%s16043_s11 + $0x60] sm:$0xff] %v9792_v28  ;;  %v10764_v1 = vadd.f32 %v10763_v40, %v10762_v50 }
 0x4fb   : > { %v10765_v41 = vpop.f32.mrf.mxu0 }
 0x4fc   : > { %v9795_v16 = vadd.f32 %v10764_v1, %v16038_v51 }
 0x4fd   : > { %v10766_v0 = vpop.f32.mrf.mxu0 }
 0x4fe   : > { %9883 = vst [vmem:[%s16043_s11 + $0x68] sm:$0xff] %v9795_v16  ;;  %v10767_v6 = vadd.f32 %v10766_v0, %v10765_v41 }
 0x4ff   : > { %v10768_v22 = vpop.f32.mrf.mxu0 }
 0x500   : > { %v9800_v23 = vadd.f32 %v10767_v6, %v16038_v51 }
 0x501   : > { %v10769_v11 = vpop.f32.mrf.mxu0 }
 0x502   : > { %9884 = vst [vmem:[%s16043_s11 + $0x70] sm:$0xff] %v9800_v23  ;;  %v10770_v12 = vadd.f32 %v10769_v11, %v10768_v22 }
 0x503   : > { %v10771_v19 = vpop.f32.mrf.mxu0 }
 0x504   : > { %v9803_v29 = vadd.f32 %v10770_v12, %v16038_v51 }
 0x505   : > { %v10772_v20 = vpop.f32.mrf.mxu0 }
 0x506   : > { %9885 = vst [vmem:[%s16043_s11 + $0x78] sm:$0xff] %v9803_v29  ;;  %v10773_v4 = vadd.f32 %v10772_v20, %v10771_v19 }
 0x507   : > { %v10774_v3 = vpop.f32.mrf.mxu0 }
 0x508   : > { %v9808_v13 = vadd.f32 %v10773_v4, %v16038_v51 }
 0x509   : > { %v10775_v49 = vpop.f32.mrf.mxu0 }
 0x50a   : > { %9886 = vst [vmem:[%s16043_s11 + $0x80] sm:$0xff] %v9808_v13  ;;  %v10776_v63 = vadd.f32 %v10775_v49, %v10774_v3 }
 0x50b   : > { %v10777_v26 = vpop.f32.mrf.mxu0 }
 0x50c   : > { %v9811_v27 = vadd.f32 %v10776_v63, %v16038_v51 }
 0x50d   : > { %v10778_v43 = vpop.f32.mrf.mxu0 }
 0x50e   : > { %9887 = vst [vmem:[%s16043_s11 + $0x88] sm:$0xff] %v9811_v27  ;;  %v10779_v53 = vadd.f32 %v10778_v43, %v10777_v26 }
 0x50f   : > { %v10780_v35 = vpop.f32.mrf.mxu0 }
 0x510   : > { %v9816_v18 = vadd.f32 %v10779_v53, %v16038_v51 }
 0x511   : > { %v10781_v9 = vpop.f32.mrf.mxu0 }
 0x512   : > { %9888 = vst [vmem:[%s16043_s11 + $0x90] sm:$0xff] %v9816_v18  ;;  %v10782_v61 = vadd.f32 %v10781_v9, %v10780_v35 }
 0x513   : > { %v10783_v55 = vpop.f32.mrf.mxu0 }
 0x514   : > { %v9819_v54 = vadd.f32 %v10782_v61, %v16038_v51 }
 0x515   : > { %v10784_v58 = vpop.f32.mrf.mxu0 }
 0x516   : > { %9889 = vst [vmem:[%s16043_s11 + $0x98] sm:$0xff] %v9819_v54  ;;  %v10785_v46 = vadd.f32 %v10784_v58, %v10783_v55 }
 0x517   : > { %v10786_v31 = vpop.f32.mrf.mxu0 }
 0x518   : > { %v9824_v47 = vadd.f32 %v10785_v46, %v16038_v51 }
 0x519   : > { %v10787_v48 = vpop.f32.mrf.mxu0 }
 0x51a   : > { %9890 = vst [vmem:[%s16043_s11 + $0xa0] sm:$0xff] %v9824_v47  ;;  %v10788_v21 = vadd.f32 %v10787_v48, %v10786_v31 }
 0x51b   : > { %v10789_v2 = vpop.f32.mrf.mxu0 }
 0x51c   : > { %v9827_v8 = vadd.f32 %v10788_v21, %v16038_v51 }
 0x51d   : > { %v10790_v34 = vpop.f32.mrf.mxu0 }
 0x51e   : > { %9891 = vst [vmem:[%s16043_s11 + $0xa8] sm:$0xff] %v9827_v8  ;;  %v10791_v57 = vadd.f32 %v10790_v34, %v10789_v2 }
 0x51f   : > { %v10792_v44 = vpop.f32.mrf.mxu0 }
 0x520   : > { %v9832_v32 = vadd.f32 %v10791_v57, %v16038_v51 }
 0x521   : > { %v10793_v5 = vpop.f32.mrf.mxu0 }
 0x522   : > { %9892 = vst [vmem:[%s16043_s11 + $0xb0] sm:$0xff] %v9832_v32  ;;  %v10794_v37 = vadd.f32 %v10793_v5, %v10792_v44 }
 0x523   : > { %v10795_v14 = vpop.f32.mrf.mxu0 }
 0x524   : > { %v9835_v56 = vadd.f32 %v10794_v37, %v16038_v51 }
 0x525   : > { %v10796_v25 = vpop.f32.mrf.mxu0 }
 0x526   : > { %9893 = vst [vmem:[%s16043_s11 + $0xb8] sm:$0xff] %v9835_v56  ;;  %v10797_v24 = vadd.f32 %v10796_v25, %v10795_v14 }
 0x527   : > { %v10798_v45 = vpop.f32.mrf.mxu0 }
 0x528   : > { %v9840_v33 = vadd.f32 %v10797_v24, %v16038_v51 }
 0x529   : > { %v10799_v60 = vpop.f32.mrf.mxu0 }
 0x52a   : > { %9894 = vst [vmem:[%s16043_s11 + $0xc0] sm:$0xff] %v9840_v33  ;;  %v10800_v10 = vadd.f32 %v10799_v60, %v10798_v45 }
 0x52b   : > { %v10801_v52 = vpop.f32.mrf.mxu0 }
 0x52c   : > { %v9843_v59 = vadd.f32 %v10800_v10, %v16038_v51 }
 0x52d   : > { %v10802_v15 = vpop.f32.mrf.mxu0 }
 0x52e   : > { %9895 = vst [vmem:[%s16043_s11 + $0xc8] sm:$0xff] %v9843_v59  ;;  %v10803_v62 = vadd.f32 %v10802_v15, %v10801_v52 }
 0x52f   : > { %v10804_v39 = vpop.f32.mrf.mxu0 }
 0x530   : > { %v9848_v38 = vadd.f32 %v10803_v62, %v16038_v51 }
 0x531   : > { %v10805_v42 = vpop.f32.mrf.mxu0 }
 0x532   : > { %9896 = vst [vmem:[%s16043_s11 + $0xd0] sm:$0xff] %v9848_v38  ;;  %v10806_v7 = vadd.f32 %v10805_v42, %v10804_v39 }
 0x533   : > { %v10807_v17 = vpop.f32.mrf.mxu0 }
 0x534   : > { %v9851_v30 = vadd.f32 %v10806_v7, %v16038_v51 }
 0x535   : > { %v10808_v36 = vpop.f32.mrf.mxu0 }
 0x536   : > { %9897 = vst [vmem:[%s16043_s11 + $0xd8] sm:$0xff] %v9851_v30  ;;  %v10809_v50 = vadd.f32 %v10808_v36, %v10807_v17 }
 0x537   : > { %v10810_v28 = vpop.f32.mrf.mxu0 }
 0x538   : > { %v9856_v40 = vadd.f32 %v10809_v50, %v16038_v51 }
 0x539   : > { %v10811_v1 = vpop.f32.mrf.mxu0 }
 0x53a   : > { %9898 = vst [vmem:[%s16043_s11 + $0xe0] sm:$0xff] %v9856_v40  ;;  %v10812_v41 = vadd.f32 %v10811_v1, %v10810_v28 }
 0x53b   : > { %v10813_v16 = vpop.f32.mrf.mxu0 }
 0x53c   : > { %v9859_v0 = vadd.f32 %v10812_v41, %v16038_v51 }
 0x53d   : > { %v10814_v6 = vpop.f32.mrf.mxu0 }
 0x53e   : > { %9899 = vst [vmem:[%s16043_s11 + $0xe8] sm:$0xff] %v9859_v0  ;;  %v10815_v22 = vadd.f32 %v10814_v6, %v10813_v16 }
 0x53f   : > { %v10816_v23 = vpop.f32.mrf.mxu0 }
 0x540   : > { %v9864_v11 = vadd.f32 %v10815_v22, %v16038_v51 }
 0x541   : > { %v10817_v12 = vpop.f32.mrf.mxu0 }
 0x542   : > { %9900 = vst [vmem:[%s16043_s11 + $0xf0] sm:$0xff] %v9864_v11  ;;  %v10818_v19 = vadd.f32 %v10817_v12, %v10816_v23 }
 0x544   : > { %v9867_v29 = vadd.f32 %v10818_v19, %v16038_v51 }
 0x546   : > { %9901 = vst [vmem:[%s16043_s11 + $0xf8] sm:$0xff] %v9867_v29 }
 0x547 PF: > { %s19_s30 = sadd.s32 1, %s11381_s30  }
 0x548   : > { %p16_p4 = scmp.ge.s32.totalorder %s19_s30, 4  }
 0x54a   :  { %18 = sbr.rel (!%p16_p4) target bundleno = 1 (0x1), region = 88 }

</bundles_post_ra>
